<compile_context>
chip_gen: v5e
topology: v5e:2x2
jax: 0.10.0
libtpu: 0.0.40
codegen_flags: <defaults>
</compile_context>

<pallas_src>
import jax
import jax.numpy as jnp
from jax import lax
from jax.experimental import pallas as pl
from jax.experimental.pallas import tpu as pltpu

EPS = 1e-5
_VMEM_LIMIT = 48 * 1024 * 1024   # < 64 MiB physical per-TC on v7x -> headroom.


# ----------------------------- Pallas kernels ------------------------------

def _accumulate_taps(xp, w_ref, h, w, cin, cout):
    """9 accumulated MXU dots over shifted (h, w, cin) views of the padded
    VMEM scratch `xp` ((h+2, w+2, cin), bf16). Returns (h*w, cout) f32."""
    acc = jnp.zeros((h * w, cout), jnp.float32)
    for ky in range(3):
        for kx in range(3):
            xs = xp[ky:ky + h, kx:kx + w, :].reshape(h * w, cin)
            acc = acc + jnp.dot(xs, w_ref[ky * 3 + kx],
                                preferred_element_type=jnp.float32)
    return acc


def _emit_conv_outputs(acc, z_ref, st_ref):
    """Store bf16 conv output + (sum, sum-of-squares) BN partial stats."""
    z_ref[0] = acc.astype(z_ref.dtype)
    ssum = jnp.sum(acc, axis=0, keepdims=True)            # (1, cout)
    ssq = jnp.sum(acc * acc, axis=0, keepdims=True)        # (1, cout)
    st_ref[0] = jnp.concatenate([ssum, ssq], axis=0)       # (2, cout)


def _make_conv_stats_kernel(h, w):
    """Stage 1: in-VMEM zero pad -> conv3x3 -> bf16 z1 + BN1 partial stats."""
    def kernel(x_ref, w_ref, z_ref, st_ref, xp):
        # x_ref : (1, h, w, cin) bf16    w_ref : (9, cin, cout) bf16 (resident)
        # z_ref : (1, h*w, cout) bf16    st_ref: (1, 2, cout) f32
        # xp    : VMEM scratch (h+2, w+2, cin) bf16
        cin = x_ref.shape[3]
        cout = w_ref.shape[2]
        xp[...] = jnp.zeros_like(xp)                 # zero padding ring (VMEM)
        xp[1:h + 1, 1:w + 1, :] = x_ref[0]
        acc = _accumulate_taps(xp, w_ref, h, w, cin, cout)
        _emit_conv_outputs(acc, z_ref, st_ref)
    return kernel


def _make_bn_relu_conv_stats_kernel(h, w):
    """Stage 2 (fused): BN1 apply + ReLU on the VMEM tile, in-VMEM zero pad,
    conv3x3, bf16 z2 + BN2 partial stats."""
    def kernel(z1_ref, s_ref, b_ref, w_ref, z_ref, st_ref, xp):
        # z1_ref: (1, h*w, cin) bf16     s_ref/b_ref: (1, cin) f32 (resident)
        # w_ref : (9, cin, cout) bf16    z_ref: (1, h*w, cout) bf16
        # st_ref: (1, 2, cout) f32       xp: VMEM scratch (h+2, w+2, cin) bf16
        cin = z1_ref.shape[2]
        cout = w_ref.shape[2]
        y = jnp.maximum(z1_ref[0].astype(jnp.float32) * s_ref[...] + b_ref[...],
                        0.0)                                  # (h*w, cin) f32
        xp[...] = jnp.zeros_like(xp)
        xp[1:h + 1, 1:w + 1, :] = y.astype(xp.dtype).reshape(h, w, cin)
        acc = _accumulate_taps(xp, w_ref, h, w, cin, cout)
        _emit_conv_outputs(acc, z_ref, st_ref)
    return kernel


def _bn_add_relu_kernel(z_ref, s_ref, b_ref, r_ref, o_ref):
    """Pass B: y = z*scale + shift + residual ; ReLU."""
    y = (z_ref[...].astype(jnp.float32) * s_ref[...] + b_ref[...]
         + r_ref[...].astype(jnp.float32))
    o_ref[...] = jnp.maximum(y, 0.0).astype(o_ref.dtype)


# ------------------------------- wrappers -----------------------------------

def _reshape_weight(w_oihw):
    """(Cout, Cin, 3, 3) -> (9, Cin, Cout) bf16, tap index = ky*3 + kx."""
    cout, cin = w_oihw.shape[0], w_oihw.shape[1]
    w = jnp.transpose(w_oihw, (2, 3, 1, 0)).reshape(9, cin, cout)
    return w.astype(jnp.bfloat16)


def _bn_finalize(stats_sum, gamma, beta, count):
    """(2, C) global (sum, sumsq) -> (1, C) scale/shift. rsqrt computed once."""
    mean = stats_sum[0] / count
    var = stats_sum[1] / count - mean * mean        # biased (training-mode) var
    inv = lax.rsqrt(var + EPS)
    scale = (gamma * inv).astype(jnp.float32).reshape(1, -1)
    shift = (beta - mean * gamma * inv).astype(jnp.float32).reshape(1, -1)
    return scale, shift


def _compiler_params():
    return pltpu.CompilerParams(dimension_semantics=("parallel",),
                                vmem_limit_bytes=_VMEM_LIMIT)


def resnet_block_forward(x_nchw, params):
    """ResNetBlock_new forward (downsample=None). Input/output: NCHW f32."""
    n, c, h, w = x_nchw.shape
    m = n * h * w

    # NCHW -> NHWC bf16, done once; reused as conv1 input AND as the residual.
    x_nhwc = jnp.transpose(x_nchw, (0, 2, 3, 1)).astype(jnp.bfloat16)

    w1 = _reshape_weight(params["w1"])              # (9, c, cout) bf16
    w2 = _reshape_weight(params["w2"])
    cout = w1.shape[-1]

    # ---------------- pass A1: conv1 + BN1 partial stats ---------------------
    flops1 = 2 * m * 9 * c * cout
    bytes1 = (x_nhwc.size * 2 + w1.size * 2 + m * cout * 2 + n * 2 * cout * 4)
    z1, st1 = pl.pallas_call(
        _make_conv_stats_kernel(h, w),
        grid=(n,),
        in_specs=[
            pl.BlockSpec((1, h, w, c), lambda i: (i, 0, 0, 0)),
            pl.BlockSpec((9, c, cout), lambda i: (0, 0, 0)),      # resident
        ],
        out_specs=(
            pl.BlockSpec((1, h * w, cout), lambda i: (i, 0, 0)),
            pl.BlockSpec((1, 2, cout), lambda i: (i, 0, 0)),
        ),
        out_shape=(
            jax.ShapeDtypeStruct((n, h * w, cout), jnp.bfloat16),
            jax.ShapeDtypeStruct((n, 2, cout), jnp.float32),
        ),
        scratch_shapes=[pltpu.VMEM((h + 2, w + 2, c), jnp.bfloat16)],
        compiler_params=_compiler_params(),
        cost_estimate=pl.CostEstimate(flops=int(flops1), transcendentals=0,
                                      bytes_accessed=int(bytes1)),
    )(x_nhwc, w1)

    scale1, shift1 = _bn_finalize(jnp.sum(st1, axis=0),
                                  params["gamma1"], params["beta1"], m)

    # -------- pass A2 (fused): BN1 apply + ReLU + conv2 + BN2 stats ----------
    flops2 = 2 * m * 9 * cout * cout + 3 * m * cout
    bytes2 = (z1.size * 2 + w2.size * 2 + 4 * cout * 4
              + m * cout * 2 + n * 2 * cout * 4)
    z2, st2 = pl.pallas_call(
        _make_bn_relu_conv_stats_kernel(h, w),
        grid=(n,),
        in_specs=[
            pl.BlockSpec((1, h * w, cout), lambda i: (i, 0, 0)),
            pl.BlockSpec((1, cout), lambda i: (0, 0)),            # resident
            pl.BlockSpec((1, cout), lambda i: (0, 0)),            # resident
            pl.BlockSpec((9, cout, cout), lambda i: (0, 0, 0)),   # resident
        ],
        out_specs=(
            pl.BlockSpec((1, h * w, cout), lambda i: (i, 0, 0)),
            pl.BlockSpec((1, 2, cout), lambda i: (i, 0, 0)),
        ),
        out_shape=(
            jax.ShapeDtypeStruct((n, h * w, cout), jnp.bfloat16),
            jax.ShapeDtypeStruct((n, 2, cout), jnp.float32),
        ),
        scratch_shapes=[pltpu.VMEM((h + 2, w + 2, cout), jnp.bfloat16)],
        compiler_params=_compiler_params(),
        cost_estimate=pl.CostEstimate(flops=int(flops2), transcendentals=0,
                                      bytes_accessed=int(bytes2)),
    )(z1, scale1, shift1, w2)

    scale2, shift2 = _bn_finalize(jnp.sum(st2, axis=0),
                                  params["gamma2"], params["beta2"], m)

    # -------------- pass B: BN2 apply + residual + ReLU ----------------------
    z2_rows = z2.reshape(m, cout)                    # bf16
    res_rows = x_nhwc.reshape(m, c)                  # bf16, reused as residual

    if cout < 128 and 128 % cout == 0 and (m * cout) % 128 == 0:
        # Lane-dense repack: 128-wide rows, scale/shift tiled to 128 lanes.
        rep = 128 // cout
        r_rows = (m * cout) // 128
        z2d = z2_rows.reshape(r_rows, 128)
        res2d = res_rows.reshape(r_rows, 128)
        s2d = jnp.tile(scale2, (1, rep))             # (1, 128)
        b2d = jnp.tile(shift2, (1, rep))
    else:
        z2d, res2d, s2d, b2d = z2_rows, res_rows, scale2, shift2

    R, ccols = z2d.shape
    tm = min(512, R)                                 # fixed large tile + cdiv
    grid_b = (pl.cdiv(R, tm),)
    bytes_b = z2d.size * 2 + res2d.size * 2 + 2 * ccols * 4 + R * ccols * 4
    out2d = pl.pallas_call(
        _bn_add_relu_kernel,
        grid=grid_b,
        in_specs=[
            pl.BlockSpec((tm, ccols), lambda i: (i, 0)),
            pl.BlockSpec((1, ccols), lambda i: (0, 0)),           # resident
            pl.BlockSpec((1, ccols), lambda i: (0, 0)),           # resident
            pl.BlockSpec((tm, ccols), lambda i: (i, 0)),
        ],
        out_specs=pl.BlockSpec((tm, ccols), lambda i: (i, 0)),
        out_shape=jax.ShapeDtypeStruct((R, ccols), jnp.float32),
        compiler_params=_compiler_params(),
        cost_estimate=pl.CostEstimate(flops=int(5 * R * ccols), transcendentals=0,
                                      bytes_accessed=int(bytes_b)),
    )(z2d, s2d, b2d, res2d)

    out_nhwc = out2d.reshape(n, h, w, cout)
    return jnp.transpose(out_nhwc, (0, 3, 1, 2))     # back to NCHW


# --------------------------- pure-JAX reference ------------------------------

def _bn_train(z_nchw, gamma, beta):
    mean = jnp.mean(z_nchw, axis=(0, 2, 3), keepdims=True)
    var = jnp.mean((z_nchw - mean) ** 2, axis=(0, 2, 3), keepdims=True)
    return (z_nchw - mean) * lax.rsqrt(var + EPS) * gamma.reshape(1, -1, 1, 1) \
        + beta.reshape(1, -1, 1, 1)


def reference_forward(x, params):
    dn = ("NCHW", "OIHW", "NCHW")
    out = lax.conv_general_dilated(x, params["w1"], (1, 1), [(1, 1), (1, 1)],
                                   dimension_numbers=dn)
    out = jnp.maximum(_bn_train(out, params["gamma1"], params["beta1"]), 0.0)
    out = lax.conv_general_dilated(out, params["w2"], (1, 1), [(1, 1), (1, 1)],
                                   dimension_numbers=dn)
    out = _bn_train(out, params["gamma2"], params["beta2"])
    return jnp.maximum(out + x, 0.0)


# ---------------------------------- main -------------------------------------

if __name__ == "__main__":
    N, C, H, W = 2, 4, 16, 16          # in_channel == out_channel (downsample=None)
    key = jax.random.PRNGKey(0)
    k1, k2, k3, k4, k5, k6, kx = jax.random.split(key, 7)

    params = {
        "w1": 0.1 * jax.random.normal(k1, (C, C, 3, 3), jnp.float32),
        "w2": 0.1 * jax.random.normal(k2, (C, C, 3, 3), jnp.float32),
        "gamma1": 1.0 + 0.1 * jax.random.normal(k3, (C,), jnp.float32),
        "beta1": 0.1 * jax.random.normal(k4, (C,), jnp.float32),
        "gamma2": 1.0 + 0.1 * jax.random.normal(k5, (C,), jnp.float32),
        "beta2": 0.1 * jax.random.normal(k6, (C,), jnp.float32),
    }
    x = jax.random.normal(kx, (N, C, H, W), jnp.float32)

    out = jax.jit(resnet_block_forward)(x, params)
    out = jax.block_until_ready(out)

    ref = reference_forward(x, params)
    assert out.shape == (N, C, H, W)
    # bf16 MXU operands + bf16 z1/z2/residual intermediates (f32 accumulation)
    # vs. an all-f32 reference -> allow a few e-2 of absolute/relative slack.
    max_err = float(jnp.max(jnp.abs(out - ref)))
    assert jnp.allclose(out, ref, rtol=4e-2, atol=4e-2), f"mismatch: {max_err}"

    print("KERNEL_OK")
</pallas_src>

<mosaic_0001>
module attributes {stable_mosaic.version = 11 : i64} {
  func.func @kernel(%arg0: i32, %arg1: memref<1x16x16x4xbf16, #tpu.memory_space<vmem>>, %arg2: memref<9x4x4xbf16, #tpu.memory_space<vmem>>, %arg3: memref<1x256x4xbf16, #tpu.memory_space<vmem>>, %arg4: memref<1x2x4xf32, #tpu.memory_space<vmem>>, %arg5: memref<18x18x4xbf16, #tpu.memory_space<vmem>>) attributes {dimension_semantics = [#tpu.dimension_semantics<parallel>], iteration_bounds = array<i64: 2>, scalar_prefetch = 0 : i64, scratch_operands = 1 : i64, tpu.core_type = #tpu.core_type<tc>, window_params = [{transform_indices = @transform_0, window_bounds = array<i64: 1, 16, 16, 4>}, {pipeline_mode = #tpu.pipeline_mode<synchronous>, transform_indices = @transform_1, window_bounds = array<i64: 9, 4, 4>}, {transform_indices = @transform_2, window_bounds = array<i64: 1, 256, 4>}, {transform_indices = @transform_3, window_bounds = array<i64: 1, 2, 4>}]} {
    %cst = arith.constant 0.000000e+00 : bf16
    %0 = vector.broadcast %cst : bf16 to vector<18x18x4xbf16>
    %c0 = arith.constant 0 : index
    %c0_0 = arith.constant 0 : index
    %c0_1 = arith.constant 0 : index
    %1 = vector.load %arg5[%c0, %c0_0, %c0_1] : memref<18x18x4xbf16, #tpu.memory_space<vmem>>, vector<18x18x4xbf16>
    tpu.vector_store %arg5[%c0, %c0_0, %c0_1], %0 {strides = array<i32>} : memref<18x18x4xbf16, #tpu.memory_space<vmem>>, vector<18x18x4xbf16>,
    %c0_2 = arith.constant 0 : index
    %c0_3 = arith.constant 0 : index
    %c0_4 = arith.constant 0 : index
    %c0_5 = arith.constant 0 : index
    %2 = vector.load %arg1[%c0_2, %c0_3, %c0_4, %c0_5] : memref<1x16x16x4xbf16, #tpu.memory_space<vmem>>, vector<1x16x16x4xbf16>
    %3 = vector.shape_cast %2 : vector<1x16x16x4xbf16> to vector<16x16x4xbf16>
    %c1 = arith.constant 1 : index
    %c1_6 = arith.constant 1 : index
    %c0_7 = arith.constant 0 : index
    %4 = vector.load %arg5[%c1, %c1_6, %c0_7] : memref<18x18x4xbf16, #tpu.memory_space<vmem>>, vector<16x16x4xbf16>
    tpu.vector_store %arg5[%c1, %c1_6, %c0_7], %3 {strides = array<i32>} : memref<18x18x4xbf16, #tpu.memory_space<vmem>>, vector<16x16x4xbf16>,
    %cst_8 = arith.constant 0.000000e+00 : f32
    %5 = vector.broadcast %cst_8 : f32 to vector<256x4xf32>
    %c0_9 = arith.constant 0 : index
    %c0_10 = arith.constant 0 : index
    %c0_11 = arith.constant 0 : index
    %6 = vector.load %arg5[%c0_9, %c0_10, %c0_11] : memref<18x18x4xbf16, #tpu.memory_space<vmem>>, vector<16x16x4xbf16>
    %7 = vector.shape_cast %6 : vector<16x16x4xbf16> to vector<256x4xbf16>
    %c0_12 = arith.constant 0 : index
    %c0_13 = arith.constant 0 : index
    %c0_14 = arith.constant 0 : index
    %8 = vector.load %arg2[%c0_12, %c0_13, %c0_14] : memref<9x4x4xbf16, #tpu.memory_space<vmem>>, vector<1x4x4xbf16>
    %9 = vector.shape_cast %8 : vector<1x4x4xbf16> to vector<4x4xbf16>
    %cst_15 = arith.constant dense<0.000000e+00> : vector<256x4xf32>
    %10 = tpu.matmul %7, %9, %cst_15 {dimension_numbers = #tpu.dot_dimension_numbers<[1], [0], [0], [1], [0, 0, 1, 1], [], []>} : vector<256x4xbf16>, vector<4x4xbf16>, vector<256x4xf32> -> vector<256x4xf32>
    %11 = arith.addf %5, %10 : vector<256x4xf32>
    %c0_16 = arith.constant 0 : index
    %c1_17 = arith.constant 1 : index
    %c0_18 = arith.constant 0 : index
    %12 = vector.load %arg5[%c0_16, %c1_17, %c0_18] : memref<18x18x4xbf16, #tpu.memory_space<vmem>>, vector<16x16x4xbf16>
    %13 = vector.shape_cast %12 : vector<16x16x4xbf16> to vector<256x4xbf16>
    %c1_19 = arith.constant 1 : index
    %c0_20 = arith.constant 0 : index
    %c0_21 = arith.constant 0 : index
    %14 = vector.load %arg2[%c1_19, %c0_20, %c0_21] : memref<9x4x4xbf16, #tpu.memory_space<vmem>>, vector<1x4x4xbf16>
    %15 = vector.shape_cast %14 : vector<1x4x4xbf16> to vector<4x4xbf16>
    %cst_22 = arith.constant dense<0.000000e+00> : vector<256x4xf32>
    %16 = tpu.matmul %13, %15, %cst_22 {dimension_numbers = #tpu.dot_dimension_numbers<[1], [0], [0], [1], [0, 0, 1, 1], [], []>} : vector<256x4xbf16>, vector<4x4xbf16>, vector<256x4xf32> -> vector<256x4xf32>
    %17 = arith.addf %11, %16 : vector<256x4xf32>
    %c0_23 = arith.constant 0 : index
    %c2 = arith.constant 2 : index
    %c0_24 = arith.constant 0 : index
    %18 = vector.load %arg5[%c0_23, %c2, %c0_24] : memref<18x18x4xbf16, #tpu.memory_space<vmem>>, vector<16x16x4xbf16>
    %19 = vector.shape_cast %18 : vector<16x16x4xbf16> to vector<256x4xbf16>
    %c2_25 = arith.constant 2 : index
    %c0_26 = arith.constant 0 : index
    %c0_27 = arith.constant 0 : index
    %20 = vector.load %arg2[%c2_25, %c0_26, %c0_27] : memref<9x4x4xbf16, #tpu.memory_space<vmem>>, vector<1x4x4xbf16>
    %21 = vector.shape_cast %20 : vector<1x4x4xbf16> to vector<4x4xbf16>
    %cst_28 = arith.constant dense<0.000000e+00> : vector<256x4xf32>
    %22 = tpu.matmul %19, %21, %cst_28 {dimension_numbers = #tpu.dot_dimension_numbers<[1], [0], [0], [1], [0, 0, 1, 1], [], []>} : vector<256x4xbf16>, vector<4x4xbf16>, vector<256x4xf32> -> vector<256x4xf32>
    %23 = arith.addf %17, %22 : vector<256x4xf32>
    %c1_29 = arith.constant 1 : index
    %c0_30 = arith.constant 0 : index
    %c0_31 = arith.constant 0 : index
    %24 = vector.load %arg5[%c1_29, %c0_30, %c0_31] : memref<18x18x4xbf16, #tpu.memory_space<vmem>>, vector<16x16x4xbf16>
    %25 = vector.shape_cast %24 : vector<16x16x4xbf16> to vector<256x4xbf16>
    %c3 = arith.constant 3 : index
    %c0_32 = arith.constant 0 : index
    %c0_33 = arith.constant 0 : index
    %26 = vector.load %arg2[%c3, %c0_32, %c0_33] : memref<9x4x4xbf16, #tpu.memory_space<vmem>>, vector<1x4x4xbf16>
    %27 = vector.shape_cast %26 : vector<1x4x4xbf16> to vector<4x4xbf16>
    %cst_34 = arith.constant dense<0.000000e+00> : vector<256x4xf32>
    %28 = tpu.matmul %25, %27, %cst_34 {dimension_numbers = #tpu.dot_dimension_numbers<[1], [0], [0], [1], [0, 0, 1, 1], [], []>} : vector<256x4xbf16>, vector<4x4xbf16>, vector<256x4xf32> -> vector<256x4xf32>
    %29 = arith.addf %23, %28 : vector<256x4xf32>
    %c1_35 = arith.constant 1 : index
    %c1_36 = arith.constant 1 : index
    %c0_37 = arith.constant 0 : index
    %30 = vector.load %arg5[%c1_35, %c1_36, %c0_37] : memref<18x18x4xbf16, #tpu.memory_space<vmem>>, vector<16x16x4xbf16>
    %31 = vector.shape_cast %30 : vector<16x16x4xbf16> to vector<256x4xbf16>
    %c4 = arith.constant 4 : index
    %c0_38 = arith.constant 0 : index
    %c0_39 = arith.constant 0 : index
    %32 = vector.load %arg2[%c4, %c0_38, %c0_39] : memref<9x4x4xbf16, #tpu.memory_space<vmem>>, vector<1x4x4xbf16>
    %33 = vector.shape_cast %32 : vector<1x4x4xbf16> to vector<4x4xbf16>
    %cst_40 = arith.constant dense<0.000000e+00> : vector<256x4xf32>
    %34 = tpu.matmul %31, %33, %cst_40 {dimension_numbers = #tpu.dot_dimension_numbers<[1], [0], [0], [1], [0, 0, 1, 1], [], []>} : vector<256x4xbf16>, vector<4x4xbf16>, vector<256x4xf32> -> vector<256x4xf32>
    %35 = arith.addf %29, %34 : vector<256x4xf32>
    %c1_41 = arith.constant 1 : index
    %c2_42 = arith.constant 2 : index
    %c0_43 = arith.constant 0 : index
    %36 = vector.load %arg5[%c1_41, %c2_42, %c0_43] : memref<18x18x4xbf16, #tpu.memory_space<vmem>>, vector<16x16x4xbf16>
    %37 = vector.shape_cast %36 : vector<16x16x4xbf16> to vector<256x4xbf16>
    %c5 = arith.constant 5 : index
    %c0_44 = arith.constant 0 : index
    %c0_45 = arith.constant 0 : index
    %38 = vector.load %arg2[%c5, %c0_44, %c0_45] : memref<9x4x4xbf16, #tpu.memory_space<vmem>>, vector<1x4x4xbf16>
    %39 = vector.shape_cast %38 : vector<1x4x4xbf16> to vector<4x4xbf16>
    %cst_46 = arith.constant dense<0.000000e+00> : vector<256x4xf32>
    %40 = tpu.matmul %37, %39, %cst_46 {dimension_numbers = #tpu.dot_dimension_numbers<[1], [0], [0], [1], [0, 0, 1, 1], [], []>} : vector<256x4xbf16>, vector<4x4xbf16>, vector<256x4xf32> -> vector<256x4xf32>
    %41 = arith.addf %35, %40 : vector<256x4xf32>
    %c2_47 = arith.constant 2 : index
    %c0_48 = arith.constant 0 : index
    %c0_49 = arith.constant 0 : index
    %42 = vector.load %arg5[%c2_47, %c0_48, %c0_49] : memref<18x18x4xbf16, #tpu.memory_space<vmem>>, vector<16x16x4xbf16>
    %43 = vector.shape_cast %42 : vector<16x16x4xbf16> to vector<256x4xbf16>
    %c6 = arith.constant 6 : index
    %c0_50 = arith.constant 0 : index
    %c0_51 = arith.constant 0 : index
    %44 = vector.load %arg2[%c6, %c0_50, %c0_51] : memref<9x4x4xbf16, #tpu.memory_space<vmem>>, vector<1x4x4xbf16>
    %45 = vector.shape_cast %44 : vector<1x4x4xbf16> to vector<4x4xbf16>
    %cst_52 = arith.constant dense<0.000000e+00> : vector<256x4xf32>
    %46 = tpu.matmul %43, %45, %cst_52 {dimension_numbers = #tpu.dot_dimension_numbers<[1], [0], [0], [1], [0, 0, 1, 1], [], []>} : vector<256x4xbf16>, vector<4x4xbf16>, vector<256x4xf32> -> vector<256x4xf32>
    %47 = arith.addf %41, %46 : vector<256x4xf32>
    %c2_53 = arith.constant 2 : index
    %c1_54 = arith.constant 1 : index
    %c0_55 = arith.constant 0 : index
    %48 = vector.load %arg5[%c2_53, %c1_54, %c0_55] : memref<18x18x4xbf16, #tpu.memory_space<vmem>>, vector<16x16x4xbf16>
    %49 = vector.shape_cast %48 : vector<16x16x4xbf16> to vector<256x4xbf16>
    %c7 = arith.constant 7 : index
    %c0_56 = arith.constant 0 : index
    %c0_57 = arith.constant 0 : index
    %50 = vector.load %arg2[%c7, %c0_56, %c0_57] : memref<9x4x4xbf16, #tpu.memory_space<vmem>>, vector<1x4x4xbf16>
    %51 = vector.shape_cast %50 : vector<1x4x4xbf16> to vector<4x4xbf16>
    %cst_58 = arith.constant dense<0.000000e+00> : vector<256x4xf32>
    %52 = tpu.matmul %49, %51, %cst_58 {dimension_numbers = #tpu.dot_dimension_numbers<[1], [0], [0], [1], [0, 0, 1, 1], [], []>} : vector<256x4xbf16>, vector<4x4xbf16>, vector<256x4xf32> -> vector<256x4xf32>
    %53 = arith.addf %47, %52 : vector<256x4xf32>
    %c2_59 = arith.constant 2 : index
    %c2_60 = arith.constant 2 : index
    %c0_61 = arith.constant 0 : index
    %54 = vector.load %arg5[%c2_59, %c2_60, %c0_61] : memref<18x18x4xbf16, #tpu.memory_space<vmem>>, vector<16x16x4xbf16>
    %55 = vector.shape_cast %54 : vector<16x16x4xbf16> to vector<256x4xbf16>
    %c8 = arith.constant 8 : index
    %c0_62 = arith.constant 0 : index
    %c0_63 = arith.constant 0 : index
    %56 = vector.load %arg2[%c8, %c0_62, %c0_63] : memref<9x4x4xbf16, #tpu.memory_space<vmem>>, vector<1x4x4xbf16>
    %57 = vector.shape_cast %56 : vector<1x4x4xbf16> to vector<4x4xbf16>
    %cst_64 = arith.constant dense<0.000000e+00> : vector<256x4xf32>
    %58 = tpu.matmul %55, %57, %cst_64 {dimension_numbers = #tpu.dot_dimension_numbers<[1], [0], [0], [1], [0, 0, 1, 1], [], []>} : vector<256x4xbf16>, vector<4x4xbf16>, vector<256x4xf32> -> vector<256x4xf32>
    %59 = arith.addf %53, %58 : vector<256x4xf32>
    %60 = arith.truncf %59 : vector<256x4xf32> to vector<256x4xbf16>
    %c0_65 = arith.constant 0 : index
    %c0_66 = arith.constant 0 : index
    %c0_67 = arith.constant 0 : index
    %61 = vector.load %arg3[%c0_65, %c0_66, %c0_67] : memref<1x256x4xbf16, #tpu.memory_space<vmem>>, vector<1x256x4xbf16>
    %62 = vector.shape_cast %61 : vector<1x256x4xbf16> to vector<256x4xbf16>
    %63 = vector.shape_cast %60 : vector<256x4xbf16> to vector<1x256x4xbf16>
    tpu.vector_store %arg3[%c0_65, %c0_66, %c0_67], %63 {strides = array<i32>} : memref<1x256x4xbf16, #tpu.memory_space<vmem>>, vector<1x256x4xbf16>,
    %cst_68 = arith.constant dense<0.000000e+00> : vector<4xf32>
    %64 = vector.multi_reduction <add>, %59, %cst_68 [0] : vector<256x4xf32> to vector<4xf32>
    %65 = vector.shape_cast %64 : vector<4xf32> to vector<1x4xf32>
    %66 = arith.mulf %59, %59 : vector<256x4xf32>
    %cst_69 = arith.constant dense<0.000000e+00> : vector<4xf32>
    %67 = vector.multi_reduction <add>, %66, %cst_69 [0] : vector<256x4xf32> to vector<4xf32>
    %68 = vector.shape_cast %67 : vector<4xf32> to vector<1x4xf32>
    %69 = tpu.concatenate %65, %68 in 0 : vector<1x4xf32>, vector<1x4xf32> -> vector<2x4xf32>
    %c0_70 = arith.constant 0 : index
    %c0_71 = arith.constant 0 : index
    %c0_72 = arith.constant 0 : index
    %70 = vector.load %arg4[%c0_70, %c0_71, %c0_72] : memref<1x2x4xf32, #tpu.memory_space<vmem>>, vector<1x2x4xf32>
    %71 = vector.shape_cast %70 : vector<1x2x4xf32> to vector<2x4xf32>
    %72 = vector.shape_cast %69 : vector<2x4xf32> to vector<1x2x4xf32>
    tpu.vector_store %arg4[%c0_70, %c0_71, %c0_72], %72 {strides = array<i32>} : memref<1x2x4xf32, #tpu.memory_space<vmem>>, vector<1x2x4xf32>,
    return
  }
  func.func @transform_0(%arg0: i32) -> (i32, i32, i32, i32) {
    %c0_i32 = arith.constant 0 : i32
    %c0_i32_0 = arith.constant 0 : i32
    %c0_i32_1 = arith.constant 0 : i32
    %c0_i32_2 = arith.constant 0 : i32
    return %arg0, %c0_i32, %c0_i32_0, %c0_i32_1 : i32, i32, i32, i32
  }
  func.func @transform_1(%arg0: i32) -> (i32, i32, i32) {
    %c0_i32 = arith.constant 0 : i32
    %c0_i32_0 = arith.constant 0 : i32
    %c0_i32_1 = arith.constant 0 : i32
    %c0_i32_2 = arith.constant 0 : i32
    return %c0_i32, %c0_i32_0, %c0_i32_1 : i32, i32, i32
  }
  func.func @transform_2(%arg0: i32) -> (i32, i32, i32) {
    %c0_i32 = arith.constant 0 : i32
    %c0_i32_0 = arith.constant 0 : i32
    %c0_i32_1 = arith.constant 0 : i32
    return %arg0, %c0_i32, %c0_i32_0 : i32, i32, i32
  }
  func.func @transform_3(%arg0: i32) -> (i32, i32, i32) {
    %c0_i32 = arith.constant 0 : i32
    %c0_i32_0 = arith.constant 0 : i32
    %c0_i32_1 = arith.constant 0 : i32
    return %arg0, %c0_i32, %c0_i32_0 : i32, i32, i32
  }
}

module attributes {stable_mosaic.version = 11 : i64} {
  func.func @kernel(%arg0: i32, %arg1: memref<1x256x4xbf16, #tpu.memory_space<vmem>>, %arg2: memref<1x4xf32, #tpu.memory_space<vmem>>, %arg3: memref<1x4xf32, #tpu.memory_space<vmem>>, %arg4: memref<9x4x4xbf16, #tpu.memory_space<vmem>>, %arg5: memref<1x256x4xbf16, #tpu.memory_space<vmem>>, %arg6: memref<1x2x4xf32, #tpu.memory_space<vmem>>, %arg7: memref<18x18x4xbf16, #tpu.memory_space<vmem>>) attributes {dimension_semantics = [#tpu.dimension_semantics<parallel>], iteration_bounds = array<i64: 2>, scalar_prefetch = 0 : i64, scratch_operands = 1 : i64, tpu.core_type = #tpu.core_type<tc>, window_params = [{transform_indices = @transform_0, window_bounds = array<i64: 1, 256, 4>}, {pipeline_mode = #tpu.pipeline_mode<synchronous>, transform_indices = @transform_1, window_bounds = array<i64: 1, 4>}, {pipeline_mode = #tpu.pipeline_mode<synchronous>, transform_indices = @transform_2, window_bounds = array<i64: 1, 4>}, {pipeline_mode = #tpu.pipeline_mode<synchronous>, transform_indices = @transform_3, window_bounds = array<i64: 9, 4, 4>}, {transform_indices = @transform_4, window_bounds = array<i64: 1, 256, 4>}, {transform_indices = @transform_5, window_bounds = array<i64: 1, 2, 4>}]} {
    %c0 = arith.constant 0 : index
    %c0_0 = arith.constant 0 : index
    %c0_1 = arith.constant 0 : index
    %0 = vector.load %arg1[%c0, %c0_0, %c0_1] : memref<1x256x4xbf16, #tpu.memory_space<vmem>>, vector<1x256x4xbf16>
    %1 = vector.shape_cast %0 : vector<1x256x4xbf16> to vector<256x4xbf16>
    %2 = arith.extf %1 : vector<256x4xbf16> to vector<256x4xf32>
    %c0_2 = arith.constant 0 : index
    %c0_3 = arith.constant 0 : index
    %3 = vector.load %arg2[%c0_2, %c0_3] : memref<1x4xf32, #tpu.memory_space<vmem>>, vector<1x4xf32>
    %4 = vector.broadcast %3 : vector<1x4xf32> to vector<256x4xf32>
    %5 = arith.mulf %2, %4 : vector<256x4xf32>
    %c0_4 = arith.constant 0 : index
    %c0_5 = arith.constant 0 : index
    %6 = vector.load %arg3[%c0_4, %c0_5] : memref<1x4xf32, #tpu.memory_space<vmem>>, vector<1x4xf32>
    %7 = vector.broadcast %6 : vector<1x4xf32> to vector<256x4xf32>
    %8 = arith.addf %5, %7 : vector<256x4xf32>
    %cst = arith.constant 0.000000e+00 : f32
    %9 = vector.broadcast %cst : f32 to vector<256x4xf32>
    %10 = arith.maximumf %8, %9 : vector<256x4xf32>
    %cst_6 = arith.constant 0.000000e+00 : bf16
    %11 = vector.broadcast %cst_6 : bf16 to vector<18x18x4xbf16>
    %c0_7 = arith.constant 0 : index
    %c0_8 = arith.constant 0 : index
    %c0_9 = arith.constant 0 : index
    %12 = vector.load %arg7[%c0_7, %c0_8, %c0_9] : memref<18x18x4xbf16, #tpu.memory_space<vmem>>, vector<18x18x4xbf16>
    tpu.vector_store %arg7[%c0_7, %c0_8, %c0_9], %11 {strides = array<i32>} : memref<18x18x4xbf16, #tpu.memory_space<vmem>>, vector<18x18x4xbf16>,
    %13 = arith.truncf %10 : vector<256x4xf32> to vector<256x4xbf16>
    %14 = vector.shape_cast %13 : vector<256x4xbf16> to vector<16x16x4xbf16>
    %c1 = arith.constant 1 : index
    %c1_10 = arith.constant 1 : index
    %c0_11 = arith.constant 0 : index
    %15 = vector.load %arg7[%c1, %c1_10, %c0_11] : memref<18x18x4xbf16, #tpu.memory_space<vmem>>, vector<16x16x4xbf16>
    tpu.vector_store %arg7[%c1, %c1_10, %c0_11], %14 {strides = array<i32>} : memref<18x18x4xbf16, #tpu.memory_space<vmem>>, vector<16x16x4xbf16>,
    %cst_12 = arith.constant 0.000000e+00 : f32
    %16 = vector.broadcast %cst_12 : f32 to vector<256x4xf32>
    %c0_13 = arith.constant 0 : index
    %c0_14 = arith.constant 0 : index
    %c0_15 = arith.constant 0 : index
    %17 = vector.load %arg7[%c0_13, %c0_14, %c0_15] : memref<18x18x4xbf16, #tpu.memory_space<vmem>>, vector<16x16x4xbf16>
    %18 = vector.shape_cast %17 : vector<16x16x4xbf16> to vector<256x4xbf16>
    %c0_16 = arith.constant 0 : index
    %c0_17 = arith.constant 0 : index
    %c0_18 = arith.constant 0 : index
    %19 = vector.load %arg4[%c0_16, %c0_17, %c0_18] : memref<9x4x4xbf16, #tpu.memory_space<vmem>>, vector<1x4x4xbf16>
    %20 = vector.shape_cast %19 : vector<1x4x4xbf16> to vector<4x4xbf16>
    %cst_19 = arith.constant dense<0.000000e+00> : vector<256x4xf32>
    %21 = tpu.matmul %18, %20, %cst_19 {dimension_numbers = #tpu.dot_dimension_numbers<[1], [0], [0], [1], [0, 0, 1, 1], [], []>} : vector<256x4xbf16>, vector<4x4xbf16>, vector<256x4xf32> -> vector<256x4xf32>
    %22 = arith.addf %16, %21 : vector<256x4xf32>
    %c0_20 = arith.constant 0 : index
    %c1_21 = arith.constant 1 : index
    %c0_22 = arith.constant 0 : index
    %23 = vector.load %arg7[%c0_20, %c1_21, %c0_22] : memref<18x18x4xbf16, #tpu.memory_space<vmem>>, vector<16x16x4xbf16>
    %24 = vector.shape_cast %23 : vector<16x16x4xbf16> to vector<256x4xbf16>
    %c1_23 = arith.constant 1 : index
    %c0_24 = arith.constant 0 : index
    %c0_25 = arith.constant 0 : index
    %25 = vector.load %arg4[%c1_23, %c0_24, %c0_25] : memref<9x4x4xbf16, #tpu.memory_space<vmem>>, vector<1x4x4xbf16>
    %26 = vector.shape_cast %25 : vector<1x4x4xbf16> to vector<4x4xbf16>
    %cst_26 = arith.constant dense<0.000000e+00> : vector<256x4xf32>
    %27 = tpu.matmul %24, %26, %cst_26 {dimension_numbers = #tpu.dot_dimension_numbers<[1], [0], [0], [1], [0, 0, 1, 1], [], []>} : vector<256x4xbf16>, vector<4x4xbf16>, vector<256x4xf32> -> vector<256x4xf32>
    %28 = arith.addf %22, %27 : vector<256x4xf32>
    %c0_27 = arith.constant 0 : index
    %c2 = arith.constant 2 : index
    %c0_28 = arith.constant 0 : index
    %29 = vector.load %arg7[%c0_27, %c2, %c0_28] : memref<18x18x4xbf16, #tpu.memory_space<vmem>>, vector<16x16x4xbf16>
    %30 = vector.shape_cast %29 : vector<16x16x4xbf16> to vector<256x4xbf16>
    %c2_29 = arith.constant 2 : index
    %c0_30 = arith.constant 0 : index
    %c0_31 = arith.constant 0 : index
    %31 = vector.load %arg4[%c2_29, %c0_30, %c0_31] : memref<9x4x4xbf16, #tpu.memory_space<vmem>>, vector<1x4x4xbf16>
    %32 = vector.shape_cast %31 : vector<1x4x4xbf16> to vector<4x4xbf16>
    %cst_32 = arith.constant dense<0.000000e+00> : vector<256x4xf32>
    %33 = tpu.matmul %30, %32, %cst_32 {dimension_numbers = #tpu.dot_dimension_numbers<[1], [0], [0], [1], [0, 0, 1, 1], [], []>} : vector<256x4xbf16>, vector<4x4xbf16>, vector<256x4xf32> -> vector<256x4xf32>
    %34 = arith.addf %28, %33 : vector<256x4xf32>
    %c1_33 = arith.constant 1 : index
    %c0_34 = arith.constant 0 : index
    %c0_35 = arith.constant 0 : index
    %35 = vector.load %arg7[%c1_33, %c0_34, %c0_35] : memref<18x18x4xbf16, #tpu.memory_space<vmem>>, vector<16x16x4xbf16>
    %36 = vector.shape_cast %35 : vector<16x16x4xbf16> to vector<256x4xbf16>
    %c3 = arith.constant 3 : index
    %c0_36 = arith.constant 0 : index
    %c0_37 = arith.constant 0 : index
    %37 = vector.load %arg4[%c3, %c0_36, %c0_37] : memref<9x4x4xbf16, #tpu.memory_space<vmem>>, vector<1x4x4xbf16>
    %38 = vector.shape_cast %37 : vector<1x4x4xbf16> to vector<4x4xbf16>
    %cst_38 = arith.constant dense<0.000000e+00> : vector<256x4xf32>
    %39 = tpu.matmul %36, %38, %cst_38 {dimension_numbers = #tpu.dot_dimension_numbers<[1], [0], [0], [1], [0, 0, 1, 1], [], []>} : vector<256x4xbf16>, vector<4x4xbf16>, vector<256x4xf32> -> vector<256x4xf32>
    %40 = arith.addf %34, %39 : vector<256x4xf32>
    %c1_39 = arith.constant 1 : index
    %c1_40 = arith.constant 1 : index
    %c0_41 = arith.constant 0 : index
    %41 = vector.load %arg7[%c1_39, %c1_40, %c0_41] : memref<18x18x4xbf16, #tpu.memory_space<vmem>>, vector<16x16x4xbf16>
    %42 = vector.shape_cast %41 : vector<16x16x4xbf16> to vector<256x4xbf16>
    %c4 = arith.constant 4 : index
    %c0_42 = arith.constant 0 : index
    %c0_43 = arith.constant 0 : index
    %43 = vector.load %arg4[%c4, %c0_42, %c0_43] : memref<9x4x4xbf16, #tpu.memory_space<vmem>>, vector<1x4x4xbf16>
    %44 = vector.shape_cast %43 : vector<1x4x4xbf16> to vector<4x4xbf16>
    %cst_44 = arith.constant dense<0.000000e+00> : vector<256x4xf32>
    %45 = tpu.matmul %42, %44, %cst_44 {dimension_numbers = #tpu.dot_dimension_numbers<[1], [0], [0], [1], [0, 0, 1, 1], [], []>} : vector<256x4xbf16>, vector<4x4xbf16>, vector<256x4xf32> -> vector<256x4xf32>
    %46 = arith.addf %40, %45 : vector<256x4xf32>
    %c1_45 = arith.constant 1 : index
    %c2_46 = arith.constant 2 : index
    %c0_47 = arith.constant 0 : index
    %47 = vector.load %arg7[%c1_45, %c2_46, %c0_47] : memref<18x18x4xbf16, #tpu.memory_space<vmem>>, vector<16x16x4xbf16>
    %48 = vector.shape_cast %47 : vector<16x16x4xbf16> to vector<256x4xbf16>
    %c5 = arith.constant 5 : index
    %c0_48 = arith.constant 0 : index
    %c0_49 = arith.constant 0 : index
    %49 = vector.load %arg4[%c5, %c0_48, %c0_49] : memref<9x4x4xbf16, #tpu.memory_space<vmem>>, vector<1x4x4xbf16>
    %50 = vector.shape_cast %49 : vector<1x4x4xbf16> to vector<4x4xbf16>
    %cst_50 = arith.constant dense<0.000000e+00> : vector<256x4xf32>
    %51 = tpu.matmul %48, %50, %cst_50 {dimension_numbers = #tpu.dot_dimension_numbers<[1], [0], [0], [1], [0, 0, 1, 1], [], []>} : vector<256x4xbf16>, vector<4x4xbf16>, vector<256x4xf32> -> vector<256x4xf32>
    %52 = arith.addf %46, %51 : vector<256x4xf32>
    %c2_51 = arith.constant 2 : index
    %c0_52 = arith.constant 0 : index
    %c0_53 = arith.constant 0 : index
    %53 = vector.load %arg7[%c2_51, %c0_52, %c0_53] : memref<18x18x4xbf16, #tpu.memory_space<vmem>>, vector<16x16x4xbf16>
    %54 = vector.shape_cast %53 : vector<16x16x4xbf16> to vector<256x4xbf16>
    %c6 = arith.constant 6 : index
    %c0_54 = arith.constant 0 : index
    %c0_55 = arith.constant 0 : index
    %55 = vector.load %arg4[%c6, %c0_54, %c0_55] : memref<9x4x4xbf16, #tpu.memory_space<vmem>>, vector<1x4x4xbf16>
    %56 = vector.shape_cast %55 : vector<1x4x4xbf16> to vector<4x4xbf16>
    %cst_56 = arith.constant dense<0.000000e+00> : vector<256x4xf32>
    %57 = tpu.matmul %54, %56, %cst_56 {dimension_numbers = #tpu.dot_dimension_numbers<[1], [0], [0], [1], [0, 0, 1, 1], [], []>} : vector<256x4xbf16>, vector<4x4xbf16>, vector<256x4xf32> -> vector<256x4xf32>
    %58 = arith.addf %52, %57 : vector<256x4xf32>
    %c2_57 = arith.constant 2 : index
    %c1_58 = arith.constant 1 : index
    %c0_59 = arith.constant 0 : index
    %59 = vector.load %arg7[%c2_57, %c1_58, %c0_59] : memref<18x18x4xbf16, #tpu.memory_space<vmem>>, vector<16x16x4xbf16>
    %60 = vector.shape_cast %59 : vector<16x16x4xbf16> to vector<256x4xbf16>
    %c7 = arith.constant 7 : index
    %c0_60 = arith.constant 0 : index
    %c0_61 = arith.constant 0 : index
    %61 = vector.load %arg4[%c7, %c0_60, %c0_61] : memref<9x4x4xbf16, #tpu.memory_space<vmem>>, vector<1x4x4xbf16>
    %62 = vector.shape_cast %61 : vector<1x4x4xbf16> to vector<4x4xbf16>
    %cst_62 = arith.constant dense<0.000000e+00> : vector<256x4xf32>
    %63 = tpu.matmul %60, %62, %cst_62 {dimension_numbers = #tpu.dot_dimension_numbers<[1], [0], [0], [1], [0, 0, 1, 1], [], []>} : vector<256x4xbf16>, vector<4x4xbf16>, vector<256x4xf32> -> vector<256x4xf32>
    %64 = arith.addf %58, %63 : vector<256x4xf32>
    %c2_63 = arith.constant 2 : index
    %c2_64 = arith.constant 2 : index
    %c0_65 = arith.constant 0 : index
    %65 = vector.load %arg7[%c2_63, %c2_64, %c0_65] : memref<18x18x4xbf16, #tpu.memory_space<vmem>>, vector<16x16x4xbf16>
    %66 = vector.shape_cast %65 : vector<16x16x4xbf16> to vector<256x4xbf16>
    %c8 = arith.constant 8 : index
    %c0_66 = arith.constant 0 : index
    %c0_67 = arith.constant 0 : index
    %67 = vector.load %arg4[%c8, %c0_66, %c0_67] : memref<9x4x4xbf16, #tpu.memory_space<vmem>>, vector<1x4x4xbf16>
    %68 = vector.shape_cast %67 : vector<1x4x4xbf16> to vector<4x4xbf16>
    %cst_68 = arith.constant dense<0.000000e+00> : vector<256x4xf32>
    %69 = tpu.matmul %66, %68, %cst_68 {dimension_numbers = #tpu.dot_dimension_numbers<[1], [0], [0], [1], [0, 0, 1, 1], [], []>} : vector<256x4xbf16>, vector<4x4xbf16>, vector<256x4xf32> -> vector<256x4xf32>
    %70 = arith.addf %64, %69 : vector<256x4xf32>
    %71 = arith.truncf %70 : vector<256x4xf32> to vector<256x4xbf16>
    %c0_69 = arith.constant 0 : index
    %c0_70 = arith.constant 0 : index
    %c0_71 = arith.constant 0 : index
    %72 = vector.load %arg5[%c0_69, %c0_70, %c0_71] : memref<1x256x4xbf16, #tpu.memory_space<vmem>>, vector<1x256x4xbf16>
    %73 = vector.shape_cast %72 : vector<1x256x4xbf16> to vector<256x4xbf16>
    %74 = vector.shape_cast %71 : vector<256x4xbf16> to vector<1x256x4xbf16>
    tpu.vector_store %arg5[%c0_69, %c0_70, %c0_71], %74 {strides = array<i32>} : memref<1x256x4xbf16, #tpu.memory_space<vmem>>, vector<1x256x4xbf16>,
    %cst_72 = arith.constant dense<0.000000e+00> : vector<4xf32>
    %75 = vector.multi_reduction <add>, %70, %cst_72 [0] : vector<256x4xf32> to vector<4xf32>
    %76 = vector.shape_cast %75 : vector<4xf32> to vector<1x4xf32>
    %77 = arith.mulf %70, %70 : vector<256x4xf32>
    %cst_73 = arith.constant dense<0.000000e+00> : vector<4xf32>
    %78 = vector.multi_reduction <add>, %77, %cst_73 [0] : vector<256x4xf32> to vector<4xf32>
    %79 = vector.shape_cast %78 : vector<4xf32> to vector<1x4xf32>
    %80 = tpu.concatenate %76, %79 in 0 : vector<1x4xf32>, vector<1x4xf32> -> vector<2x4xf32>
    %c0_74 = arith.constant 0 : index
    %c0_75 = arith.constant 0 : index
    %c0_76 = arith.constant 0 : index
    %81 = vector.load %arg6[%c0_74, %c0_75, %c0_76] : memref<1x2x4xf32, #tpu.memory_space<vmem>>, vector<1x2x4xf32>
    %82 = vector.shape_cast %81 : vector<1x2x4xf32> to vector<2x4xf32>
    %83 = vector.shape_cast %80 : vector<2x4xf32> to vector<1x2x4xf32>
    tpu.vector_store %arg6[%c0_74, %c0_75, %c0_76], %83 {strides = array<i32>} : memref<1x2x4xf32, #tpu.memory_space<vmem>>, vector<1x2x4xf32>,
    return
  }
  func.func @transform_0(%arg0: i32) -> (i32, i32, i32) {
    %c0_i32 = arith.constant 0 : i32
    %c0_i32_0 = arith.constant 0 : i32
    %c0_i32_1 = arith.constant 0 : i32
    return %arg0, %c0_i32, %c0_i32_0 : i32, i32, i32
  }
  func.func @transform_1(%arg0: i32) -> (i32, i32) {
    %c0_i32 = arith.constant 0 : i32
    %c0_i32_0 = arith.constant 0 : i32
    %c0_i32_1 = arith.constant 0 : i32
    return %c0_i32, %c0_i32_0 : i32, i32
  }
  func.func @transform_2(%arg0: i32) -> (i32, i32) {
    %c0_i32 = arith.constant 0 : i32
    %c0_i32_0 = arith.constant 0 : i32
    %c0_i32_1 = arith.constant 0 : i32
    return %c0_i32, %c0_i32_0 : i32, i32
  }
  func.func @transform_3(%arg0: i32) -> (i32, i32, i32) {
    %c0_i32 = arith.constant 0 : i32
    %c0_i32_0 = arith.constant 0 : i32
    %c0_i32_1 = arith.constant 0 : i32
    %c0_i32_2 = arith.constant 0 : i32
    return %c0_i32, %c0_i32_0, %c0_i32_1 : i32, i32, i32
  }
  func.func @transform_4(%arg0: i32) -> (i32, i32, i32) {
    %c0_i32 = arith.constant 0 : i32
    %c0_i32_0 = arith.constant 0 : i32
    %c0_i32_1 = arith.constant 0 : i32
    return %arg0, %c0_i32, %c0_i32_0 : i32, i32, i32
  }
  func.func @transform_5(%arg0: i32) -> (i32, i32, i32) {
    %c0_i32 = arith.constant 0 : i32
    %c0_i32_0 = arith.constant 0 : i32
    %c0_i32_1 = arith.constant 0 : i32
    return %arg0, %c0_i32, %c0_i32_0 : i32, i32, i32
  }
}

module attributes {stable_mosaic.version = 11 : i64} {
  func.func @_bn_add_relu_kernel(%arg0: i32, %arg1: memref<16x128xbf16, #tpu.memory_space<vmem>>, %arg2: memref<1x128xf32, #tpu.memory_space<vmem>>, %arg3: memref<1x128xf32, #tpu.memory_space<vmem>>, %arg4: memref<16x128xbf16, #tpu.memory_space<vmem>>, %arg5: memref<16x128xf32, #tpu.memory_space<vmem>>) attributes {dimension_semantics = [#tpu.dimension_semantics<parallel>], iteration_bounds = array<i64: 1>, scalar_prefetch = 0 : i64, scratch_operands = 0 : i64, tpu.core_type = #tpu.core_type<tc>, window_params = [{transform_indices = @transform_0, window_bounds = array<i64: 16, 128>}, {pipeline_mode = #tpu.pipeline_mode<synchronous>, transform_indices = @transform_1, window_bounds = array<i64: 1, 128>}, {pipeline_mode = #tpu.pipeline_mode<synchronous>, transform_indices = @transform_2, window_bounds = array<i64: 1, 128>}, {transform_indices = @transform_3, window_bounds = array<i64: 16, 128>}, {transform_indices = @transform_4, window_bounds = array<i64: 16, 128>}]} {
    %c0 = arith.constant 0 : index
    %c0_0 = arith.constant 0 : index
    %0 = vector.load %arg1[%c0, %c0_0] : memref<16x128xbf16, #tpu.memory_space<vmem>>, vector<16x128xbf16>
    %1 = arith.extf %0 : vector<16x128xbf16> to vector<16x128xf32>
    %c0_1 = arith.constant 0 : index
    %c0_2 = arith.constant 0 : index
    %2 = vector.load %arg2[%c0_1, %c0_2] : memref<1x128xf32, #tpu.memory_space<vmem>>, vector<1x128xf32>
    %3 = vector.broadcast %2 : vector<1x128xf32> to vector<16x128xf32>
    %4 = arith.mulf %1, %3 : vector<16x128xf32>
    %c0_3 = arith.constant 0 : index
    %c0_4 = arith.constant 0 : index
    %5 = vector.load %arg3[%c0_3, %c0_4] : memref<1x128xf32, #tpu.memory_space<vmem>>, vector<1x128xf32>
    %6 = vector.broadcast %5 : vector<1x128xf32> to vector<16x128xf32>
    %7 = arith.addf %4, %6 : vector<16x128xf32>
    %c0_5 = arith.constant 0 : index
    %c0_6 = arith.constant 0 : index
    %8 = vector.load %arg4[%c0_5, %c0_6] : memref<16x128xbf16, #tpu.memory_space<vmem>>, vector<16x128xbf16>
    %9 = arith.extf %8 : vector<16x128xbf16> to vector<16x128xf32>
    %10 = arith.addf %7, %9 : vector<16x128xf32>
    %cst = arith.constant 0.000000e+00 : f32
    %11 = vector.broadcast %cst : f32 to vector<16x128xf32>
    %12 = arith.maximumf %10, %11 : vector<16x128xf32>
    %c0_7 = arith.constant 0 : index
    %c0_8 = arith.constant 0 : index
    %13 = vector.load %arg5[%c0_7, %c0_8] : memref<16x128xf32, #tpu.memory_space<vmem>>, vector<16x128xf32>
    tpu.vector_store %arg5[%c0_7, %c0_8], %12 {strides = array<i32>} : memref<16x128xf32, #tpu.memory_space<vmem>>, vector<16x128xf32>,
    return
  }
  func.func @transform_0(%arg0: i32) -> (i32, i32) {
    %c0_i32 = arith.constant 0 : i32
    %c0_i32_0 = arith.constant 0 : i32
    return %arg0, %c0_i32 : i32, i32
  }
  func.func @transform_1(%arg0: i32) -> (i32, i32) {
    %c0_i32 = arith.constant 0 : i32
    %c0_i32_0 = arith.constant 0 : i32
    %c0_i32_1 = arith.constant 0 : i32
    return %c0_i32, %c0_i32_0 : i32, i32
  }
  func.func @transform_2(%arg0: i32) -> (i32, i32) {
    %c0_i32 = arith.constant 0 : i32
    %c0_i32_0 = arith.constant 0 : i32
    %c0_i32_1 = arith.constant 0 : i32
    return %c0_i32, %c0_i32_0 : i32, i32
  }
  func.func @transform_3(%arg0: i32) -> (i32, i32) {
    %c0_i32 = arith.constant 0 : i32
    %c0_i32_0 = arith.constant 0 : i32
    return %arg0, %c0_i32 : i32, i32
  }
  func.func @transform_4(%arg0: i32) -> (i32, i32) {
    %c0_i32 = arith.constant 0 : i32
    %c0_i32_0 = arith.constant 0 : i32
    return %arg0, %c0_i32 : i32, i32
  }
}

</mosaic_0001>

<bundles_post_ra>
// kernel: resnet_block_forward.5
= control target key start
LH: loop header
LB: loop body
LE: loop exit
PB: predicated region body
PF: predicated region fallthrough
CT: control target
= control target key end

     0   :  { %s100_s0 = inlined_call_operand.vmem [shape: bf16[16,128], index: 0, kind: input, shape index: {}]   ;;  %s101_s1 = inlined_call_operand.vmem [shape: f32[1,128], index: 1, kind: input, shape index: {}]   ;;  %s102_s2 = inlined_call_operand.vmem [shape: f32[1,128], index: 2, kind: input, shape index: {}]   ;;  %s103_s3 = inlined_call_operand.vmem [shape: bf16[16,128], index: 3, kind: input, shape index: {}]   ;;  %s104_s4 = inlined_call_operand.vmem [shape: f32[16,128], index: 4, kind: output, shape index: {}]  }
   0x1   :  { %v48_v0 = vld [vmem:[%s100_s0] sm:$0xff]  }
   0x2   :  { %v55_v1 = vld [vmem:[%s101_s1] ss:$0 sm:$0xff]  ;;  %v49_v2 = vunpack.c.l.bf16 %v48_v0  ;;  %v50_v5 = vunpack.c.h.bf16 %v48_v0 }
   0x3   :  { %v56_v3 = vld [vmem:[%s102_s2] ss:$0 sm:$0xff] }
   0x4   :  { %v52_v4 = vld [vmem:[%s103_s3] sm:$0xff]   ;;  %v25_v6 = vmul.f32 %v55_v1, %v49_v2  ;;  %v26_v8 = vmul.f32 %v55_v1, %v50_v5 }
   0x5   :  { %v53_v7 = vunpack.c.l.bf16 %v52_v4  ;;  %v54_v9 = vunpack.c.h.bf16 %v52_v4 }
   0x6   :  { %v31_v10 = vadd.f32 %v56_v3, %v25_v6  ;;  %v32_v11 = vadd.f32 %v56_v3, %v26_v8 }
   0x8   :  { %v37_v12 = vadd.f32 %v53_v7, %v31_v10  ;;  %v38_v13 = vadd.f32 %v54_v9, %v32_v11 }
   0xa   :  { %v39_v14 = vmax.f32 %v37_v12, 0.0  ;;  %v40_v15 = vmax.f32 %v38_v13, 0.0 }
   0xc   :  { %41 = vst [vmem:[%s104_s4] sm:$0xff] %v39_v14 }
   0xd   :  { %42 = vst [vmem:[%s104_s4 + $0x8] sm:$0xff] %v40_v15 }

// kernel: resnet_block_forward.4
= control target key start
LH: loop header
LB: loop body
LE: loop exit
PB: predicated region body
PF: predicated region fallthrough
CT: control target
= control target key end

     0   :  { %s5814_s18 = smov 0   ;;  %s7519_s0 = inlined_call_operand.vmem [shape: bf16[2,256,4], index: 0, kind: input, shape index: {}]   ;;  %s7520_s1 = inlined_call_operand.vmem [shape: f32[1,4], index: 1, kind: input, shape index: {}]   ;;  %s7521_s2 = inlined_call_operand.vmem [shape: f32[1,4], index: 2, kind: input, shape index: {}]   ;;  %s7522_s3 = inlined_call_operand.vmem [shape: bf16[9,4,4], index: 3, kind: input, shape index: {}]   ;;  %s7523_s4 = inlined_call_operand.vmem [shape: bf16[2,256,4], index: 4, kind: output, shape index: {0}]   ;;  %s7524_s5 = inlined_call_operand.vmem [shape: f32[2,2,4], index: 5, kind: output, shape index: {1}]  }
   0x1 LB: > { %s5168_s19 = sadd.s32 4294967295, %s5781_s18   ;;  %p5172_p0 = scmp.ge.s32.totalorder %s5781_s18, 1  ;;  %s5781_s18 = sphi %s5814_s18, %s16_s18  }
   0x2   : > { %p190_p1 = scmp.lt.s32.totalorder %s5781_s18, 3 }
   0x4   : > { %p191_p2 = pnand %p5172_p0, %p190_p1 }
   0x6   : > { %194 = sbr.rel (%p191_p2) target bundleno = 873 (0x369), region = 36 }
   0xb   : > { %v5178_v0 = vld [vmem:[%s7522_s3 + $0x2] sm:$0x3]  ;;  %vm1469_vm0 = vcmask 1041408   ;;  %p222_p3 = scmp.lt.s32.totalorder %s5168_s19, 1  ;;  %vm405_vm1 = vcmask 27648   ;;  %vm408_vm2 = vcmask 24576  }
   0xc   : > { %v1471_v1 = vsel %vm1469_vm0, %v5178_v0, 0  ;;  %v5783_v2 = vmov 0   ;;  %v5843_v3 = vld [vmem:[%s7520_s1] ss:$0 sm:$0xff]  ;;  %vm493_vm3 = vsmask.f32 256 }
   0xd   : > { %5701 = vmatpush.bf16.msra.mxu1 %v1471_v1  ;;  %5702 = vmatpush.bf16.msra.mxu2 %v1471_v1  ;;  %s7554_s19 = smov (!%p222_p3, %s5168_s19), 1  ;;  %419 = vst.msk [vmem:[#allocation2 + $0x30] sm:$0xf] %vm405_vm1, %v5783_v2  ;;  %v5854_v8 = vld [vmem:[%s7521_s2] ss:$0 sm:$0xff]  ;;  %vm5907_vm8 = vmand %vm408_vm2, %vm493_vm3  ;;  %vm1420_vm11 = vcmask 31744  }
   0xe   : > { %5703 = vmatpush.bf16.msra.mxu3 %v1471_v1  ;;  %1480 = vmatpush.bf16.msra.mxu0 %v1471_v1  ;;  %s5572_s22 = sshll.u32 %s7554_s19, 7  ;;  %420 = vst.msk [vmem:[#allocation2 + $0x34] sm:$0xf] %vm405_vm1, %v5783_v2  ;;  %vm494_vm4 = vsmask.f32 4368  ;;  %vm1830_vm13 = vcmask 1042432  }
   0xf   : > { %s5838_s25 = scalar_lea.vmem %s7519_s0, %s5572_s22  ;;  %421 = vst.msk [vmem:[#allocation2 + $0x38] sm:$0x1] %vm408_vm2, %v5783_v2  ;;  %vm818_vm5 = vsmask.f32 7938  ;;  %vm5890_vm6 = vmor %vm493_vm3, %vm494_vm4  ;;  %vm983_vm9 = vsmask.f32 3328  ;;  %s7146_s9 = scalar_lea.vmem %s7523_s4, %s5572_s22 }
  0x10   : > { %v5688_v4 = vld [vmem:[%s5838_s25 + $0x18] sm:$0xff]   ;;  %406 = vst.msk [vmem:[#allocation2] sm:$0xf] %vm405_vm1, %v5783_v2  ;;  %vm5898_vm7 = vmand %vm405_vm1, %vm818_vm5  ;;  %vm984_vm10 = vsmask.f32 7440  ;;  %vm1831_vm14 = vcmask 1046532  }
  0x11   : > { %v5692_v5 = vld [vmem:[%s5838_s25 + $0x38] sm:$0xff]   ;;  %v5636_v6 = vunpack.c.l.bf16 %v5688_v4  ;;  %v5637_v7 = vunpack.c.h.bf16 %v5688_v4  ;;  %407 = vst.msk [vmem:[#allocation2 + $0x4] sm:$0xf] %vm405_vm1, %v5783_v2  ;;  %vm5976_vm12 = vmor %vm983_vm9, %vm984_vm10  ;;  %s5177_s22 = sshll.u32 %s7554_s19, 1 }
  0x12   : > { %v5652_v9 = vunpack.c.l.bf16 %v5692_v5  ;;  %v5653_v10 = vunpack.c.h.bf16 %v5692_v5  ;;  %409 = vst.msk [vmem:[#allocation2 + $0x8] sm:$0x1] %vm408_vm2, %v5783_v2  ;;  %v5696_v19 = vld [vmem:[%s5838_s25 + $0x58] sm:$0xff]   ;;  %v5689_v5 = vld [vmem:[%s5838_s25 + $0x20] sm:$0xff]   ;;  %vm6419_vm15 = vmor %vm1830_vm13, %vm1831_vm14  ;;  %s235_s12 = scalar_lea.vmem %s7524_s5, %s5177_s22 }
  0x13   : > { %v311_v11 = vmul.f32 %v5843_v3, %v5636_v6  ;;  %v312_v12 = vmul.f32 %v5843_v3, %v5637_v7  ;;  %410 = vst.msk [vmem:[#allocation2 + $0xc] sm:$0xf] %vm405_vm1, %v5783_v2  ;;  %v5668_v20 = vunpack.c.l.bf16 %v5696_v19  ;;  %v5669_v21 = vunpack.c.h.bf16 %v5696_v19  ;;  %v5693_v6 = vld [vmem:[%s5838_s25 + $0x40] sm:$0xff]  }
  0x14   : > { %v319_v13 = vmul.f32 %v5843_v3, %v5652_v9  ;;  %v320_v14 = vmul.f32 %v5843_v3, %v5653_v10  ;;  %411 = vst.msk [vmem:[#allocation2 + $0x10] sm:$0xf] %vm405_vm1, %v5783_v2  ;;  %v843_v41 = vld [vmem:[#allocation2 + $0x30] sm:$0xf]  ;;  %v5640_v10 = vunpack.c.l.bf16 %v5689_v5 }
  0x15   : > { %v347_v15 = vadd.f32 %v5854_v8, %v311_v11  ;;  %v348_v16 = vadd.f32 %v5854_v8, %v312_v12  ;;  %412 = vst.msk [vmem:[#allocation2 + $0x14] sm:$0x1] %vm408_vm2, %v5783_v2  ;;  %v327_v26 = vmul.f32 %v5843_v3, %v5668_v20  ;;  %v328_v29 = vmul.f32 %v5843_v3, %v5669_v21 }
  0x16   : > { %v355_v17 = vadd.f32 %v5854_v8, %v319_v13  ;;  %v356_v18 = vadd.f32 %v5854_v8, %v320_v14  ;;  %413 = vst.msk [vmem:[#allocation2 + $0x18] sm:$0xf] %vm405_vm1, %v5783_v2  ;;  %v847_v44 = vld [vmem:[#allocation2 + $0x38] sm:$0x1]  ;;  %v5641_v11 = vunpack.c.h.bf16 %v5689_v5  ;;  %v5656_v12 = vunpack.c.l.bf16 %v5693_v6 }
  0x17   : > { %v379_v22 = vmax.f32 %v347_v15, 0.0  ;;  %v380_v23 = vmax.f32 %v348_v16, 0.0  ;;  %414 = vst.msk [vmem:[#allocation2 + $0x1c] sm:$0xf] %vm405_vm1, %v5783_v2  ;;  %v363_v37 = vadd.f32 %v5854_v8, %v327_v26  ;;  %v364_v42 = vadd.f32 %v5854_v8, %v328_v29 }
  0x18   : > { %v387_v24 = vmax.f32 %v355_v17, 0.0  ;;  %415 = vst.msk [vmem:[#allocation2 + $0x20] sm:$0x1] %vm408_vm2, %v5783_v2  ;;  %v388_v25 = vmax.f32 %v356_v18, 0.0  ;;  %v5657_v17 = vunpack.c.h.bf16 %v5693_v6  ;;  %v313_v21 = vmul.f32 %v5843_v3, %v5640_v10 }
  0x19   : > { %v467_v27 = vpack.c.bf16 %v379_v22, %v379_v22  ;;  %v468_v28 = vpack.c.bf16 %v380_v23, %v380_v23  ;;  %416 = vst.msk [vmem:[#allocation2 + $0x24] sm:$0xf] %vm405_vm1, %v5783_v2  ;;  %v395_v51 = vmax.f32 %v363_v37, 0.0  ;;  %v396_v55 = vmax.f32 %v364_v42, 0.0 }
  0x1a   : > { %417 = vst.msk [vmem:[#allocation2 + $0x28] sm:$0xf] %vm405_vm1, %v5783_v2  ;;  %v475_v30 = vpack.c.bf16 %v387_v24, %v387_v24  ;;  %v476_v36 = vpack.c.bf16 %v388_v25, %v388_v25  ;;  %v314_v22 = vmul.f32 %v5843_v3, %v5641_v11  ;;  %v321_v26 = vmul.f32 %v5843_v3, %v5656_v12 }
  0x1b   : > { %v548_v31 = vshrl.u32 %v467_v27, 16  ;;  %v551_v32 = vshll.u32 %v467_v27, 16  ;;  %v556_v33 = vshrl.u32 %v468_v28, 16  ;;  %v559_v34 = vshll.u32 %v468_v28, 16  ;;  %418 = vst.msk [vmem:[#allocation2 + $0x2c] sm:$0x1] %vm408_vm2, %v5783_v2 }
  0x1c   : > { %422 = vst.msk [vmem:[#allocation2 + $0x3c] sm:$0xf] %vm405_vm1, %v5783_v2  ;;  %v616_v45 = vshrl.u32 %v475_v30, 16  ;;  %v624_v50 = vshrl.u32 %v476_v36, 16  ;;  %v619_v57 = vshll.u32 %v475_v30, 16  ;;  %v5928_v58 = vpack.c.bf16 %v395_v51, %v395_v51 }
  0x1d   : > { %v550_v38 = vrot.slane %v548_v31, 7  ;;  %v558_v39 = vrot.slane %v556_v33, 7  ;;  %423 = vst.msk [vmem:[#allocation2 + $0x40] sm:$0xf] %vm405_vm1, %v5783_v2  ;;  %v5934_v60 = vpack.c.bf16 %v396_v55, %v396_v55  ;;  %v627_v61 = vshll.u32 %v476_v36, 16 }
  0x1e   : > { %424 = vst.msk [vmem:[#allocation2 + $0x44] sm:$0x1] %vm408_vm2, %v5783_v2  ;;  %v5926_v56 = vrot.slane %v616_v45, 7  ;;  %v5932_v59 = vrot.slane %v624_v50, 7  ;;  %v684_v1 = vshrl.u32 %v5928_v58, 16  ;;  %v687_v4 = vshll.u32 %v5928_v58, 16 }
  0x1f   : > { %v553_v46 = vor.u32 %v551_v32, %v550_v38  ;;  %v554_v47 = vrot.slane %v550_v38, 4  ;;  %v561_v48 = vor.u32 %v559_v34, %v558_v39  ;;  %v563_v49 = vrot.slane %v558_v39, 4  ;;  %425 = vst.msk [vmem:[#allocation2 + $0x48] sm:$0xf] %vm405_vm1, %v5783_v2  ;;  %v934_v58 = vld [vmem:[#allocation2] sm:$0xf] }
  0x20   : > { %426 = vst.msk [vmem:[#allocation2 + $0x4c] sm:$0xf] %vm405_vm1, %v5783_v2  ;;  %v622_v62 = vrot.slane %v5926_v56, 4  ;;  %v631_v63 = vrot.slane %v5932_v59, 4  ;;  %v5945_v0 = vor.u32 %v619_v57, %v5926_v56  ;;  %v692_v9 = vshrl.u32 %v5934_v60, 16 }
  0x21   : > { %v562_v52 = vsel %vm5890_vm6, %v554_v47, %v561_v48  ;;  %v844_v53 = vsel %vm5898_vm7, %v553_v46, %v843_v41  ;;  %v848_v54 = vsel %vm5907_vm8, %v563_v49, %v847_v44  ;;  %427 = vst.msk [vmem:[#allocation2 + $0x50] sm:$0x1] %vm408_vm2, %v5783_v2  ;;  %v629_v16 = vor.u32 %v627_v61, %v5932_v59  ;;  %v5697_v47 = vld [vmem:[%s5838_s25 + $0x60] sm:$0xff]  }
  0x22   : > { %845 = vst [vmem:[#allocation2 + $0x30] sm:$0xf] %v844_v53  ;;  %v349_v29 = vadd.f32 %v5854_v8, %v313_v21  ;;  %v350_v30 = vadd.f32 %v5854_v8, %v314_v22  ;;  %v5970_v32 = vrot.slane %v684_v1, 7  ;;  %v322_v33 = vmul.f32 %v5843_v3, %v5657_v17  ;;  %v966_v59 = vld [vmem:[%s7522_s3] sm:$0x3] }
  0x23   : > { %846 = vst.msk [vmem:[#allocation2 + $0x34] sm:$0xf] %vm405_vm1, %v562_v52  ;;  %v357_v34 = vadd.f32 %v5854_v8, %v321_v26  ;;  %v5986_v44 = vsel %vm5890_vm6, %v622_v62, %v629_v16  ;;  %v5988_v45 = vrot.slane %v692_v9, 7  ;;  %v695_v46 = vshll.u32 %v5934_v60, 16  ;;  %v935_v60 = vld [vmem:[#allocation2 + $0x4] sm:$0xf] }
  0x24   : > { %849 = vst [vmem:[#allocation2 + $0x38] sm:$0x1] %v848_v54  ;;  %v381_v39 = vmax.f32 %v349_v29, 0.0  ;;  %v382_v41 = vmax.f32 %v350_v30, 0.0  ;;  %v358_v51 = vadd.f32 %v5854_v8, %v322_v33  ;;  %v6004_v53 = vor.u32 %v687_v4, %v5970_v32 }
  0x25   : > { %428 = vst.msk [vmem:[#allocation2 + $0x54] sm:$0xf] %vm405_vm1, %v5783_v2  ;;  %v690_v54 = vrot.slane %v5970_v32, 4  ;;  %v389_v55 = vmax.f32 %v357_v34, 0.0  ;;  %v5672_v61 = vunpack.c.l.bf16 %v5697_v47  ;;  %v5673_v62 = vunpack.c.h.bf16 %v5697_v47 }
  0x26   : > { %429 = vst.msk [vmem:[#allocation2 + $0x58] sm:$0xf] %vm405_vm1, %v5783_v2  ;;  %v5994_v49 = vpack.c.bf16 %v381_v39, %v381_v39  ;;  %v5996_v50 = vpack.c.bf16 %v382_v41, %v382_v41  ;;  %v987_v4 = vshrl.u32 %v934_v58, 16  ;;  %v990_v5 = vshll.u32 %v934_v58, 16 }
  0x27   : > { %430 = vst.msk [vmem:[#allocation2 + $0x5c] sm:$0x1] %vm408_vm2, %v5783_v2  ;;  %v996_v6 = vshll.u32 %v935_v60, 16  ;;  %v390_v11 = vmax.f32 %v358_v51, 0.0  ;;  %v697_v16 = vor.u32 %v695_v46, %v5988_v45  ;;  %v699_v17 = vrot.slane %v5988_v45, 4 }
  0x28   : > { %431 = vst.msk [vmem:[#allocation2 + $0x60] sm:$0xf] %vm405_vm1, %v5783_v2  ;;  %v565_v9 = vshrl.u32 %v5994_v49, 16  ;;  %v573_v10 = vshrl.u32 %v5996_v50, 16  ;;  %v568_v29 = vshll.u32 %v5994_v49, 16  ;;  %v576_v34 = vshll.u32 %v5996_v50, 16 }
  0x29   : > { %v942_v7 = vld [vmem:[#allocation2 + $0x30] sm:$0xf]  ;;  %432 = vst.msk [vmem:[#allocation2 + $0x64] sm:$0xf] %vm405_vm1, %v5783_v2  ;;  %v6038_v30 = vpack.c.bf16 %v390_v11, %v390_v11 }
  0x2a   : > { %v943_v13 = vld [vmem:[#allocation2 + $0x34] sm:$0xf]  ;;  %v1083_v14 = vshrl.u32 %v942_v7, 16  ;;  %v1086_v15 = vshll.u32 %v942_v7, 16  ;;  %433 = vst.msk [vmem:[#allocation2 + $0x68] sm:$0x1] %vm408_vm2, %v5783_v2 }
  0x2b   : > { %v971_v18 = vld [vmem:[#allocation2 + $0x38] sm:$0x1]  ;;  %v1092_v19 = vshll.u32 %v943_v13, 16  ;;  %v1096_v20 = vshrl.u32 %v943_v13, 16  ;;  %434 = vst.msk [vmem:[#allocation2 + $0x6c] sm:$0xf] %vm405_vm1, %v5783_v2 }
  0x2c   : > { %v1085_v23 = vrot.slane %v1083_v14, 4  ;;  %v1088_v24 = vrot.slane %v1086_v15, 5  ;;  %v1102_v25 = vshll.u32 %v971_v18, 16  ;;  %435 = vst.msk [vmem:[#allocation2 + $0x70] sm:$0xf] %vm405_vm1, %v5783_v2  ;;  %v1000_v7 = vshrl.u32 %v935_v60, 16 }
  0x2d   : > { %v1094_v27 = vrot.slane %v1092_v19, 5  ;;  %v1098_v28 = vrot.slane %v1096_v20, 4  ;;  %436 = vst.msk [vmem:[#allocation2 + $0x74] sm:$0x1] %vm408_vm2, %v5783_v2  ;;  %v989_v13 = vrot.slane %v987_v4, 4  ;;  %v992_v14 = vrot.slane %v990_v5, 5 }
  0x2e   : > { %v1089_v31 = vor.u32 %v1088_v24, %v1085_v23  ;;  %437 = vst.msk [vmem:[#allocation2 + $0x78] sm:$0xf] %vm405_vm1, %v5783_v2  ;;  %v1104_v38 = vrot.slane %v1102_v25, 5  ;;  %v998_v15 = vrot.slane %v996_v6, 5  ;;  %v967_v18 = vld [vmem:[#allocation2 + $0x8] sm:$0x1]  ;;  %v6023_v20 = vpack.c.bf16 %v389_v55, %v389_v55 }
  0x2f   : > { %v1099_v37 = vor.u32 %v1098_v28, %v1094_v27  ;;  %438 = vst.msk [vmem:[#allocation2 + $0x7c] sm:$0xf] %vm405_vm1, %v5783_v2  ;;  %v1002_v19 = vrot.slane %v1000_v7, 4  ;;  %v993_v21 = vor.u32 %v992_v14, %v989_v13  ;;  %v1006_v22 = vshll.u32 %v967_v18, 16  ;;  %v5623_v25 = vld [vmem:[%s5838_s25] sm:$0xff]  }
  0x30   : > { %v1090_v42 = vrot.slane %v1089_v31, 4  ;;  %439 = vst.msk [vmem:[#allocation2 + $0x80] sm:$0x1] %vm408_vm2, %v5783_v2  ;;  %v329_v23 = vmul.f32 %v5843_v3, %v5672_v61  ;;  %v330_v24 = vmul.f32 %v5843_v3, %v5673_v62  ;;  %v6033_v26 = vld [vmem:[#allocation2 + $0x60] sm:$0xf]  ;;  %v6035_v28 = vrot.slane %v565_v9, 7 }
  0x31   : > { %v1100_v48 = vrot.slane %v1099_v37, 4  ;;  %440 = vst.msk [vmem:[#allocation2 + $0x84] sm:$0xf] %vm405_vm1, %v5783_v2  ;;  %v994_v31 = vrot.slane %v993_v21, 4  ;;  %v1008_v32 = vrot.slane %v1006_v22, 5  ;;  %v6042_v33 = vrot.slane %v573_v10, 7 }
  0x32   : > { %v1095_v52 = vsel %vm5976_vm12, %v1090_v42, %v1094_v27  ;;  %441 = vst.msk [vmem:[#allocation2 + $0x88] sm:$0xf] %vm405_vm1, %v5783_v2  ;;  %v1003_v27 = vor.u32 %v1002_v19, %v998_v15  ;;  %v6049_v37 = vsel %vm5890_vm6, %v690_v54, %v697_v16  ;;  %v633_v39 = vshrl.u32 %v6023_v20, 16  ;;  %v875_v46 = vld [vmem:[#allocation2 + $0x68] sm:$0x1] }
  0x33   : > { %v1105_v56 = vsel %vm5976_vm12, %v1100_v48, %v1104_v38  ;;  %v1380_v57 = vunpack.c.l.b16 %v1095_v52  ;;  %442 = vst.msk [vmem:[#allocation2 + $0x8c] sm:$0x1] %vm408_vm2, %v5783_v2  ;;  %v5624_v41 = vunpack.c.l.bf16 %v5623_v25  ;;  %v872_v42 = vsel %vm5898_vm7, %v5945_v0, %v6033_v26  ;;  %v6069_v54 = vld [vmem:[#allocation2 + $0x3c] sm:$0xf]  ;;  %v5291_v61 = vld [vmem:[%s7522_s3 + $0x4] sm:$0x3] }
  0x34   : > { %v1381_v1 = vunpack.c.l.b16 %v1105_v56  ;;  %443 = vst.msk [vmem:[#allocation2 + $0x90] sm:$0xf] %vm405_vm1, %v5783_v2  ;;  %v1004_v38 = vrot.slane %v1003_v27, 4  ;;  %v999_v47 = vsel %vm5976_vm12, %v994_v31, %v998_v15  ;;  %v365_v48 = vadd.f32 %v5854_v8, %v329_v23 }
  0x35   : > { %444 = vst.msk [vmem:[#allocation2 + $0x94] sm:$0xf] %vm405_vm1, %v5783_v2  ;;  %v366_v49 = vadd.f32 %v5854_v8, %v330_v24  ;;  %v1372_v51 = vunpack.c.l.b16 %v999_v47  ;;  %v6067_v52 = vor.u32 %v568_v29, %v6035_v28  ;;  %v641_v0 = vshrl.u32 %v6038_v30, 16 }
  0x36   : > { %v1408_v12 = vpack.c.b16 %v1381_v1, %v1380_v57  ;;  %445 = vst.msk [vmem:[#allocation2 + $0x98] sm:$0x1] %vm408_vm2, %v5783_v2  ;;  %v1009_v50 = vsel %vm5976_vm12, %v1004_v38, %v1008_v32  ;;  %v571_v57 = vrot.slane %v6035_v28, 4  ;;  %v578_v58 = vor.u32 %v576_v34, %v6042_v33  ;;  %v854_v1 = vld [vmem:[#allocation2 + $0x44] sm:$0x1] }
  0x37   : > { %446 = vst.msk [vmem:[#allocation2 + $0x9c] sm:$0xf] %vm405_vm1, %v5783_v2  ;;  %v1373_v56 = vunpack.c.l.b16 %v1009_v50  ;;  %v636_v60 = vshll.u32 %v6023_v20, 16  ;;  %v580_v62 = vrot.slane %v6042_v33, 4  ;;  %v6085_v4 = vrot.slane %v633_v39, 7 }
  0x38   : > { %5183 = vmatmul.msk.bf16.vlgmr.msra.gmra.mxu1 %vm1420_vm11, %v1408_v12  ;;  %447 = vst.msk [vmem:[#allocation2 + $0xa0] sm:$0xf] %vm405_vm1, %v5783_v2  ;;  %v5625_v5 = vunpack.c.h.bf16 %v5623_v25  ;;  %v305_v6 = vmul.f32 %v5843_v3, %v5624_v41  ;;  %v876_v7 = vsel %vm5907_vm8, %v631_v63, %v875_v46  ;;  %v2044_v10 = vsel %vm1469_vm0, %v5291_v61, 0  ;;  %v5308_v12 = vld [vmem:[%s7522_s3 + $0x6] sm:$0x3] }
  0x39   : > { %448 = vst.msk [vmem:[#allocation2 + $0xa4] sm:$0x1] %vm408_vm2, %v5783_v2  ;;  %v1404_v11 = vpack.c.b16 %v1373_v56, %v1372_v51  ;;  %v6098_v13 = vrot.slane %v641_v0, 7  ;;  %2053 = vmatpush.bf16.msrb.mxu2 %v2044_v10  ;;  %v2330_v14 = vsel %vm1469_vm0, %v5308_v12, 0  ;;  %v644_v63 = vshll.u32 %v6038_v30, 16 }
  0x3a   : > { %449 = vst.msk [vmem:[#allocation2 + $0xa8] sm:$0xf] %vm405_vm1, %v5783_v2  ;;  %v306_v15 = vmul.f32 %v5843_v3, %v5625_v5  ;;  %v341_v16 = vadd.f32 %v5854_v8, %v305_v6  ;;  %2339 = vmatpush.bf16.msrb.mxu3 %v2330_v14  ;;  %v1691_v19 = vsel %vm1469_vm0, %v966_v59, 0  ;;  %v5389_v20 = vld [vmem:[%s7522_s3 + $0x8] sm:$0x3]  ;;  %v851_v21 = vsel %vm5898_vm7, %v6067_v52, %v6069_v54 }
  0x3b   : > { %450 = vst.msk [vmem:[#allocation2 + $0xac] sm:$0xf] %vm405_vm1, %v5783_v2  ;;  %v6074_v55 = vld [vmem:[#allocation2 + $0x90] sm:$0xf]  ;;  %5179 = vmatmul.msk.bf16.vlgmr.msra.gmra.mxu0 %vm1420_vm11, %v1404_v11  ;;  %v397_v22 = vmax.f32 %v365_v48, 0.0  ;;  %1700 = vmatpush.bf16.msrb.mxu1 %v1691_v19  ;;  %v579_v23 = vsel %vm5890_vm6, %v571_v57, %v578_v58  ;;  %v398_v24 = vmax.f32 %v366_v49, 0.0  ;;  %v855_v26 = vsel %vm5907_vm8, %v580_v62, %v854_v1 }
  0x3c   : > { %451 = vst.msk [vmem:[#allocation2 + $0xb0] sm:$0x1] %vm408_vm2, %v5783_v2  ;;  %v900_v18 = vsel %vm5898_vm7, %v6004_v53, %v6074_v55  ;;  %v2984_v53 = vsel %vm1469_vm0, %v5389_v20, 0  ;;  %v342_v25 = vadd.f32 %v5854_v8, %v306_v15  ;;  %v6135_v27 = vor.u32 %v636_v60, %v6085_v4  ;;  %v878_v30 = vld [vmem:[#allocation2 + $0x6c] sm:$0xf] }
  0x3d   : > { %452 = vst.msk [vmem:[#allocation2 + $0xb4] sm:$0xf] %vm405_vm1, %v5783_v2  ;;  %v903_v9 = vld [vmem:[#allocation2 + $0x98] sm:$0x1]  ;;  %2993 = vmatpush.bf16.msrb.mxu0 %v2984_v53  ;;  %v485_v28 = vpack.c.bf16 %v397_v22, %v397_v22  ;;  %v486_v31 = vpack.c.bf16 %v398_v24, %v398_v24  ;;  %v373_v32 = vmax.f32 %v341_v16, 0.0  ;;  %v639_v34 = vrot.slane %v6085_v4, 4 }
  0x3e   : > { %453 = vst.msk [vmem:[#allocation2 + $0xb8] sm:$0xf] %vm405_vm1, %v5783_v2  ;;  %v904_v29 = vsel %vm5907_vm8, %v699_v17, %v903_v9  ;;  %v374_v33 = vmax.f32 %v342_v25, 0.0  ;;  %v646_v38 = vor.u32 %v644_v63, %v6098_v13  ;;  %v5690_v17 = vld [vmem:[%s5838_s25 + $0x28] sm:$0xff]   ;;  %v648_v48 = vrot.slane %v6098_v13, 4 }
  0x3f   : > { %454 = vst.msk [vmem:[#allocation2 + $0xbc] sm:$0x1] %vm408_vm2, %v5783_v2  ;;  %v701_v39 = vshrl.u32 %v485_v28, 16  ;;  %v704_v41 = vshll.u32 %v485_v28, 16  ;;  %v712_v45 = vshll.u32 %v486_v31, 16  ;;  %v461_v46 = vpack.c.bf16 %v373_v32, %v373_v32  ;;  %v6153_v55 = vld [vmem:[%s5838_s25 + $0x48] sm:$0xff]  }
  0x40   : > { %455 = vst.msk [vmem:[#allocation2 + $0xc0] sm:$0xf] %vm405_vm1, %v5783_v2  ;;  %v462_v47 = vpack.c.bf16 %v374_v33, %v374_v33  ;;  %v882_v49 = vld [vmem:[#allocation2 + $0x74] sm:$0x1]  ;;  %v5644_v51 = vunpack.c.l.bf16 %v5690_v17  ;;  %v5645_v0 = vunpack.c.h.bf16 %v5690_v17  ;;  %v6159_v56 = vsel %vm5890_vm6, %v639_v34, %v646_v38  ;;  %v6163_v60 = vld [vmem:[#allocation2 + $0x9c] sm:$0xf] }
  0x41   : > { %456 = vst.msk [vmem:[#allocation2 + $0xc4] sm:$0xf] %vm405_vm1, %v5783_v2  ;;  %v703_v50 = vrot.slane %v701_v39, 7  ;;  %v497_v54 = vshrl.u32 %v461_v46, 16  ;;  %v500_v5 = vshll.u32 %v461_v46, 16  ;;  %v5660_v10 = vunpack.c.l.bf16 %v6153_v55 }
  0x42   : > { %457 = vst.msk [vmem:[#allocation2 + $0xc8] sm:$0x1] %vm408_vm2, %v5783_v2  ;;  %v315_v61 = vmul.f32 %v5843_v3, %v5644_v51  ;;  %v910_v6 = vld [vmem:[#allocation2 + $0xa4] sm:$0x1]  ;;  %v508_v9 = vshll.u32 %v462_v47, 16  ;;  %v6182_v14 = vmul.f32 %v5843_v3, %v5645_v0  ;;  %v5661_v19 = vunpack.c.h.bf16 %v6153_v55 }
  0x43   : > { %458 = vst.msk [vmem:[#allocation2 + $0xcc] sm:$0xf] %vm405_vm1, %v5783_v2  ;;  %v6161_v57 = vor.u32 %v704_v41, %v703_v50  ;;  %v707_v58 = vrot.slane %v703_v50, 4  ;;  %v6166_v4 = vrot.slane %v497_v54, 7  ;;  %v820_v24 = vld [vmem:[#allocation2 + $0xc] sm:$0xf] }
  0x44   : > { %459 = vst.msk [vmem:[#allocation2 + $0xd0] sm:$0xf] %vm405_vm1, %v5783_v2  ;;  %v6185_v59 = vadd.f32 %v5854_v8, %v315_v61 }
  0x45   : > { %460 = vst.msk [vmem:[#allocation2 + $0xd4] sm:$0x1] %vm408_vm2, %v5783_v2  ;;  %v709_v2 = vshrl.u32 %v486_v31, 16  ;;  %v907_v12 = vsel %vm5898_vm7, %v6161_v57, %v6163_v60  ;;  %v503_v13 = vrot.slane %v6166_v4, 4 }
  0x46   : > { %873 = vst [vmem:[#allocation2 + $0x60] sm:$0xf] %v872_v42  ;;  %v879_v42 = vsel %vm5898_vm7, %v6135_v27, %v878_v30 }
  0x47   : > { %874 = vst.msk [vmem:[#allocation2 + $0x64] sm:$0xf] %vm405_vm1, %v5986_v44  ;;  %v711_v52 = vrot.slane %v709_v2, 7  ;;  %v505_v44 = vshrl.u32 %v462_v47, 16 }
  0x48   : > { %877 = vst [vmem:[#allocation2 + $0x68] sm:$0x1] %v876_v7 }
  0x49   : > { %901 = vst [vmem:[#allocation2 + $0x90] sm:$0xf] %v900_v18  ;;  %v714_v62 = vor.u32 %v712_v45, %v711_v52  ;;  %v716_v1 = vrot.slane %v711_v52, 4  ;;  %v6172_v7 = vrot.slane %v505_v44, 7 }
  0x4a   : > { %902 = vst.msk [vmem:[#allocation2 + $0x94] sm:$0xf] %vm405_vm1, %v6049_v37  ;;  %v6170_v37 = vsel %vm5907_vm8, %v648_v48, %v882_v49 }
  0x4b   : > { %905 = vst [vmem:[#allocation2 + $0x98] sm:$0x1] %v904_v29  ;;  %v715_v18 = vsel %vm5890_vm6, %v707_v58, %v714_v62  ;;  %v911_v53 = vsel %vm5907_vm8, %v716_v1, %v910_v6 }
  0x4c   : > { %852 = vst [vmem:[#allocation2 + $0x3c] sm:$0xf] %v851_v21 }
  0x4d   : > { %v950_v11 = vld [vmem:[#allocation2 + $0x60] sm:$0xf]  ;;  %853 = vst.msk [vmem:[#allocation2 + $0x40] sm:$0xf] %vm405_vm1, %v579_v23  ;;  %v502_v23 = vor.u32 %v500_v5, %v6166_v4 }
  0x4e   : > { %v951_v63 = vld [vmem:[#allocation2 + $0x64] sm:$0xf]  ;;  %v1179_v15 = vshrl.u32 %v950_v11, 16  ;;  %v1182_v16 = vshll.u32 %v950_v11, 16  ;;  %856 = vst [vmem:[#allocation2 + $0x44] sm:$0x1] %v855_v26  ;;  %v510_v26 = vor.u32 %v508_v9, %v6172_v7 }
  0x4f   : > { %v975_v20 = vld [vmem:[#allocation2 + $0x68] sm:$0x1]  ;;  %v1188_v21 = vshll.u32 %v951_v63, 16  ;;  %v1192_v22 = vshrl.u32 %v951_v63, 16  ;;  %880 = vst [vmem:[#allocation2 + $0x6c] sm:$0xf] %v879_v42  ;;  %v821_v54 = vsel %vm5898_vm7, %v502_v23, %v820_v24 }
  0x50   : > { %v1181_v25 = vrot.slane %v1179_v15, 4  ;;  %v1184_v27 = vrot.slane %v1182_v16, 5  ;;  %v1198_v28 = vshll.u32 %v975_v20, 16  ;;  %v958_v29 = vld [vmem:[#allocation2 + $0x90] sm:$0xf] }
  0x51   : > { %v1190_v30 = vrot.slane %v1188_v21, 5  ;;  %v1194_v31 = vrot.slane %v1192_v22, 4  ;;  %v959_v32 = vld [vmem:[#allocation2 + $0x94] sm:$0xf]  ;;  %v1275_v33 = vshrl.u32 %v958_v29, 16  ;;  %v1278_v34 = vshll.u32 %v958_v29, 16 }
  0x52   : > { %v1185_v38 = vor.u32 %v1184_v27, %v1181_v25  ;;  %v1200_v39 = vrot.slane %v1198_v28, 5  ;;  %v979_v41 = vld [vmem:[#allocation2 + $0x98] sm:$0x1]  ;;  %v1284_v2 = vshll.u32 %v959_v32, 16  ;;  %v1288_v45 = vshrl.u32 %v959_v32, 16 }
  0x53   : > { %v1195_v46 = vor.u32 %v1194_v31, %v1190_v30  ;;  %v1277_v47 = vrot.slane %v1275_v33, 4  ;;  %v1280_v17 = vrot.slane %v1278_v34, 5  ;;  %v1294_v48 = vshll.u32 %v979_v41, 16  ;;  %v944_v42 = vld [vmem:[#allocation2 + $0x3c] sm:$0xf] }
  0x54   : > { %v1186_v49 = vrot.slane %v1185_v38, 4  ;;  %v1286_v50 = vrot.slane %v1284_v2, 5  ;;  %v1290_v51 = vrot.slane %v1288_v45, 4  ;;  %v945_v52 = vld [vmem:[#allocation2 + $0x40] sm:$0xf]  ;;  %v1107_v60 = vshrl.u32 %v944_v42, 16 }
  0x55   : > { %v1196_v44 = vrot.slane %v1195_v46, 4  ;;  %v1281_v0 = vor.u32 %v1280_v17, %v1277_v47  ;;  %v1296_v57 = vrot.slane %v1294_v48, 5  ;;  %v972_v58 = vld [vmem:[#allocation2 + $0x44] sm:$0x1]  ;;  %v1110_v1 = vshll.u32 %v944_v42, 16 }
  0x56   : > { %v1191_v61 = vsel %vm5976_vm12, %v1186_v49, %v1190_v30  ;;  %v1291_v62 = vor.u32 %v1290_v51, %v1286_v50  ;;  %v1116_v5 = vshll.u32 %v945_v52, 16  ;;  %881 = vst.msk [vmem:[#allocation2 + $0x70] sm:$0xf] %vm405_vm1, %v6159_v56  ;;  %v952_v6 = vld [vmem:[#allocation2 + $0x6c] sm:$0xf]  ;;  %v1109_v15 = vrot.slane %v1107_v60, 4 }
  0x57   : > { %v1201_v9 = vsel %vm5976_vm12, %v1196_v44, %v1200_v39  ;;  %v1388_v11 = vunpack.c.l.b16 %v1191_v61  ;;  %v1282_v63 = vrot.slane %v1281_v0, 4  ;;  %884 = vst [vmem:[#allocation2 + $0x74] sm:$0x1] %v6170_v37  ;;  %v1112_v21 = vrot.slane %v1110_v1, 5 }
  0x58   : > { %v1389_v16 = vunpack.c.l.b16 %v1201_v9  ;;  %v1292_v20 = vrot.slane %v1291_v62, 4  ;;  %v1118_v22 = vrot.slane %v1116_v5, 5  ;;  %908 = vst [vmem:[#allocation2 + $0x9c] sm:$0xf] %v907_v12  ;;  %v1120_v24 = vshrl.u32 %v945_v52, 16 }
  0x59   : > { %v1287_v23 = vsel %vm5976_vm12, %v1282_v63, %v1286_v50  ;;  %v1126_v25 = vshll.u32 %v972_v58, 16  ;;  %v1203_v56 = vshrl.u32 %v952_v6, 16  ;;  %909 = vst.msk [vmem:[#allocation2 + $0xa0] sm:$0xf] %vm405_vm1, %v715_v18  ;;  %v1113_v30 = vor.u32 %v1112_v21, %v1109_v15  ;;  %v826_v5 = vld [vmem:[#allocation2 + $0x14] sm:$0x1] }
  0x5a   : > { %v1412_v27 = vpack.c.b16 %v1389_v16, %v1388_v11  ;;  %v1297_v28 = vsel %vm5976_vm12, %v1292_v20, %v1296_v57  ;;  %v1396_v29 = vunpack.c.l.b16 %v1287_v23  ;;  %912 = vst [vmem:[#allocation2 + $0xa4] sm:$0x1] %v911_v53  ;;  %v1122_v31 = vrot.slane %v1120_v24, 4 }
  0x5b   : > { %v1397_v37 = vunpack.c.l.b16 %v1297_v28  ;;  %822 = vst [vmem:[#allocation2 + $0xc] sm:$0xf] %v821_v54  ;;  %v6210_v12 = vadd.f32 %v5854_v8, %v6182_v14  ;;  %v6215_v32 = vmul.f32 %v5843_v3, %v5660_v10  ;;  %v1114_v18 = vrot.slane %v1113_v30, 4 }
  0x5c   : > { %5187 = vmatmul.msk.bf16.vlgmr.msra.gmra.mxu2 %vm1420_vm11, %v1412_v27  ;;  %v1205_v33 = vrot.slane %v1203_v56, 4  ;;  %v1206_v34 = vshll.u32 %v952_v6, 16  ;;  %v511_v53 = vsel %vm5890_vm6, %v503_v13, %v510_v26  ;;  %v1123_v39 = vor.u32 %v1122_v31, %v1118_v22 }
  0x5d   : > { %v1416_v38 = vpack.c.b16 %v1397_v37, %v1396_v29  ;;  %v1128_v41 = vrot.slane %v1126_v25, 5  ;;  %v953_v14 = vld [vmem:[#allocation2 + $0x70] sm:$0xf]  ;;  %v512_v2 = vrot.slane %v6172_v7, 4  ;;  %823 = vst.msk [vmem:[#allocation2 + $0x10] sm:$0xf] %vm405_vm1, %v511_v53  ;;  %v1119_v10 = vsel %vm5976_vm12, %v1114_v18, %v1118_v22 }
  0x5e   : > { %v976_v45 = vld [vmem:[#allocation2 + $0x74] sm:$0x1]  ;;  %v1208_v46 = vrot.slane %v1206_v34, 5  ;;  %v1212_v47 = vshll.u32 %v953_v14, 16  ;;  %v1216_v17 = vshrl.u32 %v953_v14, 16  ;;  %v1124_v4 = vrot.slane %v1123_v39, 4 }
  0x5f   : > { %5191 = vmatmul.msk.bf16.vlgmr.msra.gmra.mxu3 %vm1420_vm11, %v1416_v38  ;;  %v1382_v48 = vunpack.c.l.b16 %v1119_v10  ;;  %v1222_v13 = vshll.u32 %v976_v45, 16  ;;  %v960_v26 = vld [vmem:[#allocation2 + $0x9c] sm:$0xf]  ;;  %v383_v42 = vmax.f32 %v6185_v59, 0.0  ;;  %v384_v22 = vmax.f32 %v6210_v12, 0.0 }
  0x60   : > { %v1209_v49 = vor.u32 %v1208_v46, %v1205_v33  ;;  %v1214_v50 = vrot.slane %v1212_v47, 5  ;;  %v1218_v7 = vrot.slane %v1216_v17, 4  ;;  %v961_v51 = vld [vmem:[#allocation2 + $0xa0] sm:$0xf]  ;;  %v1299_v52 = vshrl.u32 %v960_v26, 16 }
  0x61   : > { %v1129_v54 = vsel %vm5976_vm12, %v1124_v4, %v1128_v41  ;;  %v1224_v44 = vrot.slane %v1222_v13, 5  ;;  %v980_v0 = vld [vmem:[#allocation2 + $0xa4] sm:$0x1]  ;;  %v1302_v57 = vshll.u32 %v960_v26, 16  ;;  %v1308_v58 = vshll.u32 %v961_v51, 16 }
  0x62   : > { %v1383_v60 = vunpack.c.l.b16 %v1129_v54  ;;  %v1210_v61 = vrot.slane %v1209_v49, 4  ;;  %v1219_v62 = vor.u32 %v1218_v7, %v1214_v50  ;;  %v1301_v1 = vrot.slane %v1299_v52, 4  ;;  %v936_v63 = vld [vmem:[#allocation2 + $0xc] sm:$0xf] }
  0x63   : > { %v1304_v6 = vrot.slane %v1302_v57, 5  ;;  %v1310_v9 = vrot.slane %v1308_v58, 5  ;;  %v1312_v59 = vshrl.u32 %v961_v51, 16  ;;  %v1318_v11 = vshll.u32 %v980_v0, 16 }
  0x64   : > { %v1409_v15 = vpack.c.b16 %v1383_v60, %v1382_v48  ;;  %v1215_v16 = vsel %vm5976_vm12, %v1210_v61, %v1214_v50  ;;  %v1220_v20 = vrot.slane %v1219_v62, 4  ;;  %v6232_v21 = vld [vmem:[#allocation2 + $0x10] sm:$0xf]  ;;  %v827_v28 = vsel %vm5907_vm8, %v512_v2, %v826_v5  ;;  %v857_v60 = vld [vmem:[#allocation2 + $0x48] sm:$0xf] }
  0x65   : > { %v1390_v23 = vunpack.c.l.b16 %v1215_v16  ;;  %v1305_v24 = vor.u32 %v1304_v6, %v1301_v1  ;;  %v1314_v25 = vrot.slane %v1312_v59, 4  ;;  %v1320_v56 = vrot.slane %v1318_v11, 5  ;;  %828 = vst [vmem:[#allocation2 + $0x14] sm:$0x1] %v827_v28  ;;  %v861_v6 = vld [vmem:[#allocation2 + $0x50] sm:$0x1] }
  0x66   : > { %5184 = vmatmul.msk.bf16.gmra.mxu1 %vm1420_vm11, %v1409_v15  ;;  %v1225_v27 = vsel %vm5976_vm12, %v1220_v20, %v1224_v44  ;;  %v1011_v29 = vshrl.u32 %v936_v63, 16  ;;  %v1014_v30 = vshll.u32 %v936_v63, 16  ;;  %v1020_v12 = vshll.u32 %v6232_v21, 16  ;;  %v5698_v44 = vld [vmem:[%s5838_s25 + $0x68] sm:$0xff]  }
  0x67   : > { %v1391_v37 = vunpack.c.l.b16 %v1225_v27  ;;  %v1306_v31 = vrot.slane %v1305_v24, 4  ;;  %v1315_v18 = vor.u32 %v1314_v25, %v1310_v9  ;;  %v1024_v53 = vshrl.u32 %v6232_v21, 16  ;;  %v5686_v63 = vld [vmem:[%s5838_s25 + $0x8] sm:$0xff]  }
  0x68   : > { %v1013_v33 = vrot.slane %v1011_v29, 4  ;;  %v1016_v34 = vrot.slane %v1014_v30, 5  ;;  %v471_v38 = vpack.c.bf16 %v383_v42, %v383_v42  ;;  %v1022_v10 = vrot.slane %v1020_v12, 5 }
  0x69   : > { %v1413_v39 = vpack.c.b16 %v1391_v37, %v1390_v23  ;;  %v1311_v41 = vsel %vm5976_vm12, %v1306_v31, %v1310_v9  ;;  %v1316_v14 = vrot.slane %v1315_v18, 4  ;;  %v1026_v46 = vrot.slane %v1024_v53, 4 }
  0x6a   : > { %v1398_v2 = vunpack.c.l.b16 %v1311_v41  ;;  %v1017_v45 = vor.u32 %v1016_v34, %v1013_v33  ;;  %v472_v47 = vpack.c.bf16 %v384_v22, %v384_v22  ;;  %v582_v4 = vshrl.u32 %v471_v38, 16 }
  0x6b   : > { %v1321_v17 = vsel %vm5976_vm12, %v1316_v14, %v1320_v56  ;;  %v585_v48 = vshll.u32 %v471_v38, 16  ;;  %v324_v13 = vmul.f32 %v5843_v3, %v5661_v19  ;;  %v1027_v49 = vor.u32 %v1026_v46, %v1022_v10 }
  0x6c   : > { %5188 = vmatmul.msk.bf16.gmra.mxu2 %vm1420_vm11, %v1413_v39  ;;  %v1399_v26 = vunpack.c.l.b16 %v1321_v17  ;;  %v1018_v42 = vrot.slane %v1017_v45, 4  ;;  %v590_v50 = vshrl.u32 %v472_v47, 16  ;;  %v584_v7 = vrot.slane %v582_v4, 7  ;;  %v6254_v57 = vld [vmem:[#allocation2 + $0x14] sm:$0x1] }
  0x6d   : > { %v593_v51 = vshll.u32 %v472_v47, 16  ;;  %v359_v52 = vadd.f32 %v5854_v8, %v6215_v32  ;;  %v360_v54 = vadd.f32 %v5854_v8, %v324_v13  ;;  %v1028_v19 = vrot.slane %v1027_v49, 4  ;;  %v885_v45 = vld [vmem:[#allocation2 + $0x78] sm:$0xf] }
  0x6e   : > { %v1417_v0 = vpack.c.b16 %v1399_v26, %v1398_v2  ;;  %v1023_v55 = vsel %vm5976_vm12, %v1018_v42, %v1022_v10  ;;  %v592_v58 = vrot.slane %v590_v50, 7  ;;  %v1030_v61 = vshll.u32 %v6254_v57, 16  ;;  %v6281_v2 = vld [vmem:[%s5838_s25 + $0x30] sm:$0xff]   ;;  %v889_v26 = vld [vmem:[#allocation2 + $0x80] sm:$0x1] }
  0x6f   : > { %v1374_v62 = vunpack.c.l.b16 %v1023_v55  ;;  %v587_v1 = vor.u32 %v585_v48, %v584_v7  ;;  %v588_v5 = vrot.slane %v584_v7, 4  ;;  %v391_v59 = vmax.f32 %v359_v52, 0.0  ;;  %v6288_v7 = vld [vmem:[%s7521_s2] ss:$0 sm:$0xff] }
  0x70   : > { %5192 = vmatmul.msk.bf16.gmra.mxu3 %vm1420_vm11, %v1417_v0  ;;  %v595_v32 = vor.u32 %v593_v51, %v592_v58  ;;  %v597_v9 = vrot.slane %v592_v58, 4  ;;  %v392_v11 = vmax.f32 %v360_v54, 0.0  ;;  %v1032_v15 = vrot.slane %v1030_v61, 5 }
  0x71   : > { %v858_v16 = vsel %vm5898_vm7, %v587_v1, %v857_v60  ;;  %v5676_v20 = vunpack.c.l.bf16 %v5698_v44  ;;  %v5677_v22 = vunpack.c.h.bf16 %v5698_v44  ;;  %v479_v25 = vpack.c.bf16 %v391_v59, %v391_v59 }
  0x72   : > { %v596_v23 = vsel %vm5890_vm6, %v588_v5, %v595_v32  ;;  %859 = vst [vmem:[#allocation2 + $0x48] sm:$0xf] %v858_v16  ;;  %v862_v24 = vsel %vm5907_vm8, %v597_v9, %v861_v6  ;;  %v480_v56 = vpack.c.bf16 %v392_v11, %v392_v11  ;;  %v1033_v27 = vsel %vm5976_vm12, %v1028_v19, %v1032_v15 }
  0x73   : > { %860 = vst.msk [vmem:[#allocation2 + $0x4c] sm:$0xf] %vm405_vm1, %v596_v23  ;;  %v331_v28 = vmul.f32 %v5843_v3, %v5676_v20  ;;  %v332_v29 = vmul.f32 %v5843_v3, %v5677_v22  ;;  %v5628_v30 = vunpack.c.l.bf16 %v5686_v63  ;;  %v1375_v37 = vunpack.c.l.b16 %v1033_v27  ;;  %v6277_v3 = vld [vmem:[%s7520_s1] ss:$0 sm:$0xff] }
  0x74   : > { %863 = vst [vmem:[#allocation2 + $0x50] sm:$0x1] %v862_v24  ;;  %v650_v31 = vshrl.u32 %v479_v25, 16  ;;  %v653_v18 = vshll.u32 %v479_v25, 16  ;;  %v658_v12 = vshrl.u32 %v480_v56, 16  ;;  %v661_v33 = vshll.u32 %v480_v56, 16 }
  0x75   : > { %v367_v34 = vadd.f32 %v5854_v8, %v331_v28  ;;  %v368_v53 = vadd.f32 %v5854_v8, %v332_v29  ;;  %v5629_v38 = vunpack.c.h.bf16 %v5686_v63  ;;  %v1405_v39 = vpack.c.b16 %v1375_v37, %v1374_v62  ;;  %v913_v56 = vld [vmem:[#allocation2 + $0xa8] sm:$0xf] }
  0x76   : > { %v652_v41 = vrot.slane %v650_v31, 7  ;;  %v660_v14 = vrot.slane %v658_v12, 7  ;;  %v307_v10 = vmul.f32 %v6277_v3, %v5628_v30  ;;  %v5648_v52 = vunpack.c.l.bf16 %v6281_v2 }
  0x77   : > { %v399_v46 = vmax.f32 %v367_v34, 0.0  ;;  %v400_v47 = vmax.f32 %v368_v53, 0.0  ;;  %v308_v17 = vmul.f32 %v6277_v3, %v5629_v38  ;;  %5180 = vmatmul.msk.bf16.gmra.mxu0 %vm1420_vm11, %v1405_v39  ;;  %v5649_v31 = vunpack.c.h.bf16 %v6281_v2 }
  0x78   : > { %v655_v8 = vor.u32 %v653_v18, %v652_v41  ;;  %v656_v4 = vrot.slane %v652_v41, 4  ;;  %v663_v48 = vor.u32 %v661_v33, %v660_v14  ;;  %v665_v13 = vrot.slane %v660_v14, 4  ;;  %v917_v41 = vld [vmem:[#allocation2 + $0xb0] sm:$0x1] }
  0x79   : > { %v946_v42 = vld [vmem:[#allocation2 + $0x48] sm:$0xf]  ;;  %v487_v49 = vpack.c.bf16 %v399_v46, %v399_v46  ;;  %v488_v50 = vpack.c.bf16 %v400_v47, %v400_v47  ;;  %v343_v51 = vadd.f32 %v6288_v7, %v307_v10  ;;  %v344_v1 = vadd.f32 %v6288_v7, %v308_v17 }
  0x7a   : > { %v947_v54 = vld [vmem:[#allocation2 + $0x4c] sm:$0xf]  ;;  %v1131_v44 = vshrl.u32 %v946_v42, 16  ;;  %v1134_v0 = vshll.u32 %v946_v42, 16  ;;  %v664_v55 = vsel %vm5890_vm6, %v656_v4, %v663_v48  ;;  %v886_v19 = vsel %vm5898_vm7, %v655_v8, %v885_v45 }
  0x7b   : > { %v973_v58 = vld [vmem:[#allocation2 + $0x50] sm:$0x1]  ;;  %v1140_v60 = vshll.u32 %v947_v54, 16  ;;  %v1144_v61 = vshrl.u32 %v947_v54, 16  ;;  %887 = vst [vmem:[#allocation2 + $0x78] sm:$0xf] %v886_v19  ;;  %v890_v62 = vsel %vm5907_vm8, %v665_v13, %v889_v26  ;;  %v317_v34 = vmul.f32 %v6277_v3, %v5648_v52 }
  0x7c   : > { %v1133_v5 = vrot.slane %v1131_v44, 4  ;;  %v1136_v6 = vrot.slane %v1134_v0, 5  ;;  %v1150_v32 = vshll.u32 %v973_v58, 16  ;;  %888 = vst.msk [vmem:[#allocation2 + $0x7c] sm:$0xf] %vm405_vm1, %v664_v55  ;;  %v718_v9 = vshrl.u32 %v487_v49, 16 }
  0x7d   : > { %v1142_v59 = vrot.slane %v1140_v60, 5  ;;  %v1146_v11 = vrot.slane %v1144_v61, 4  ;;  %891 = vst [vmem:[#allocation2 + $0x80] sm:$0x1] %v890_v62  ;;  %v721_v63 = vshll.u32 %v487_v49, 16  ;;  %v726_v15 = vshrl.u32 %v488_v50, 16 }
  0x7e   : > { %v1137_v16 = vor.u32 %v1136_v6, %v1133_v5  ;;  %v1152_v20 = vrot.slane %v1150_v32, 5  ;;  %v720_v22 = vrot.slane %v718_v9, 7  ;;  %v729_v23 = vshll.u32 %v488_v50, 16  ;;  %v5695_v55 = vld [vmem:[%s5838_s25 + $0x50] sm:$0xff]  }
  0x7f   : > { %v1147_v24 = vor.u32 %v1146_v11, %v1142_v59  ;;  %v728_v25 = vrot.slane %v726_v15, 7  ;;  %v375_v27 = vmax.f32 %v343_v51, 0.0  ;;  %v376_v28 = vmax.f32 %v344_v1, 0.0 }
  0x80   : > { %v1138_v29 = vrot.slane %v1137_v16, 4  ;;  %v723_v30 = vor.u32 %v721_v63, %v720_v22  ;;  %v724_v37 = vrot.slane %v720_v22, 4  ;;  %v318_v51 = vmul.f32 %v6277_v3, %v5649_v31 }
  0x81   : > { %v1148_v18 = vrot.slane %v1147_v24, 4  ;;  %v731_v12 = vor.u32 %v729_v23, %v728_v25  ;;  %v733_v33 = vrot.slane %v728_v25, 4  ;;  %v463_v14 = vpack.c.bf16 %v375_v27, %v375_v27  ;;  %v829_v27 = vld [vmem:[#allocation2 + $0x18] sm:$0xf] }
  0x82   : > { %v1143_v53 = vsel %vm5976_vm12, %v1138_v29, %v1142_v59  ;;  %v954_v38 = vld [vmem:[#allocation2 + $0x78] sm:$0xf]  ;;  %v914_v39 = vsel %vm5898_vm7, %v723_v30, %v913_v56  ;;  %v464_v10 = vpack.c.bf16 %v376_v28, %v376_v28  ;;  %v353_v6 = vadd.f32 %v6288_v7, %v317_v34 }
  0x83   : > { %v1153_v45 = vsel %vm5976_vm12, %v1148_v18, %v1152_v20  ;;  %v1384_v46 = vunpack.c.l.b16 %v1143_v53  ;;  %v955_v2 = vld [vmem:[#allocation2 + $0x7c] sm:$0xf]  ;;  %v1227_v47 = vshrl.u32 %v954_v38, 16  ;;  %v1230_v17 = vshll.u32 %v954_v38, 16  ;;  %915 = vst [vmem:[#allocation2 + $0xa8] sm:$0xf] %v914_v39 }
  0x84   : > { %v1385_v8 = vunpack.c.l.b16 %v1153_v45  ;;  %v977_v4 = vld [vmem:[#allocation2 + $0x80] sm:$0x1]  ;;  %v1236_v48 = vshll.u32 %v955_v2, 16  ;;  %v1240_v13 = vshrl.u32 %v955_v2, 16  ;;  %v732_v26 = vsel %vm5890_vm6, %v724_v37, %v731_v12 }
  0x85   : > { %v1229_v42 = vrot.slane %v1227_v47, 4  ;;  %v1232_v49 = vrot.slane %v1230_v17, 5  ;;  %v1246_v50 = vshll.u32 %v977_v4, 16  ;;  %916 = vst.msk [vmem:[#allocation2 + $0xac] sm:$0xf] %vm405_vm1, %v732_v26  ;;  %v918_v0 = vsel %vm5907_vm8, %v733_v33, %v917_v41  ;;  %v6327_v17 = vld [vmem:[%s5838_s25 + $0x70] sm:$0xff]  }
  0x86   : > { %v1410_v52 = vpack.c.b16 %v1385_v8, %v1384_v46  ;;  %v1238_v54 = vrot.slane %v1236_v48, 5  ;;  %v1242_v44 = vrot.slane %v1240_v13, 4  ;;  %919 = vst [vmem:[#allocation2 + $0xb0] sm:$0x1] %v918_v0  ;;  %v514_v60 = vshrl.u32 %v463_v14, 16 }
  0x87   : > { %v1233_v19 = vor.u32 %v1232_v49, %v1229_v42  ;;  %v1248_v58 = vrot.slane %v1246_v50, 5  ;;  %v517_v61 = vshll.u32 %v463_v14, 16  ;;  %v522_v1 = vshrl.u32 %v464_v10, 16  ;;  %v833_v53 = vld [vmem:[#allocation2 + $0x20] sm:$0x1] }
  0x88   : > { %5185 = vmatmul.msk.bf16.gmra.mxu1 %vm1420_vm11, %v1410_v52  ;;  %v1243_v62 = vor.u32 %v1242_v44, %v1238_v54  ;;  %v525_v5 = vshll.u32 %v464_v10, 16  ;;  %v516_v9 = vrot.slane %v514_v60, 7  ;;  %v354_v59 = vadd.f32 %v6288_v7, %v318_v51 }
  0x89   : > { %v1234_v32 = vrot.slane %v1233_v19, 4  ;;  %v5664_v11 = vunpack.c.l.bf16 %v5695_v55  ;;  %v524_v16 = vrot.slane %v522_v1, 7  ;;  %v385_v20 = vmax.f32 %v353_v6, 0.0 }
  0x8a   : > { %v1244_v63 = vrot.slane %v1243_v62, 4  ;;  %v962_v15 = vld [vmem:[#allocation2 + $0xa8] sm:$0xf]  ;;  %v5665_v22 = vunpack.c.h.bf16 %v5695_v55  ;;  %v519_v56 = vor.u32 %v517_v61, %v516_v9  ;;  %v520_v37 = vrot.slane %v516_v9, 4 }
  0x8b   : > { %v1239_v23 = vsel %vm5976_vm12, %v1234_v32, %v1238_v54  ;;  %v1323_v24 = vshrl.u32 %v962_v15, 16  ;;  %v1326_v25 = vshll.u32 %v962_v15, 16  ;;  %v527_v31 = vor.u32 %v525_v5, %v524_v16 }
  0x8c   : > { %v1249_v28 = vsel %vm5976_vm12, %v1244_v63, %v1248_v58  ;;  %v1392_v29 = vunpack.c.l.b16 %v1239_v23  ;;  %v963_v30 = vld [vmem:[#allocation2 + $0xac] sm:$0xf]  ;;  %v529_v14 = vrot.slane %v524_v16, 4  ;;  %v830_v10 = vsel %vm5898_vm7, %v519_v56, %v829_v27  ;;  %v6340_v58 = vld [vmem:[%s5838_s25 + $0x10] sm:$0xff]  }
  0x8d   : > { %v1393_v18 = vunpack.c.l.b16 %v1249_v28  ;;  %v1325_v12 = vrot.slane %v1323_v24, 4  ;;  %v1328_v33 = vrot.slane %v1326_v25, 5  ;;  %v1332_v34 = vshll.u32 %v963_v30, 16  ;;  %v981_v38 = vld [vmem:[#allocation2 + $0xb0] sm:$0x1] }
  0x8e   : > { %v1336_v39 = vshrl.u32 %v963_v30, 16  ;;  %v528_v41 = vsel %vm5890_vm6, %v520_v37, %v527_v31  ;;  %v1342_v47 = vshll.u32 %v981_v38, 16  ;;  %831 = vst [vmem:[#allocation2 + $0x18] sm:$0xf] %v830_v10  ;;  %v834_v4 = vsel %vm5907_vm8, %v529_v14, %v833_v53  ;;  %v864_v56 = vld [vmem:[#allocation2 + $0x54] sm:$0xf] }
  0x8f   : > { %v1414_v45 = vpack.c.b16 %v1393_v18, %v1392_v29  ;;  %v1329_v46 = vor.u32 %v1328_v33, %v1325_v12  ;;  %v1334_v2 = vrot.slane %v1332_v34, 5  ;;  %832 = vst.msk [vmem:[#allocation2 + $0x1c] sm:$0xf] %vm405_vm1, %v528_v41  ;;  %v386_v48 = vmax.f32 %v354_v59, 0.0  ;;  %v868_v34 = vld [vmem:[#allocation2 + $0x5c] sm:$0x1] }
  0x90   : > { %v1338_v8 = vrot.slane %v1336_v39, 4  ;;  %v1344_v26 = vrot.slane %v1342_v47, 5  ;;  %835 = vst [vmem:[#allocation2 + $0x20] sm:$0x1] %v834_v4  ;;  %v473_v42 = vpack.c.bf16 %v385_v20, %v385_v20  ;;  %v325_v49 = vmul.f32 %v6277_v3, %v5664_v11 }
  0x91   : > { %5189 = vmatmul.msk.bf16.gmra.mxu2 %vm1420_vm11, %v1414_v45  ;;  %v1330_v13 = vrot.slane %v1329_v46, 4  ;;  %v474_v51 = vpack.c.bf16 %v386_v48, %v386_v48  ;;  %v326_v52 = vmul.f32 %v6277_v3, %v5665_v22  ;;  %v5680_v54 = vunpack.c.l.bf16 %v6327_v17 }
  0x92   : > { %v1339_v50 = vor.u32 %v1338_v8, %v1334_v2  ;;  %v599_v0 = vshrl.u32 %v473_v42, 16  ;;  %v602_v55 = vshll.u32 %v473_v42, 16  ;;  %v361_v19 = vadd.f32 %v6288_v7, %v325_v49 }
  0x93   : > { %v1335_v44 = vsel %vm5976_vm12, %v1330_v13, %v1334_v2  ;;  %v607_v62 = vshrl.u32 %v474_v51, 16  ;;  %v610_v1 = vshll.u32 %v474_v51, 16  ;;  %v362_v6 = vadd.f32 %v6288_v7, %v326_v52 }
  0x94   : > { %v1340_v60 = vrot.slane %v1339_v50, 4  ;;  %v1400_v61 = vunpack.c.l.b16 %v1335_v44  ;;  %v601_v5 = vrot.slane %v599_v0, 7  ;;  %v393_v32 = vmax.f32 %v361_v19, 0.0 }
  0x95   : > { %v5681_v9 = vunpack.c.h.bf16 %v6327_v17  ;;  %v938_v11 = vld [vmem:[#allocation2 + $0x18] sm:$0xf]  ;;  %v609_v63 = vrot.slane %v607_v62, 7  ;;  %v333_v15 = vmul.f32 %v6277_v3, %v5680_v54  ;;  %v5632_v16 = vunpack.c.l.bf16 %v6340_v58 }
  0x96   : > { %v1345_v59 = vsel %vm5976_vm12, %v1340_v60, %v1344_v26  ;;  %v6348_v22 = vld [vmem:[#allocation2 + $0x1c] sm:$0xf]  ;;  %v1035_v23 = vshrl.u32 %v938_v11, 16  ;;  %v1038_v24 = vshll.u32 %v938_v11, 16  ;;  %v604_v25 = vor.u32 %v602_v55, %v601_v5 }
  0x97   : > { %v1401_v20 = vunpack.c.l.b16 %v1345_v59  ;;  %v6350_v27 = vld [vmem:[#allocation2 + $0x20] sm:$0x1]  ;;  %v1044_v28 = vshll.u32 %v6348_v22, 16  ;;  %v1048_v29 = vshrl.u32 %v6348_v22, 16  ;;  %v605_v30 = vrot.slane %v601_v5, 4 }
  0x98   : > { %v612_v37 = vor.u32 %v610_v1, %v609_v63  ;;  %v1037_v18 = vrot.slane %v1035_v23, 4  ;;  %v1040_v12 = vrot.slane %v1038_v24, 5  ;;  %v1054_v33 = vshll.u32 %v6350_v27, 16 }
  0x99   : > { %v1418_v31 = vpack.c.b16 %v1401_v20, %v1400_v61  ;;  %v1046_v53 = vrot.slane %v1044_v28, 5  ;;  %v1050_v38 = vrot.slane %v1048_v29, 4  ;;  %v614_v41 = vrot.slane %v609_v63, 4 }
  0x9a   : > { %v613_v39 = vsel %vm5890_vm6, %v605_v30, %v612_v37  ;;  %v1041_v14 = vor.u32 %v1040_v12, %v1037_v18  ;;  %v1056_v10 = vrot.slane %v1054_v33, 5  ;;  %v865_v45 = vsel %vm5898_vm7, %v604_v25, %v864_v56  ;;  %v896_v56 = vld [vmem:[#allocation2 + $0x8c] sm:$0x1] }
  0x9b   : > { %5193 = vmatmul.msk.bf16.gmra.mxu3 %vm1420_vm11, %v1418_v31  ;;  %867 = vst.msk [vmem:[#allocation2 + $0x58] sm:$0xf] %vm405_vm1, %v613_v39  ;;  %v394_v46 = vmax.f32 %v362_v6, 0.0  ;;  %v1051_v2 = vor.u32 %v1050_v38, %v1046_v53  ;;  %v869_v47 = vsel %vm5907_vm8, %v614_v41, %v868_v34  ;;  %v481_v17 = vpack.c.bf16 %v393_v32, %v393_v32 }
  0x9c   : > { %866 = vst [vmem:[#allocation2 + $0x54] sm:$0xf] %v865_v45  ;;  %v334_v8 = vmul.f32 %v6277_v3, %v5681_v9  ;;  %v1042_v4 = vrot.slane %v1041_v14, 4  ;;  %v369_v13 = vadd.f32 %v6288_v7, %v333_v15  ;;  %v5633_v26 = vunpack.c.h.bf16 %v6340_v58  ;;  %v892_v58 = vld [vmem:[#allocation2 + $0x84] sm:$0xf] }
  0x9d   : > { %870 = vst [vmem:[#allocation2 + $0x5c] sm:$0x1] %v869_v47  ;;  %v482_v48 = vpack.c.bf16 %v394_v46, %v394_v46  ;;  %v1052_v42 = vrot.slane %v1051_v2, 4  ;;  %v667_v49 = vshrl.u32 %v481_v17, 16  ;;  %v670_v50 = vshll.u32 %v481_v17, 16 }
  0x9e   : > { %v370_v51 = vadd.f32 %v6288_v7, %v334_v8  ;;  %v1047_v52 = vsel %vm5976_vm12, %v1042_v4, %v1046_v53  ;;  %v401_v0 = vmax.f32 %v369_v13, 0.0  ;;  %v309_v6 = vmul.f32 %v6277_v3, %v5632_v16  ;;  %v920_v4 = vld [vmem:[#allocation2 + $0xb4] sm:$0xf] }
  0x9f   : > { %v675_v54 = vshrl.u32 %v482_v48, 16  ;;  %v678_v44 = vshll.u32 %v482_v48, 16  ;;  %v1057_v55 = vsel %vm5976_vm12, %v1052_v42, %v1056_v10  ;;  %v1376_v19 = vunpack.c.l.b16 %v1047_v52 }
  0xa0   : > { %v669_v60 = vrot.slane %v667_v49, 7  ;;  %v402_v61 = vmax.f32 %v370_v51, 0.0  ;;  %v1377_v62 = vunpack.c.l.b16 %v1057_v55  ;;  %v489_v5 = vpack.c.bf16 %v401_v0, %v401_v0 }
  0xa1   : > { %v677_v1 = vrot.slane %v675_v54, 7  ;;  %v310_v63 = vmul.f32 %v6277_v3, %v5633_v26  ;;  %v345_v47 = vadd.f32 %v6288_v7, %v309_v6  ;;  %v924_v54 = vld [vmem:[#allocation2 + $0xbc] sm:$0x1] }
  0xa2   : > { %v6372_v32 = vld [vmem:[#allocation2 + $0x58] sm:$0xf]  ;;  %v672_v9 = vor.u32 %v670_v50, %v669_v60  ;;  %v673_v59 = vrot.slane %v669_v60, 4  ;;  %v490_v11 = vpack.c.bf16 %v402_v61, %v402_v61  ;;  %v1406_v15 = vpack.c.b16 %v1377_v62, %v1376_v19 }
  0xa3   : > { %v948_v20 = vld [vmem:[#allocation2 + $0x54] sm:$0xf]  ;;  %v1164_v23 = vshll.u32 %v6372_v32, 16  ;;  %v1168_v24 = vshrl.u32 %v6372_v32, 16  ;;  %v680_v25 = vor.u32 %v678_v44, %v677_v1  ;;  %v682_v16 = vrot.slane %v677_v1, 4 }
  0xa4   : > { %v6377_v28 = vld [vmem:[#allocation2 + $0x5c] sm:$0x1]  ;;  %v1155_v29 = vshrl.u32 %v948_v20, 16  ;;  %v1158_v30 = vshll.u32 %v948_v20, 16  ;;  %v893_v37 = vsel %vm5898_vm7, %v672_v9, %v892_v58  ;;  %5181 = vmatmul.msk.bf16.gmra.mxu0 %vm1420_vm11, %v1406_v15  ;;  %v735_v38 = vshrl.u32 %v489_v5, 16 }
  0xa5   : > { %v1166_v31 = vrot.slane %v1164_v23, 5  ;;  %v1170_v3 = vrot.slane %v1168_v24, 4  ;;  %v1174_v18 = vshll.u32 %v6377_v28, 16  ;;  %v681_v12 = vsel %vm5890_vm6, %v673_v59, %v680_v25  ;;  %894 = vst [vmem:[#allocation2 + $0x84] sm:$0xf] %v893_v37 }
  0xa6   : > { %v1157_v33 = vrot.slane %v1155_v29, 4  ;;  %v1160_v34 = vrot.slane %v1158_v30, 5  ;;  %895 = vst.msk [vmem:[#allocation2 + $0x88] sm:$0xf] %vm405_vm1, %v681_v12  ;;  %v897_v53 = vsel %vm5907_vm8, %v682_v16, %v896_v56  ;;  %v738_v14 = vshll.u32 %v489_v5, 16 }
  0xa7   : > { %v1171_v39 = vor.u32 %v1170_v3, %v1166_v31  ;;  %v1176_v41 = vrot.slane %v1174_v18, 5  ;;  %898 = vst [vmem:[#allocation2 + $0x8c] sm:$0x1] %v897_v53  ;;  %v743_v10 = vshrl.u32 %v490_v11, 16  ;;  %v737_v46 = vrot.slane %v735_v38, 7 }
  0xa8   : > { %v1161_v45 = vor.u32 %v1160_v34, %v1157_v33  ;;  %v746_v2 = vshll.u32 %v490_v11, 16  ;;  %v346_v48 = vadd.f32 %v6288_v7, %v310_v63  ;;  %v377_v49 = vmax.f32 %v345_v47, 0.0 }
  0xa9   : > { %v1172_v17 = vrot.slane %v1171_v39, 4  ;;  %v745_v8 = vrot.slane %v743_v10, 7  ;;  %v740_v26 = vor.u32 %v738_v14, %v737_v46  ;;  %v741_v42 = vrot.slane %v737_v46, 4  ;;  %v5717_v14 = vld [vmem:[#allocation2 + $0x4] sm:$0xf] }
  0xaa   : > { %v1162_v13 = vrot.slane %v1161_v45, 4  ;;  %v378_v44 = vmax.f32 %v346_v48, 0.0  ;;  %v465_v7 = vpack.c.bf16 %v377_v49, %v377_v49  ;;  %v1835_v10 = vrot.slane %v5717_v14, 5  ;;  %v840_v49 = vld [vmem:[#allocation2 + $0x2c] sm:$0x1] }
  0xab   : > { %v1177_v50 = vsel %vm5976_vm12, %v1172_v17, %v1176_v41  ;;  %v748_v51 = vor.u32 %v746_v2, %v745_v8  ;;  %v750_v52 = vrot.slane %v745_v8, 4  ;;  %v921_v60 = vsel %vm5898_vm7, %v740_v26, %v920_v4  ;;  %v836_v8 = vld [vmem:[#allocation2 + $0x24] sm:$0xf]  ;;  %v5520_v14 = vld [vmem:[%s7522_s3 + $0xe] sm:$0x3] }
  0xac   : > { %v1167_v0 = vsel %vm5976_vm12, %v1162_v13, %v1166_v31  ;;  %v1387_v55 = vunpack.c.l.b16 %v1177_v50  ;;  %v956_v19 = vld [vmem:[#allocation2 + $0x84] sm:$0xf]  ;;  %922 = vst [vmem:[#allocation2 + $0xb4] sm:$0xf] %v921_v60  ;;  %v466_v63 = vpack.c.bf16 %v378_v44, %v378_v44  ;;  %v531_v29 = vshrl.u32 %v465_v7, 16 }
  0xad   : > { %v1386_v61 = vunpack.c.l.b16 %v1167_v0  ;;  %v957_v62 = vld [vmem:[#allocation2 + $0x88] sm:$0xf]  ;;  %v1251_v1 = vshrl.u32 %v956_v19, 16  ;;  %v1254_v58 = vshll.u32 %v956_v19, 16  ;;  %v749_v5 = vsel %vm5890_vm6, %v741_v42, %v748_v51  ;;  %v1782_v44 = vld [vmem:[#allocation2] sm:$0xe] }
  0xae   : > { %v978_v6 = vld [vmem:[#allocation2 + $0x8c] sm:$0x1]  ;;  %v1260_v9 = vshll.u32 %v957_v62, 16  ;;  %v1264_v59 = vshrl.u32 %v957_v62, 16  ;;  %923 = vst.msk [vmem:[#allocation2 + $0xb8] sm:$0xf] %vm405_vm1, %v749_v5  ;;  %v925_v11 = vsel %vm5907_vm8, %v750_v52, %v924_v54 }
  0xaf   : > { %v1411_v15 = vpack.c.b16 %v1387_v55, %v1386_v61  ;;  %v1253_v20 = vrot.slane %v1251_v1, 4  ;;  %v1256_v23 = vrot.slane %v1254_v58, 5  ;;  %v1270_v24 = vshll.u32 %v978_v6, 16  ;;  %926 = vst [vmem:[#allocation2 + $0xbc] sm:$0x1] %v925_v11 }
  0xb0   : > { %v1262_v25 = vrot.slane %v1260_v9, 5  ;;  %v1266_v56 = vrot.slane %v1264_v59, 4  ;;  %v534_v16 = vshll.u32 %v465_v7, 16  ;;  %v539_v37 = vshrl.u32 %v466_v63, 16  ;;  %v5439_v60 = vld [vmem:[%s7522_s3 + $0xc] sm:$0x3] }
  0xb1   : > { %5186 = vmatmul.msk.bf16.gmra.mxu1 %vm1420_vm11, %v1411_v15  ;;  %v1257_v30 = vor.u32 %v1256_v23, %v1253_v20  ;;  %v1272_v3 = vrot.slane %v1270_v24, 5  ;;  %v533_v18 = vrot.slane %v531_v29, 7  ;;  %v542_v12 = vshll.u32 %v466_v63, 16  ;;  %v5718_v7 = vld [vmem:[#allocation2 + $0x8] sm:$0x1] }
  0xb2   : > { %v1267_v31 = vor.u32 %v1266_v56, %v1262_v25  ;;  %v541_v34 = vrot.slane %v539_v37, 7  ;;  %v1838_v61 = vrot.slane %v5718_v7, 5  ;;  %v5275_v59 = vrot.slane %v1782_v44, 9  ;;  %v5574_v56 = vld [vmem:[#allocation2] sm:$0xff]  ;;  %v2453_v29 = vld [vmem:[#allocation2 + $0xc] sm:$0xf] }
  0xb3   : > { %v1258_v33 = vrot.slane %v1257_v30, 4  ;;  %v964_v38 = vld [vmem:[#allocation2 + $0xb4] sm:$0xf]  ;;  %v536_v39 = vor.u32 %v534_v16, %v533_v18  ;;  %v537_v41 = vrot.slane %v533_v18, 4  ;;  %v1837_v20 = vrot.slane %v1835_v10, 4 }
  0xb4   : > { %v1268_v53 = vrot.slane %v1267_v31, 4  ;;  %v1347_v2 = vshrl.u32 %v964_v38, 16  ;;  %v1350_v47 = vshll.u32 %v964_v38, 16  ;;  %v544_v17 = vor.u32 %v542_v12, %v541_v34  ;;  %v2454_v18 = vld [vmem:[#allocation2 + $0x10] sm:$0xf] }
  0xb5   : > { %v1263_v45 = vsel %vm5976_vm12, %v1258_v33, %v1262_v25  ;;  %v965_v46 = vld [vmem:[#allocation2 + $0xb8] sm:$0xf]  ;;  %v546_v58 = vrot.slane %v541_v34, 4  ;;  %v837_v9 = vsel %vm5898_vm7, %v536_v39, %v836_v8  ;;  %v3669_v23 = vsel %vm1469_vm0, %v5439_v60, 0 }
  0xb6   : > { %v1273_v4 = vsel %vm5976_vm12, %v1268_v53, %v1272_v3  ;;  %v1394_v48 = vunpack.c.l.b16 %v1263_v45  ;;  %v982_v13 = vld [vmem:[#allocation2 + $0xbc] sm:$0x1]  ;;  %v1356_v26 = vshll.u32 %v965_v46, 16  ;;  %v1360_v42 = vshrl.u32 %v965_v46, 16  ;;  %838 = vst [vmem:[#allocation2 + $0x24] sm:$0xf] %v837_v9  ;;  %3678 = vmatpush.bf16.msra.mxu2 %v3669_v23 }
  0xb7   : > { %v1395_v50 = vunpack.c.l.b16 %v1273_v4  ;;  %v1349_v51 = vrot.slane %v1347_v2, 4  ;;  %v1352_v52 = vrot.slane %v1350_v47, 5  ;;  %v1366_v54 = vshll.u32 %v982_v13, 16 }
  0xb8   : > { %v1358_v0 = vrot.slane %v1356_v26, 5  ;;  %v1362_v55 = vrot.slane %v1360_v42, 4  ;;  %v545_v19 = vsel %vm5890_vm6, %v537_v41, %v544_v17  ;;  %v841_v63 = vsel %vm5907_vm8, %v546_v58, %v840_v49  ;;  %v2455_v58 = vld [vmem:[#allocation2 + $0x14] sm:$0x1] }
  0xb9   : > { %v1415_v62 = vpack.c.b16 %v1395_v50, %v1394_v48  ;;  %v1353_v1 = vor.u32 %v1352_v52, %v1349_v51  ;;  %839 = vst.msk [vmem:[#allocation2 + $0x28] sm:$0xf] %vm405_vm1, %v545_v19  ;;  %v1368_v6 = vrot.slane %v1366_v54, 5  ;;  %v1836_v37 = vsel %vm6419_vm15, %v5275_v59, %v1835_v10  ;;  %v5422_v10 = vld [vmem:[%s7522_s3 + $0xa] sm:$0x3] }
  0xba   : > { %v1363_v5 = vor.u32 %v1362_v55, %v1358_v0  ;;  %842 = vst [vmem:[#allocation2 + $0x2c] sm:$0x1] %v841_v63  ;;  %v1839_v3 = vsel %vm6419_vm15, %v1837_v20, %v1838_v61  ;;  %v2502_v33 = vshrl.u32 %v2453_v29, 16  ;;  %v2505_v34 = vshll.u32 %v2453_v29, 16  ;;  %v5553_v51 = vld [vmem:[%s7522_s3 + $0x10] sm:$0x3] }
  0xbb   : > { %5190 = vmatmul.msk.bf16.gmra.mxu2 %vm1420_vm11, %v1415_v62  ;;  %v1354_v11 = vrot.slane %v1353_v1, 4  ;;  %v1947_v41 = vunpack.c.l.b16 %v1836_v37  ;;  %v1948_v46 = vunpack.c.l.b16 %v1839_v3  ;;  %v2511_v2 = vshll.u32 %v2454_v18, 16  ;;  %v1783_v59 = vld [vmem:[#allocation2 + $0xc] sm:$0xe] }
  0xbc   : > { %v1364_v24 = vrot.slane %v1363_v5, 4  ;;  %v2515_v47 = vshrl.u32 %v2454_v18, 16  ;;  %v4323_v17 = vsel %vm1469_vm0, %v5520_v14, 0  ;;  %v2504_v49 = vrot.slane %v2502_v33, 4  ;;  %v5590_v18 = vld [vmem:[#allocation2 + $0xc] sm:$0xff] }
  0xbd   : > { %v1359_v25 = vsel %vm5976_vm12, %v1354_v11, %v1358_v0  ;;  %v940_v45 = vld [vmem:[#allocation2 + $0x24] sm:$0xf]  ;;  %4332 = vmatpush.bf16.msra.mxu3 %v4323_v17  ;;  %v3382_v50 = vsel %vm1469_vm0, %v5422_v10, 0  ;;  %v2507_v0 = vrot.slane %v2505_v34, 5  ;;  %v2513_v19 = vrot.slane %v2511_v2, 5 }
  0xbe   : > { %v1369_v30 = vsel %vm5976_vm12, %v1364_v24, %v1368_v6  ;;  %v1402_v16 = vunpack.c.l.b16 %v1359_v25  ;;  %v1059_v4 = vshrl.u32 %v940_v45, 16  ;;  %v1062_v48 = vshll.u32 %v940_v45, 16  ;;  %3391 = vmatpush.bf16.msra.mxu1 %v3382_v50  ;;  %v2456_v33 = vld [vmem:[#allocation2 + $0x18] sm:$0xf] }
  0xbf   : > { %v1403_v31 = vunpack.c.l.b16 %v1369_v30  ;;  %v2517_v60 = vrot.slane %v2515_v47, 4  ;;  %v4721_v7 = vsel %vm1469_vm0, %v5553_v51, 0  ;;  %v1979_v1 = vpack.c.b16 %v1948_v46, %v1947_v41  ;;  %v2457_v41 = vld [vmem:[#allocation2 + $0x1c] sm:$0xf] }
  0xc0   : > { %v6432_v12 = vld [vmem:[#allocation2 + $0x28] sm:$0xf]  ;;  %v1061_v52 = vrot.slane %v1059_v4, 4  ;;  %v1064_v54 = vrot.slane %v1062_v48, 5  ;;  %4730 = vmatpush.bf16.msra.mxu0 %v4721_v7  ;;  %v1842_v5 = vrot.slane %v6232_v21, 5  ;;  %v2508_v63 = vor.u32 %v2507_v0, %v2504_v49  ;;  %v5575_v21 = vld [vmem:[#allocation2 + $0xc] sm:$0xff] }
  0xc1   : > { %v1419_v53 = vpack.c.b16 %v1403_v31, %v1402_v16  ;;  %v1068_v38 = vshll.u32 %v6432_v12, 16  ;;  %v1072_v39 = vshrl.u32 %v6432_v12, 16  ;;  %5259 = vmatmul.msk.bf16.vlgmr.msrb.gmra.mxu1 %vm1420_vm11, %v5574_v56  ;;  %v6445_v8 = vld [vmem:[#allocation2 + $0x2c] sm:$0x1]  ;;  %v2518_v20 = vor.u32 %v2517_v60, %v2513_v19 }
  0xc2   : > { %v1078_v42 = vshll.u32 %v6445_v8, 16  ;;  %v1065_v61 = vor.u32 %v1064_v54, %v1061_v52  ;;  %v2521_v23 = vshll.u32 %v2455_v58, 16  ;;  %v5276_v56 = vrot.slane %v1783_v59, 9  ;;  %v5591_v58 = vld [vmem:[#allocation2 + $0x18] sm:$0xff] }
  0xc3   : > { %5194 = vmatmul.msk.bf16.gmra.mxu3 %vm1420_vm11, %v1419_v53  ;;  %v1070_v13 = vrot.slane %v1068_v38, 5  ;;  %v1074_v26 = vrot.slane %v1072_v39, 4  ;;  %v1844_v29 = vrot.slane %v1842_v5, 4  ;;  %v1845_v30 = vrot.slane %v6254_v57, 5  ;;  %v1784_v38 = vld [vmem:[#allocation2 + $0x18] sm:$0xe] }
  0xc4   : > { %v1080_v55 = vrot.slane %v1078_v42, 5  ;;  %v1066_v6 = vrot.slane %v1065_v61, 4  ;;  %v2509_v37 = vrot.slane %v2508_v63, 4  ;;  %v2519_v31 = vrot.slane %v2518_v20, 4 }
  0xc5   : > { %v1075_v44 = vor.u32 %v1074_v26, %v1070_v13  ;;  %v2523_v3 = vrot.slane %v2521_v23, 5  ;;  %v1843_v34 = vsel %vm6419_vm15, %v5276_v56, %v1842_v5  ;;  %v1846_v53 = vsel %vm6419_vm15, %v1844_v29, %v1845_v30  ;;  %v2459_v5 = vld [vmem:[#allocation2 + $0x24] sm:$0xf] }
  0xc6   : > { %v1071_v24 = vsel %vm5976_vm12, %v1066_v6, %v1070_v13  ;;  %v1849_v39 = vrot.slane %v6348_v22, 5  ;;  %v1852_v57 = vrot.slane %v6350_v27, 5  ;;  %v5277_v14 = vrot.slane %v1784_v38, 9 }
  0xc7   : > { %v1076_v62 = vrot.slane %v1075_v44, 4  ;;  %v1378_v25 = vunpack.c.l.b16 %v1071_v24  ;;  %v2514_v10 = vsel %vm5976_vm12, %v2509_v37, %v2513_v19  ;;  %v2524_v45 = vsel %vm5976_vm12, %v2519_v31, %v2523_v3  ;;  %v2458_v19 = vld [vmem:[#allocation2 + $0x20] sm:$0x1]  ;;  %v2461_v37 = vld [vmem:[#allocation2 + $0x2c] sm:$0x1] }
  0xc8   : > { %v2526_v46 = vshrl.u32 %v2456_v33, 16  ;;  %v1851_v2 = vrot.slane %v1849_v39, 4  ;;  %v1949_v47 = vunpack.c.l.b16 %v1843_v34  ;;  %v1950_v17 = vunpack.c.l.b16 %v1846_v53 }
  0xc9   : > { %v1081_v9 = vsel %vm5976_vm12, %v1076_v62, %v1080_v55  ;;  %v2529_v4 = vshll.u32 %v2456_v33, 16  ;;  %v1850_v22 = vsel %vm6419_vm15, %v5277_v14, %v1849_v39  ;;  %v2535_v27 = vshll.u32 %v2457_v41, 16  ;;  %v1785_v33 = vld [vmem:[#allocation2 + $0x24] sm:$0xe] }
  0xca   : > { %v1379_v11 = vunpack.c.l.b16 %v1081_v9  ;;  %v2539_v48 = vshrl.u32 %v2457_v41, 16  ;;  %v1853_v13 = vsel %vm6419_vm15, %v1851_v2, %v1852_v57  ;;  %v1951_v26 = vunpack.c.l.b16 %v1850_v22  ;;  %v2463_v22 = vld [vmem:[#allocation2 + $0x34] sm:$0xf] }
  0xcb   : > { %5292 = vmatmul.msk.bf16.vlgmr.msrb.gmra.mxu2 %vm1420_vm11, %v1979_v1  ;;  %v1952_v42 = vunpack.c.l.b16 %v1853_v13  ;;  %v2887_v49 = vunpack.c.l.b16 %v2514_v10  ;;  %v2888_v50 = vunpack.c.l.b16 %v2524_v45  ;;  %v1980_v51 = vpack.c.b16 %v1950_v17, %v1949_v47  ;;  %v5576_v1 = vld [vmem:[#allocation2 + $0x18] sm:$0xff]  ;;  %v5577_v10 = vld [vmem:[#allocation2 + $0x24] sm:$0xff] }
  0xcc   : > { %v1407_v16 = vpack.c.b16 %v1379_v11, %v1378_v25  ;;  %v2528_v54 = vrot.slane %v2526_v46, 4  ;;  %v2531_v44 = vrot.slane %v2529_v4, 5  ;;  %v2537_v0 = vrot.slane %v2535_v27, 5  ;;  %v2460_v11 = vld [vmem:[#allocation2 + $0x28] sm:$0xf] }
  0xcd   : > { %v1981_v52 = vpack.c.b16 %v1952_v42, %v1951_v26  ;;  %v2541_v55 = vrot.slane %v2539_v48, 4  ;;  %v2919_v60 = vpack.c.b16 %v2888_v50, %v2887_v49  ;;  %v2545_v62 = vshll.u32 %v2458_v19, 16  ;;  %v5592_v46 = vld [vmem:[#allocation2 + $0x24] sm:$0xff]  ;;  %v2462_v4 = vld [vmem:[#allocation2 + $0x30] sm:$0xf] }
  0xce   : > { %5182 = vmatmul.msk.bf16.gmra.mxu0 %vm1420_vm11, %v1407_v16  ;;  %v2532_v7 = vor.u32 %v2531_v44, %v2528_v54  ;;  %v2550_v63 = vshrl.u32 %v2459_v5, 16  ;;  %v2553_v20 = vshll.u32 %v2459_v5, 16  ;;  %v2559_v25 = vshll.u32 %v2460_v11, 16  ;;  %v2464_v19 = vld [vmem:[#allocation2 + $0x38] sm:$0x1] }
  0xcf   : > { %v2542_v61 = vor.u32 %v2541_v55, %v2537_v0  ;;  %v2547_v59 = vrot.slane %v2545_v62, 5  ;;  %v2563_v56 = vshrl.u32 %v2460_v11, 16  ;;  %v2569_v38 = vshll.u32 %v2461_v37, 16  ;;  %v6499_v55 = vpop.f32.mrf.mxu1  ;;  %v2466_v37 = vld [vmem:[#allocation2 + $0x40] sm:$0xf] }
  0xd0   : > { %v2533_v6 = vrot.slane %v2532_v7, 4  ;;  %v2552_v29 = vrot.slane %v2550_v63, 4  ;;  %v2555_v30 = vrot.slane %v2553_v20, 5  ;;  %v2561_v31 = vrot.slane %v2559_v25, 5  ;;  %v5720_v63 = vld [vmem:[#allocation2 + $0x38] sm:$0x1] }
  0xd1   : > { %5260 = vmatmul.msk.bf16.gmra.mxu1 %vm1420_vm11, %v5575_v21  ;;  %v2543_v9 = vrot.slane %v2542_v61, 4  ;;  %v2565_v3 = vrot.slane %v2563_v56, 4  ;;  %v5278_v57 = vrot.slane %v1785_v33, 9  ;;  %v1859_v14 = vrot.slane %v6445_v8, 5  ;;  %v5719_v61 = vld [vmem:[#allocation2 + $0x34] sm:$0xf] }
  0xd2   : > { %v2538_v23 = vsel %vm5976_vm12, %v2533_v6, %v2537_v0  ;;  %v2556_v34 = vor.u32 %v2555_v30, %v2552_v29  ;;  %v2571_v47 = vrot.slane %v2569_v38, 5  ;;  %v2574_v13 = vshrl.u32 %v2462_v4, 16  ;;  %v2465_v56 = vld [vmem:[#allocation2 + $0x3c] sm:$0xf] }
  0xd3   : > { %5373 = vmatmul.msk.bf16.vlgmr.msrb.gmra.mxu3 %vm1420_vm11, %v5590_v18  ;;  %v2548_v24 = vsel %vm5976_vm12, %v2543_v9, %v2547_v59  ;;  %v2889_v21 = vunpack.c.l.b16 %v2538_v23  ;;  %v1856_v18 = vrot.slane %v6432_v12, 5  ;;  %v2566_v39 = vor.u32 %v2565_v3, %v2561_v31  ;;  %v5578_v23 = vld [vmem:[#allocation2 + $0x30] sm:$0xff] }
  0xd4   : > { %v2890_v16 = vunpack.c.l.b16 %v2548_v24  ;;  %v2557_v45 = vrot.slane %v2556_v34, 4  ;;  %v2577_v26 = vshll.u32 %v2462_v4, 16  ;;  %v2583_v49 = vshll.u32 %v2463_v22, 16  ;;  %v5593_v24 = vld [vmem:[#allocation2 + $0x30] sm:$0xff]  ;;  %v5721_v4 = vld [vmem:[#allocation2 + $0x40] sm:$0xf] }
  0xd5   : > { %v1858_v41 = vrot.slane %v1856_v18, 4  ;;  %v2567_v2 = vrot.slane %v2566_v39, 4  ;;  %v1857_v12 = vsel %vm6419_vm15, %v5278_v57, %v1856_v18  ;;  %v2587_v50 = vshrl.u32 %v2463_v22, 16 }
  0xd6   : > { %v2920_v53 = vpack.c.b16 %v2890_v16, %v2889_v21  ;;  %v2562_v8 = vsel %vm5976_vm12, %v2557_v45, %v2561_v31  ;;  %v1953_v27 = vunpack.c.l.b16 %v1857_v12  ;;  %v2576_v44 = vrot.slane %v2574_v13, 4 }
  0xd7   : > { %v1860_v17 = vsel %vm6419_vm15, %v1858_v41, %v1859_v14  ;;  %v2572_v42 = vsel %vm5976_vm12, %v2567_v2, %v2571_v47  ;;  %v2579_v0 = vrot.slane %v2577_v26, 5  ;;  %v2589_v7 = vrot.slane %v2587_v50, 4  ;;  %v6508_v31 = vpop.f32.mrf.mxu1  ;;  %v2467_v47 = vld [vmem:[#allocation2 + $0x44] sm:$0x1] }
  0xd8   : > { %v1954_v48 = vunpack.c.l.b16 %v1860_v17  ;;  %v1863_v62 = vrot.slane %v5719_v61, 5  ;;  %v2593_v6 = vshll.u32 %v2464_v19, 16  ;;  %v1866_v20 = vrot.slane %v5720_v63, 5 }
  0xd9   : > { %v2580_v5 = vor.u32 %v2579_v0, %v2576_v44  ;;  %v2598_v3 = vshrl.u32 %v2465_v56, 16  ;;  %v2601_v18 = vshll.u32 %v2465_v56, 16  ;;  %v2607_v57 = vshll.u32 %v2466_v37, 16  ;;  %v5579_v0 = vld [vmem:[#allocation2 + $0x3c] sm:$0xff] }
  0xda   : > { %v1982_v54 = vpack.c.b16 %v1954_v48, %v1953_v27  ;;  %v1865_v11 = vrot.slane %v1863_v62, 4  ;;  %v2595_v25 = vrot.slane %v2593_v6, 5  ;;  %v2611_v41 = vshrl.u32 %v2466_v37, 16  ;;  %v1787_v27 = vld [vmem:[#allocation2 + $0x3c] sm:$0xe] }
  0xdb   : > { %5293 = vmatmul.msk.bf16.gmra.mxu2 %vm1420_vm11, %v1980_v51  ;;  %v2891_v51 = vunpack.c.l.b16 %v2562_v8  ;;  %v2581_v29 = vrot.slane %v2580_v5, 4  ;;  %v2600_v14 = vrot.slane %v2598_v3, 4  ;;  %v2609_v12 = vrot.slane %v2607_v57, 5  ;;  %v6529_v5 = vpop.f32.mrf.mxu0  ;;  %v2469_v6 = vld [vmem:[#allocation2 + $0x4c] sm:$0xf] }
  0xdc   : > { %v1867_v16 = vsel %vm6419_vm15, %v1865_v11, %v1866_v20  ;;  %v2613_v17 = vrot.slane %v2611_v41, 4  ;;  %v1870_v22 = vrot.slane %v5721_v4, 5  ;;  %v2631_v56 = vshll.u32 %v2469_v6, 16  ;;  %v1788_v41 = vld [vmem:[#allocation2 + $0x48] sm:$0xe] }
  0xdd   : > { %v5724_v4 = vld [vmem:[#allocation2 + $0x50] sm:$0x1]  ;;  %vm5078_vm0 = vcmask 1040384  }
  0xde   : > { %5390 = vmatmul.msk.bf16.vlgmr.msrb.gmra.mxu0 %vm1420_vm11, %v2919_v60  ;;  %v2585_v60 = vrot.slane %v2583_v49, 5  ;;  %v2614_v49 = vor.u32 %v2613_v17, %v2609_v12 }
  0xdf   : > { %v6510_v33 = vpop.f32.mrf.mxu2 }
  0xe0   : > { %v2590_v9 = vor.u32 %v2589_v7, %v2585_v60  ;;  %v2586_v38 = vsel %vm5976_vm12, %v2581_v29, %v2585_v60  ;;  %v5594_v60 = vld [vmem:[#allocation2 + $0x3c] sm:$0xff]  ;;  %v2615_v7 = vrot.slane %v2614_v49, 4  ;;  %v2635_v29 = vshrl.u32 %v2469_v6, 16 }
  0xe1   : > { %5261 = vmatmul.msk.bf16.gmra.mxu1 %vm1420_vm11, %v5576_v1  ;;  %v1786_v1 = vld [vmem:[#allocation2 + $0x30] sm:$0xe]  ;;  %v2893_v45 = vunpack.c.l.b16 %v2586_v38 }
  0xe2   : > { %v5279_v59 = vrot.slane %v1786_v1, 9  ;;  %v2591_v30 = vrot.slane %v2590_v9, 4  ;;  %v6519_v13 = vpop.f32.mrf.mxu3  ;;  %v2637_v38 = vrot.slane %v2635_v29, 4 }
  0xe3   : > { %5374 = vmatmul.msk.bf16.gmra.mxu3 %vm1420_vm11, %v5591_v58  ;;  %v6517_v8 = vpop.f32.mrf.mxu1 }
  0xe4   : > { %v1864_v21 = vsel %vm6419_vm15, %v5279_v59, %v1863_v62  ;;  %v2596_v39 = vsel %vm5976_vm12, %v2591_v30, %v2595_v25 }
  0xe5   : > { %v1955_v34 = vunpack.c.l.b16 %v1864_v21 }
  0xe7   : > { %v6522_v50 = vpop.f32.mrf.mxu2 }
  0xea   : > { %v6539_v25 = vpop.f32.mrf.mxu3 }
  0xeb   : > { %5294 = vmatmul.msk.bf16.gmra.mxu2 %vm1420_vm11, %v1981_v52  ;;  %v2892_v52 = vunpack.c.l.b16 %v2572_v42  ;;  %v2617_v42 = vshll.u32 %v2467_v47, 16  ;;  %v6532_v9 = vpop.f32.mrf.mxu1 }
  0xed   : > { %v2921_v58 = vpack.c.b16 %v2892_v52, %v2891_v51  ;;  %v5280_v51 = vrot.slane %v1787_v27, 9  ;;  %v1872_v52 = vrot.slane %v1870_v22, 4  ;;  %v2619_v61 = vrot.slane %v2617_v42, 5  ;;  %v5580_v27 = vld [vmem:[#allocation2 + $0x48] sm:$0xff] }
  0xee   : > { %5391 = vmatmul.msk.bf16.gmra.mxu0 %vm1420_vm11, %v2920_v53  ;;  %v1956_v53 = vunpack.c.l.b16 %v1867_v16 }
  0xef   : > { %v1871_v62 = vsel %vm6419_vm15, %v5280_v51, %v1870_v22  ;;  %v6541_v21 = vpop.f32.mrf.mxu2  ;;  %v1880_v22 = vrot.slane %v5724_v4, 5 }
  0xf0   : > { %v1983_v2 = vpack.c.b16 %v1956_v53, %v1955_v34  ;;  %v1957_v11 = vunpack.c.l.b16 %v1871_v62  ;;  %v2470_v34 = vld [vmem:[#allocation2 + $0x50] sm:$0x1]  ;;  %v2633_v53 = vrot.slane %v2631_v56, 5 }
  0xf1   : > { %5262 = vmatmul.msk.bf16.gmra.mxu1 %vm1420_vm11, %v5577_v10  ;;  %v2603_v10 = vrot.slane %v2601_v18, 5 }
  0xf2   : > { %v2638_v47 = vor.u32 %v2637_v38, %v2633_v53 }
  0xf3   : > { %5375 = vmatmul.msk.bf16.gmra.mxu3 %vm1420_vm11, %v5592_v46  ;;  %v2894_v46 = vunpack.c.l.b16 %v2596_v39  ;;  %v2604_v48 = vor.u32 %v2603_v10, %v2600_v14  ;;  %v5723_v39 = vld [vmem:[#allocation2 + $0x4c] sm:$0xf] }
  0xf4   : > { %v1877_v57 = vrot.slane %v5723_v39, 5  ;;  %v2639_v51 = vrot.slane %v2638_v47, 4  ;;  %v5581_v47 = vld [vmem:[#allocation2 + $0x54] sm:$0xff] }
  0xf5   : > { %v2922_v26 = vpack.c.b16 %v2894_v46, %v2893_v45  ;;  %v2605_v19 = vrot.slane %v2604_v48, 4  ;;  %v6545_v45 = vpop.f32.mrf.mxu0  ;;  %v6548_v48 = vpop.f32.mrf.mxu3 }
  0xf6   : > { %v1879_v17 = vrot.slane %v1877_v57, 4 }
  0xf7   : > { %v2610_v59 = vsel %vm5976_vm12, %v2605_v19, %v2609_v12  ;;  %v5281_v12 = vrot.slane %v1788_v41, 9  ;;  %v2472_v19 = vld [vmem:[#allocation2 + $0x58] sm:$0xf] }
  0xf8   : > { %v2895_v30 = vunpack.c.l.b16 %v2610_v59 }
  0xfb   : > { %5295 = vmatmul.msk.bf16.gmra.mxu2 %vm1420_vm11, %v1982_v54  ;;  %v5722_v54 = vld [vmem:[#allocation2 + $0x44] sm:$0x1] }
  0xfc   : > { %v1873_v44 = vrot.slane %v5722_v54, 5  ;;  %v1878_v54 = vsel %vm6419_vm15, %v5281_v12, %v1877_v57 }
  0xfd   : > { %v6565_v59 = vpop.f32.mrf.mxu0  ;;  %v6567_v56 = vpop.f32.mrf.mxu3 }
  0xfe   : > { %5392 = vmatmul.msk.bf16.gmra.mxu0 %vm1420_vm11, %v2921_v58  ;;  %v1874_v1 = vsel %vm6419_vm15, %v1872_v52, %v1873_v44  ;;  %v2468_v58 = vld [vmem:[#allocation2 + $0x48] sm:$0xf]  ;;  %v6551_v52 = vpop.f32.mrf.mxu2  ;;  %v1881_v44 = vsel %vm6419_vm15, %v1879_v17, %v1880_v22  ;;  %v5596_v17 = vld [vmem:[#allocation2 + $0x54] sm:$0xff] }
  0xff   : > { %v1958_v63 = vunpack.c.l.b16 %v1874_v1  ;;  %v2622_v20 = vshrl.u32 %v2468_v58, 16 }
 0x101   : > { %5263 = vmatmul.msk.bf16.gmra.mxu1 %vm1420_vm11, %v5578_v23  ;;  %v2625_v23 = vshll.u32 %v2468_v58, 16  ;;  %v1984_v37 = vpack.c.b16 %v1958_v63, %v1957_v11  ;;  %v2624_v3 = vrot.slane %v2622_v20, 4  ;;  %v2655_v11 = vshll.u32 %v2472_v19, 16 }
 0x102   : > { %v2659_v63 = vshrl.u32 %v2472_v19, 16 }
 0x103   : > { %5376 = vmatmul.msk.bf16.gmra.mxu3 %vm1420_vm11, %v5593_v24  ;;  %v2620_v24 = vsel %vm5976_vm12, %v2615_v7, %v2619_v61  ;;  %v2627_v18 = vrot.slane %v2625_v23, 5  ;;  %v1960_v7 = vunpack.c.l.b16 %v1881_v44 }
 0x104   : > { %v2896_v16 = vunpack.c.l.b16 %v2620_v24 }
 0x105   : > { %v6543_v14 = vpop.f32.mrf.mxu1  ;;  %v2628_v46 = vor.u32 %v2627_v18, %v2624_v3  ;;  %v2661_v3 = vrot.slane %v2659_v63, 4  ;;  %v1789_v18 = vld [vmem:[#allocation2 + $0x54] sm:$0xe] }
 0x106   : > { %v2923_v10 = vpack.c.b16 %v2896_v16, %v2895_v30  ;;  %v1884_v16 = vrot.slane %v6372_v32, 5  ;;  %v5282_v57 = vrot.slane %v1789_v18, 9  ;;  %v6576_v32 = vpop.f32.mrf.mxu0  ;;  %v1790_v18 = vld [vmem:[#allocation2 + $0x60] sm:$0xe] }
 0x107   : > { %v2629_v49 = vrot.slane %v2628_v46, 4 }
 0x108   : > { %v1886_v41 = vrot.slane %v1884_v16, 4  ;;  %v1885_v22 = vsel %vm6419_vm15, %v5282_v57, %v1884_v16 }
 0x109   : > { %v2634_v61 = vsel %vm5976_vm12, %v2629_v49, %v2633_v53 }
 0x10a   : > { %v2897_v20 = vunpack.c.l.b16 %v2634_v61 }
 0x10b   : > { %5296 = vmatmul.msk.bf16.gmra.mxu2 %vm1420_vm11, %v1983_v2  ;;  %v2641_v2 = vshll.u32 %v2470_v34, 16  ;;  %v2473_v34 = vld [vmem:[#allocation2 + $0x5c] sm:$0x1] }
 0x10d   : > { %v2643_v42 = vrot.slane %v2641_v2, 5  ;;  %v6563_v6 = vpop.f32.mrf.mxu1  ;;  %v2665_v2 = vshll.u32 %v2473_v34, 16  ;;  %v2476_v34 = vld [vmem:[#allocation2 + $0x68] sm:$0x1] }
 0x10e   : > { %5393 = vmatmul.msk.bf16.gmra.mxu0 %vm1420_vm11, %v2922_v26  ;;  %v5595_v26 = vld [vmem:[#allocation2 + $0x48] sm:$0xff] }
 0x10f   : > { %v2644_v62 = vsel %vm5976_vm12, %v2639_v51, %v2643_v42  ;;  %v2667_v42 = vrot.slane %v2665_v2, 5  ;;  %v2475_v51 = vld [vmem:[#allocation2 + $0x64] sm:$0xf] }
 0x110   : > { %v2898_v23 = vunpack.c.l.b16 %v2644_v62  ;;  %v2679_v62 = vshll.u32 %v2475_v51, 16 }
 0x111   : > { %5264 = vmatmul.msk.bf16.gmra.mxu1 %vm1420_vm11, %v5579_v0  ;;  %v2471_v0 = vld [vmem:[#allocation2 + $0x54] sm:$0xf] }
 0x112   : > { %v2646_v1 = vshrl.u32 %v2471_v0, 16  ;;  %v2649_v58 = vshll.u32 %v2471_v0, 16  ;;  %v2924_v38 = vpack.c.b16 %v2898_v23, %v2897_v20 }
 0x113   : > { %5377 = vmatmul.msk.bf16.gmra.mxu3 %vm1420_vm11, %v5594_v60  ;;  %v1959_v60 = vunpack.c.l.b16 %v1878_v54  ;;  %v1961_v54 = vunpack.c.l.b16 %v1885_v22 }
 0x114   : > { %v2648_v29 = vrot.slane %v2646_v1, 4  ;;  %v2651_v30 = vrot.slane %v2649_v58, 5  ;;  %v6570_v53 = vpop.f32.mrf.mxu2  ;;  %v2683_v1 = vshrl.u32 %v2475_v51, 16 }
 0x115   : > { %v1985_v24 = vpack.c.b16 %v1960_v7, %v1959_v60 }
 0x116   : > { %v2652_v39 = vor.u32 %v2651_v30, %v2648_v29  ;;  %v5725_v29 = vld [vmem:[#allocation2 + $0x64] sm:$0xf] }
 0x117   : > { %v1891_v30 = vrot.slane %v5725_v29, 5 }
 0x118   : > { %v2653_v4 = vrot.slane %v2652_v39, 4 }
 0x119   : > { %v1893_v2 = vrot.slane %v1891_v30, 4 }
 0x11b   : > { %5297 = vmatmul.msk.bf16.gmra.mxu2 %vm1420_vm11, %v1984_v37  ;;  %v2657_v37 = vrot.slane %v2655_v11, 5 }
 0x11c   : > { %v6589_v19 = vpop.f32.mrf.mxu2 }
 0x11d   : > { %v2662_v46 = vor.u32 %v2661_v3, %v2657_v37  ;;  %v2658_v0 = vsel %vm5976_vm12, %v2653_v4, %v2657_v37  ;;  %v2681_v37 = vrot.slane %v2679_v62, 5  ;;  %v2685_v3 = vrot.slane %v2683_v1, 4  ;;  %v5582_v4 = vld [vmem:[#allocation2 + $0x60] sm:$0xff] }
 0x11e   : > { %5394 = vmatmul.msk.bf16.gmra.mxu0 %vm1420_vm11, %v2923_v10  ;;  %v1887_v10 = vrot.slane %v6377_v28, 5  ;;  %v2474_v28 = vld [vmem:[#allocation2 + $0x60] sm:$0xf]  ;;  %v6584_v49 = vpop.f32.mrf.mxu3  ;;  %v2899_v11 = vunpack.c.l.b16 %v2658_v0 }
 0x11f   : > { %v2670_v60 = vshrl.u32 %v2474_v28, 16  ;;  %v2673_v7 = vshll.u32 %v2474_v28, 16 }
 0x121   : > { %5265 = vmatmul.msk.bf16.gmra.mxu1 %vm1420_vm11, %v5580_v27  ;;  %v1888_v27 = vsel %vm6419_vm15, %v1886_v41, %v1887_v10  ;;  %v2672_v23 = vrot.slane %v2670_v60, 4  ;;  %v6595_v16 = vpop.f32.mrf.mxu0 }
 0x122   : > { %v1962_v44 = vunpack.c.l.b16 %v1888_v27 }
 0x123   : > { %5378 = vmatmul.msk.bf16.gmra.mxu3 %vm1420_vm11, %v5595_v26  ;;  %v2663_v26 = vrot.slane %v2662_v46, 4  ;;  %v5283_v46 = vrot.slane %v1790_v18, 9 }
 0x124   : > { %v1986_v63 = vpack.c.b16 %v1962_v44, %v1961_v54  ;;  %v2477_v44 = vld [vmem:[#allocation2 + $0x6c] sm:$0xf] }
 0x125   : > { %v2668_v61 = vsel %vm5976_vm12, %v2663_v26, %v2667_v42  ;;  %v5597_v26 = vld [vmem:[#allocation2 + $0x60] sm:$0xff]  ;;  %v1892_v51 = vsel %vm6419_vm15, %v5283_v46, %v1891_v30  ;;  %v2694_v1 = vshrl.u32 %v2477_v44, 16 }
 0x126   : > { %v2900_v20 = vunpack.c.l.b16 %v2668_v61  ;;  %v6598_v41 = vpop.f32.mrf.mxu3 }
 0x128   : > { %v2925_v57 = vpack.c.b16 %v2900_v20, %v2899_v11  ;;  %v2697_v11 = vshll.u32 %v2477_v44, 16 }
 0x129   : > { %v6609_v61 = vpop.f32.mrf.mxu0 }
 0x12b   : > { %5298 = vmatmul.msk.bf16.gmra.mxu2 %vm1420_vm11, %v1985_v24  ;;  %v2675_v24 = vrot.slane %v2673_v7, 5  ;;  %v2478_v7 = vld [vmem:[#allocation2 + $0x70] sm:$0xf] }
 0x12c   : > { %v2703_v20 = vshll.u32 %v2478_v7, 16 }
 0x12d   : > { %v2676_v10 = vor.u32 %v2675_v24, %v2672_v23  ;;  %v2707_v23 = vshrl.u32 %v2478_v7, 16  ;;  %v5583_v7 = vld [vmem:[#allocation2 + $0x6c] sm:$0xff] }
 0x12e   : > { %v6574_v12 = vpop.f32.mrf.mxu1  ;;  %5395 = vmatmul.msk.bf16.gmra.mxu0 %vm1420_vm11, %v2924_v38  ;;  %v5726_v38 = vld [vmem:[#allocation2 + $0x68] sm:$0x1]  ;;  %v2705_v46 = vrot.slane %v2703_v20, 5 }
 0x12f   : > { %v1894_v39 = vrot.slane %v5726_v38, 5  ;;  %v2677_v28 = vrot.slane %v2676_v10, 4  ;;  %v2699_v38 = vrot.slane %v2697_v11, 5  ;;  %v2479_v10 = vld [vmem:[#allocation2 + $0x74] sm:$0x1] }
 0x131   : > { %5266 = vmatmul.msk.bf16.gmra.mxu1 %vm1420_vm11, %v5581_v47  ;;  %v2686_v47 = vor.u32 %v2685_v3, %v2681_v37  ;;  %v1895_v54 = vsel %vm6419_vm15, %v1893_v2, %v1894_v39  ;;  %v2709_v2 = vrot.slane %v2707_v23, 4 }
 0x132   : > { %v1964_v62 = vunpack.c.l.b16 %v1895_v54 }
 0x133   : > { %5379 = vmatmul.msk.bf16.gmra.mxu3 %vm1420_vm11, %v5596_v17  ;;  %v2689_v17 = vshll.u32 %v2476_v34, 16  ;;  %v2687_v0 = vrot.slane %v2686_v47, 4  ;;  %v2696_v34 = vrot.slane %v2694_v1, 4  ;;  %v5727_v47 = vld [vmem:[#allocation2 + $0x70] sm:$0xf]  ;;  %v2710_v54 = vor.u32 %v2709_v2, %v2705_v46 }
 0x134   : > { %v5598_v1 = vld [vmem:[#allocation2 + $0x6c] sm:$0xff] }
 0x135   : > { %v2691_v60 = vrot.slane %v2689_v17, 5  ;;  %v1791_v17 = vld [vmem:[#allocation2 + $0x6c] sm:$0xe] }
 0x136   : > { %v6593_v58 = vpop.f32.mrf.mxu1  ;;  %v5284_v44 = vrot.slane %v1791_v17, 9 }
 0x137   : > { %v2692_v24 = vsel %vm5976_vm12, %v2687_v0, %v2691_v60 }
 0x13b   : > { %5299 = vmatmul.msk.bf16.gmra.mxu2 %vm1420_vm11, %v1986_v63  ;;  %v2682_v63 = vsel %vm5976_vm12, %v2677_v28, %v2681_v37  ;;  %v1898_v37 = vrot.slane %v5727_v47, 5  ;;  %v2713_v28 = vshll.u32 %v2479_v10, 16 }
 0x13c   : > { %v2901_v3 = vunpack.c.l.b16 %v2682_v63 }
 0x13d   : > { %v1900_v0 = vrot.slane %v1898_v37, 4  ;;  %v2715_v63 = vrot.slane %v2713_v28, 5 }
 0x13e   : > { %v6600_v22 = vpop.f32.mrf.mxu2  ;;  %v1702_v27 = vpop.f32.mrf.mxu1  ;;  %5396 = vmatmul.msk.bf16.gmra.mxu0 %vm1420_vm11, %v2925_v57  ;;  %v2902_v57 = vunpack.c.l.b16 %v2692_v24  ;;  %v2711_v24 = vrot.slane %v2710_v54, 4 }
 0x13f   : > { %v1703_v42 = vadd.f32 %v1702_v27, %v6529_v5  ;;  %v1963_v5 = vunpack.c.l.b16 %v1892_v51 }
 0x140   : > { %v2926_v51 = vpack.c.b16 %v2902_v57, %v2901_v3  ;;  %v1899_v3 = vsel %vm6419_vm15, %v5284_v44, %v1898_v37  ;;  %v2481_v57 = vld [vmem:[#allocation2 + $0x7c] sm:$0xf] }
 0x141   : > { %5267 = vmatmul.msk.bf16.gmra.mxu1 %vm1420_vm11, %v5582_v4  ;;  %v1987_v18 = vpack.c.b16 %v1964_v62, %v1963_v5  ;;  %v5728_v4 = vld [vmem:[#allocation2 + $0x74] sm:$0x1]  ;;  %v1965_v10 = vunpack.c.l.b16 %v1899_v3 }
 0x142   : > { %v1901_v27 = vrot.slane %v5728_v4, 5 }
 0x143   : > { %5380 = vmatmul.msk.bf16.gmra.mxu3 %vm1420_vm11, %v5597_v26  ;;  %v2700_v26 = vor.u32 %v2699_v38, %v2696_v34  ;;  %v2480_v38 = vld [vmem:[#allocation2 + $0x78] sm:$0xf] }
 0x144   : > { %v1902_v34 = vsel %vm6419_vm15, %v1900_v0, %v1901_v27  ;;  %v2718_v47 = vshrl.u32 %v2480_v38, 16  ;;  %v2721_v4 = vshll.u32 %v2480_v38, 16  ;;  %v2727_v27 = vshll.u32 %v2481_v57, 16 }
 0x145   : > { %v2701_v11 = vrot.slane %v2700_v26, 4  ;;  %v2731_v26 = vshrl.u32 %v2481_v57, 16 }
 0x146   : > { %v6616_v29 = vpop.f32.mrf.mxu3  ;;  %v6618_v30 = vpop.f32.mrf.mxu2 }
 0x147   : > { %7535 = vst [vmem:[#allocation3_spill] sm:$0xff] %v6616_v29  ;;  %v1704_v39 = vpop.f32.mrf.mxu1  ;;  %v2706_v2 = vsel %vm5976_vm12, %v2701_v11, %v2705_v46  ;;  %v5729_v46 = vld [vmem:[#allocation2 + $0x7c] sm:$0xf]  ;;  %v2733_v3 = vrot.slane %v2731_v26, 4  ;;  %v2483_v29 = vld [vmem:[#allocation2 + $0x84] sm:$0xf] }
 0x148   : > { %v1705_v37 = vadd.f32 %v1704_v39, %v6545_v45  ;;  %v1905_v11 = vrot.slane %v5729_v46, 5  ;;  %v5730_v45 = vld [vmem:[#allocation2 + $0x80] sm:$0x1] }
 0x149   : > { %v1908_v39 = vrot.slane %v5730_v45, 5 }
 0x14b   : > { %5300 = vmatmul.msk.bf16.gmra.mxu2 %vm1420_vm11, %v1987_v18  ;;  %v6621_v60 = vpop.f32.mrf.mxu0 }
 0x14e   : > { %v6623_v5 = vpop.f32.mrf.mxu3  ;;  %v2055_v62 = vpop.f32.mrf.mxu2  ;;  %5397 = vmatmul.msk.bf16.gmra.mxu0 %vm1420_vm11, %v2926_v51 }
 0x14f   : > { %7536 = vst [vmem:[#allocation4_spill] sm:$0xff] %v6623_v5  ;;  %v2135_v20 = vadd.f32 %v2055_v62, %v1703_v42  ;;  %v1707_v23 = vpop.f32.mrf.mxu1  ;;  %v1966_v42 = vunpack.c.l.b16 %v1902_v34  ;;  %v2903_v62 = vunpack.c.l.b16 %v2706_v2  ;;  %v1792_v34 = vld [vmem:[#allocation2 + $0x78] sm:$0xe]  ;;  %v2482_v5 = vld [vmem:[#allocation2 + $0x80] sm:$0x1] }
 0x150   : > { %v1708_v18 = vadd.f32 %v1707_v23, %v6565_v59  ;;  %v2716_v59 = vsel %vm5976_vm12, %v2711_v24, %v2715_v63  ;;  %v2720_v23 = vrot.slane %v2718_v47, 4  ;;  %v2723_v63 = vrot.slane %v2721_v4, 5 }
 0x151   : > { %5268 = vmatmul.msk.bf16.gmra.mxu1 %vm1420_vm11, %v5583_v7  ;;  %v1988_v0 = vpack.c.b16 %v1966_v42, %v1965_v10  ;;  %v2729_v24 = vrot.slane %v2727_v27, 5  ;;  %v5285_v57 = vrot.slane %v1792_v34, 9  ;;  %v2737_v2 = vshll.u32 %v2482_v5, 16  ;;  %v5599_v27 = vld [vmem:[#allocation2 + $0x78] sm:$0xff] }
 0x152   : > { %v2724_v10 = vor.u32 %v2723_v63, %v2720_v23 }
 0x153   : > { %5381 = vmatmul.msk.bf16.gmra.mxu3 %vm1420_vm11, %v5598_v1  ;;  %v6637_v17 = vpop.f32.mrf.mxu0  ;;  %v2904_v1 = vunpack.c.l.b16 %v2716_v59  ;;  %v2734_v42 = vor.u32 %v2733_v3, %v2729_v24  ;;  %v5584_v59 = vld [vmem:[#allocation2 + $0x78] sm:$0xff] }
 0x154   : > { %v2725_v23 = vrot.slane %v2724_v10, 4 }
 0x155   : > { %v2927_v38 = vpack.c.b16 %v2904_v1, %v2903_v62  ;;  %v1906_v1 = vsel %vm6419_vm15, %v5285_v57, %v1905_v11  ;;  %v2735_v63 = vrot.slane %v2734_v42, 4 }
 0x156   : > { %v2341_v28 = vpop.f32.mrf.mxu3  ;;  %v2057_v51 = vpop.f32.mrf.mxu2  ;;  %v1967_v34 = vunpack.c.l.b16 %v1906_v1 }
 0x157   : > { %v2421_v54 = vadd.f32 %v2341_v28, %v2135_v20  ;;  %v2136_v44 = vadd.f32 %v2057_v51, %v1705_v37  ;;  %v1709_v7 = vpop.f32.mrf.mxu1  ;;  %v1907_v20 = vrot.slane %v1905_v11, 4  ;;  %v2730_v11 = vsel %vm5976_vm12, %v2725_v23, %v2729_v24 }
 0x158   : > { %v1710_v57 = vadd.f32 %v1709_v7, %v6576_v32  ;;  %v1793_v32 = vld [vmem:[#allocation2 + $0x84] sm:$0xe]  ;;  %v5732_v7 = vld [vmem:[#allocation2 + $0x8c] sm:$0x1] }
 0x159   : > { %v1909_v5 = vsel %vm6419_vm15, %v1907_v20, %v1908_v39 }
 0x15a   : > { %v1968_v45 = vunpack.c.l.b16 %v1909_v5  ;;  %v5731_v5 = vld [vmem:[#allocation2 + $0x88] sm:$0xf] }
 0x15b   : > { %5301 = vmatmul.msk.bf16.gmra.mxu2 %vm1420_vm11, %v1988_v0  ;;  %v2995_v37 = vpop.f32.mrf.mxu0  ;;  %v2484_v0 = vld [vmem:[#allocation2 + $0x88] sm:$0xf]  ;;  %v1912_v23 = vrot.slane %v5731_v5, 5 }
 0x15c   : > { %v6641_v47 = vadd.f32 %v2995_v37, %v2421_v54  ;;  %v2739_v54 = vrot.slane %v2737_v2, 5  ;;  %v2751_v3 = vshll.u32 %v2484_v0, 16 }
 0x15e   : > { %v2343_v28 = vpop.f32.mrf.mxu3  ;;  %v2060_v51 = vpop.f32.mrf.mxu2  ;;  %5398 = vmatmul.msk.bf16.gmra.mxu0 %vm1420_vm11, %v2927_v38  ;;  %v2755_v38 = vshrl.u32 %v2484_v0, 16  ;;  %v2740_v39 = vsel %vm5976_vm12, %v2735_v63, %v2739_v54  ;;  %v2905_v0 = vunpack.c.l.b16 %v2730_v11  ;;  %v2485_v63 = vld [vmem:[#allocation2 + $0x8c] sm:$0x1]  ;;  %v1915_v54 = vrot.slane %v5732_v7, 5 }
 0x15f   : > { %v2422_v4 = vadd.f32 %v2343_v28, %v2136_v44  ;;  %v2137_v26 = vadd.f32 %v2060_v51, %v1708_v18  ;;  %v1712_v46 = vpop.f32.mrf.mxu1  ;;  %v2742_v44 = vshrl.u32 %v2483_v29, 16  ;;  %v2745_v18 = vshll.u32 %v2483_v29, 16 }
 0x160   : > { %v1713_v62 = vadd.f32 %v1712_v46, %v6595_v16  ;;  %v2753_v29 = vrot.slane %v2751_v3, 5  ;;  %v1989_v51 = vpack.c.b16 %v1968_v45, %v1967_v34  ;;  %v2906_v1 = vunpack.c.l.b16 %v2740_v39 }
 0x161   : > { %5269 = vmatmul.msk.bf16.gmra.mxu1 %vm1420_vm11, %v5584_v59  ;;  %v2744_v10 = vrot.slane %v2742_v44, 4  ;;  %v2747_v42 = vrot.slane %v2745_v18, 5  ;;  %v5286_v3 = vrot.slane %v1793_v32, 9  ;;  %v1914_v34 = vrot.slane %v1912_v23, 4 }
 0x162   : > { %v2928_v18 = vpack.c.b16 %v2906_v1, %v2905_v0 }
 0x163   : > { %5382 = vmatmul.msk.bf16.gmra.mxu3 %vm1420_vm11, %v5599_v27  ;;  %v2997_v16 = vpop.f32.mrf.mxu0  ;;  %v2757_v27 = vrot.slane %v2755_v38, 4  ;;  %v2748_v44 = vor.u32 %v2747_v42, %v2744_v10  ;;  %v5585_v38 = vld [vmem:[#allocation2 + $0x84] sm:$0xff] }
 0x164   : > { %v6656_v2 = vadd.f32 %v2997_v16, %v2422_v4 }
 0x165   : > { %v2758_v4 = vor.u32 %v2757_v27, %v2753_v29  ;;  %v1916_v27 = vsel %vm6419_vm15, %v1914_v34, %v1915_v54 }
 0x166   : > { %v2346_v20 = vpop.f32.mrf.mxu3  ;;  %v2062_v37 = vpop.f32.mrf.mxu2  ;;  %v1970_v1 = vunpack.c.l.b16 %v1916_v27  ;;  %v2488_v27 = vld [vmem:[#allocation2 + $0x98] sm:$0x1] }
 0x167   : > { %v2423_v59 = vadd.f32 %v2346_v20, %v2137_v26  ;;  %v2138_v28 = vadd.f32 %v2062_v37, %v1710_v57  ;;  %v1714_v46 = vpop.f32.mrf.mxu1  ;;  %v2761_v26 = vshll.u32 %v2485_v63, 16  ;;  %v5600_v57 = vld [vmem:[#allocation2 + $0x84] sm:$0xff]  ;;  %v2749_v20 = vrot.slane %v2748_v44, 4 }
 0x168   : > { %v1715_v24 = vadd.f32 %v1714_v46, %v6609_v61  ;;  %v2759_v37 = vrot.slane %v2758_v4, 4 }
 0x169   : > { %v2763_v10 = vrot.slane %v2761_v26, 5 }
 0x16b   : > { %5302 = vmatmul.msk.bf16.gmra.mxu2 %vm1420_vm11, %v1989_v51  ;;  %v3000_v45 = vpop.f32.mrf.mxu0  ;;  %v1913_v51 = vsel %vm6419_vm15, %v5286_v3, %v1912_v23 }
 0x16c   : > { %v6660_v39 = vadd.f32 %v3000_v45, %v2423_v59  ;;  %v2486_v59 = vld [vmem:[#allocation2 + $0x90] sm:$0xf]  ;;  %v1969_v0 = vunpack.c.l.b16 %v1913_v51 }
 0x16d   : > { %v2766_v63 = vshrl.u32 %v2486_v59, 16  ;;  %v2769_v32 = vshll.u32 %v2486_v59, 16  ;;  %v1794_v51 = vld [vmem:[#allocation2 + $0x90] sm:$0xe]  ;;  %v5734_v59 = vld [vmem:[#allocation2 + $0x98] sm:$0x1] }
 0x16e   : > { %v2348_v16 = vpop.f32.mrf.mxu3  ;;  %v2065_v11 = vpop.f32.mrf.mxu2  ;;  %5399 = vmatmul.msk.bf16.gmra.mxu0 %vm1420_vm11, %v2928_v18 }
 0x16f   : > { %v2424_v61 = vadd.f32 %v2348_v16, %v2138_v28  ;;  %v2139_v46 = vadd.f32 %v2065_v11, %v1713_v62  ;;  %v1717_v5 = vpop.f32.mrf.mxu1  ;;  %v2487_v28 = vld [vmem:[#allocation2 + $0x94] sm:$0xf]  ;;  %v2754_v62 = vsel %vm5976_vm12, %v2749_v20, %v2753_v29  ;;  %v2768_v16 = vrot.slane %v2766_v63, 4 }
 0x170   : > { %v1718_v42 = vadd.f32 %v1717_v5, %v6621_v60  ;;  %v2764_v60 = vsel %vm5976_vm12, %v2759_v37, %v2763_v10  ;;  %v2775_v7 = vshll.u32 %v2487_v28, 16  ;;  %v2779_v44 = vshrl.u32 %v2487_v28, 16  ;;  %v5733_v20 = vld [vmem:[#allocation2 + $0x94] sm:$0xf] }
 0x171   : > { %5270 = vmatmul.msk.bf16.gmra.mxu1 %vm1420_vm11, %v5585_v38  ;;  %v2907_v54 = vunpack.c.l.b16 %v2754_v62  ;;  %v2908_v3 = vunpack.c.l.b16 %v2764_v60  ;;  %v1990_v38 = vpack.c.b16 %v1970_v1, %v1969_v0  ;;  %v2771_v11 = vrot.slane %v2769_v32, 5  ;;  %v5586_v63 = vld [vmem:[#allocation2 + $0x90] sm:$0xff] }
 0x172   : > { %v1919_v37 = vrot.slane %v5733_v20, 5  ;;  %v2777_v5 = vrot.slane %v2775_v7, 5  ;;  %v2781_v10 = vrot.slane %v2779_v44, 4  ;;  %v1922_v28 = vrot.slane %v5734_v59, 5  ;;  %v5601_v44 = vld [vmem:[#allocation2 + $0x90] sm:$0xff] }
 0x173   : > { %5383 = vmatmul.msk.bf16.gmra.mxu3 %vm1420_vm11, %v5600_v57  ;;  %v3002_v23 = vpop.f32.mrf.mxu0  ;;  %v2772_v62 = vor.u32 %v2771_v11, %v2768_v16  ;;  %v2785_v60 = vshll.u32 %v2488_v27, 16  ;;  %v2490_v20 = vld [vmem:[#allocation2 + $0xa0] sm:$0xf] }
 0x174   : > { %v6674_v26 = vadd.f32 %v3002_v23, %v2424_v61  ;;  %v2929_v61 = vpack.c.b16 %v2908_v3, %v2907_v54  ;;  %v2782_v1 = vor.u32 %v2781_v10, %v2777_v5  ;;  %v2489_v23 = vld [vmem:[#allocation2 + $0x9c] sm:$0xf] }
 0x175   : > { %v2773_v54 = vrot.slane %v2772_v62, 4  ;;  %v2787_v11 = vrot.slane %v2785_v60, 5  ;;  %v2793_v10 = vshll.u32 %v2489_v23, 16 }
 0x176   : > { %v2351_v4 = vpop.f32.mrf.mxu3  ;;  %v2067_v18 = vpop.f32.mrf.mxu2  ;;  %v2783_v16 = vrot.slane %v2782_v1, 4 }
 0x177   : > { %v2425_v34 = vadd.f32 %v2351_v4, %v2139_v46  ;;  %v2140_v45 = vadd.f32 %v2067_v18, %v1715_v24  ;;  %v1719_v29 = vpop.f32.mrf.mxu1  ;;  %v5287_v46 = vrot.slane %v1794_v51, 9  ;;  %v1921_v24 = vrot.slane %v1919_v37, 4 }
 0x178   : > { %v1720_v57 = vadd.f32 %v1719_v29, %v6637_v17  ;;  %v2803_v51 = vshrl.u32 %v2490_v20, 16  ;;  %v2795_v62 = vrot.slane %v2793_v10, 5 }
 0x179   : > { %v1920_v3 = vsel %vm6419_vm15, %v5287_v46, %v1919_v37  ;;  %v2788_v37 = vsel %vm5976_vm12, %v2783_v16, %v2787_v11  ;;  %v1795_v16 = vld [vmem:[#allocation2 + $0x9c] sm:$0xe] }
 0x17a   : > { %v2805_v1 = vrot.slane %v2803_v51, 4  ;;  %v5700_v11 = vld [vmem:[%s5838_s25 + $0x78] sm:$0xff]  }
 0x17b   : > { %5303 = vmatmul.msk.bf16.gmra.mxu2 %vm1420_vm11, %v1990_v38  ;;  %v3005_v0 = vpop.f32.mrf.mxu0  ;;  %v1923_v38 = vsel %vm6419_vm15, %v1921_v24, %v1922_v28  ;;  %v5685_v51 = vunpack.c.h.bf16 %v5700_v11 }
 0x17c   : > { %v6678_v4 = vadd.f32 %v3005_v0, %v2425_v34  ;;  %v2790_v34 = vshrl.u32 %v2489_v23, 16  ;;  %v1972_v27 = vunpack.c.l.b16 %v1923_v38  ;;  %v2491_v23 = vld [vmem:[#allocation2 + $0xa4] sm:$0x1] }
 0x17d   : > { %v2809_v10 = vshll.u32 %v2491_v23, 16 }
 0x17e   : > { %v2353_v32 = vpop.f32.mrf.mxu3  ;;  %v2070_v17 = vpop.f32.mrf.mxu2  ;;  %7537 = vst [vmem:[#allocation5_spill] sm:$0xff] %v6678_v4  ;;  %5400 = vmatmul.msk.bf16.gmra.mxu0 %vm1420_vm11, %v2929_v61  ;;  %v2778_v61 = vsel %vm5976_vm12, %v2773_v54, %v2777_v5  ;;  %v2792_v28 = vrot.slane %v2790_v34, 4  ;;  %v5735_v5 = vld [vmem:[#allocation2 + $0xa0] sm:$0xf] }
 0x17f   : > { %v2426_v7 = vadd.f32 %v2353_v32, %v2140_v45  ;;  %v2141_v18 = vadd.f32 %v2070_v17, %v1718_v42  ;;  %v1722_v29 = vpop.f32.mrf.mxu1  ;;  %v2799_v45 = vshll.u32 %v2490_v20, 16  ;;  %v1971_v42 = vunpack.c.l.b16 %v1920_v3 }
 0x180   : > { %v2909_v20 = vunpack.c.l.b16 %v2778_v61  ;;  %v2910_v3 = vunpack.c.l.b16 %v2788_v37  ;;  %v1926_v54 = vrot.slane %v5735_v5, 5  ;;  %v2796_v38 = vor.u32 %v2795_v62, %v2792_v28  ;;  %v5737_v28 = vld [vmem:[%s7520_s1] ss:$0 sm:$0xff] }
 0x181   : > { %5271 = vmatmul.msk.bf16.gmra.mxu1 %vm1420_vm11, %v5586_v63  ;;  %v2801_v0 = vrot.slane %v2799_v45, 5  ;;  %v1991_v17 = vpack.c.b16 %v1972_v27, %v1971_v42  ;;  %v5684_v45 = vunpack.c.l.bf16 %v5700_v11  ;;  %v1723_v61 = vadd.f32 %v1722_v29, %v6499_v55  ;;  %v2492_v11 = vld [vmem:[#allocation2 + $0xa8] sm:$0xf]  ;;  %v2493_v55 = vld [vmem:[#allocation2 + $0xac] sm:$0xf] }
 0x182   : > { %v1928_v42 = vrot.slane %v1926_v54, 4  ;;  %v2797_v37 = vrot.slane %v2796_v38, 4  ;;  %v2811_v23 = vrot.slane %v2809_v10, 5  ;;  %v5738_v29 = vld [vmem:[%s7521_s2] ss:$0 sm:$0xff]  ;;  %v2814_v10 = vshrl.u32 %v2492_v11, 16 }
 0x183   : > { %5384 = vmatmul.msk.bf16.gmra.mxu3 %vm1420_vm11, %v5601_v44  ;;  %v3007_v59 = vpop.f32.mrf.mxu0  ;;  %v2806_v34 = vor.u32 %v2805_v1, %v2801_v0  ;;  %v335_v62 = vmul.f32 %v5737_v28, %v5684_v45  ;;  %v2817_v45 = vshll.u32 %v2492_v11, 16 }
 0x184   : > { %v6691_v60 = vadd.f32 %v3007_v59, %v2426_v7  ;;  %v5736_v7 = vld [vmem:[#allocation2 + $0xa4] sm:$0x1] }
 0x185   : > { %v1929_v59 = vrot.slane %v5736_v7, 5  ;;  %v371_v38 = vadd.f32 %v5738_v29, %v335_v62 }
 0x186   : > { %v2356_v46 = vpop.f32.mrf.mxu3  ;;  %v2072_v24 = vpop.f32.mrf.mxu2  ;;  %7538 = vst [vmem:[#allocation6_spill] sm:$0xff] %v6691_v60 }
 0x187   : > { %v2427_v63 = vadd.f32 %v2356_v46, %v2141_v18  ;;  %v2142_v32 = vadd.f32 %v2072_v24, %v1720_v57  ;;  %v1724_v44 = vpop.f32.mrf.mxu1  ;;  %v2930_v18 = vpack.c.b16 %v2910_v3, %v2909_v20  ;;  %v5288_v57 = vrot.slane %v1795_v16, 9  ;;  %v5587_v46 = vld [vmem:[#allocation2 + $0x9c] sm:$0xff] }
 0x188   : > { %v336_v24 = vmul.f32 %v5737_v28, %v5685_v51  ;;  %v5602_v3 = vld [vmem:[#allocation2 + $0x9c] sm:$0xff]  ;;  %v403_v51 = vmax.f32 %v371_v38, 0.0  ;;  %v2827_v28 = vshrl.u32 %v2493_v55, 16 }
 0x18a   : > { %v372_v4 = vadd.f32 %v5738_v29, %v336_v24 }
 0x18b   : > { %5304 = vmatmul.msk.bf16.gmra.mxu2 %vm1420_vm11, %v1991_v17  ;;  %v3010_v27 = vpop.f32.mrf.mxu0  ;;  %v2807_v17 = vrot.slane %v2806_v34, 4  ;;  %v1927_v34 = vsel %vm6419_vm15, %v5288_v57, %v1926_v54 }
 0x18c   : > { %v6699_v7 = vadd.f32 %v3010_v27, %v2427_v63  ;;  %v1930_v63 = vsel %vm6419_vm15, %v1928_v42, %v1929_v59  ;;  %v404_v57 = vmax.f32 %v372_v4, 0.0  ;;  %v491_v59 = vpack.c.bf16 %v403_v51, %v403_v51  ;;  %v2494_v51 = vld [vmem:[#allocation2 + $0xb0] sm:$0x1] }
 0x18d   : > { %v2812_v27 = vsel %vm5976_vm12, %v2807_v17, %v2811_v23  ;;  %v1974_v54 = vunpack.c.l.b16 %v1930_v63  ;;  %v2829_v17 = vrot.slane %v2827_v28, 4  ;;  %v5739_v63 = vld [vmem:[#allocation2 + $0xac] sm:$0xf] }
 0x18e   : > { %v2358_v1 = vpop.f32.mrf.mxu3  ;;  %v2075_v5 = vpop.f32.mrf.mxu2  ;;  %7539 = vst [vmem:[#allocation7_spill] sm:$0xff] %v6699_v7  ;;  %5401 = vmatmul.msk.bf16.gmra.mxu0 %vm1420_vm11, %v2930_v18  ;;  %v1973_v18 = vunpack.c.l.b16 %v1927_v34  ;;  %v2912_v24 = vunpack.c.l.b16 %v2812_v27  ;;  %v752_v23 = vshrl.u32 %v491_v59, 16  ;;  %v492_v34 = vpack.c.bf16 %v404_v57, %v404_v57  ;;  %v1796_v27 = vld [vmem:[#allocation2 + $0xa8] sm:$0xe] }
 0x18f   : > { %v2428_v20 = vadd.f32 %v2358_v1, %v2142_v32  ;;  %v2143_v16 = vadd.f32 %v2075_v5, %v1723_v61  ;;  %v1727_v60 = vpop.f32.mrf.mxu1  ;;  %v2802_v32 = vsel %vm5976_vm12, %v2797_v37, %v2801_v0  ;;  %v2823_v61 = vshll.u32 %v2493_v55, 16 }
 0x190   : > { %v2911_v62 = vunpack.c.l.b16 %v2802_v32  ;;  %v1725_v0 = vadd.f32 %v1724_v44, %v6508_v31  ;;  %v2816_v37 = vrot.slane %v2814_v10, 4  ;;  %v1992_v38 = vpack.c.b16 %v1974_v54, %v1973_v18  ;;  %v5740_v10 = vld [vmem:[#allocation2 + $0xb0] sm:$0x1] }
 0x191   : > { %5272 = vmatmul.msk.bf16.gmra.mxu1 %vm1420_vm11, %v5587_v46  ;;  %v2819_v46 = vrot.slane %v2817_v45, 5  ;;  %v6716_v11 = vrot.slane %v2823_v61, 5  ;;  %v1933_v32 = vrot.slane %v5739_v63, 5  ;;  %v754_v31 = vrot.slane %v752_v23, 7  ;;  %v927_v61 = vld [vmem:[#allocation2 + $0xc0] sm:$0xf] }
 0x192   : > { %v755_v44 = vshll.u32 %v491_v59, 16  ;;  %v1936_v45 = vrot.slane %v5740_v10, 5  ;;  %v2931_v7 = vpack.c.b16 %v2912_v24, %v2911_v62  ;;  %v2833_v18 = vshll.u32 %v2494_v51, 16  ;;  %v5588_v23 = vld [vmem:[#allocation2 + $0xa8] sm:$0xff] }
 0x193   : > { %5385 = vmatmul.msk.bf16.gmra.mxu3 %vm1420_vm11, %v5602_v3  ;;  %v3012_v42 = vpop.f32.mrf.mxu0  ;;  %v2820_v28 = vor.u32 %v2819_v46, %v2816_v37  ;;  %v5289_v54 = vrot.slane %v1796_v27, 9  ;;  %v1935_v57 = vrot.slane %v1933_v32, 4  ;;  %v758_v59 = vrot.slane %v754_v31, 4  ;;  %v931_v37 = vld [vmem:[#allocation2 + $0xc8] sm:$0x1] }
 0x194   : > { %v6718_v55 = vadd.f32 %v3012_v42, %v2428_v20  ;;  %v2830_v20 = vor.u32 %v2829_v17, %v6716_v11  ;;  %v760_v42 = vshrl.u32 %v492_v34, 16  ;;  %v5603_v51 = vld [vmem:[#allocation2 + $0xa8] sm:$0xff] }
 0x195   : > { %v1934_v40 = vsel %vm6419_vm15, %v5289_v54, %v1933_v32 }
 0x196   : > { %v2361_v1 = vpop.f32.mrf.mxu3  ;;  %v2077_v5 = vpop.f32.mrf.mxu2  ;;  %7540 = vst [vmem:[#allocation8_spill] sm:$0xff] %v6718_v55  ;;  %v762_v63 = vrot.slane %v760_v42, 7 }
 0x197   : > { %v2429_v3 = vadd.f32 %v2361_v1, %v2143_v16  ;;  %v2144_v29 = vadd.f32 %v2077_v5, %v1725_v0  ;;  %v1729_v4 = vpop.f32.mrf.mxu1  ;;  %v757_v16 = vor.u32 %v755_v44, %v754_v31  ;;  %v763_v0 = vshll.u32 %v492_v34, 16  ;;  %v2495_v34 = vld [vmem:[#allocation2 + $0xb4] sm:$0xf] }
 0x198   : > { %v1728_v5 = vadd.f32 %v1727_v60, %v6517_v8  ;;  %v767_v55 = vrot.slane %v762_v63, 4  ;;  %v2821_v8 = vrot.slane %v2820_v28, 4  ;;  %v1937_v60 = vsel %vm6419_vm15, %v1935_v57, %v1936_v45 }
 0x199   : > { %v928_v62 = vsel %vm5898_vm7, %v757_v16, %v927_v61  ;;  %v765_v10 = vor.u32 %v763_v0, %v762_v63  ;;  %v2831_v31 = vrot.slane %v2830_v20, 4  ;;  %v2835_v61 = vrot.slane %v2833_v18, 5 }
 0x19a   : > { %929 = vst [vmem:[#allocation2 + $0xc0] sm:$0xf] %v928_v62  ;;  %v932_v16 = vsel %vm5907_vm8, %v767_v55, %v931_v37  ;;  %v2838_v42 = vshrl.u32 %v2495_v34, 16  ;;  %v1976_v32 = vunpack.c.l.b16 %v1937_v60  ;;  %v2841_v28 = vshll.u32 %v2495_v34, 16  ;;  %v1797_v37 = vld [vmem:[#allocation2 + $0xb4] sm:$0xe] }
 0x19b   : > { %5305 = vmatmul.msk.bf16.gmra.mxu2 %vm1420_vm11, %v1992_v38  ;;  %v3015_v1 = vpop.f32.mrf.mxu0  ;;  %933 = vst [vmem:[#allocation2 + $0xc8] sm:$0x1] %v932_v16  ;;  %v2826_v35 = vsel %vm5976_vm12, %v2821_v8, %v6716_v11  ;;  %v2836_v43 = vsel %vm5976_vm12, %v2831_v31, %v2835_v61  ;;  %v1730_v55 = vadd.f32 %v1729_v4, %v6532_v9  ;;  %v2497_v8 = vld [vmem:[#allocation2 + $0xbc] sm:$0x1]  ;;  %v5589_v16 = vld [vmem:[#allocation2 + $0xb4] sm:$0xff] }
 0x19c   : > { %v6725_v46 = vadd.f32 %v3015_v1, %v2429_v3  ;;  %v2496_v3 = vld [vmem:[#allocation2 + $0xb8] sm:$0xf]  ;;  %v2840_v0 = vrot.slane %v2838_v42, 4  ;;  %v2914_v11 = vunpack.c.l.b16 %v2836_v43  ;;  %v5742_v9 = vld [vmem:[#allocation2 + $0xbc] sm:$0x1]  ;;  %v2857_v61 = vshll.u32 %v2497_v8, 16 }
 0x19d   : > { %v2847_v45 = vshll.u32 %v2496_v3, 16  ;;  %v2851_v20 = vshrl.u32 %v2496_v3, 16  ;;  %v5741_v1 = vld [vmem:[#allocation2 + $0xb8] sm:$0xf]  ;;  %v1943_v4 = vrot.slane %v5742_v9, 5 }
 0x19e   : > { %v2363_v24 = vpop.f32.mrf.mxu3  ;;  %v2080_v38 = vpop.f32.mrf.mxu2  ;;  %5402 = vmatmul.msk.bf16.gmra.mxu0 %vm1420_vm11, %v2931_v7  ;;  %v1975_v7 = vunpack.c.l.b16 %v1934_v40  ;;  %v5290_v40 = vrot.slane %v1797_v37, 9  ;;  %v6761_v9 = vld [vmem:[#allocation2 + $0x1c] sm:$0xf] }
 0x19f   : > { %v2430_v17 = vadd.f32 %v2363_v24, %v2144_v29  ;;  %v2145_v27 = vadd.f32 %v2080_v38, %v1728_v5  ;;  %v1732_v44 = vpop.f32.mrf.mxu1  ;;  %v766_v29 = vsel %vm5890_vm6, %v758_v59, %v765_v10  ;;  %v1940_v5 = vrot.slane %v5741_v1, 5 }
 0x1a0   : > { %930 = vst.msk [vmem:[#allocation2 + $0xc4] sm:$0xf] %vm405_vm1, %v766_v29  ;;  %v1993_v62 = vpack.c.b16 %v1976_v32, %v1975_v7  ;;  %v2843_v24 = vrot.slane %v2841_v28, 5  ;;  %v6747_v34 = vrot.slane %v2847_v45, 5  ;;  %v2853_v10 = vrot.slane %v2851_v20, 4 }
 0x1a1   : > { %5273 = vmatmul.msk.bf16.gmra.mxu1 %vm1420_vm11, %v5588_v23  ;;  %v1942_v60 = vrot.slane %v1940_v5, 4  ;;  %v1733_v29 = vadd.f32 %v1732_v44, %v6543_v14  ;;  %v2498_v42 = vld [vmem:[#allocation2 + $0xc0] sm:$0xf]  ;;  %v1941_v28 = vsel %vm6419_vm15, %v5290_v40, %v1940_v5  ;;  %v2859_v1 = vrot.slane %v2857_v61, 5 }
 0x1a2   : > { %v1977_v5 = vunpack.c.l.b16 %v1941_v28  ;;  %v3850_v28 = vshll.u32 %v6761_v9, 16 }
 0x1a3   : > { %5386 = vmatmul.msk.bf16.gmra.mxu3 %vm1420_vm11, %v5603_v51  ;;  %v3017_v18 = vpop.f32.mrf.mxu0  ;;  %v2913_v51 = vunpack.c.l.b16 %v2826_v35  ;;  %v1944_v45 = vsel %vm6419_vm15, %v1942_v60, %v1943_v4 }
 0x1a4   : > { %v6745_v23 = vadd.f32 %v3017_v18, %v2430_v17  ;;  %v2844_v17 = vor.u32 %v2843_v24, %v2840_v0  ;;  %v5743_v18 = vld [vmem:[#allocation2 + $0x10] sm:$0xf]  ;;  %v2865_v24 = vshll.u32 %v2498_v42, 16  ;;  %v1978_v37 = vunpack.c.l.b16 %v1944_v45 }
 0x1a5   : > { %v2932_v31 = vpack.c.b16 %v2914_v11, %v2913_v51  ;;  %v3173_v35 = vrot.slane %v5743_v18, 5  ;;  %v3792_v51 = vld [vmem:[#allocation2 + $0x18] sm:$0xf]  ;;  %v3854_v45 = vshrl.u32 %v6761_v9, 16 }
 0x1a6   : > { %v2366_v54 = vpop.f32.mrf.mxu3  ;;  %v2082_v57 = vpop.f32.mrf.mxu2  ;;  %v1994_v61 = vpack.c.b16 %v1978_v37, %v1977_v5 }
 0x1a7   : > { %v2431_v59 = vadd.f32 %v2366_v54, %v2145_v27  ;;  %v2146_v63 = vadd.f32 %v2082_v57, %v1730_v55  ;;  %v1734_v38 = vpop.f32.mrf.mxu1  ;;  %v2854_v27 = vor.u32 %v2853_v10, %v6747_v34  ;;  %v5604_v55 = vld [vmem:[#allocation2 + $0xb4] sm:$0xff]  ;;  %v2845_v54 = vrot.slane %v2844_v17, 4  ;;  %v2499_v14 = vld [vmem:[#allocation2 + $0xc4] sm:$0xf] }
 0x1a8   : > { %v3175_v11 = vrot.slane %v3173_v35, 4  ;;  %v5744_v10 = vld [vmem:[#allocation2 + $0x14] sm:$0x1]  ;;  %v2875_v8 = vshrl.u32 %v2499_v14, 16  ;;  %v2867_v17 = vrot.slane %v2865_v24, 5 }
 0x1a9   : > { %v2855_v44 = vrot.slane %v2854_v27, 4  ;;  %v2850_v4 = vsel %vm5976_vm12, %v2845_v54, %v6747_v34  ;;  %v1735_v27 = vadd.f32 %v1734_v38, %v6563_v6  ;;  %v2500_v38 = vld [vmem:[#allocation2 + $0xc8] sm:$0x1] }
 0x1aa   : > { %v2877_v54 = vrot.slane %v2875_v8, 4 }
 0x1ab   : > { %5306 = vmatmul.msk.bf16.gmra.mxu2 %vm1420_vm11, %v1993_v62  ;;  %v3020_v3 = vpop.f32.mrf.mxu0  ;;  %v2862_v62 = vshrl.u32 %v2498_v42, 16  ;;  %v2860_v40 = vsel %vm5976_vm12, %v2855_v44, %v2859_v1  ;;  %v2915_v1 = vunpack.c.l.b16 %v2850_v4  ;;  %v2881_v4 = vshll.u32 %v2500_v38, 16 }
 0x1ac   : > { %v6756_v20 = vadd.f32 %v3020_v3, %v2431_v59  ;;  %v2871_v59 = vshll.u32 %v2499_v14, 16  ;;  %v3841_v3 = vshrl.u32 %v3792_v51, 16  ;;  %v2916_v6 = vunpack.c.l.b16 %v2860_v40  ;;  %v6780_v40 = vld [vmem:[#allocation2 + $0x20] sm:$0x1] }
 0x1ad   : > { %v2864_v60 = vrot.slane %v2862_v62, 4 }
 0x1ae   : > { %v2368_v7 = vpop.f32.mrf.mxu3  ;;  %v2085_v32 = vpop.f32.mrf.mxu2  ;;  %5403 = vmatmul.msk.bf16.gmra.mxu0 %vm1420_vm11, %v2932_v31  ;;  %v3843_v37 = vrot.slane %v3841_v3, 4 }
 0x1af   : > { %v2432_v43 = vadd.f32 %v2368_v7, %v2146_v63  ;;  %v2147_v57 = vadd.f32 %v2085_v32, %v1733_v29  ;;  %v1737_v0 = vpop.f32.mrf.mxu1  ;;  %v3176_v63 = vrot.slane %v5744_v10, 5  ;;  %v3844_v29 = vshll.u32 %v3792_v51, 16  ;;  %v3107_v32 = vld [vmem:[#allocation2 + $0xc] sm:$0xe] }
 0x1b0   : > { %v2873_v7 = vrot.slane %v2871_v59, 5  ;;  %v5406_v44 = vrot.slane %v3107_v32, 9  ;;  %v2868_v62 = vor.u32 %v2867_v17, %v2864_v60  ;;  %v6777_v10 = vrot.slane %v3850_v28, 5  ;;  %v5605_v32 = vld [vmem:[#allocation2 + $0xc0] sm:$0xff] }
 0x1b1   : > { %5274 = vmatmul.msk.bf16.gmra.mxu1 %vm1420_vm11, %v5589_v16  ;;  %v3177_v5 = vsel %vm6419_vm15, %v3175_v11, %v3176_v63  ;;  %v3846_v59 = vrot.slane %v3844_v29, 5  ;;  %v2933_v60 = vpack.c.b16 %v2916_v6, %v2915_v1 }
 0x1b2   : > { %v3174_v24 = vsel %vm6419_vm15, %v5406_v44, %v3173_v35  ;;  %v2878_v8 = vor.u32 %v2877_v54, %v2873_v7  ;;  %v1738_v35 = vadd.f32 %v1737_v0, %v6574_v12 }
 0x1b3   : > { %5387 = vmatmul.msk.bf16.gmra.mxu3 %vm1420_vm11, %v5604_v55  ;;  %v3022_v31 = vpop.f32.mrf.mxu0  ;;  %v3285_v51 = vunpack.c.l.b16 %v3174_v24  ;;  %v3847_v3 = vor.u32 %v3846_v59, %v3843_v37  ;;  %v5746_v37 = vld [vmem:[#allocation2 + $0x1c] sm:$0xf] }
 0x1b4   : > { %v6771_v34 = vadd.f32 %v3022_v31, %v2432_v43  ;;  %v3286_v43 = vunpack.c.l.b16 %v3177_v5  ;;  %v2879_v28 = vrot.slane %v2878_v8, 4  ;;  %v3180_v59 = vrot.slane %v5746_v37, 5 }
 0x1b5   : > { %v3848_v0 = vrot.slane %v3847_v3, 4 }
 0x1b6   : > { %v2371_v16 = vpop.f32.mrf.mxu3  ;;  %v2087_v42 = vpop.f32.mrf.mxu2  ;;  %v3317_v17 = vpack.c.b16 %v3286_v43, %v3285_v51  ;;  %v3795_v51 = vld [vmem:[#allocation2 + $0x24] sm:$0xf]  ;;  %v6795_v43 = vld [vmem:[#allocation2 + $0x28] sm:$0xf] }
 0x1b7   : > { %v2433_v18 = vadd.f32 %v2371_v16, %v2147_v57  ;;  %v2148_v55 = vadd.f32 %v2087_v42, %v1735_v27  ;;  %v1739_v14 = vpop.f32.mrf.mxu1  ;;  %v3856_v57 = vrot.slane %v3854_v45, 4  ;;  %v2869_v27 = vrot.slane %v2868_v62, 4 }
 0x1b8   : > { %v3860_v16 = vshll.u32 %v6780_v40, 16  ;;  %v2883_v45 = vrot.slane %v2881_v4, 5  ;;  %v1740_v5 = vadd.f32 %v1739_v14, %v6593_v58  ;;  %v3853_v4 = vsel %vm5976_vm12, %v3848_v0, %v6777_v10  ;;  %v5606_v14 = vld [vmem:[#allocation2 + $0x18] sm:$0xff] }
 0x1b9   : > { %v3857_v29 = vor.u32 %v3856_v57, %v6777_v10  ;;  %v2874_v12 = vsel %vm5976_vm12, %v2869_v27, %v2873_v7  ;;  %v3865_v3 = vshrl.u32 %v3795_v51, 16 }
 0x1ba   : > { %v3862_v6 = vrot.slane %v3860_v16, 5  ;;  %v2917_v24 = vunpack.c.l.b16 %v2874_v12  ;;  %v3874_v16 = vshll.u32 %v6795_v43, 16  ;;  %v4226_v12 = vunpack.c.l.b16 %v3853_v4 }
 0x1bb   : > { %5307 = vmatmul.msk.bf16.gmra.mxu2 %vm1420_vm11, %v1994_v61  ;;  %v3025_v31 = vpop.f32.mrf.mxu0  ;;  %v3858_v1 = vrot.slane %v3857_v29, 4  ;;  %v3868_v29 = vshll.u32 %v3795_v51, 16 }
 0x1bc   : > { %v6785_v42 = vadd.f32 %v3025_v31, %v2433_v18  ;;  %v2884_v18 = vsel %vm5976_vm12, %v2879_v28, %v2883_v45 }
 0x1bd   : > { %v2918_v7 = vunpack.c.l.b16 %v2884_v18  ;;  %v3867_v18 = vrot.slane %v3865_v3, 4  ;;  %v3798_v3 = vld [vmem:[#allocation2 + $0x30] sm:$0xf] }
 0x1be   : > { %v2373_v11 = vpop.f32.mrf.mxu3  ;;  %v2090_v63 = vpop.f32.mrf.mxu2  ;;  %5404 = vmatmul.msk.bf16.gmra.mxu0 %vm1420_vm11, %v2933_v60  ;;  %v3863_v60 = vsel %vm5976_vm12, %v3858_v1, %v3862_v6  ;;  %v4446_v1 = vld [vmem:[#allocation2 + $0x18] sm:$0xe]  ;;  %v4512_v6 = vrot.slane %v6761_v9, 5 }
 0x1bf   : > { %v2434_v61 = vadd.f32 %v2373_v11, %v2148_v55  ;;  %v2149_v54 = vadd.f32 %v2090_v63, %v1738_v35  ;;  %v1742_v44 = vpop.f32.mrf.mxu1  ;;  %v5745_v55 = vld [vmem:[#allocation2 + $0x20] sm:$0x1]  ;;  %v3182_v63 = vrot.slane %v3180_v59, 4  ;;  %v4227_v0 = vunpack.c.l.b16 %v3863_v60 }
 0x1c0   : > { %v3183_v38 = vrot.slane %v5745_v55, 5  ;;  %v3870_v55 = vrot.slane %v3868_v29, 5  ;;  %v5747_v29 = vld [vmem:[#allocation2 + $0x2c] sm:$0x1] }
 0x1c1   : > { %5423 = vmatmul.msk.bf16.vlgmr.msra.gmra.mxu1 %vm1420_vm11, %v3317_v17  ;;  %v3108_v17 = vld [vmem:[#allocation2 + $0x18] sm:$0xe]  ;;  %v4258_v60 = vpack.c.b16 %v4227_v0, %v4226_v12  ;;  %v3889_v0 = vshrl.u32 %v3798_v3, 16 }
 0x1c2   : > { %v5407_v11 = vrot.slane %v3108_v17, 9  ;;  %v3184_v28 = vsel %vm6419_vm15, %v3182_v63, %v3183_v38  ;;  %v6815_v38 = vld [vmem:[#allocation2 + $0x2c] sm:$0x1]  ;;  %v4514_v17 = vrot.slane %v4512_v6, 4  ;;  %v3871_v63 = vor.u32 %v3870_v55, %v3867_v18 }
 0x1c3   : > { %5388 = vmatmul.msk.bf16.gmra.mxu3 %vm1420_vm11, %v5605_v32  ;;  %v3027_v62 = vpop.f32.mrf.mxu0  ;;  %v3878_v32 = vshrl.u32 %v6795_v43, 16  ;;  %v3288_v45 = vunpack.c.l.b16 %v3184_v28 }
 0x1c4   : > { %v6802_v31 = vadd.f32 %v3027_v62, %v2434_v61  ;;  %v3181_v10 = vsel %vm6419_vm15, %v5407_v11, %v3180_v59  ;;  %v6812_v62 = vrot.slane %v3874_v16, 5  ;;  %v1743_v59 = vadd.f32 %v1742_v44, %v6510_v33  ;;  %v6827_v16 = vld [vmem:[#allocation2 + $0x34] sm:$0xf] }
 0x1c5   : > { %v3287_v61 = vunpack.c.l.b16 %v3181_v10  ;;  %v4515_v11 = vrot.slane %v6780_v40, 5  ;;  %v3884_v44 = vshll.u32 %v6815_v38, 16 }
 0x1c6   : > { %v2376_v57 = vpop.f32.mrf.mxu3  ;;  %v2092_v8 = vpop.f32.mrf.mxu2 }
 0x1c7   : > { %v2435_v35 = vadd.f32 %v2376_v57, %v2149_v54  ;;  %v2150_v58 = vadd.f32 %v2092_v8, %v1740_v5  ;;  %v1744_v27 = vpop.f32.mrf.mxu1  ;;  %v2934_v54 = vpack.c.b16 %v2918_v7, %v2917_v24  ;;  %v3880_v5 = vrot.slane %v3878_v32, 4 }
 0x1c8   : > { %v3318_v51 = vpack.c.b16 %v3288_v45, %v3287_v61  ;;  %v5537_v24 = vrot.slane %v4446_v1, 9  ;;  %v4516_v40 = vsel %vm6419_vm15, %v4514_v17, %v4515_v11  ;;  %v3872_v32 = vrot.slane %v3871_v63, 4 }
 0x1c9   : > { %v3881_v33 = vor.u32 %v3880_v5, %v6812_v62  ;;  %v3886_v28 = vrot.slane %v3884_v44, 5  ;;  %v1745_v45 = vadd.f32 %v1744_v27, %v6522_v50  ;;  %v3892_v1 = vshll.u32 %v3798_v3, 16 }
 0x1ca   : > { %v4625_v27 = vunpack.c.l.b16 %v4516_v40  ;;  %v3877_v11 = vsel %vm5976_vm12, %v3872_v32, %v6812_v62  ;;  %v3891_v44 = vrot.slane %v3889_v0, 4 }
 0x1cb   : > { %5504 = vmatmul.msk.bf16.vlgmr.msra.gmra.mxu2 %vm1420_vm11, %v5606_v14  ;;  %v3030_v37 = vpop.f32.mrf.mxu0  ;;  %v3882_v10 = vrot.slane %v3881_v33, 4  ;;  %v4519_v33 = vrot.slane %v6795_v43, 5  ;;  %v3894_v3 = vrot.slane %v3892_v1, 5  ;;  %v4228_v62 = vunpack.c.l.b16 %v3877_v11 }
 0x1cc   : > { %v6817_v8 = vadd.f32 %v3030_v37, %v2435_v35  ;;  %v3190_v35 = vrot.slane %v5747_v29, 5  ;;  %v3109_v37 = vld [vmem:[#allocation2 + $0x24] sm:$0xe] }
 0x1cd   : > { %v5408_v17 = vrot.slane %v3109_v37, 9  ;;  %v3887_v63 = vsel %vm5976_vm12, %v3882_v10, %v3886_v28  ;;  %v4447_v29 = vld [vmem:[#allocation2 + $0x24] sm:$0xe]  ;;  %v6849_v10 = vld [vmem:[#allocation2 + $0x38] sm:$0x1] }
 0x1ce   : > { %v2378_v57 = vpop.f32.mrf.mxu3  ;;  %v2095_v7 = vpop.f32.mrf.mxu2  ;;  %5405 = vmatmul.msk.bf16.gmra.mxu0 %vm1420_vm11, %v2934_v54  ;;  %v5748_v54 = vld [vmem:[#allocation2 + $0x28] sm:$0xf]  ;;  %v4229_v32 = vunpack.c.l.b16 %v3887_v63 }
 0x1cf   : > { %v2436_v4 = vadd.f32 %v2378_v57, %v2150_v58  ;;  %v2151_v9 = vadd.f32 %v2095_v7, %v1743_v59  ;;  %v1747_v14 = vpop.f32.mrf.mxu1  ;;  %v4513_v58 = vsel %vm6419_vm15, %v5537_v24, %v4512_v6  ;;  %v3187_v12 = vrot.slane %v5748_v54, 5  ;;  %v5607_v7 = vld [vmem:[#allocation2 + $0x24] sm:$0xff] }
 0x1d0   : > { %v4624_v18 = vunpack.c.l.b16 %v4513_v58  ;;  %v3898_v6 = vshll.u32 %v6827_v16, 16  ;;  %v3902_v59 = vshrl.u32 %v6827_v16, 16  ;;  %v1748_v54 = vadd.f32 %v1747_v14, %v6541_v21 }
 0x1d1   : > { %5424 = vmatmul.msk.bf16.gmra.mxu1 %vm1420_vm11, %v3318_v51  ;;  %v3189_v50 = vrot.slane %v3187_v12, 4 }
 0x1d2   : > { %v4656_v43 = vpack.c.b16 %v4625_v27, %v4624_v18 }
 0x1d3   : > { %5521 = vmatmul.msk.bf16.vlgmr.msra.gmra.mxu3 %vm1420_vm11, %v4258_v60  ;;  %v3032_v61 = vpop.f32.mrf.mxu0 }
 0x1d4   : > { %v6834_v51 = vadd.f32 %v3032_v61, %v2436_v4  ;;  %v3188_v4 = vsel %vm6419_vm15, %v5408_v17, %v3187_v12  ;;  %v6846_v61 = vrot.slane %v3898_v6, 5  ;;  %v5538_v12 = vrot.slane %v4447_v29, 9 }
 0x1d5   : > { %v3289_v58 = vunpack.c.l.b16 %v3188_v4  ;;  %v3908_v6 = vshll.u32 %v6849_v10, 16  ;;  %v4259_v17 = vpack.c.b16 %v4229_v32, %v4228_v62 }
 0x1d6   : > { %v2381_v55 = vpop.f32.mrf.mxu3  ;;  %v2097_v5 = vpop.f32.mrf.mxu2  ;;  %v4520_v21 = vsel %vm6419_vm15, %v5538_v12, %v4519_v33 }
 0x1d7   : > { %v2437_v57 = vadd.f32 %v2381_v55, %v2151_v9  ;;  %v2152_v24 = vadd.f32 %v2097_v5, %v1745_v45  ;;  %v1749_v60 = vpop.f32.mrf.mxu1  ;;  %v3191_v9 = vsel %vm6419_vm15, %v3189_v50, %v3190_v35  ;;  %v3904_v45 = vrot.slane %v3902_v59, 4 }
 0x1d8   : > { %v3290_v40 = vunpack.c.l.b16 %v3191_v9  ;;  %v4521_v35 = vrot.slane %v4519_v33, 4  ;;  %v3895_v5 = vor.u32 %v3894_v3, %v3891_v44  ;;  %v4522_v50 = vrot.slane %v6815_v38, 5  ;;  %v5750_v3 = vld [vmem:[#allocation2 + $0x34] sm:$0xf] }
 0x1d9   : > { %v3905_v37 = vor.u32 %v3904_v45, %v6846_v61  ;;  %v3910_v63 = vrot.slane %v3908_v6, 5  ;;  %v4626_v9 = vunpack.c.l.b16 %v4520_v21  ;;  %v1750_v44 = vadd.f32 %v1749_v60, %v6551_v52  ;;  %v5608_v60 = vld [vmem:[#allocation2 + $0x30] sm:$0xff] }
 0x1da   : > { %v3319_v0 = vpack.c.b16 %v3290_v40, %v3289_v58  ;;  %v3896_v14 = vrot.slane %v3895_v5, 4  ;;  %v3194_v29 = vrot.slane %v5750_v3, 5  ;;  %v3801_v58 = vld [vmem:[#allocation2 + $0x3c] sm:$0xf]  ;;  %v6865_v40 = vld [vmem:[#allocation2 + $0x40] sm:$0xf] }
 0x1db   : > { %5505 = vmatmul.msk.bf16.gmra.mxu2 %vm1420_vm11, %v5607_v7  ;;  %v3035_v28 = vpop.f32.mrf.mxu0  ;;  %v3906_v11 = vrot.slane %v3905_v37, 4  ;;  %v3916_v5 = vshll.u32 %v3801_v58, 16  ;;  %v3922_v37 = vshll.u32 %v6865_v40, 16  ;;  %v3926_v6 = vshrl.u32 %v6865_v40, 16 }
 0x1dc   : > { %v6854_v59 = vadd.f32 %v3035_v28, %v2437_v57  ;;  %v4523_v57 = vsel %vm6419_vm15, %v4521_v35, %v4522_v50  ;;  %v3901_v32 = vsel %vm5976_vm12, %v3896_v14, %v6846_v61  ;;  %v3110_v28 = vld [vmem:[#allocation2 + $0x30] sm:$0xe] }
 0x1dd   : > { %v4627_v33 = vunpack.c.l.b16 %v4523_v57  ;;  %v4230_v21 = vunpack.c.l.b16 %v3901_v32 }
 0x1de   : > { %v2383_v1 = vpop.f32.mrf.mxu3  ;;  %v2100_v55 = vpop.f32.mrf.mxu2  ;;  %5554 = vmatmul.msk.bf16.vlgmr.msra.gmra.mxu0 %vm1420_vm11, %v4656_v43  ;;  %v3911_v43 = vsel %vm5976_vm12, %v3906_v11, %v3910_v63  ;;  %v4448_v11 = vld [vmem:[#allocation2 + $0x30] sm:$0xe]  ;;  %v4526_v63 = vrot.slane %v6827_v16, 5 }
 0x1df   : > { %v2438_v7 = vadd.f32 %v2383_v1, %v2152_v24  ;;  %v2153_v18 = vadd.f32 %v2100_v55, %v1748_v54  ;;  %v1752_v27 = vpop.f32.mrf.mxu1  ;;  %v5749_v24 = vld [vmem:[#allocation2 + $0x38] sm:$0x1]  ;;  %v3196_v1 = vrot.slane %v3194_v29, 4  ;;  %v3913_v55 = vshrl.u32 %v3801_v58, 16 }
 0x1e0   : > { %v3197_v4 = vrot.slane %v5749_v24, 5  ;;  %v4231_v14 = vunpack.c.l.b16 %v3911_v43  ;;  %v3918_v24 = vrot.slane %v3916_v5, 5  ;;  %v5751_v5 = vld [vmem:[#allocation2 + $0x44] sm:$0x1] }
 0x1e1   : > { %5425 = vmatmul.msk.bf16.gmra.mxu1 %vm1420_vm11, %v3319_v0  ;;  %v5409_v0 = vrot.slane %v3110_v28, 9  ;;  %v3915_v57 = vrot.slane %v3913_v55, 4  ;;  %v4528_v28 = vrot.slane %v4526_v63, 4  ;;  %v3804_v55 = vld [vmem:[#allocation2 + $0x48] sm:$0xf] }
 0x1e2   : > { %v4260_v43 = vpack.c.b16 %v4231_v14, %v4230_v21  ;;  %v3937_v14 = vshrl.u32 %v3804_v55, 16 }
 0x1e3   : > { %5522 = vmatmul.msk.bf16.gmra.mxu3 %vm1420_vm11, %v4259_v17  ;;  %v3037_v38 = vpop.f32.mrf.mxu0  ;;  %v3195_v61 = vsel %vm6419_vm15, %v5409_v0, %v3194_v29  ;;  %v3198_v17 = vsel %vm6419_vm15, %v3196_v1, %v3197_v4  ;;  %v1753_v29 = vadd.f32 %v1752_v27, %v6570_v53  ;;  %v6885_v4 = vld [vmem:[#allocation2 + $0x44] sm:$0x1]  ;;  %v4529_v0 = vrot.slane %v6849_v10, 5 }
 0x1e4   : > { %v6872_v54 = vadd.f32 %v3037_v38, %v2438_v7  ;;  %v3291_v7 = vunpack.c.l.b16 %v3195_v61  ;;  %v3292_v50 = vunpack.c.l.b16 %v3198_v17  ;;  %v6882_v38 = vrot.slane %v3922_v37, 5  ;;  %v6897_v37 = vld [vmem:[#allocation2 + $0x4c] sm:$0xf] }
 0x1e5   : > { %v3919_v1 = vor.u32 %v3918_v24, %v3915_v57  ;;  %v3932_v27 = vshll.u32 %v6885_v4, 16  ;;  %v4530_v10 = vsel %vm6419_vm15, %v4528_v28, %v4529_v0 }
 0x1e6   : > { %v2386_v45 = vpop.f32.mrf.mxu3  ;;  %v2102_v62 = vpop.f32.mrf.mxu2  ;;  %v3320_v58 = vpack.c.b16 %v3292_v50, %v3291_v7 }
 0x1e7   : > { %v2439_v12 = vadd.f32 %v2386_v45, %v2153_v18  ;;  %v2154_v52 = vadd.f32 %v2102_v62, %v1750_v44  ;;  %v1754_v35 = vpop.f32.mrf.mxu1  ;;  %v4657_v18 = vpack.c.b16 %v4627_v33, %v4626_v9  ;;  %v3928_v44 = vrot.slane %v3926_v6, 4 }
 0x1e8   : > { %v5539_v9 = vrot.slane %v4448_v11, 9  ;;  %v3920_v6 = vrot.slane %v3919_v1, 4  ;;  %v3934_v17 = vrot.slane %v3932_v27, 5  ;;  %v1755_v50 = vadd.f32 %v1754_v35, %v6589_v19 }
 0x1e9   : > { %v3929_v53 = vor.u32 %v3928_v44, %v6882_v38  ;;  %v3940_v11 = vshll.u32 %v3804_v55, 16  ;;  %v4629_v35 = vunpack.c.l.b16 %v4530_v10  ;;  %v3939_v27 = vrot.slane %v3937_v14, 4 }
 0x1ea   : > { %v3925_v0 = vsel %vm5976_vm12, %v3920_v6, %v6882_v38 }
 0x1eb   : > { %5506 = vmatmul.msk.bf16.gmra.mxu2 %vm1420_vm11, %v5608_v60  ;;  %v3040_v3 = vpop.f32.mrf.mxu0  ;;  %v3930_v61 = vrot.slane %v3929_v53, 4  ;;  %v4533_v53 = vrot.slane %v6865_v40, 5  ;;  %v3942_v55 = vrot.slane %v3940_v11, 5  ;;  %v4232_v38 = vunpack.c.l.b16 %v3925_v0 }
 0x1ec   : > { %v6887_v62 = vadd.f32 %v3040_v3, %v2439_v12  ;;  %v3204_v12 = vrot.slane %v5751_v5, 5  ;;  %v3111_v3 = vld [vmem:[#allocation2 + $0x3c] sm:$0xe] }
 0x1ed   : > { %v5410_v28 = vrot.slane %v3111_v3, 9  ;;  %v3935_v1 = vsel %vm5976_vm12, %v3930_v61, %v3934_v17  ;;  %v4449_v5 = vld [vmem:[#allocation2 + $0x3c] sm:$0xe]  ;;  %v6919_v61 = vld [vmem:[#allocation2 + $0x50] sm:$0x1] }
 0x1ee   : > { %v2388_v45 = vpop.f32.mrf.mxu3  ;;  %v2105_v33 = vpop.f32.mrf.mxu2  ;;  %5555 = vmatmul.msk.bf16.gmra.mxu0 %vm1420_vm11, %v4657_v18  ;;  %v5752_v18 = vld [vmem:[#allocation2 + $0x40] sm:$0xf]  ;;  %v4233_v6 = vunpack.c.l.b16 %v3935_v1 }
 0x1ef   : > { %v2440_v32 = vadd.f32 %v2388_v45, %v2154_v52  ;;  %v2155_v16 = vadd.f32 %v2105_v33, %v1753_v29  ;;  %v1757_v60 = vpop.f32.mrf.mxu1  ;;  %v4527_v52 = vsel %vm6419_vm15, %v5539_v9, %v4526_v63  ;;  %v3201_v21 = vrot.slane %v5752_v18, 5  ;;  %v5609_v33 = vld [vmem:[#allocation2 + $0x3c] sm:$0xff] }
 0x1f0   : > { %v4628_v57 = vunpack.c.l.b16 %v4527_v52  ;;  %v3946_v63 = vshll.u32 %v6897_v37, 16  ;;  %v3950_v29 = vshrl.u32 %v6897_v37, 16  ;;  %v1758_v18 = vadd.f32 %v1757_v60, %v6600_v22 }
 0x1f1   : > { %5426 = vmatmul.msk.bf16.gmra.mxu1 %vm1420_vm11, %v3320_v58  ;;  %v3203_v19 = vrot.slane %v3201_v21, 4 }
 0x1f2   : > { %v4658_v40 = vpack.c.b16 %v4629_v35, %v4628_v57 }
 0x1f3   : > { %5523 = vmatmul.msk.bf16.gmra.mxu3 %vm1420_vm11, %v4260_v43  ;;  %v3042_v7 = vpop.f32.mrf.mxu0 }
 0x1f4   : > { %v6904_v58 = vadd.f32 %v3042_v7, %v2440_v32  ;;  %v3202_v32 = vsel %vm6419_vm15, %v5410_v28, %v3201_v21  ;;  %v6916_v7 = vrot.slane %v3946_v63, 5  ;;  %v5540_v21 = vrot.slane %v4449_v5, 9 }
 0x1f5   : > { %v3293_v52 = vunpack.c.l.b16 %v3202_v32  ;;  %v3956_v63 = vshll.u32 %v6919_v61, 16  ;;  %v4261_v28 = vpack.c.b16 %v4233_v6, %v4232_v38 }
 0x1f6   : > { %v2391_v24 = vpop.f32.mrf.mxu3  ;;  %v2107_v44 = vpop.f32.mrf.mxu2  ;;  %v4534_v22 = vsel %vm6419_vm15, %v5540_v21, %v4533_v53 }
 0x1f7   : > { %v2441_v45 = vadd.f32 %v2391_v24, %v2155_v16  ;;  %v2156_v9 = vadd.f32 %v2107_v44, %v1755_v50  ;;  %v1759_v43 = vpop.f32.mrf.mxu1  ;;  %v3205_v16 = vsel %vm6419_vm15, %v3203_v19, %v3204_v12  ;;  %v3952_v50 = vrot.slane %v3950_v29, 4 }
 0x1f8   : > { %v3294_v10 = vunpack.c.l.b16 %v3205_v16  ;;  %v4535_v12 = vrot.slane %v4533_v53, 4  ;;  %v3943_v44 = vor.u32 %v3942_v55, %v3939_v27  ;;  %v4536_v19 = vrot.slane %v6885_v4, 5  ;;  %v5754_v55 = vld [vmem:[#allocation2 + $0x4c] sm:$0xf] }
 0x1f9   : > { %v3953_v3 = vor.u32 %v3952_v50, %v6916_v7  ;;  %v3958_v1 = vrot.slane %v3956_v63, 5  ;;  %v4630_v16 = vunpack.c.l.b16 %v4534_v22  ;;  %v1760_v27 = vadd.f32 %v1759_v43, %v6618_v30  ;;  %v5610_v43 = vld [vmem:[#allocation2 + $0x48] sm:$0xff] }
 0x1fa   : > { %v3321_v14 = vpack.c.b16 %v3294_v10, %v3293_v52  ;;  %v3944_v60 = vrot.slane %v3943_v44, 4  ;;  %v3208_v5 = vrot.slane %v5754_v55, 5  ;;  %v3807_v52 = vld [vmem:[#allocation2 + $0x54] sm:$0xf]  ;;  %v6935_v10 = vld [vmem:[#allocation2 + $0x58] sm:$0xf] }
 0x1fb   : > { %5507 = vmatmul.msk.bf16.gmra.mxu2 %vm1420_vm11, %v5609_v33  ;;  %v3045_v17 = vpop.f32.mrf.mxu0  ;;  %v3954_v0 = vrot.slane %v3953_v3, 4  ;;  %v3964_v44 = vshll.u32 %v3807_v52, 16  ;;  %v3970_v3 = vshll.u32 %v6935_v10, 16  ;;  %v3974_v63 = vshrl.u32 %v6935_v10, 16 }
 0x1fc   : > { %v6924_v29 = vadd.f32 %v3045_v17, %v2441_v45  ;;  %v4537_v45 = vsel %vm6419_vm15, %v4535_v12, %v4536_v19  ;;  %v3949_v6 = vsel %vm5976_vm12, %v3944_v60, %v6916_v7  ;;  %v3112_v17 = vld [vmem:[#allocation2 + $0x48] sm:$0xe] }
 0x1fd   : > { %v4631_v53 = vunpack.c.l.b16 %v4537_v45  ;;  %v4234_v22 = vunpack.c.l.b16 %v3949_v6 }
 0x1fe   : > { %v2393_v11 = vpop.f32.mrf.mxu3  ;;  %v2110_v24 = vpop.f32.mrf.mxu2  ;;  %5556 = vmatmul.msk.bf16.gmra.mxu0 %vm1420_vm11, %v4658_v40  ;;  %v3959_v40 = vsel %vm5976_vm12, %v3954_v0, %v3958_v1  ;;  %v4450_v0 = vld [vmem:[#allocation2 + $0x48] sm:$0xe]  ;;  %v4540_v1 = vrot.slane %v6897_v37, 5 }
 0x1ff   : > { %v2442_v33 = vadd.f32 %v2393_v11, %v2156_v9  ;;  %v2157_v57 = vadd.f32 %v2110_v24, %v1758_v18  ;;  %v1762_v35 = vpop.f32.mrf.mxu1  ;;  %v5753_v9 = vld [vmem:[#allocation2 + $0x50] sm:$0x1]  ;;  %v3210_v11 = vrot.slane %v3208_v5, 4  ;;  %v3961_v24 = vshrl.u32 %v3807_v52, 16 }
 0x200   : > { %v3211_v32 = vrot.slane %v5753_v9, 5  ;;  %v4235_v60 = vunpack.c.l.b16 %v3959_v40  ;;  %v3966_v9 = vrot.slane %v3964_v44, 5  ;;  %v5755_v44 = vld [vmem:[#allocation2 + $0x5c] sm:$0x1] }
 0x201   : > { %5427 = vmatmul.msk.bf16.gmra.mxu1 %vm1420_vm11, %v3321_v14  ;;  %v5411_v14 = vrot.slane %v3112_v17, 9  ;;  %v3963_v45 = vrot.slane %v3961_v24, 4  ;;  %v4542_v17 = vrot.slane %v4540_v1, 4  ;;  %v3810_v24 = vld [vmem:[#allocation2 + $0x60] sm:$0xf] }
 0x202   : > { %v4262_v40 = vpack.c.b16 %v4235_v60, %v4234_v22  ;;  %v3985_v60 = vshrl.u32 %v3810_v24, 16 }
 0x203   : > { %5524 = vmatmul.msk.bf16.gmra.mxu3 %vm1420_vm11, %v4261_v28  ;;  %v3047_v4 = vpop.f32.mrf.mxu0  ;;  %v3209_v7 = vsel %vm6419_vm15, %v5411_v14, %v3208_v5  ;;  %v3212_v28 = vsel %vm6419_vm15, %v3210_v11, %v3211_v32  ;;  %v1763_v5 = vadd.f32 %v1762_v35, %v6519_v13  ;;  %v6955_v32 = vld [vmem:[#allocation2 + $0x5c] sm:$0x1]  ;;  %v4543_v14 = vrot.slane %v6919_v61, 5 }
 0x204   : > { %v6942_v18 = vadd.f32 %v3047_v4, %v2442_v33  ;;  %v3295_v33 = vunpack.c.l.b16 %v3209_v7  ;;  %v3296_v19 = vunpack.c.l.b16 %v3212_v28  ;;  %v6952_v4 = vrot.slane %v3970_v3, 5  ;;  %v6967_v3 = vld [vmem:[#allocation2 + $0x64] sm:$0xf] }
 0x205   : > { %v3967_v11 = vor.u32 %v3966_v9, %v3963_v45  ;;  %v3980_v35 = vshll.u32 %v6955_v32, 16  ;;  %v4544_v61 = vsel %vm6419_vm15, %v4542_v17, %v4543_v14 }
 0x206   : > { %v2396_v50 = vpop.f32.mrf.mxu3  ;;  %v2112_v38 = vpop.f32.mrf.mxu2  ;;  %v3322_v52 = vpack.c.b16 %v3296_v19, %v3295_v33 }
 0x207   : > { %v2443_v21 = vadd.f32 %v2396_v50, %v2157_v57  ;;  %v2158_v30 = vadd.f32 %v2112_v38, %v1760_v27  ;;  %v1764_v12 = vpop.f32.mrf.mxu1  ;;  %v4659_v57 = vpack.c.b16 %v4631_v53, %v4630_v16  ;;  %v3976_v27 = vrot.slane %v3974_v63, 4 }
 0x208   : > { %v5541_v16 = vrot.slane %v4450_v0, 9  ;;  %v3968_v63 = vrot.slane %v3967_v11, 4  ;;  %v3982_v28 = vrot.slane %v3980_v35, 5  ;;  %v1765_v19 = vadd.f32 %v1764_v12, %v6539_v25 }
 0x209   : > { %v3977_v13 = vor.u32 %v3976_v27, %v6952_v4  ;;  %v3988_v0 = vshll.u32 %v3810_v24, 16  ;;  %v4633_v12 = vunpack.c.l.b16 %v4544_v61  ;;  %v3987_v35 = vrot.slane %v3985_v60, 4 }
 0x20a   : > { %v3973_v14 = vsel %vm5976_vm12, %v3968_v63, %v6952_v4 }
 0x20b   : > { %5508 = vmatmul.msk.bf16.gmra.mxu2 %vm1420_vm11, %v5610_v43  ;;  %v3050_v55 = vpop.f32.mrf.mxu0  ;;  %v3978_v7 = vrot.slane %v3977_v13, 4  ;;  %v4547_v13 = vrot.slane %v6935_v10, 5  ;;  %v3990_v24 = vrot.slane %v3988_v0, 5  ;;  %v4236_v4 = vunpack.c.l.b16 %v3973_v14 }
 0x20c   : > { %v6957_v38 = vadd.f32 %v3050_v55, %v2443_v21  ;;  %v3218_v21 = vrot.slane %v5755_v44, 5  ;;  %v3113_v55 = vld [vmem:[#allocation2 + $0x54] sm:$0xe] }
 0x20d   : > { %v5412_v17 = vrot.slane %v3113_v55, 9  ;;  %v3983_v11 = vsel %vm5976_vm12, %v3978_v7, %v3982_v28  ;;  %v4451_v44 = vld [vmem:[#allocation2 + $0x54] sm:$0xe]  ;;  %v6989_v7 = vld [vmem:[#allocation2 + $0x68] sm:$0x1] }
 0x20e   : > { %v2398_v50 = vpop.f32.mrf.mxu3  ;;  %v2115_v53 = vpop.f32.mrf.mxu2  ;;  %5557 = vmatmul.msk.bf16.gmra.mxu0 %vm1420_vm11, %v4659_v57  ;;  %v5756_v57 = vld [vmem:[#allocation2 + $0x58] sm:$0xf]  ;;  %v4237_v63 = vunpack.c.l.b16 %v3983_v11 }
 0x20f   : > { %v2444_v6 = vadd.f32 %v2398_v50, %v2158_v30  ;;  %v2159_v37 = vadd.f32 %v2115_v53, %v1763_v5  ;;  %v1767_v43 = vpop.f32.mrf.mxu1  ;;  %v4541_v30 = vsel %vm6419_vm15, %v5541_v16, %v4540_v1  ;;  %v3215_v22 = vrot.slane %v5756_v57, 5  ;;  %v5611_v53 = vld [vmem:[#allocation2 + $0x54] sm:$0xff] }
 0x210   : > { %v4632_v45 = vunpack.c.l.b16 %v4541_v30  ;;  %v3994_v1 = vshll.u32 %v6967_v3, 16  ;;  %v3998_v5 = vshrl.u32 %v6967_v3, 16  ;;  %v1768_v57 = vadd.f32 %v1767_v43, %v6548_v48 }
 0x211   : > { %5428 = vmatmul.msk.bf16.gmra.mxu1 %vm1420_vm11, %v3322_v52  ;;  %v3217_v25 = vrot.slane %v3215_v22, 4 }
 0x212   : > { %v4660_v10 = vpack.c.b16 %v4633_v12, %v4632_v45 }
 0x213   : > { %5525 = vmatmul.msk.bf16.gmra.mxu3 %vm1420_vm11, %v4262_v40  ;;  %v3052_v33 = vpop.f32.mrf.mxu0 }
 0x214   : > { %v6974_v52 = vadd.f32 %v3052_v33, %v2444_v6  ;;  %v3216_v6 = vsel %vm6419_vm15, %v5412_v17, %v3215_v22  ;;  %v6986_v33 = vrot.slane %v3994_v1, 5  ;;  %v5542_v22 = vrot.slane %v4451_v44, 9 }
 0x215   : > { %v3297_v30 = vunpack.c.l.b16 %v3216_v6  ;;  %v4004_v1 = vshll.u32 %v6989_v7, 16  ;;  %v4263_v17 = vpack.c.b16 %v4237_v63, %v4236_v4 }
 0x216   : > { %v2401_v9 = vpop.f32.mrf.mxu3  ;;  %v2117_v27 = vpop.f32.mrf.mxu2  ;;  %v4548_v48 = vsel %vm6419_vm15, %v5542_v22, %v4547_v13 }
 0x217   : > { %v2445_v50 = vadd.f32 %v2401_v9, %v2159_v37  ;;  %v2160_v16 = vadd.f32 %v2117_v27, %v1765_v19  ;;  %v1769_v40 = vpop.f32.mrf.mxu1  ;;  %v3219_v37 = vsel %vm6419_vm15, %v3217_v25, %v3218_v21  ;;  %v4000_v19 = vrot.slane %v3998_v5, 4 }
 0x218   : > { %v3298_v61 = vunpack.c.l.b16 %v3219_v37  ;;  %v4549_v21 = vrot.slane %v4547_v13, 4  ;;  %v3991_v27 = vor.u32 %v3990_v24, %v3987_v35  ;;  %v4550_v25 = vrot.slane %v6955_v32, 5  ;;  %v5758_v24 = vld [vmem:[#allocation2 + $0x64] sm:$0xf] }
 0x219   : > { %v4001_v55 = vor.u32 %v4000_v19, %v6986_v33  ;;  %v4006_v11 = vrot.slane %v4004_v1, 5  ;;  %v4634_v37 = vunpack.c.l.b16 %v4548_v48  ;;  %v1770_v35 = vadd.f32 %v1769_v40, %v6567_v56  ;;  %v5612_v40 = vld [vmem:[#allocation2 + $0x60] sm:$0xff] }
 0x21a   : > { %v3323_v60 = vpack.c.b16 %v3298_v61, %v3297_v30  ;;  %v3992_v43 = vrot.slane %v3991_v27, 4  ;;  %v3222_v44 = vrot.slane %v5758_v24, 5  ;;  %v3813_v30 = vld [vmem:[#allocation2 + $0x6c] sm:$0xf]  ;;  %v7005_v61 = vld [vmem:[#allocation2 + $0x70] sm:$0xf] }
 0x21b   : > { %5509 = vmatmul.msk.bf16.gmra.mxu2 %vm1420_vm11, %v5611_v53  ;;  %v3055_v28 = vpop.f32.mrf.mxu0  ;;  %v4002_v14 = vrot.slane %v4001_v55, 4  ;;  %v4012_v27 = vshll.u32 %v3813_v30, 16  ;;  %v4018_v55 = vshll.u32 %v7005_v61, 16  ;;  %v4022_v1 = vshrl.u32 %v7005_v61, 16 }
 0x21c   : > { %v6994_v5 = vadd.f32 %v3055_v28, %v2445_v50  ;;  %v4551_v50 = vsel %vm6419_vm15, %v4549_v21, %v4550_v25  ;;  %v3997_v63 = vsel %vm5976_vm12, %v3992_v43, %v6986_v33  ;;  %v3114_v28 = vld [vmem:[#allocation2 + $0x60] sm:$0xe] }
 0x21d   : > { %v4635_v13 = vunpack.c.l.b16 %v4551_v50  ;;  %v4238_v48 = vunpack.c.l.b16 %v3997_v63 }
 0x21e   : > { %v2403_v0 = vpop.f32.mrf.mxu3  ;;  %v2120_v9 = vpop.f32.mrf.mxu2  ;;  %5558 = vmatmul.msk.bf16.gmra.mxu0 %vm1420_vm11, %v4660_v10  ;;  %v4007_v10 = vsel %vm5976_vm12, %v4002_v14, %v4006_v11  ;;  %v4452_v14 = vld [vmem:[#allocation2 + $0x60] sm:$0xe]  ;;  %v4554_v11 = vrot.slane %v6967_v3, 5 }
 0x21f   : > { %v2446_v53 = vadd.f32 %v2403_v0, %v2160_v16  ;;  %v2161_v45 = vadd.f32 %v2120_v9, %v1768_v57  ;;  %v1772_v12 = vpop.f32.mrf.mxu1  ;;  %v5757_v16 = vld [vmem:[#allocation2 + $0x68] sm:$0x1]  ;;  %v3224_v0 = vrot.slane %v3222_v44, 4  ;;  %v4009_v9 = vshrl.u32 %v3813_v30, 16 }
 0x220   : > { %v3225_v6 = vrot.slane %v5757_v16, 5  ;;  %v4239_v43 = vunpack.c.l.b16 %v4007_v10  ;;  %v4014_v16 = vrot.slane %v4012_v27, 5 }
 0x221   : > { %5429 = vmatmul.msk.bf16.gmra.mxu1 %vm1420_vm11, %v3323_v60  ;;  %v5413_v60 = vrot.slane %v3114_v28, 9  ;;  %v4011_v50 = vrot.slane %v4009_v9, 4  ;;  %v4556_v28 = vrot.slane %v4554_v11, 4  ;;  %v3816_v9 = vld [vmem:[#allocation2 + $0x78] sm:$0xf] }
 0x222   : > { %v4264_v10 = vpack.c.b16 %v4239_v43, %v4238_v48  ;;  %v4036_v48 = vshll.u32 %v3816_v9, 16 }
 0x223   : > { %5526 = vmatmul.msk.bf16.gmra.mxu3 %vm1420_vm11, %v4263_v17  ;;  %v3057_v32 = vpop.f32.mrf.mxu0  ;;  %v3223_v33 = vsel %vm6419_vm15, %v5413_v60, %v3222_v44  ;;  %v3226_v17 = vsel %vm6419_vm15, %v3224_v0, %v3225_v6  ;;  %v1773_v44 = vadd.f32 %v1772_v12, %v6584_v49  ;;  %v7025_v6 = vld [vmem:[#allocation2 + $0x74] sm:$0x1]  ;;  %v4557_v60 = vrot.slane %v6989_v7, 5 }
 0x224   : > { %v7012_v57 = vadd.f32 %v3057_v32, %v2446_v53  ;;  %v3299_v53 = vunpack.c.l.b16 %v3223_v33  ;;  %v3300_v25 = vunpack.c.l.b16 %v3226_v17  ;;  %v7022_v32 = vrot.slane %v4018_v55, 5 }
 0x225   : > { %v4015_v0 = vor.u32 %v4014_v16, %v4011_v50  ;;  %v4028_v12 = vshll.u32 %v7025_v6, 16  ;;  %v4558_v27 = vsel %vm6419_vm15, %v4556_v28, %v4557_v60  ;;  %v3115_v16 = vld [vmem:[#allocation2 + $0x6c] sm:$0xe]  ;;  %v5760_v60 = vld [vmem:[#allocation2 + $0x74] sm:$0x1] }
 0x226   : > { %v2406_v19 = vpop.f32.mrf.mxu3  ;;  %v2122_v4 = vpop.f32.mrf.mxu2  ;;  %v3324_v30 = vpack.c.b16 %v3300_v25, %v3299_v53  ;;  %v5759_v53 = vld [vmem:[#allocation2 + $0x70] sm:$0xf] }
 0x227   : > { %v2447_v22 = vadd.f32 %v2406_v19, %v2161_v45  ;;  %v2162_v56 = vadd.f32 %v2122_v4, %v1770_v35  ;;  %v1774_v21 = vpop.f32.mrf.mxu1  ;;  %v4661_v45 = vpack.c.b16 %v4635_v13, %v4634_v37  ;;  %v4024_v35 = vrot.slane %v4022_v1, 4 }
 0x228   : > { %v5543_v37 = vrot.slane %v4452_v14, 9  ;;  %v4016_v55 = vrot.slane %v4015_v0, 4  ;;  %v4030_v1 = vrot.slane %v4028_v12, 5  ;;  %v1775_v17 = vadd.f32 %v1774_v21, %v6598_v41 }
 0x229   : > { %v4025_v49 = vor.u32 %v4024_v35, %v7022_v32  ;;  %v3229_v25 = vrot.slane %v5759_v53, 5  ;;  %v4637_v21 = vunpack.c.l.b16 %v4558_v27  ;;  %v3232_v0 = vrot.slane %v5760_v60, 5 }
 0x22b   : > { %5510 = vmatmul.msk.bf16.gmra.mxu2 %vm1420_vm11, %v5612_v40  ;;  %v3060_v24 = vpop.f32.mrf.mxu0  ;;  %v4026_v7 = vrot.slane %v4025_v49, 4  ;;  %v3231_v41 = vrot.slane %v3229_v25, 4  ;;  %v4453_v49 = vld [vmem:[#allocation2 + $0x6c] sm:$0xe] }
 0x22c   : > { %v7027_v4 = vadd.f32 %v3060_v24, %v2447_v22  ;;  %v4555_v22 = vsel %vm6419_vm15, %v5543_v37, %v4554_v11  ;;  %v5544_v53 = vrot.slane %v4453_v49, 9 }
 0x22d   : > { %v4636_v43 = vunpack.c.l.b16 %v4555_v22  ;;  %v4031_v28 = vsel %vm5976_vm12, %v4026_v7, %v4030_v1  ;;  %v3233_v22 = vsel %vm6419_vm15, %v3231_v41, %v3232_v0 }
 0x22e   : > { %v2408_v19 = vpop.f32.mrf.mxu3  ;;  %v2125_v13 = vpop.f32.mrf.mxu2  ;;  %5559 = vmatmul.msk.bf16.gmra.mxu0 %vm1420_vm11, %v4661_v45  ;;  %v4033_v45 = vshrl.u32 %v3816_v9, 16  ;;  %v4038_v9 = vrot.slane %v4036_v48, 5  ;;  %v4241_v7 = vunpack.c.l.b16 %v4031_v28  ;;  %v3302_v1 = vunpack.c.l.b16 %v3233_v22  ;;  %v7542_v22 = vld [vmem:[#allocation4_spill] sm:$0xff] }
 0x22f   : > { %v2448_v63 = vadd.f32 %v2408_v19, %v2162_v56  ;;  %v2163_v3 = vadd.f32 %v2125_v13, %v1773_v44  ;;  %v1777_v40 = vpop.f32.mrf.mxu1  ;;  %v7037_v56 = vld [vmem:[#allocation2 + $0x7c] sm:$0xf]  ;;  %v5613_v19 = vld [vmem:[#allocation2 + $0x6c] sm:$0xff]  ;;  %v5414_v13 = vrot.slane %v3115_v16, 9 }
 0x230   : > { %v4042_v11 = vshll.u32 %v7037_v56, 16  ;;  %v4046_v35 = vshrl.u32 %v7037_v56, 16  ;;  %v4035_v12 = vrot.slane %v4033_v45, 4 }
 0x231   : > { %5430 = vmatmul.msk.bf16.gmra.mxu1 %vm1420_vm11, %v3324_v30 }
 0x232   : > { %v4039_v41 = vor.u32 %v4038_v9, %v4035_v12 }
 0x233   : > { %5527 = vmatmul.msk.bf16.gmra.mxu3 %vm1420_vm11, %v4264_v10  ;;  %v3062_v33 = vpop.f32.mrf.mxu0  ;;  %v4021_v10 = vsel %vm5976_vm12, %v4016_v55, %v7022_v32  ;;  %v4048_v32 = vrot.slane %v4046_v35, 4 }
 0x234   : > { %v7044_v24 = vadd.f32 %v3062_v33, %v2448_v63  ;;  %v4561_v63 = vrot.slane %v7005_v61, 5  ;;  %v7056_v33 = vrot.slane %v4042_v11, 5  ;;  %v4240_v55 = vunpack.c.l.b16 %v4021_v10 }
 0x235   : > { %v4662_v61 = vpack.c.b16 %v4637_v21, %v4636_v43  ;;  %v4040_v0 = vrot.slane %v4039_v41, 4  ;;  %v5762_v41 = vld [vmem:[#allocation2 + $0x80] sm:$0x1] }
 0x236   : > { %v2411_v14 = vpop.f32.mrf.mxu3  ;;  %v2127_v50 = vpop.f32.mrf.mxu2  ;;  %v4563_v48 = vrot.slane %v4561_v63, 4  ;;  %v4049_v35 = vor.u32 %v4048_v32, %v7056_v33  ;;  %v4265_v60 = vpack.c.b16 %v4241_v7, %v4240_v55  ;;  %v5761_v32 = vld [vmem:[#allocation2 + $0x7c] sm:$0xf]  ;;  %v7077_v7 = vld [vmem:[#allocation2 + $0x88] sm:$0xf] }
 0x237   : > { %v2449_v44 = vadd.f32 %v2411_v14, %v2163_v3  ;;  %v2164_v30 = vadd.f32 %v2127_v50, %v1775_v17  ;;  %v1779_v37 = vpop.f32.mrf.mxu1  ;;  %v3230_v3 = vsel %vm6419_vm15, %v5414_v13, %v3229_v25  ;;  %v7059_v17 = vld [vmem:[#allocation2 + $0x80] sm:$0x1]  ;;  %v7541_v25 = vld [vmem:[#allocation3_spill] sm:$0xff]  ;;  %v4564_v50 = vrot.slane %v7025_v6, 5 }
 0x238   : > { %v3301_v27 = vunpack.c.l.b16 %v3230_v3  ;;  %v1778_v45 = vadd.f32 %v1777_v40, %v7541_v25  ;;  %v4562_v6 = vsel %vm6419_vm15, %v5544_v53, %v4561_v63  ;;  %v4050_v49 = vrot.slane %v4049_v35, 4 }
 0x239   : > { %v4565_v40 = vsel %vm6419_vm15, %v4563_v48, %v4564_v50  ;;  %v4638_v12 = vunpack.c.l.b16 %v4562_v6  ;;  %v3236_v55 = vrot.slane %v5761_v32, 5  ;;  %v3239_v35 = vrot.slane %v5762_v41, 5 }
 0x23a   : > { %v3325_v16 = vpack.c.b16 %v3302_v1, %v3301_v27  ;;  %v4639_v9 = vunpack.c.l.b16 %v4565_v40  ;;  %v1780_v27 = vadd.f32 %v1779_v37, %v7542_v22  ;;  %v5614_v37 = vld [vmem:[#allocation2 + $0x78] sm:$0xff] }
 0x23b   : > { %5511 = vmatmul.msk.bf16.gmra.mxu2 %vm1420_vm11, %v5613_v19  ;;  %v3065_v14 = vpop.f32.mrf.mxu0  ;;  %v4052_v19 = vshll.u32 %v7059_v17, 16 }
 0x23c   : > { %v7065_v10 = vadd.f32 %v3065_v14, %v2449_v44  ;;  %v3819_v44 = vld [vmem:[#allocation2 + $0x84] sm:$0xf]  ;;  %v3116_v14 = vld [vmem:[#allocation2 + $0x78] sm:$0xe]  ;;  %v4663_v40 = vpack.c.b16 %v4639_v9, %v4638_v12 }
 0x23d   : > { %v4054_v3 = vrot.slane %v4052_v19, 5  ;;  %v4057_v25 = vshrl.u32 %v3819_v44, 16  ;;  %v4060_v19 = vshll.u32 %v3819_v44, 16 }
 0x23e   : > { %v2413_v13 = vpop.f32.mrf.mxu3  ;;  %v2130_v11 = vpop.f32.mrf.mxu2  ;;  %5560 = vmatmul.msk.bf16.gmra.mxu0 %vm1420_vm11, %v4662_v61  ;;  %v4045_v61 = vsel %vm5976_vm12, %v4040_v0, %v7056_v33  ;;  %v4070_v33 = vshrl.u32 %v7077_v7, 16 }
 0x23f   : > { %v2450_v28 = vadd.f32 %v2413_v13, %v2164_v30  ;;  %v2165_v43 = vadd.f32 %v2130_v11, %v1778_v45  ;;  %v7067_v21 = vpop.f32.mrf.mxu1  ;;  %v4055_v53 = vsel %vm5976_vm12, %v4050_v49, %v4054_v3  ;;  %v5415_v13 = vrot.slane %v3116_v14, 9  ;;  %v7098_v14 = vld [vmem:[#allocation2 + $0x8c] sm:$0x1] }
 0x240   : > { %v3238_v11 = vrot.slane %v3236_v55, 4  ;;  %v4242_v0 = vunpack.c.l.b16 %v4045_v61  ;;  %v4243_v49 = vunpack.c.l.b16 %v4055_v53  ;;  %v4059_v22 = vrot.slane %v4057_v25, 4 }
 0x241   : > { %5431 = vmatmul.msk.bf16.gmra.mxu1 %vm1420_vm11, %v3325_v16  ;;  %v3237_v6 = vsel %vm6419_vm15, %v5415_v13, %v3236_v55  ;;  %v4062_v44 = vrot.slane %v4060_v19, 5  ;;  %v4072_v32 = vrot.slane %v4070_v33, 4 }
 0x242   : > { %v4266_v61 = vpack.c.b16 %v4243_v49, %v4242_v0 }
 0x243   : > { %5528 = vmatmul.msk.bf16.gmra.mxu3 %vm1420_vm11, %v4265_v60  ;;  %v3067_v30 = vpop.f32.mrf.mxu0  ;;  %v4066_v60 = vshll.u32 %v7077_v7, 16  ;;  %v4063_v25 = vor.u32 %v4062_v44, %v4059_v22 }
 0x244   : > { %v7084_v45 = vadd.f32 %v3067_v30, %v2450_v28  ;;  %v3240_v28 = vsel %vm6419_vm15, %v3238_v11, %v3239_v35  ;;  %v4454_v30 = vld [vmem:[#allocation2 + $0x78] sm:$0xe]  ;;  %v4076_v35 = vshll.u32 %v7098_v14, 16 }
 0x245   : > { %v3304_v3 = vunpack.c.l.b16 %v3240_v28  ;;  %v5545_v53 = vrot.slane %v4454_v30, 9  ;;  %v3473_v28 = vadd.f32 %v7067_v21, %v6641_v47 }
 0x246   : > { %v2416_v63 = vpop.f32.mrf.mxu3  ;;  %v2132_v1 = vpop.f32.mrf.mxu2  ;;  %v4078_v0 = vrot.slane %v4076_v35, 5 }
 0x247   : > { %v2451_v48 = vadd.f32 %v2416_v63, %v2165_v43  ;;  %v2166_v50 = vadd.f32 %v2132_v1, %v1780_v27  ;;  %v7086_v16 = vpop.f32.mrf.mxu1  ;;  %v3303_v43 = vunpack.c.l.b16 %v3237_v6  ;;  %v7095_v27 = vrot.slane %v4066_v60, 5 }
 0x248   : > { %v4568_v1 = vrot.slane %v7037_v56, 5  ;;  %v3822_v56 = vld [vmem:[#allocation2 + $0x90] sm:$0xf]  ;;  %v4571_v60 = vrot.slane %v7059_v17, 5 }
 0x249   : > { %v3326_v55 = vpack.c.b16 %v3304_v3, %v3303_v43  ;;  %v4073_v41 = vor.u32 %v4072_v32, %v7095_v27  ;;  %v4084_v33 = vshll.u32 %v3822_v56, 16  ;;  %v4064_v43 = vrot.slane %v4063_v25, 4  ;;  %v5763_v3 = vld [vmem:[#allocation2 + $0x88] sm:$0xf] }
 0x24a   : > { %v4570_v19 = vrot.slane %v4568_v1, 4  ;;  %v4569_v6 = vsel %vm6419_vm15, %v5545_v53, %v4568_v1  ;;  %v3243_v30 = vrot.slane %v5763_v3, 5  ;;  %v3117_v1 = vld [vmem:[#allocation2 + $0x84] sm:$0xe] }
 0x24b   : > { %5512 = vmatmul.msk.bf16.gmra.mxu2 %vm1420_vm11, %v5614_v37  ;;  %v3070_v63 = vpop.f32.mrf.mxu0  ;;  %v4640_v21 = vunpack.c.l.b16 %v4569_v6  ;;  %v5615_v53 = vld [vmem:[#allocation2 + $0x84] sm:$0xff] }
 0x24c   : > { %v7100_v12 = vadd.f32 %v3070_v63, %v2451_v48  ;;  %v7109_v48 = vld [vmem:[#allocation2 + $0x94] sm:$0xf]  ;;  %v4572_v17 = vsel %vm6419_vm15, %v4570_v19, %v4571_v60  ;;  %v3245_v35 = vrot.slane %v3243_v30, 4  ;;  %v4069_v19 = vsel %vm5976_vm12, %v4064_v43, %v7095_v27  ;;  %v5764_v60 = vld [vmem:[#allocation2 + $0x8c] sm:$0x1] }
 0x24d   : > { %v4090_v22 = vshll.u32 %v7109_v48, 16  ;;  %v4094_v44 = vshrl.u32 %v7109_v48, 16  ;;  %v4244_v43 = vunpack.c.l.b16 %v4069_v19 }
 0x24e   : > { %v2418_v13 = vpop.f32.mrf.mxu3  ;;  %v3680_v11 = vpop.f32.mrf.mxu2  ;;  %7543 = vst [vmem:[#allocation3_spill] sm:$0xff] %v7100_v12  ;;  %5561 = vmatmul.msk.bf16.gmra.mxu0 %vm1420_vm11, %v4663_v40  ;;  %v4074_v40 = vrot.slane %v4073_v41, 4  ;;  %v5416_v41 = vrot.slane %v3117_v1, 9  ;;  %v7184_v12 = vld [vmem:[#allocation2 + $0xa4] sm:$0x1] }
 0x24f   : > { %v2452_v9 = vadd.f32 %v2418_v13, %v2166_v50  ;;  %v7102_v37 = vpop.f32.mrf.mxu1  ;;  %v4081_v50 = vshrl.u32 %v3822_v56, 16  ;;  %v3760_v32 = vadd.f32 %v3680_v11, %v3473_v28  ;;  %v4641_v56 = vunpack.c.l.b16 %v4572_v17 }
 0x250   : > { %v4079_v11 = vsel %vm5976_vm12, %v4074_v40, %v4078_v0  ;;  %v3246_v28 = vrot.slane %v5764_v60, 5  ;;  %v4092_v6 = vrot.slane %v4090_v22, 5 }
 0x251   : > { %5432 = vmatmul.msk.bf16.gmra.mxu1 %vm1420_vm11, %v3326_v55  ;;  %v4083_v13 = vrot.slane %v4081_v50, 4  ;;  %v4455_v50 = vld [vmem:[#allocation2 + $0x84] sm:$0xe]  ;;  %v4245_v40 = vunpack.c.l.b16 %v4079_v11 }
 0x252   : > { %v3247_v17 = vsel %vm6419_vm15, %v3245_v35, %v3246_v28  ;;  %v5546_v22 = vrot.slane %v4455_v50, 9 }
 0x253   : > { %5529 = vmatmul.msk.bf16.gmra.mxu3 %vm1420_vm11, %v4266_v61  ;;  %v3072_v49 = vpop.f32.mrf.mxu0  ;;  %v4086_v61 = vrot.slane %v4084_v33, 5  ;;  %v3244_v33 = vsel %vm6419_vm15, %v5416_v41, %v3243_v30  ;;  %v3306_v0 = vunpack.c.l.b16 %v3247_v17  ;;  %v3474_v30 = vadd.f32 %v7086_v16, %v6656_v2 }
 0x254   : > { %v7120_v47 = vadd.f32 %v3072_v49, %v2452_v9  ;;  %v4575_v9 = vrot.slane %v7077_v7, 5  ;;  %v4096_v49 = vrot.slane %v4094_v44, 4  ;;  %v3305_v1 = vunpack.c.l.b16 %v3244_v33  ;;  %v7156_v33 = vld [vmem:[#allocation2 + $0xa0] sm:$0xf] }
 0x255   : > { %v4087_v27 = vor.u32 %v4086_v61, %v4083_v13  ;;  %v4664_v7 = vpack.c.b16 %v4641_v56, %v4640_v21  ;;  %v4578_v44 = vrot.slane %v7098_v14, 5  ;;  %v4267_v2 = vpack.c.b16 %v4245_v40, %v4244_v43 }
 0x256   : > { %v4334_v63 = vpop.f32.mrf.mxu3  ;;  %v3682_v55 = vpop.f32.mrf.mxu2  ;;  %7544 = vst [vmem:[#allocation4_spill] sm:$0xff] %v7120_v47  ;;  %v7134_v47 = vld [vmem:[#allocation2 + $0x98] sm:$0x1]  ;;  %v3327_v41 = vpack.c.b16 %v3306_v0, %v3305_v1  ;;  %v4097_v35 = vor.u32 %v4096_v49, %v4092_v6  ;;  %v4576_v21 = vsel %vm6419_vm15, %v5546_v22, %v4575_v9  ;;  %v4114_v0 = vshll.u32 %v7156_v33, 16 }
 0x257   : > { %v7122_v25 = vpop.f32.mrf.mxu1  ;;  %v4414_v3 = vadd.f32 %v4334_v63, %v3760_v32  ;;  %v4577_v63 = vrot.slane %v4575_v9, 4  ;;  %v4100_v60 = vshll.u32 %v7134_v47, 16  ;;  %v3761_v61 = vadd.f32 %v3682_v55, %v3474_v30  ;;  %v3825_v55 = vld [vmem:[#allocation2 + $0x9c] sm:$0xf] }
 0x258   : > { %v4088_v11 = vrot.slane %v4087_v27, 4  ;;  %v4098_v28 = vrot.slane %v4097_v35, 4  ;;  %v4642_v17 = vunpack.c.l.b16 %v4576_v21  ;;  %v4105_v9 = vshrl.u32 %v3825_v55, 16 }
 0x259   : > { %v4579_v56 = vsel %vm6419_vm15, %v4577_v63, %v4578_v44  ;;  %v4102_v50 = vrot.slane %v4100_v60, 5  ;;  %v4108_v1 = vshll.u32 %v3825_v55, 16  ;;  %v3475_v27 = vadd.f32 %v7102_v37, %v6660_v39 }
 0x25a   : > { %v4643_v43 = vunpack.c.l.b16 %v4579_v56  ;;  %v4107_v21 = vrot.slane %v4105_v9, 4 }
 0x25b   : > { %5513 = vmatmul.msk.bf16.gmra.mxu2 %vm1420_vm11, %v5615_v53  ;;  %v4732_v32 = vpop.f32.mrf.mxu0  ;;  %v4103_v30 = vsel %vm5976_vm12, %v4098_v28, %v4102_v50  ;;  %v4110_v55 = vrot.slane %v4108_v1, 5 }
 0x25c   : > { %v4812_v13 = vadd.f32 %v4732_v32, %v4414_v3  ;;  %v4093_v3 = vsel %vm5976_vm12, %v4088_v11, %v4092_v6  ;;  %v5765_v6 = vld [vmem:[#allocation2 + $0x94] sm:$0xf]  ;;  %v4118_v32 = vshrl.u32 %v7156_v33, 16 }
 0x25d   : > { %v7169_v22 = vunpack.c.l.b16 %v4093_v3  ;;  %v3250_v44 = vrot.slane %v5765_v6, 5  ;;  %v7176_v3 = vrot.slane %v4114_v0, 5 }
 0x25e   : > { %v4336_v53 = vpop.f32.mrf.mxu3  ;;  %v3685_v19 = vpop.f32.mrf.mxu2  ;;  %5562 = vmatmul.msk.bf16.gmra.mxu0 %vm1420_vm11, %v4664_v7  ;;  %v4844_v14 = vpack.c.bf16 %v4812_v13, %v4812_v13  ;;  %v4908_v63 = vsel %vm1420_vm11, %v4812_v13, 0.0  ;;  %v4120_v6 = vrot.slane %v4118_v32, 4  ;;  %v3476_v32 = vadd.f32 %v7122_v25, %v6674_v26 }
 0x25f   : > { %v7148_v16 = vpop.f32.mrf.mxu1  ;;  %v4415_v49 = vadd.f32 %v4336_v53, %v3761_v61  ;;  %v3762_v39 = vadd.f32 %v3685_v19, %v3475_v27  ;;  %v3118_v61 = vld [vmem:[#allocation2 + $0x90] sm:$0xe]  ;;  %v5766_v27 = vld [vmem:[#allocation2 + $0x98] sm:$0x1] }
 0x260   : > { %4876 = vst.msk [vmem:[%s7146_s9] sm:$0xf] %vm405_vm1, %v4844_v14  ;;  %v5616_v53 = vld [vmem:[#allocation2 + $0x90] sm:$0xff]  ;;  %v3252_v14 = vrot.slane %v3250_v44, 4 }
 0x261   : > { %5433 = vmatmul.msk.bf16.gmra.mxu1 %vm1420_vm11, %v3327_v41  ;;  %v4977_v41 = vmul.f32 %v4812_v13, %v4812_v13 }
 0x263   : > { %5530 = vmatmul.msk.bf16.gmra.mxu3 %vm1420_vm11, %v4267_v2  ;;  %v4734_v7 = vpop.f32.mrf.mxu0  ;;  %v5417_v2 = vrot.slane %v3118_v61, 9  ;;  %v5009_v40 = vsel %vm1420_vm11, %v4977_v41, 0.0 }
 0x264   : > { %v4813_v35 = vadd.f32 %v4734_v7, %v4415_v49  ;;  %v4456_v49 = vld [vmem:[#allocation2 + $0x90] sm:$0xe]  ;;  %v3253_v7 = vrot.slane %v5766_v27, 5 }
 0x265   : > { %v3251_v19 = vsel %vm6419_vm15, %v5417_v2, %v3250_v44  ;;  %v4665_v2 = vpack.c.b16 %v4643_v43, %v4642_v17 }
 0x266   : > { %v4339_v37 = vpop.f32.mrf.mxu3  ;;  %v3687_v60 = vpop.f32.mrf.mxu2  ;;  %v4845_v56 = vpack.c.bf16 %v4813_v35, %v4813_v35  ;;  %v4909_v28 = vsel %vm1420_vm11, %v4813_v35, 0.0  ;;  %v4978_v50 = vmul.f32 %v4813_v35, %v4813_v35  ;;  %v3307_v61 = vunpack.c.l.b16 %v3251_v19 }
 0x267   : > { %v7173_v11 = vpop.f32.mrf.mxu1  ;;  %v4910_v13 = vadd.f32 %v4909_v28, %v4908_v63  ;;  %v4416_v1 = vadd.f32 %v4339_v37, %v3762_v39  ;;  %v4247_v63 = vunpack.c.l.b16 %v4103_v30  ;;  %v3254_v44 = vsel %vm6419_vm15, %v3252_v14, %v3253_v7 }
 0x268   : > { %4877 = vst.msk [vmem:[%s7146_s9 + $0x4] sm:$0xf] %vm405_vm1, %v4845_v56  ;;  %v5010_v9 = vsel %vm1420_vm11, %v4978_v50, 0.0  ;;  %v4111_v35 = vor.u32 %v4110_v55, %v4107_v21  ;;  %v3308_v41 = vunpack.c.l.b16 %v3254_v44  ;;  %v5547_v28 = vrot.slane %v4456_v49, 9 }
 0x269   : > { %v5011_v0 = vadd.f32 %v5010_v9, %v5009_v40  ;;  %v4585_v39 = vrot.slane %v7134_v47, 5  ;;  %v4121_v37 = vor.u32 %v4120_v6, %v7176_v3  ;;  %v4124_v40 = vshll.u32 %v7184_v12, 16 }
 0x26a   : > { %v7545_v19 = vrot.slane %v7109_v48, 5  ;;  %v3328_v43 = vpack.c.b16 %v3308_v41, %v3307_v61  ;;  %v4268_v26 = vpack.c.b16 %v4247_v63, %v7169_v22  ;;  %v4112_v21 = vrot.slane %v4111_v35, 4  ;;  %v3828_v22 = vld [vmem:[#allocation2 + $0xa8] sm:$0xf] }
 0x26b   : > { %5514 = vmatmul.msk.bf16.gmra.mxu2 %vm1420_vm11, %v5616_v53  ;;  %v4737_v56 = vpop.f32.mrf.mxu0  ;;  %v3763_v53 = vadd.f32 %v3687_v60, %v3476_v32  ;;  %v4122_v6 = vrot.slane %v4121_v37, 4  ;;  %v4126_v9 = vrot.slane %v4124_v40, 5  ;;  %v7217_v32 = vld [vmem:[#allocation2 + $0xac] sm:$0xf]  ;;  %v4129_v41 = vshrl.u32 %v3828_v22, 16 }
 0x26c   : > { %v4814_v50 = vadd.f32 %v4737_v56, %v4416_v1  ;;  %v4584_v14 = vrot.slane %v7545_v19, 4  ;;  %v7546_v60 = vmov %v7545_v19  ;;  %v4117_v48 = vsel %vm5976_vm12, %v4112_v21, %v7176_v3 }
 0x26d   : > { %v4583_v7 = vsel %vm6419_vm15, %v5547_v28, %v7546_v60  ;;  %v4127_v37 = vsel %vm5976_vm12, %v4122_v6, %v4126_v9  ;;  %v4132_v40 = vshll.u32 %v3828_v22, 16  ;;  %v7221_v3 = vunpack.c.l.b16 %v4117_v48  ;;  %v5768_v22 = vld [vmem:[#allocation2 + $0xa4] sm:$0x1] }
 0x26e   : > { %v4341_v30 = vpop.f32.mrf.mxu3  ;;  %v3690_v17 = vpop.f32.mrf.mxu2  ;;  %5563 = vmatmul.msk.bf16.gmra.mxu0 %vm1420_vm11, %v4665_v2  ;;  %v4846_v47 = vpack.c.bf16 %v4814_v50, %v4814_v50  ;;  %v4911_v55 = vsel %vm1420_vm11, %v4814_v50, 0.0  ;;  %v4979_v49 = vmul.f32 %v4814_v50, %v4814_v50  ;;  %v4586_v63 = vsel %vm6419_vm15, %v4584_v14, %v4585_v39  ;;  %v5767_v39 = vld [vmem:[#allocation2 + $0xa0] sm:$0xf]  ;;  %v3119_v14 = vld [vmem:[#allocation2 + $0x9c] sm:$0xe] }
 0x26f   : > { %v7197_v25 = vpop.f32.mrf.mxu1  ;;  %v4912_v27 = vadd.f32 %v4911_v55, %v4910_v13  ;;  %v4417_v61 = vadd.f32 %v4341_v30, %v3763_v53  ;;  %v7547_v13 = vld [vmem:[#allocation5_spill] sm:$0xff]  ;;  %v4644_v2 = vunpack.c.l.b16 %v4583_v7  ;;  %v4645_v28 = vunpack.c.l.b16 %v4586_v63 }
 0x270   : > { %4878 = vst.msk [vmem:[%s7146_s9 + $0x8] sm:$0xf] %vm405_vm1, %v4846_v47  ;;  %v5012_v1 = vsel %vm1420_vm11, %v4979_v49, 0.0  ;;  %v3477_v35 = vadd.f32 %v7148_v16, %v7547_v13  ;;  %v4589_v16 = vrot.slane %v7156_v33, 5  ;;  %v5418_v21 = vrot.slane %v3119_v14, 9  ;;  %v7548_v14 = vld [vmem:[#allocation6_spill] sm:$0xff] }
 0x271   : > { %5434 = vmatmul.msk.bf16.gmra.mxu1 %vm1420_vm11, %v3328_v43  ;;  %v5013_v44 = vadd.f32 %v5012_v1, %v5011_v0  ;;  %v3257_v0 = vrot.slane %v5767_v39, 5  ;;  %v5617_v43 = vld [vmem:[#allocation2 + $0x9c] sm:$0xff]  ;;  %v4138_v55 = vshll.u32 %v7217_v32, 16  ;;  %v4142_v49 = vshrl.u32 %v7217_v32, 16 }
 0x272   : > { %v3764_v53 = vadd.f32 %v3690_v17, %v3477_v35  ;;  %v4131_v6 = vrot.slane %v4129_v41, 4  ;;  %v3260_v1 = vrot.slane %v5768_v22, 5  ;;  %v4249_v13 = vunpack.c.l.b16 %v4127_v37  ;;  %v4457_v35 = vld [vmem:[#allocation2 + $0x9c] sm:$0xe] }
 0x273   : > { %5531 = vmatmul.msk.bf16.gmra.mxu3 %vm1420_vm11, %v4268_v26  ;;  %v4739_v56 = vpop.f32.mrf.mxu0  ;;  %v3259_v47 = vrot.slane %v3257_v0, 4  ;;  %v3258_v33 = vsel %vm6419_vm15, %v5418_v21, %v3257_v0  ;;  %v7237_v41 = vrot.slane %v4138_v55, 5  ;;  %v4144_v0 = vrot.slane %v4142_v49, 4 }
 0x274   : > { %v4815_v50 = vadd.f32 %v4739_v56, %v4417_v61  ;;  %v4134_v61 = vrot.slane %v4132_v40, 5  ;;  %v3309_v56 = vunpack.c.l.b16 %v3258_v33  ;;  %v3478_v40 = vadd.f32 %v7173_v11, %v7548_v14 }
 0x275   : > { %v5548_v37 = vrot.slane %v4457_v35, 9  ;;  %v4145_v11 = vor.u32 %v4144_v0, %v7237_v41 }
 0x276   : > { %v4344_v30 = vpop.f32.mrf.mxu3  ;;  %v3692_v19 = vpop.f32.mrf.mxu2  ;;  %v4847_v60 = vpack.c.bf16 %v4815_v50, %v4815_v50  ;;  %v4913_v17 = vsel %vm1420_vm11, %v4815_v50, 0.0  ;;  %v4980_v7 = vmul.f32 %v4815_v50, %v4815_v50  ;;  %v4666_v50 = vpack.c.b16 %v4645_v28, %v4644_v2 }
 0x277   : > { %v7224_v26 = vpop.f32.mrf.mxu1  ;;  %v4914_v9 = vadd.f32 %v4913_v17, %v4912_v27  ;;  %v4418_v48 = vadd.f32 %v4344_v30, %v3764_v53  ;;  %v3261_v27 = vsel %vm6419_vm15, %v3259_v47, %v3260_v1  ;;  %v4591_v30 = vrot.slane %v4589_v16, 4  ;;  %v3831_v1 = vld [vmem:[#allocation2 + $0xb4] sm:$0xf] }
 0x278   : > { %4879 = vst.msk [vmem:[%s7146_s9 + $0xc] sm:$0xf] %vm405_vm1, %v4847_v60  ;;  %v5014_v63 = vsel %vm1420_vm11, %v4980_v7, 0.0  ;;  %v3310_v21 = vunpack.c.l.b16 %v3261_v27  ;;  %v7241_v60 = vld [vmem:[#allocation2 + $0xb0] sm:$0x1]  ;;  %v4135_v17 = vor.u32 %v4134_v61, %v4131_v6  ;;  %v3765_v7 = vadd.f32 %v3692_v19, %v3478_v40 }
 0x279   : > { %v5015_v39 = vadd.f32 %v5014_v63, %v5013_v44  ;;  %v4592_v44 = vrot.slane %v7184_v12, 5  ;;  %v4269_v2 = vpack.c.b16 %v4249_v13, %v7221_v3  ;;  %v4148_v49 = vshll.u32 %v7241_v60, 16 }
 0x27a   : > { %v3329_v55 = vpack.c.b16 %v3310_v21, %v3309_v56  ;;  %v4590_v61 = vsel %vm6419_vm15, %v5548_v37, %v4589_v16  ;;  %v4136_v63 = vrot.slane %v4135_v17, 4  ;;  %v4153_v56 = vshrl.u32 %v3831_v1, 16 }
 0x27b   : > { %5515 = vmatmul.msk.bf16.gmra.mxu2 %vm1420_vm11, %v5617_v43  ;;  %v4742_v53 = vpop.f32.mrf.mxu0  ;;  %v4593_v3 = vsel %vm6419_vm15, %v4591_v30, %v4592_v44  ;;  %v4156_v27 = vshll.u32 %v3831_v1, 16  ;;  %v4150_v16 = vrot.slane %v4148_v49, 5  ;;  %v4646_v40 = vunpack.c.l.b16 %v4590_v61  ;;  %v5769_v44 = vld [vmem:[#allocation2 + $0xac] sm:$0xf] }
 0x27c   : > { %v4816_v43 = vadd.f32 %v4742_v53, %v4418_v48  ;;  %v7256_v48 = vld [vmem:[#allocation2 + $0xb8] sm:$0xf]  ;;  %v4647_v37 = vunpack.c.l.b16 %v4593_v3  ;;  %v4141_v30 = vsel %vm5976_vm12, %v4136_v63, %v7237_v41  ;;  %v3264_v17 = vrot.slane %v5769_v44, 5  ;;  %v5618_v49 = vld [vmem:[#allocation2 + $0xa8] sm:$0xff] }
 0x27d   : > { %v4162_v21 = vshll.u32 %v7256_v48, 16 }
 0x27e   : > { %v4346_v33 = vpop.f32.mrf.mxu3  ;;  %v3695_v47 = vpop.f32.mrf.mxu2  ;;  %5564 = vmatmul.msk.bf16.gmra.mxu0 %vm1420_vm11, %v4666_v50  ;;  %v4848_v22 = vpack.c.bf16 %v4816_v43, %v4816_v43  ;;  %v4915_v12 = vsel %vm1420_vm11, %v4816_v43, 0.0  ;;  %v4981_v6 = vmul.f32 %v4816_v43, %v4816_v43  ;;  %v7549_v50 = vld [vmem:[#allocation7_spill] sm:$0xff]  ;;  %v3266_v1 = vrot.slane %v3264_v17, 4 }
 0x27f   : > { %v7245_v28 = vpop.f32.mrf.mxu1  ;;  %v4916_v19 = vadd.f32 %v4915_v12, %v4914_v9  ;;  %v4419_v35 = vadd.f32 %v4346_v33, %v3765_v7  ;;  %v4146_v9 = vrot.slane %v4145_v11, 4  ;;  %v3479_v14 = vadd.f32 %v7197_v25, %v7549_v50 }
 0x280   : > { %4880 = vst.msk [vmem:[%s7146_s9 + $0x10] sm:$0xf] %vm405_vm1, %v4848_v22  ;;  %v5016_v13 = vsel %vm1420_vm11, %v4981_v6, 0.0  ;;  %v4155_v11 = vrot.slane %v4153_v56, 4  ;;  %v4158_v25 = vrot.slane %v4156_v27, 5  ;;  %v4596_v12 = vrot.slane %v7217_v32, 5 }
 0x281   : > { %5435 = vmatmul.msk.bf16.gmra.mxu1 %vm1420_vm11, %v3329_v55  ;;  %v5017_v0 = vadd.f32 %v5016_v13, %v5015_v39  ;;  %v4166_v39 = vshrl.u32 %v7256_v48, 16  ;;  %v3766_v7 = vadd.f32 %v3695_v47, %v3479_v14  ;;  %v4151_v22 = vsel %vm5976_vm12, %v4146_v9, %v4150_v16  ;;  %v5770_v27 = vld [vmem:[#allocation2 + $0xb0] sm:$0x1] }
 0x282   : > { %v7275_v63 = vrot.slane %v4162_v21, 5  ;;  %v3267_v50 = vrot.slane %v5770_v27, 5  ;;  %v4159_v44 = vor.u32 %v4158_v25, %v4155_v11  ;;  %v4251_v21 = vunpack.c.l.b16 %v4151_v22 }
 0x283   : > { %5532 = vmatmul.msk.bf16.gmra.mxu3 %vm1420_vm11, %v4269_v2  ;;  %v4744_v53 = vpop.f32.mrf.mxu0  ;;  %v3120_v2 = vld [vmem:[#allocation2 + $0xa8] sm:$0xe]  ;;  %v4168_v9 = vrot.slane %v4166_v39, 4 }
 0x284   : > { %v4817_v43 = vadd.f32 %v4744_v53, %v4419_v35  ;;  %v5419_v41 = vrot.slane %v3120_v2, 9  ;;  %v4458_v35 = vld [vmem:[#allocation2 + $0xa8] sm:$0xe]  ;;  %v7282_v53 = vld [vmem:[#allocation2 + $0xbc] sm:$0x1]  ;;  %v4667_v2 = vpack.c.b16 %v4647_v37, %v4646_v40 }
 0x285   : > { %v4169_v11 = vor.u32 %v4168_v9, %v7275_v63 }
 0x286   : > { %v4349_v33 = vpop.f32.mrf.mxu3  ;;  %v3697_v55 = vpop.f32.mrf.mxu2  ;;  %v4849_v61 = vpack.c.bf16 %v4817_v43, %v4817_v43  ;;  %v4917_v3 = vsel %vm1420_vm11, %v4817_v43, 0.0  ;;  %v4982_v47 = vmul.f32 %v4817_v43, %v4817_v43  ;;  %v3265_v56 = vsel %vm6419_vm15, %v5419_v41, %v3264_v17  ;;  %v7550_v41 = vld [vmem:[#allocation8_spill] sm:$0xff] }
 0x287   : > { %v7272_v6 = vpop.f32.mrf.mxu1  ;;  %v4918_v13 = vadd.f32 %v4917_v3, %v4916_v19  ;;  %v4420_v16 = vadd.f32 %v4349_v33, %v3766_v7  ;;  %v3311_v14 = vunpack.c.l.b16 %v3265_v56  ;;  %v4250_v19 = vunpack.c.l.b16 %v4141_v30 }
 0x288   : > { %4881 = vst.msk [vmem:[%s7146_s9 + $0x14] sm:$0xf] %vm405_vm1, %v4849_v61  ;;  %v5018_v32 = vsel %vm1420_vm11, %v4982_v47, 0.0  ;;  %v3268_v17 = vsel %vm6419_vm15, %v3266_v1, %v3267_v50  ;;  %v3480_v39 = vadd.f32 %v7224_v26, %v7550_v41  ;;  %v5549_v61 = vrot.slane %v4458_v35, 9  ;;  %v3834_v50 = vld [vmem:[#allocation2 + $0xc0] sm:$0xf] }
 0x289   : > { %v5019_v43 = vadd.f32 %v5018_v32, %v5017_v0  ;;  %v3312_v3 = vunpack.c.l.b16 %v3268_v17  ;;  %v4598_v7 = vrot.slane %v4596_v12, 4  ;;  %v4599_v33 = vrot.slane %v7241_v60, 5 }
 0x28a   : > { %v4172_v0 = vshll.u32 %v7282_v53, 16  ;;  %v3767_v30 = vadd.f32 %v3697_v55, %v3480_v39  ;;  %v4160_v1 = vrot.slane %v4159_v44, 4  ;;  %v4270_v40 = vpack.c.b16 %v4251_v21, %v4250_v19  ;;  %v7301_v44 = vld [vmem:[#allocation2 + $0xc4] sm:$0xf] }
 0x28b   : > { %5516 = vmatmul.msk.bf16.gmra.mxu2 %vm1420_vm11, %v5618_v49  ;;  %v4747_v47 = vpop.f32.mrf.mxu0  ;;  %v3330_v56 = vpack.c.b16 %v3312_v3, %v3311_v14  ;;  %v4597_v27 = vsel %vm6419_vm15, %v5549_v61, %v4596_v12  ;;  %v4600_v55 = vsel %vm6419_vm15, %v4598_v7, %v4599_v33  ;;  %v4170_v32 = vrot.slane %v4169_v11, 4  ;;  %v4459_v14 = vld [vmem:[#allocation2 + $0xb4] sm:$0xe] }
 0x28c   : > { %v4818_v25 = vadd.f32 %v4747_v47, %v4420_v16  ;;  %v4174_v16 = vrot.slane %v4172_v0, 5  ;;  %v4165_v12 = vsel %vm5976_vm12, %v4160_v1, %v7275_v63  ;;  %v4648_v17 = vunpack.c.l.b16 %v4597_v27  ;;  %v5771_v63 = vld [vmem:[#allocation2 + $0xb8] sm:$0xf]  ;;  %v3121_v1 = vld [vmem:[#allocation2 + $0xb4] sm:$0xe] }
 0x28d   : > { %v4180_v41 = vshll.u32 %v3834_v50, 16  ;;  %v3481_v39 = vadd.f32 %v7245_v28, %v6725_v46  ;;  %v4649_v61 = vunpack.c.l.b16 %v4600_v55  ;;  %v5550_v3 = vrot.slane %v4459_v14, 9 }
 0x28e   : > { %v4351_v49 = vpop.f32.mrf.mxu3  ;;  %v3700_v22 = vpop.f32.mrf.mxu2  ;;  %5565 = vmatmul.msk.bf16.gmra.mxu0 %vm1420_vm11, %v4667_v2  ;;  %v4850_v26 = vpack.c.bf16 %v4818_v25, %v4818_v25  ;;  %v4919_v35 = vsel %vm1420_vm11, %v4818_v25, 0.0  ;;  %v4983_v60 = vmul.f32 %v4818_v25, %v4818_v25  ;;  %v4177_v2 = vshrl.u32 %v3834_v50, 16 }
 0x28f   : > { %v7292_v37 = vpop.f32.mrf.mxu1  ;;  %v4920_v9 = vadd.f32 %v4919_v35, %v4918_v13  ;;  %v4421_v21 = vadd.f32 %v4351_v49, %v3767_v30  ;;  %v4186_v47 = vshll.u32 %v7301_v44, 16  ;;  %v4175_v33 = vsel %vm5976_vm12, %v4170_v32, %v4174_v16 }
 0x290   : > { %4882 = vst.msk [vmem:[%s7146_s9 + $0x18] sm:$0xf] %vm405_vm1, %v4850_v26  ;;  %v5020_v19 = vsel %vm1420_vm11, %v4983_v60, 0.0  ;;  %v7315_v11 = vunpack.c.l.b16 %v4165_v12  ;;  %v4190_v0 = vshrl.u32 %v7301_v44, 16  ;;  %v3768_v30 = vadd.f32 %v3700_v22, %v3481_v39 }
 0x291   : > { %5436 = vmatmul.msk.bf16.gmra.mxu1 %vm1420_vm11, %v3330_v56  ;;  %v5021_v13 = vadd.f32 %v5020_v19, %v5019_v43  ;;  %v3271_v43 = vrot.slane %v5771_v63, 5  ;;  %v4603_v46 = vrot.slane %v7256_v48, 5  ;;  %v4606_v28 = vrot.slane %v7282_v53, 5  ;;  %v5772_v19 = vld [vmem:[#allocation2 + $0xbc] sm:$0x1] }
 0x292   : > { %v5420_v35 = vrot.slane %v3121_v1, 9  ;;  %v4179_v27 = vrot.slane %v4177_v2, 4  ;;  %v4182_v50 = vrot.slane %v4180_v41, 5  ;;  %v4188_v22 = vrot.slane %v4186_v47, 5  ;;  %v7328_v41 = vld [vmem:[#allocation2 + $0xc8] sm:$0x1] }
 0x293   : > { %5533 = vmatmul.msk.bf16.gmra.mxu3 %vm1420_vm11, %v4270_v40  ;;  %v4749_v7 = vpop.f32.mrf.mxu0  ;;  %v5619_v40 = vld [vmem:[#allocation2 + $0xb4] sm:$0xff]  ;;  %v3273_v60 = vrot.slane %v3271_v43, 4  ;;  %v3274_v53 = vrot.slane %v5772_v19, 5  ;;  %v4253_v47 = vunpack.c.l.b16 %v4175_v33 }
 0x294   : > { %v4819_v25 = vadd.f32 %v4749_v7, %v4421_v21  ;;  %v3272_v48 = vsel %vm6419_vm15, %v5420_v35, %v3271_v43  ;;  %v4192_v21 = vrot.slane %v4190_v0, 4  ;;  %v4605_v7 = vrot.slane %v4603_v46, 4 }
 0x295   : > { %v3313_v2 = vunpack.c.l.b16 %v3272_v48  ;;  %v4183_v43 = vor.u32 %v4182_v50, %v4179_v27  ;;  %v3482_v0 = vadd.f32 %v7272_v6, %v6745_v23 }
 0x296   : > { %v4354_v49 = vpop.f32.mrf.mxu3  ;;  %v3702_v56 = vpop.f32.mrf.mxu2  ;;  %v4851_v55 = vpack.c.bf16 %v4819_v25, %v4819_v25  ;;  %v4921_v32 = vsel %vm1420_vm11, %v4819_v25, 0.0  ;;  %v4984_v16 = vmul.f32 %v4819_v25, %v4819_v25  ;;  %v4668_v25 = vpack.c.b16 %v4649_v61, %v4648_v17 }
 0x297   : > { %v7320_v26 = vpop.f32.mrf.mxu1  ;;  %v4922_v14 = vadd.f32 %v4921_v32, %v4920_v9  ;;  %v4422_v39 = vadd.f32 %v4354_v49, %v3768_v30  ;;  %v3275_v9 = vsel %vm6419_vm15, %v3273_v60, %v3274_v53  ;;  %v4604_v30 = vsel %vm6419_vm15, %v5550_v3, %v4603_v46 }
 0x298   : > { %4883 = vst.msk [vmem:[%s7146_s9 + $0x1c] sm:$0xf] %vm405_vm1, %v4851_v55  ;;  %v5022_v12 = vsel %vm1420_vm11, %v4984_v16, 0.0  ;;  %v3314_v1 = vunpack.c.l.b16 %v3275_v9  ;;  %v4193_v49 = vor.u32 %v4192_v21, %v4188_v22  ;;  %v4196_v55 = vshll.u32 %v7328_v41, 16  ;;  %v5773_v9 = vld [vmem:[#allocation2 + $0xc4] sm:$0xf] }
 0x299   : > { %v5023_v63 = vadd.f32 %v5022_v12, %v5021_v13  ;;  %v3769_v32 = vadd.f32 %v3702_v56, %v3482_v0  ;;  %v4607_v33 = vsel %vm6419_vm15, %v4605_v7, %v4606_v28  ;;  %v4271_v61 = vpack.c.b16 %v4253_v47, %v7315_v11  ;;  %v3837_v12 = vld [vmem:[#allocation2 + $0xcc] sm:$0xf] }
 0x29a   : > { %v3331_v17 = vpack.c.b16 %v3314_v1, %v3313_v2  ;;  %v4184_v6 = vrot.slane %v4183_v43, 4  ;;  %v4650_v50 = vunpack.c.l.b16 %v4604_v30  ;;  %v4651_v16 = vunpack.c.l.b16 %v4607_v33  ;;  %v3122_v30 = vld [vmem:[#allocation2 + $0xc0] sm:$0xe] }
 0x29b   : > { %5517 = vmatmul.msk.bf16.gmra.mxu2 %vm1420_vm11, %v5619_v40  ;;  %v4752_v35 = vpop.f32.mrf.mxu0  ;;  %v4194_v28 = vrot.slane %v4193_v49, 4  ;;  %v4198_v48 = vrot.slane %v4196_v55, 5  ;;  %v3278_v43 = vrot.slane %v5773_v9, 5  ;;  %v5620_v49 = vld [vmem:[#allocation2 + $0xc0] sm:$0xff] }
 0x29c   : > { %v4820_v13 = vadd.f32 %v4752_v35, %v4422_v39  ;;  %v4189_v21 = vsel %vm5976_vm12, %v4184_v6, %v4188_v22  ;;  %v7354_v39 = vld [vmem:[#allocation2 + $0xd0] sm:$0xf]  ;;  %v4669_v2 = vpack.c.b16 %v4651_v16, %v4650_v50  ;;  %v4201_v22 = vshrl.u32 %v3837_v12, 16 }
 0x29d   : > { %v4199_v47 = vsel %vm5976_vm12, %v4194_v28, %v4198_v48  ;;  %v4254_v35 = vunpack.c.l.b16 %v4189_v21  ;;  %v4610_v6 = vrot.slane %v7301_v44, 5  ;;  %v4460_v48 = vld [vmem:[#allocation2 + $0xc0] sm:$0xe]  ;;  %v4617_v36 = vrot.slane %v7354_v39, 5 }
 0x29e   : > { %v4356_v40 = vpop.f32.mrf.mxu3  ;;  %v3705_v60 = vpop.f32.mrf.mxu2  ;;  %5566 = vmatmul.msk.bf16.gmra.mxu0 %vm1420_vm11, %v4668_v25  ;;  %v4852_v3 = vpack.c.bf16 %v4820_v13, %v4820_v13  ;;  %v4923_v46 = vsel %vm1420_vm11, %v4820_v13, 0.0  ;;  %v4985_v27 = vmul.f32 %v4820_v13, %v4820_v13  ;;  %v4204_v13 = vshll.u32 %v3837_v12, 16 }
 0x29f   : > { %v7341_v23 = vpop.f32.mrf.mxu1  ;;  %v4924_v56 = vadd.f32 %v4923_v46, %v4922_v14  ;;  %v4423_v19 = vadd.f32 %v4356_v40, %v3769_v32  ;;  %v3483_v14 = vadd.f32 %v7292_v37, %v6756_v20  ;;  %v5421_v20 = vrot.slane %v3122_v30, 9  ;;  %v5774_v46 = vld [vmem:[#allocation2 + $0xc8] sm:$0x1] }
 0x2a0   : > { %4884 = vst.msk [vmem:[%s7146_s9 + $0x20] sm:$0xf] %vm405_vm1, %v4852_v3  ;;  %v5024_v11 = vsel %vm1420_vm11, %v4985_v27, 0.0  ;;  %v3280_v37 = vrot.slane %v3278_v43, 4  ;;  %v4210_v32 = vshll.u32 %v7354_v39, 16  ;;  %v3281_v27 = vrot.slane %v5774_v46, 5 }
 0x2a1   : > { %5437 = vmatmul.msk.bf16.gmra.mxu1 %vm1420_vm11, %v3331_v17  ;;  %v5025_v53 = vadd.f32 %v5024_v11, %v5023_v63  ;;  %v3770_v63 = vadd.f32 %v3705_v60, %v3483_v14  ;;  %v4214_v60 = vshrl.u32 %v7354_v39, 16  ;;  %v3279_v3 = vsel %vm6419_vm15, %v5421_v20, %v3278_v43 }
 0x2a2   : > { %v4255_v28 = vunpack.c.l.b16 %v4199_v47  ;;  %v3315_v11 = vunpack.c.l.b16 %v3279_v3  ;;  %v4203_v44 = vrot.slane %v4201_v22, 4  ;;  %v4206_v21 = vrot.slane %v4204_v13, 5 }
 0x2a3   : > { %5534 = vmatmul.msk.bf16.gmra.mxu3 %vm1420_vm11, %v4271_v61  ;;  %v4754_v7 = vpop.f32.mrf.mxu0  ;;  %v3484_v12 = vadd.f32 %v7320_v26, %v6771_v34  ;;  %v4212_v9 = vrot.slane %v4210_v32, 5  ;;  %v4216_v43 = vrot.slane %v4214_v60, 4  ;;  %v5551_v47 = vrot.slane %v4460_v48, 9 }
 0x2a4   : > { %v4821_v25 = vadd.f32 %v4754_v7, %v4423_v19  ;;  %v7374_v7 = vld [vmem:[#allocation2 + $0xd4] sm:$0x1]  ;;  %v4613_v30 = vrot.slane %v7328_v41, 5  ;;  %v4272_v22 = vpack.c.b16 %v4255_v28, %v4254_v35  ;;  %v4207_v34 = vor.u32 %v4206_v21, %v4203_v44  ;;  %v5621_v21 = vld [vmem:[#allocation2 + $0xcc] sm:$0xff] }
 0x2a5   : > { %v4220_v26 = vshll.u32 %v7374_v7, 16  ;;  %v4611_v3 = vsel %vm6419_vm15, %v5551_v47, %v4610_v6  ;;  %v3485_v46 = vadd.f32 %v7341_v23, %v6785_v42 }
 0x2a6   : > { %v4359_v0 = vpop.f32.mrf.mxu3  ;;  %v3707_v1 = vpop.f32.mrf.mxu2  ;;  %v4853_v40 = vpack.c.bf16 %v4821_v25, %v4821_v25  ;;  %v4925_v33 = vsel %vm1420_vm11, %v4821_v25, 0.0  ;;  %v4986_v17 = vmul.f32 %v4821_v25, %v4821_v25 }
 0x2a7   : > { %v7358_v55 = vpop.f32.mrf.mxu1  ;;  %v4926_v61 = vadd.f32 %v4925_v33, %v4924_v56  ;;  %v4424_v16 = vadd.f32 %v4359_v0, %v3770_v63  ;;  %v3282_v56 = vsel %vm6419_vm15, %v3280_v37, %v3281_v27  ;;  %v3771_v0 = vadd.f32 %v3707_v1, %v3484_v12 }
 0x2a8   : > { %4885 = vst.msk [vmem:[%s7146_s9 + $0x24] sm:$0xf] %vm405_vm1, %v4853_v40  ;;  %v5026_v50 = vsel %vm1420_vm11, %v4986_v17, 0.0  ;;  %v3316_v14 = vunpack.c.l.b16 %v3282_v56  ;;  %v4612_v37 = vrot.slane %v4610_v6, 4  ;;  %v4217_v1 = vor.u32 %v4216_v43, %v4212_v9 }
 0x2a9   : > { %v5027_v19 = vadd.f32 %v5026_v50, %v5025_v53  ;;  %v4222_v50 = vrot.slane %v4220_v26, 5  ;;  %v4652_v56 = vunpack.c.l.b16 %v4611_v3 }
 0x2aa   : > { %v3332_v20 = vpack.c.b16 %v3316_v14, %v3315_v11  ;;  %v4218_v27 = vrot.slane %v4217_v1, 4 }
 0x2ab   : > { %5518 = vmatmul.msk.bf16.gmra.mxu2 %vm1420_vm11, %v5620_v49  ;;  %v4757_v25 = vpop.f32.mrf.mxu0 }
 0x2ac   : > { %v4822_v63 = vadd.f32 %v4757_v25, %v4424_v16  ;;  %v4223_v43 = vsel %vm5976_vm12, %v4218_v27, %v4222_v50 }
 0x2ae   : > { %v4361_v53 = vpop.f32.mrf.mxu3  ;;  %v3710_v49 = vpop.f32.mrf.mxu2  ;;  %5567 = vmatmul.msk.bf16.gmra.mxu0 %vm1420_vm11, %v4669_v2  ;;  %v4854_v32 = vpack.c.bf16 %v4822_v63, %v4822_v63  ;;  %v4927_v40 = vsel %vm1420_vm11, %v4822_v63, 0.0  ;;  %v4987_v33 = vmul.f32 %v4822_v63, %v4822_v63  ;;  %v4208_v2 = vrot.slane %v4207_v34, 4 }
 0x2af   : > { %v7377_v13 = vpop.f32.mrf.mxu1  ;;  %v4928_v17 = vadd.f32 %v4927_v40, %v4926_v61  ;;  %v4425_v35 = vadd.f32 %v4361_v53, %v3771_v0  ;;  %v4614_v61 = vsel %vm6419_vm15, %v4612_v37, %v4613_v30  ;;  %v3772_v48 = vadd.f32 %v3710_v49, %v3485_v46 }
 0x2b0   : > { %4886 = vst.msk [vmem:[%s7146_s9 + $0x28] sm:$0xf] %vm405_vm1, %v4854_v32  ;;  %v5028_v41 = vsel %vm1420_vm11, %v4987_v33, 0.0  ;;  %v4653_v44 = vunpack.c.l.b16 %v4614_v61  ;;  %v4213_v6 = vsel %vm5976_vm12, %v4208_v2, %v4212_v9  ;;  %v4257_v30 = vunpack.c.l.b16 %v4223_v43 }
 0x2b1   : > { %5438 = vmatmul.msk.bf16.gmra.mxu1 %vm1420_vm11, %v3332_v20  ;;  %v5029_v60 = vadd.f32 %v5028_v41, %v5027_v19  ;;  %v4256_v53 = vunpack.c.l.b16 %v4213_v6  ;;  %v3486_v49 = vadd.f32 %v7358_v55, %v6802_v31  ;;  %v4619_v31 = vrot.slane %v4617_v36, 4 }
 0x2b2   : > { %v4670_v9 = vpack.c.b16 %v4653_v44, %v4652_v56  ;;  %v4620_v55 = vrot.slane %v7374_v7, 5  ;;  %v3487_v46 = vadd.f32 %v7377_v13, %v6817_v8 }
 0x2b3   : > { %5535 = vmatmul.msk.bf16.gmra.mxu3 %vm1420_vm11, %v4272_v22  ;;  %v4759_v16 = vpop.f32.mrf.mxu0  ;;  %v4461_v22 = vld [vmem:[#allocation2 + $0xcc] sm:$0xe]  ;;  %v4273_v40 = vpack.c.b16 %v4257_v30, %v4256_v53 }
 0x2b4   : > { %v4823_v28 = vadd.f32 %v4759_v16, %v4425_v35  ;;  %v5552_v35 = vrot.slane %v4461_v22, 9  ;;  %v4621_v50 = vsel %vm6419_vm15, %v4619_v31, %v4620_v55 }
 0x2b5   : > { %v4655_v6 = vunpack.c.l.b16 %v4621_v50 }
 0x2b6   : > { %v4364_v11 = vpop.f32.mrf.mxu3  ;;  %v3712_v19 = vpop.f32.mrf.mxu2  ;;  %v4855_v14 = vpack.c.bf16 %v4823_v28, %v4823_v28  ;;  %v4929_v42 = vsel %vm1420_vm11, %v4823_v28, 0.0  ;;  %v4988_v23 = vmul.f32 %v4823_v28, %v4823_v28  ;;  %v4618_v61 = vsel %vm6419_vm15, %v5552_v35, %v4617_v36 }
 0x2b7   : > { %v3430_v12 = vpop.f32.mrf.mxu1  ;;  %v4930_v25 = vadd.f32 %v4929_v42, %v4928_v17  ;;  %v4426_v63 = vadd.f32 %v4364_v11, %v3772_v48  ;;  %v3773_v34 = vadd.f32 %v3712_v19, %v3486_v49  ;;  %v4654_v11 = vunpack.c.l.b16 %v4618_v61 }
 0x2b8   : > { %4887 = vst.msk [vmem:[%s7146_s9 + $0x2c] sm:$0xf] %vm405_vm1, %v4855_v14  ;;  %v5030_v47 = vsel %vm1420_vm11, %v4988_v23, 0.0  ;;  %v3488_v23 = vadd.f32 %v3430_v12, %v6834_v51 }
 0x2b9   : > { %v5031_v0 = vadd.f32 %v5030_v47, %v5029_v60  ;;  %v4671_v42 = vpack.c.b16 %v4655_v6, %v4654_v11 }
 0x2bb   : > { %5519 = vmatmul.msk.bf16.gmra.mxu2 %vm1420_vm11, %v5621_v21  ;;  %v4762_v20 = vpop.f32.mrf.mxu0 }
 0x2bc   : > { %v4824_v37 = vadd.f32 %v4762_v20, %v4426_v63 }
 0x2be   : > { %v4366_v26 = vpop.f32.mrf.mxu3  ;;  %v3715_v32 = vpop.f32.mrf.mxu2  ;;  %5568 = vmatmul.msk.bf16.gmra.mxu0 %vm1420_vm11, %v4670_v9  ;;  %v4856_v1 = vpack.c.bf16 %v4824_v37, %v4824_v37  ;;  %v4931_v17 = vsel %vm1420_vm11, %v4824_v37, 0.0  ;;  %v4989_v41 = vmul.f32 %v4824_v37, %v4824_v37 }
 0x2bf   : > { %v3433_v33 = vpop.f32.mrf.mxu1  ;;  %v4932_v60 = vadd.f32 %v4931_v17, %v4930_v25  ;;  %v4427_v3 = vadd.f32 %v4366_v26, %v3773_v34  ;;  %v3774_v16 = vadd.f32 %v3715_v32, %v3487_v46 }
 0x2c0   : > { %4888 = vst.msk [vmem:[%s7146_s9 + $0x30] sm:$0xf] %vm405_vm1, %v4856_v1  ;;  %v5032_v39 = vsel %vm1420_vm11, %v4989_v41, 0.0  ;;  %v3489_v12 = vadd.f32 %v3433_v33, %v6854_v59 }
 0x2c1   : > { %v5033_v2 = vadd.f32 %v5032_v39, %v5031_v0 }
 0x2c3   : > { %5536 = vmatmul.msk.bf16.gmra.mxu3 %vm1420_vm11, %v4273_v40  ;;  %v4764_v27 = vpop.f32.mrf.mxu0 }
 0x2c4   : > { %v4825_v7 = vadd.f32 %v4764_v27, %v4427_v3 }
 0x2c6   : > { %v4369_v28 = vpop.f32.mrf.mxu3  ;;  %v3717_v48 = vpop.f32.mrf.mxu2  ;;  %v4857_v56 = vpack.c.bf16 %v4825_v7, %v4825_v7  ;;  %v4933_v44 = vsel %vm1420_vm11, %v4825_v7, 0.0  ;;  %v4990_v21 = vmul.f32 %v4825_v7, %v4825_v7 }
 0x2c7   : > { %v3435_v19 = vpop.f32.mrf.mxu1  ;;  %v4934_v14 = vadd.f32 %v4933_v44, %v4932_v60  ;;  %v4428_v13 = vadd.f32 %v4369_v28, %v3774_v16  ;;  %v3775_v47 = vadd.f32 %v3717_v48, %v3488_v23 }
 0x2c8   : > { %4889 = vst.msk [vmem:[%s7146_s9 + $0x34] sm:$0xf] %vm405_vm1, %v4857_v56  ;;  %v5034_v8 = vsel %vm1420_vm11, %v4990_v21, 0.0  ;;  %v3490_v59 = vadd.f32 %v3435_v19, %v6872_v54 }
 0x2c9   : > { %v5035_v15 = vadd.f32 %v5034_v8, %v5033_v2 }
 0x2cb   : > { %v4767_v43 = vpop.f32.mrf.mxu0 }
 0x2cc   : > { %v4826_v25 = vadd.f32 %v4767_v43, %v4428_v13 }
 0x2ce   : > { %v4371_v63 = vpop.f32.mrf.mxu3  ;;  %v3720_v0 = vpop.f32.mrf.mxu2  ;;  %5569 = vmatmul.msk.bf16.gmra.mxu0 %vm1420_vm11, %v4671_v42  ;;  %v4858_v30 = vpack.c.bf16 %v4826_v25, %v4826_v25  ;;  %v4935_v9 = vsel %vm1420_vm11, %v4826_v25, 0.0  ;;  %v4991_v49 = vmul.f32 %v4826_v25, %v4826_v25 }
 0x2cf   : > { %v3438_v53 = vpop.f32.mrf.mxu1  ;;  %v4936_v20 = vadd.f32 %v4935_v9, %v4934_v14  ;;  %v4429_v36 = vadd.f32 %v4371_v63, %v3775_v47  ;;  %v3776_v26 = vadd.f32 %v3720_v0, %v3489_v12 }
 0x2d0   : > { %4890 = vst.msk [vmem:[%s7146_s9 + $0x38] sm:$0xf] %vm405_vm1, %v4858_v30  ;;  %v5036_v22 = vsel %vm1420_vm11, %v4991_v49, 0.0  ;;  %v3491_v54 = vadd.f32 %v3438_v53, %v6887_v62 }
 0x2d1   : > { %v5037_v51 = vadd.f32 %v5036_v22, %v5035_v15 }
 0x2d3   : > { %v4769_v37 = vpop.f32.mrf.mxu0 }
 0x2d4   : > { %v4827_v34 = vadd.f32 %v4769_v37, %v4429_v36 }
 0x2d6   : > { %v4374_v32 = vpop.f32.mrf.mxu3  ;;  %v3722_v40 = vpop.f32.mrf.mxu2  ;;  %v4859_v17 = vpack.c.bf16 %v4827_v34, %v4827_v34  ;;  %v4937_v41 = vsel %vm1420_vm11, %v4827_v34, 0.0  ;;  %v4992_v35 = vmul.f32 %v4827_v34, %v4827_v34 }
 0x2d7   : > { %v3440_v1 = vpop.f32.mrf.mxu1  ;;  %v4938_v60 = vadd.f32 %v4937_v41, %v4936_v20  ;;  %v4430_v55 = vadd.f32 %v4374_v32, %v3776_v26  ;;  %v3777_v2 = vadd.f32 %v3722_v40, %v3490_v59 }
 0x2d8   : > { %4891 = vst.msk [vmem:[%s7146_s9 + $0x3c] sm:$0xf] %vm405_vm1, %v4859_v17  ;;  %v5038_v31 = vsel %vm1420_vm11, %v4992_v35, 0.0  ;;  %v3492_v62 = vadd.f32 %v3440_v1, %v6904_v58 }
 0x2d9   : > { %v5039_v39 = vadd.f32 %v5038_v31, %v5037_v51 }
 0x2db   : > { %v4772_v33 = vpop.f32.mrf.mxu0 }
 0x2dc   : > { %v4828_v3 = vadd.f32 %v4772_v33, %v4430_v55 }
 0x2de   : > { %v4376_v46 = vpop.f32.mrf.mxu3  ;;  %v3725_v61 = vpop.f32.mrf.mxu2  ;;  %v4860_v50 = vpack.c.bf16 %v4828_v3, %v4828_v3  ;;  %v4939_v7 = vsel %vm1420_vm11, %v4828_v3, 0.0  ;;  %v4993_v16 = vmul.f32 %v4828_v3, %v4828_v3 }
 0x2df   : > { %v3443_v27 = vpop.f32.mrf.mxu1  ;;  %v4940_v28 = vadd.f32 %v4939_v7, %v4938_v60  ;;  %v4431_v11 = vadd.f32 %v4376_v46, %v3777_v2  ;;  %v3778_v21 = vadd.f32 %v3725_v61, %v3491_v54 }
 0x2e0   : > { %4892 = vst.msk [vmem:[%s7146_s9 + $0x40] sm:$0xf] %vm405_vm1, %v4860_v50  ;;  %v5040_v48 = vsel %vm1420_vm11, %v4993_v16, 0.0  ;;  %v3493_v58 = vadd.f32 %v3443_v27, %v6924_v29 }
 0x2e1   : > { %v5041_v56 = vadd.f32 %v5040_v48, %v5039_v39 }
 0x2e3   : > { %v4774_v19 = vpop.f32.mrf.mxu0 }
 0x2e4   : > { %v4829_v44 = vadd.f32 %v4774_v19, %v4431_v11 }
 0x2e6   : > { %v4379_v6 = vpop.f32.mrf.mxu3  ;;  %v3727_v14 = vpop.f32.mrf.mxu2  ;;  %v4861_v13 = vpack.c.bf16 %v4829_v44, %v4829_v44  ;;  %v4941_v15 = vsel %vm1420_vm11, %v4829_v44, 0.0  ;;  %v4994_v42 = vmul.f32 %v4829_v44, %v4829_v44 }
 0x2e7   : > { %v3445_v8 = vpop.f32.mrf.mxu1  ;;  %v4942_v23 = vadd.f32 %v4941_v15, %v4940_v28  ;;  %v4432_v25 = vadd.f32 %v4379_v6, %v3778_v21  ;;  %v3779_v53 = vadd.f32 %v3727_v14, %v3492_v62 }
 0x2e8   : > { %4893 = vst.msk [vmem:[%s7146_s9 + $0x44] sm:$0xf] %vm405_vm1, %v4861_v13  ;;  %v5042_v43 = vsel %vm1420_vm11, %v4994_v42, 0.0  ;;  %v3494_v29 = vadd.f32 %v3445_v8, %v6942_v18 }
 0x2e9   : > { %v5043_v47 = vadd.f32 %v5042_v43, %v5041_v56 }
 0x2eb   : > { %v4777_v63 = vpop.f32.mrf.mxu0 }
 0x2ec   : > { %v4830_v0 = vadd.f32 %v4777_v63, %v4432_v25 }
 0x2ee   : > { %v4381_v30 = vpop.f32.mrf.mxu3  ;;  %v3730_v9 = vpop.f32.mrf.mxu2  ;;  %v4862_v20 = vpack.c.bf16 %v4830_v0, %v4830_v0  ;;  %v4943_v22 = vsel %vm1420_vm11, %v4830_v0, 0.0  ;;  %v4995_v36 = vmul.f32 %v4830_v0, %v4830_v0 }
 0x2ef   : > { %v3448_v49 = vpop.f32.mrf.mxu1  ;;  %v4944_v51 = vadd.f32 %v4943_v22, %v4942_v23  ;;  %v4433_v37 = vadd.f32 %v4381_v30, %v3779_v53  ;;  %v3780_v40 = vadd.f32 %v3730_v9, %v3493_v58 }
 0x2f0   : > { %4894 = vst.msk [vmem:[%s7146_s9 + $0x48] sm:$0xf] %vm405_vm1, %v4862_v20  ;;  %v5044_v12 = vsel %vm1420_vm11, %v4995_v36, 0.0  ;;  %v3495_v18 = vadd.f32 %v3448_v49, %v6957_v38 }
 0x2f1   : > { %v5045_v34 = vadd.f32 %v5044_v12, %v5043_v47 }
 0x2f3   : > { %v4779_v26 = vpop.f32.mrf.mxu0 }
 0x2f4   : > { %v4831_v32 = vadd.f32 %v4779_v26, %v4433_v37 }
 0x2f6   : > { %v4384_v1 = vpop.f32.mrf.mxu3  ;;  %v3732_v17 = vpop.f32.mrf.mxu2  ;;  %v4863_v41 = vpack.c.bf16 %v4831_v32, %v4831_v32  ;;  %v4945_v35 = vsel %vm1420_vm11, %v4831_v32, 0.0  ;;  %v4996_v60 = vmul.f32 %v4831_v32, %v4831_v32 }
 0x2f7   : > { %v4946_v31 = vadd.f32 %v4945_v35, %v4944_v51  ;;  %v3450_v55 = vpop.f32.mrf.mxu1  ;;  %v4434_v59 = vadd.f32 %v4384_v1, %v3780_v40  ;;  %v3781_v46 = vadd.f32 %v3732_v17, %v3494_v29 }
 0x2f8   : > { %4895 = vst.msk [vmem:[%s7146_s9 + $0x4c] sm:$0xf] %vm405_vm1, %v4863_v41  ;;  %v5046_v39 = vsel %vm1420_vm11, %v4996_v60, 0.0  ;;  %v3496_v47 = vadd.f32 %v3450_v55, %v6974_v52 }
 0x2f9   : > { %v5047_v33 = vadd.f32 %v5046_v39, %v5045_v34 }
 0x2fb   : > { %v4782_v3 = vpop.f32.mrf.mxu0 }
 0x2fc   : > { %v4832_v2 = vadd.f32 %v4782_v3, %v4434_v59 }
 0x2fe   : > { %v4386_v61 = vpop.f32.mrf.mxu3  ;;  %v3735_v27 = vpop.f32.mrf.mxu2  ;;  %v4864_v50 = vpack.c.bf16 %v4832_v2, %v4832_v2  ;;  %v4947_v7 = vsel %vm1420_vm11, %v4832_v2, 0.0  ;;  %v4997_v16 = vmul.f32 %v4832_v2, %v4832_v2 }
 0x2ff   : > { %v4948_v28 = vadd.f32 %v4947_v7, %v4946_v31  ;;  %v4435_v11 = vadd.f32 %v4386_v61, %v3781_v46  ;;  %v3453_v54 = vpop.f32.mrf.mxu1  ;;  %v3782_v21 = vadd.f32 %v3735_v27, %v3495_v18 }
 0x300   : > { %4896 = vst.msk [vmem:[%s7146_s9 + $0x50] sm:$0xf] %vm405_vm1, %v4864_v50  ;;  %v5048_v48 = vsel %vm1420_vm11, %v4997_v16, 0.0  ;;  %v3497_v52 = vadd.f32 %v3453_v54, %v6994_v5 }
 0x301   : > { %v5049_v56 = vadd.f32 %v5048_v48, %v5047_v33 }
 0x303   : > { %v4784_v19 = vpop.f32.mrf.mxu0 }
 0x304   : > { %v4833_v44 = vadd.f32 %v4784_v19, %v4435_v11 }
 0x306   : > { %v4389_v6 = vpop.f32.mrf.mxu3  ;;  %v3737_v14 = vpop.f32.mrf.mxu2  ;;  %v4865_v8 = vpack.c.bf16 %v4833_v44, %v4833_v44  ;;  %v4949_v13 = vsel %vm1420_vm11, %v4833_v44, 0.0  ;;  %v4998_v15 = vmul.f32 %v4833_v44, %v4833_v44 }
 0x307   : > { %v4950_v42 = vadd.f32 %v4949_v13, %v4948_v28  ;;  %v4436_v43 = vadd.f32 %v4389_v6, %v3782_v21  ;;  %v3455_v62 = vpop.f32.mrf.mxu1  ;;  %v3783_v0 = vadd.f32 %v3737_v14, %v3496_v47 }
 0x308   : > { %4897 = vst.msk [vmem:[%s7146_s9 + $0x54] sm:$0xf] %vm405_vm1, %v4865_v8  ;;  %v5050_v23 = vsel %vm1420_vm11, %v4998_v15, 0.0  ;;  %v3498_v5 = vadd.f32 %v3455_v62, %v7012_v57 }
 0x309   : > { %v5051_v25 = vadd.f32 %v5050_v23, %v5049_v56 }
 0x30b   : > { %v4787_v38 = vpop.f32.mrf.mxu0 }
 0x30c   : > { %v4834_v63 = vadd.f32 %v4787_v38, %v4436_v43 }
 0x30e   : > { %v4391_v53 = vpop.f32.mrf.mxu3  ;;  %v3740_v30 = vpop.f32.mrf.mxu2  ;;  %v4866_v9 = vpack.c.bf16 %v4834_v63, %v4834_v63  ;;  %v4951_v49 = vsel %vm1420_vm11, %v4834_v63, 0.0  ;;  %v4999_v20 = vmul.f32 %v4834_v63, %v4834_v63 }
 0x30f   : > { %v4952_v22 = vadd.f32 %v4951_v49, %v4950_v42  ;;  %v4437_v51 = vadd.f32 %v4391_v53, %v3783_v0  ;;  %v3784_v58 = vadd.f32 %v3740_v30, %v3497_v52  ;;  %v3458_v40 = vpop.f32.mrf.mxu1 }
 0x310   : > { %4898 = vst.msk [vmem:[%s7146_s9 + $0x58] sm:$0xf] %vm405_vm1, %v4866_v9  ;;  %v5052_v36 = vsel %vm1420_vm11, %v4999_v20, 0.0  ;;  %v3499_v57 = vadd.f32 %v3458_v40, %v7027_v4 }
 0x311   : > { %v5053_v12 = vadd.f32 %v5052_v36, %v5051_v25 }
 0x313   : > { %v4789_v37 = vpop.f32.mrf.mxu0 }
 0x314   : > { %v4835_v34 = vadd.f32 %v4789_v37, %v4437_v51 }
 0x316   : > { %v4394_v26 = vpop.f32.mrf.mxu3  ;;  %v3742_v32 = vpop.f32.mrf.mxu2  ;;  %v4867_v1 = vpack.c.bf16 %v4835_v34, %v4835_v34  ;;  %v4953_v17 = vsel %vm1420_vm11, %v4835_v34, 0.0  ;;  %v5000_v41 = vmul.f32 %v4835_v34, %v4835_v34 }
 0x317   : > { %v4954_v35 = vadd.f32 %v4953_v17, %v4952_v22  ;;  %v4438_v31 = vadd.f32 %v4394_v26, %v3784_v58  ;;  %v3785_v33 = vadd.f32 %v3742_v32, %v3498_v5  ;;  %v3460_v50 = vpop.f32.mrf.mxu1 }
 0x318   : > { %4899 = vst.msk [vmem:[%s7146_s9 + $0x5c] sm:$0xf] %vm405_vm1, %v4867_v1  ;;  %v5054_v60 = vsel %vm1420_vm11, %v5000_v41, 0.0  ;;  %v3500_v4 = vadd.f32 %v3460_v50, %v7044_v24 }
 0x319   : > { %v5055_v55 = vadd.f32 %v5054_v60, %v5053_v12 }
 0x31b   : > { %v4792_v39 = vpop.f32.mrf.mxu0 }
 0x31c   : > { %v4836_v59 = vadd.f32 %v4792_v39, %v4438_v31 }
 0x31e   : > { %v4396_v29 = vpop.f32.mrf.mxu3  ;;  %v3745_v3 = vpop.f32.mrf.mxu2  ;;  %v4868_v2 = vpack.c.bf16 %v4836_v59, %v4836_v59  ;;  %v4955_v46 = vsel %vm1420_vm11, %v4836_v59, 0.0  ;;  %v5001_v61 = vmul.f32 %v4836_v59, %v4836_v59 }
 0x31f   : > { %v4956_v27 = vadd.f32 %v4955_v46, %v4954_v35  ;;  %v4439_v16 = vadd.f32 %v4396_v29, %v3785_v33  ;;  %v3786_v56 = vadd.f32 %v3745_v3, %v3499_v57  ;;  %v3463_v15 = vpop.f32.mrf.mxu1 }
 0x320   : > { %4900 = vst.msk [vmem:[%s7146_s9 + $0x60] sm:$0xf] %vm405_vm1, %v4868_v2  ;;  %v5056_v7 = vsel %vm1420_vm11, %v5001_v61, 0.0  ;;  %v3501_v49 = vadd.f32 %v3463_v15, %v7065_v10  ;;  %v7551_v2 = vld [vmem:[#allocation3_spill] sm:$0xff] }
 0x321   : > { %v5057_v28 = vadd.f32 %v5056_v7, %v5055_v55 }
 0x323   : > { %v4794_v48 = vpop.f32.mrf.mxu0 }
 0x324   : > { %v4837_v11 = vadd.f32 %v4794_v48, %v4439_v16 }
 0x326   : > { %v4399_v54 = vpop.f32.mrf.mxu3  ;;  %v3747_v18 = vpop.f32.mrf.mxu2  ;;  %v4869_v19 = vpack.c.bf16 %v4837_v11, %v4837_v11  ;;  %v4957_v44 = vsel %vm1420_vm11, %v4837_v11, 0.0  ;;  %v5002_v21 = vmul.f32 %v4837_v11, %v4837_v11 }
 0x327   : > { %v4958_v6 = vadd.f32 %v4957_v44, %v4956_v27  ;;  %v4440_v8 = vadd.f32 %v4399_v54, %v3786_v56  ;;  %v3787_v43 = vadd.f32 %v3747_v18, %v3500_v4  ;;  %v3465_v20 = vpop.f32.mrf.mxu1 }
 0x328   : > { %4901 = vst.msk [vmem:[%s7146_s9 + $0x64] sm:$0xf] %vm405_vm1, %v4869_v19  ;;  %v5058_v14 = vsel %vm1420_vm11, %v5002_v21, 0.0  ;;  %v3502_v10 = vadd.f32 %v3465_v20, %v7084_v45  ;;  %v7552_v19 = vld [vmem:[#allocation4_spill] sm:$0xff] }
 0x329   : > { %v5059_v13 = vadd.f32 %v5058_v14, %v5057_v28 }
 0x32b   : > { %v4797_v42 = vpop.f32.mrf.mxu0 }
 0x32c   : > { %v4838_v23 = vadd.f32 %v4797_v42, %v4440_v8 }
 0x32e   : > { %v4401_v25 = vpop.f32.mrf.mxu3  ;;  %v3750_v47 = vpop.f32.mrf.mxu2  ;;  %v4870_v38 = vpack.c.bf16 %v4838_v23, %v4838_v23  ;;  %v4959_v62 = vsel %vm1420_vm11, %v4838_v23, 0.0  ;;  %v5003_v63 = vmul.f32 %v4838_v23, %v4838_v23 }
 0x32f   : > { %v4960_v0 = vadd.f32 %v4959_v62, %v4958_v6  ;;  %v4441_v30 = vadd.f32 %v4401_v25, %v3787_v43  ;;  %v3788_v36 = vadd.f32 %v3750_v47, %v3501_v49  ;;  %v3468_v60 = vpop.f32.mrf.mxu1 }
 0x330   : > { %4902 = vst.msk [vmem:[%s7146_s9 + $0x68] sm:$0xf] %vm405_vm1, %v4870_v38  ;;  %v5060_v53 = vsel %vm1420_vm11, %v5003_v63, 0.0  ;;  %v3503_v45 = vadd.f32 %v3468_v60, %v7551_v2 }
 0x331   : > { %v5061_v9 = vadd.f32 %v5060_v53, %v5059_v13 }
 0x333   : > { %v4799_v24 = vpop.f32.mrf.mxu0 }
 0x334   : > { %v4839_v22 = vadd.f32 %v4799_v24, %v4441_v30 }
 0x336   : > { %v4404_v51 = vpop.f32.mrf.mxu3  ;;  %v3752_v12 = vpop.f32.mrf.mxu2  ;;  %v4871_v52 = vpack.c.bf16 %v4839_v22, %v4839_v22  ;;  %v4961_v37 = vsel %vm1420_vm11, %v4839_v22, 0.0  ;;  %v5004_v34 = vmul.f32 %v4839_v22, %v4839_v22 }
 0x337   : > { %v4962_v58 = vadd.f32 %v4961_v37, %v4960_v0  ;;  %v4442_v32 = vadd.f32 %v4404_v51, %v3788_v36  ;;  %v3789_v41 = vadd.f32 %v3752_v12, %v3502_v10  ;;  %v3470_v48 = vpop.f32.mrf.mxu1 }
 0x338   : > { %4903 = vst.msk [vmem:[%s7146_s9 + $0x6c] sm:$0xf] %vm405_vm1, %v4871_v52  ;;  %v5062_v26 = vsel %vm1420_vm11, %v5004_v34, 0.0  ;;  %v3504_v44 = vadd.f32 %v3470_v48, %v7552_v19 }
 0x339   : > { %v5063_v40 = vadd.f32 %v5062_v26, %v5061_v9 }
 0x33b   : > { %v4802_v1 = vpop.f32.mrf.mxu0 }
 0x33c   : > { %v4840_v17 = vadd.f32 %v4802_v1, %v4442_v32 }
 0x33e   : > { %v4406_v35 = vpop.f32.mrf.mxu3  ;;  %v4872_v31 = vpack.c.bf16 %v4840_v17, %v4840_v17  ;;  %v4963_v55 = vsel %vm1420_vm11, %v4840_v17, 0.0  ;;  %v5005_v5 = vmul.f32 %v4840_v17, %v4840_v17  ;;  %v3755_v59 = vpop.f32.mrf.mxu2 }
 0x33f   : > { %v4964_v39 = vadd.f32 %v4963_v55, %v4962_v58  ;;  %v4443_v29 = vadd.f32 %v4406_v35, %v3789_v41  ;;  %v3790_v27 = vadd.f32 %v3755_v59, %v3503_v45 }
 0x340   : > { %4904 = vst.msk [vmem:[%s7146_s9 + $0x70] sm:$0xf] %vm405_vm1, %v4872_v31  ;;  %v5064_v33 = vsel %vm1420_vm11, %v5005_v5, 0.0 }
 0x341   : > { %v5065_v3 = vadd.f32 %v5064_v33, %v5063_v40 }
 0x343   : > { %v4804_v46 = vpop.f32.mrf.mxu0 }
 0x344   : > { %v4841_v61 = vadd.f32 %v4804_v46, %v4443_v29 }
 0x346   : > { %v4409_v50 = vpop.f32.mrf.mxu3  ;;  %v4873_v7 = vpack.c.bf16 %v4841_v61, %v4841_v61  ;;  %v4965_v16 = vsel %vm1420_vm11, %v4841_v61, 0.0  ;;  %v5006_v28 = vmul.f32 %v4841_v61, %v4841_v61  ;;  %v3757_v18 = vpop.f32.mrf.mxu2 }
 0x347   : > { %v4966_v57 = vadd.f32 %v4965_v16, %v4964_v39  ;;  %v4444_v56 = vadd.f32 %v4409_v50, %v3790_v27  ;;  %v3791_v14 = vadd.f32 %v3757_v18, %v3504_v44 }
 0x348   : > { %4905 = vst.msk [vmem:[%s7146_s9 + $0x74] sm:$0xf] %vm405_vm1, %v4873_v7  ;;  %v5066_v11 = vsel %vm1420_vm11, %v5006_v28, 0.0 }
 0x349   : > { %v5067_v54 = vadd.f32 %v5066_v11, %v5065_v3 }
 0x34b   : > { %v4807_v21 = vpop.f32.mrf.mxu0 }
 0x34c   : > { %v4842_v6 = vadd.f32 %v4807_v21, %v4444_v56 }
 0x34e   : > { %v4874_v8 = vpack.c.bf16 %v4842_v6, %v4842_v6  ;;  %v4967_v13 = vsel %vm1420_vm11, %v4842_v6, 0.0  ;;  %v5007_v15 = vmul.f32 %v4842_v6, %v4842_v6  ;;  %v4411_v42 = vpop.f32.mrf.mxu3 }
 0x34f   : > { %v4968_v4 = vadd.f32 %v4967_v13, %v4966_v57  ;;  %v4445_v43 = vadd.f32 %v4411_v42, %v3791_v14 }
 0x350   : > { %4906 = vst.msk [vmem:[%s7146_s9 + $0x78] sm:$0xf] %vm405_vm1, %v4874_v8  ;;  %v5068_v23 = vsel %vm1420_vm11, %v5007_v15, 0.0 }
 0x351   : > { %v5069_v25 = vadd.f32 %v5068_v23, %v5067_v54 }
 0x353   : > { %v4809_v47 = vpop.f32.mrf.mxu0 }
 0x354   : > { %v4843_v38 = vadd.f32 %v4809_v47, %v4445_v43 }
 0x356   : > { %v4875_v62 = vpack.c.bf16 %v4843_v38, %v4843_v38  ;;  %v4969_v63 = vsel %vm1420_vm11, %v4843_v38, 0.0  ;;  %v5008_v0 = vmul.f32 %v4843_v38, %v4843_v38 }
 0x357   : > { %v4970_v53 = vadd.f32 %v4969_v63, %v4968_v4 }
 0x358   : > { %4907 = vst.msk [vmem:[%s7146_s9 + $0x7c] sm:$0xf] %vm405_vm1, %v4875_v62  ;;  %v5070_v30 = vsel %vm1420_vm11, %v5008_v0, 0.0  ;;  %vm5080_vm1 = vcmask 25600  }
 0x359   : > { %v4971_v9 = vrot.slane %v4970_v53, 4  ;;  %v5071_v49 = vadd.f32 %v5070_v30, %v5069_v25 }
 0x35b   : > { %v4972_v24 = vadd.f32 %v4971_v9, %v4970_v53  ;;  %v5072_v20 = vrot.slane %v5071_v49, 4 }
 0x35d   : > { %v4973_v22 = vrot.slane %v4972_v24, 2  ;;  %v5073_v36 = vadd.f32 %v5072_v20, %v5071_v49 }
 0x35f   : > { %v4974_v51 = vadd.f32 %v4973_v22, %v4972_v24  ;;  %v5074_v12 = vrot.slane %v5073_v36, 2 }
 0x361   : > { %v4975_v52 = vrot.slane %v4974_v51, 1  ;;  %v5075_v37 = vadd.f32 %v5074_v12, %v5073_v36 }
 0x363   : > { %v5076_v34 = vrot.slane %v5075_v37, 1  ;;  %v4976_v58 = vadd.f32 %v4975_v52, %v4974_v51 }
 0x365   : > { %v5077_v26 = vadd.f32 %v5076_v34, %v5075_v37 }
 0x367   : > { %v5079_v32 = vsel %vm5078_vm0, %v4976_v58, %v5077_v26 }
 0x368   : > { %5081 = vst.msk [vmem:[%s235_s12] sm:$0x3] %vm5080_vm1, %v5079_v32 }
 0x369 PF: > { %s16_s18 = sadd.s32 1, %s5781_s18  }
 0x36a   : > { %p13_p4 = scmp.ge.s32.totalorder %s16_s18, 4  }
 0x36c   :  { %15 = sbr.rel (!%p13_p4) target bundleno = 1 (0x1), region = 88 }

// kernel: resnet_block_forward.3
= control target key start
LH: loop header
LB: loop body
LE: loop exit
PB: predicated region body
PF: predicated region fallthrough
CT: control target
= control target key end

     0   :  { %s5497_s12 = smov 0   ;;  %s7029_s0 = inlined_call_operand.vmem [shape: bf16[2,16,16,4], index: 0, kind: input, shape index: {}]   ;;  %s7030_s1 = inlined_call_operand.vmem [shape: bf16[9,4,4], index: 1, kind: input, shape index: {}]   ;;  %s7031_s2 = inlined_call_operand.vmem [shape: bf16[2,256,4], index: 2, kind: output, shape index: {0}]   ;;  %s7032_s3 = inlined_call_operand.vmem [shape: f32[2,2,4], index: 3, kind: output, shape index: {1}]  }
   0x1 LB: > { %s4946_s13 = sadd.s32 4294967295, %s5474_s12   ;;  %p4950_p0 = scmp.ge.s32.totalorder %s5474_s12, 1  ;;  %s5474_s12 = sphi %s5497_s12, %s14_s12  }
   0x2   : > { %p140_p1 = scmp.lt.s32.totalorder %s5474_s12, 3 }
   0x4   : > { %p141_p2 = pnand %p4950_p0, %p140_p1 }
   0x6   : > { %144 = sbr.rel (%p141_p2) target bundleno = 853 (0x355), region = 28 }
   0xb   : > { %v4956_v0 = vld [vmem:[%s7030_s1 + $0x2] sm:$0x3]  ;;  %vm1247_vm0 = vcmask 1041408   ;;  %p168_p3 = scmp.lt.s32.totalorder %s4946_s13, 1  ;;  %vm183_vm1 = vcmask 27648   ;;  %vm186_vm2 = vcmask 24576  }
   0xc   : > { %v1249_v1 = vsel %vm1247_vm0, %v4956_v0, 0  ;;  %v5476_v2 = vmov 0   ;;  %vm271_vm3 = vsmask.f32 256  ;;  %vm272_vm4 = vsmask.f32 4368 }
   0xd   : > { %197 = vst.msk [vmem:[#allocation2 + $0x30] sm:$0xf] %vm183_vm1, %v5476_v2  ;;  %5400 = vmatpush.bf16.msra.mxu1 %v1249_v1  ;;  %5401 = vmatpush.bf16.msra.mxu2 %v1249_v1  ;;  %s7058_s13 = smov (!%p168_p3, %s4946_s13), 1  ;;  %vm596_vm5 = vsmask.f32 7938  ;;  %vm5537_vm6 = vmand %vm186_vm2, %vm271_vm3  ;;  %vm1198_vm12 = vcmask 31744  }
   0xe   : > { %198 = vst.msk [vmem:[#allocation2 + $0x34] sm:$0xf] %vm183_vm1, %v5476_v2  ;;  %5402 = vmatpush.bf16.msra.mxu3 %v1249_v1  ;;  %1258 = vmatpush.bf16.msra.mxu0 %v1249_v1  ;;  %s5350_s16 = sshll.u32 %s7058_s13, 7  ;;  %vm5544_vm7 = vmor %vm271_vm3, %vm272_vm4  ;;  %vm761_vm9 = vsmask.f32 3328  ;;  %vm1608_vm13 = vcmask 1042432  }
   0xf   : > { %199 = vst.msk [vmem:[#allocation2 + $0x38] sm:$0x1] %vm186_vm2, %v5476_v2  ;;  %s5525_s19 = scalar_lea.vmem %s7029_s0, %s5350_s16  ;;  %vm5552_vm8 = vmand %vm183_vm1, %vm596_vm5  ;;  %vm762_vm10 = vsmask.f32 7440  ;;  %vm1609_vm14 = vcmask 1046532   ;;  %s6668_s11 = scalar_lea.vmem %s7031_s2, %s5350_s16 }
  0x10   : > { %184 = vst.msk [vmem:[#allocation2] sm:$0xf] %vm183_vm1, %v5476_v2  ;;  %v245_v3 = vld [vmem:[%s5525_s19 + $0x18] sm:$0xf]  ;;  %v246_v4 = vld [vmem:[%s5525_s19 + $0x1c] sm:$0xf]  ;;  %vm5593_vm11 = vmor %vm761_vm9, %vm762_vm10 }
  0x11   : > { %185 = vst.msk [vmem:[#allocation2 + $0x4] sm:$0xf] %vm183_vm1, %v5476_v2  ;;  %v326_v5 = vshrl.u32 %v245_v3, 16  ;;  %v329_v6 = vshll.u32 %v245_v3, 16  ;;  %v334_v7 = vshrl.u32 %v246_v4, 16  ;;  %v337_v8 = vshll.u32 %v246_v4, 16  ;;  %vm5996_vm15 = vmor %vm1608_vm13, %vm1609_vm14 }
  0x12   : > { %187 = vst.msk [vmem:[#allocation2 + $0x8] sm:$0x1] %vm186_vm2, %v5476_v2  ;;  %v5618_v46 = vld [vmem:[%s5525_s19 + $0x38] sm:$0xf]  ;;  %v5623_v47 = vld [vmem:[%s5525_s19 + $0x3c] sm:$0xf] }
  0x13   : > { %188 = vst.msk [vmem:[#allocation2 + $0xc] sm:$0xf] %vm183_vm1, %v5476_v2  ;;  %v328_v11 = vrot.slane %v326_v5, 7  ;;  %v336_v12 = vrot.slane %v334_v7, 7  ;;  %v5626_v48 = vld [vmem:[%s5525_s19 + $0x58] sm:$0xf] }
  0x14   : > { %189 = vst.msk [vmem:[#allocation2 + $0x10] sm:$0xf] %vm183_vm1, %v5476_v2  ;;  %v621_v14 = vld [vmem:[#allocation2 + $0x30] sm:$0xf]  ;;  %v394_v49 = vshrl.u32 %v5618_v46, 16  ;;  %v402_v50 = vshrl.u32 %v5623_v47, 16 }
  0x15   : > { %190 = vst.msk [vmem:[#allocation2 + $0x14] sm:$0x1] %vm186_vm2, %v5476_v2  ;;  %v331_v16 = vor.u32 %v329_v6, %v328_v11  ;;  %v332_v17 = vrot.slane %v328_v11, 4  ;;  %v339_v18 = vor.u32 %v337_v8, %v336_v12  ;;  %v341_v19 = vrot.slane %v336_v12, 4  ;;  %v5638_v51 = vld [vmem:[%s5525_s19 + $0x5c] sm:$0xf] }
  0x16   : > { %v625_v15 = vld [vmem:[#allocation2 + $0x38] sm:$0x1]  ;;  %191 = vst.msk [vmem:[#allocation2 + $0x18] sm:$0xf] %vm183_vm1, %v5476_v2  ;;  %v462_v52 = vshrl.u32 %v5626_v48, 16  ;;  %v5647_v59 = vrot.slane %v394_v49, 7 }
  0x17   : > { %192 = vst.msk [vmem:[#allocation2 + $0x1c] sm:$0xf] %vm183_vm1, %v5476_v2  ;;  %v340_v20 = vsel %vm5544_vm7, %v332_v17, %v339_v18  ;;  %v622_v21 = vsel %vm5552_vm8, %v331_v16, %v621_v14  ;;  %v626_v22 = vsel %vm5537_vm6, %v341_v19, %v625_v15  ;;  %v712_v53 = vld [vmem:[#allocation2] sm:$0xf]  ;;  %v470_v60 = vshrl.u32 %v5638_v51, 16  ;;  %s4955_s14 = sshll.u32 %s7058_s13, 1 }
  0x18   : > { %193 = vst.msk [vmem:[#allocation2 + $0x20] sm:$0x1] %vm186_vm2, %v5476_v2  ;;  %v713_v54 = vld [vmem:[#allocation2 + $0x4] sm:$0xf]  ;;  %v765_v55 = vshrl.u32 %v712_v53, 16  ;;  %v768_v56 = vshll.u32 %v712_v53, 16  ;;  %s181_s17 = scalar_lea.vmem %s7032_s3, %s4955_s14 }
  0x19   : > { %194 = vst.msk [vmem:[#allocation2 + $0x24] sm:$0xf] %vm183_vm1, %v5476_v2  ;;  %v774_v57 = vshll.u32 %v713_v54, 16  ;;  %v778_v58 = vshrl.u32 %v713_v54, 16  ;;  %v5651_v61 = vld [vmem:[%s5525_s19 + $0x20] sm:$0xf] }
  0x1a   : > { %623 = vst [vmem:[#allocation2 + $0x30] sm:$0xf] %v622_v21  ;;  %v767_v62 = vrot.slane %v765_v55, 4  ;;  %v770_v63 = vrot.slane %v768_v56, 5  ;;  %v745_v3 = vld [vmem:[#allocation2 + $0x8] sm:$0x1] }
  0x1b   : > { %624 = vst.msk [vmem:[#allocation2 + $0x34] sm:$0xf] %vm183_vm1, %v340_v20  ;;  %v776_v0 = vrot.slane %v774_v57, 5  ;;  %v780_v1 = vrot.slane %v778_v58, 4  ;;  %v5658_v4 = vld [vmem:[%s5525_s19 + $0x24] sm:$0xf] }
  0x1c   : > { %627 = vst [vmem:[#allocation2 + $0x38] sm:$0x1] %v626_v22  ;;  %v5662_v5 = vrot.slane %v462_v52, 7  ;;  %v771_v6 = vor.u32 %v770_v63, %v767_v62  ;;  %v784_v8 = vshll.u32 %v745_v3, 16  ;;  %v397_v11 = vshll.u32 %v5618_v46, 16 }
  0x1d   : > { %195 = vst.msk [vmem:[#allocation2 + $0x28] sm:$0xf] %vm183_vm1, %v5476_v2  ;;  %v781_v7 = vor.u32 %v780_v1, %v776_v0  ;;  %v5667_v12 = vrot.slane %v402_v50, 7  ;;  %v343_v14 = vshrl.u32 %v5651_v61, 16  ;;  %v351_v18 = vshrl.u32 %v5658_v4, 16 }
  0x1e   : > { %196 = vst.msk [vmem:[#allocation2 + $0x2c] sm:$0x1] %vm186_vm2, %v5476_v2  ;;  %v772_v15 = vrot.slane %v771_v6, 4  ;;  %v786_v17 = vrot.slane %v784_v8, 5  ;;  %v400_v19 = vrot.slane %v5647_v59, 4  ;;  %v405_v20 = vshll.u32 %v5623_v47, 16 }
  0x1f   : > { %200 = vst.msk [vmem:[#allocation2 + $0x3c] sm:$0xf] %vm183_vm1, %v5476_v2  ;;  %v782_v16 = vrot.slane %v781_v7, 4  ;;  %v409_v21 = vrot.slane %v5667_v12, 4  ;;  %v465_v22 = vshll.u32 %v5626_v48, 16  ;;  %v346_v46 = vshll.u32 %v5651_v61, 16 }
  0x20   : > { %201 = vst.msk [vmem:[#allocation2 + $0x40] sm:$0xf] %vm183_vm1, %v5476_v2  ;;  %v5167_v55 = vld [vmem:[%s7030_s1 + $0x8] sm:$0x3]  ;;  %v264_v6 = vld [vmem:[%s5525_s19 + $0x64] sm:$0xf] }
  0x21   : > { %v720_v23 = vld [vmem:[#allocation2 + $0x30] sm:$0xf]  ;;  %202 = vst.msk [vmem:[#allocation2 + $0x44] sm:$0x1] %vm186_vm2, %v5476_v2  ;;  %v467_v47 = vor.u32 %v465_v22, %v5662_v5  ;;  %v239_v22 = vld [vmem:[%s5525_s19] sm:$0xf] }
  0x22   : > { %v721_v24 = vld [vmem:[#allocation2 + $0x34] sm:$0xf]  ;;  %v861_v25 = vshrl.u32 %v720_v23, 16  ;;  %v864_v26 = vshll.u32 %v720_v23, 16  ;;  %203 = vst.msk [vmem:[#allocation2 + $0x48] sm:$0xf] %vm183_vm1, %v5476_v2 }
  0x23   : > { %v749_v27 = vld [vmem:[#allocation2 + $0x38] sm:$0x1]  ;;  %v870_v28 = vshll.u32 %v721_v24, 16  ;;  %v874_v29 = vshrl.u32 %v721_v24, 16  ;;  %204 = vst.msk [vmem:[#allocation2 + $0x4c] sm:$0xf] %vm183_vm1, %v5476_v2 }
  0x24   : > { %v863_v30 = vrot.slane %v861_v25, 4  ;;  %v866_v31 = vrot.slane %v864_v26, 5  ;;  %v880_v32 = vshll.u32 %v749_v27, 16  ;;  %205 = vst.msk [vmem:[#allocation2 + $0x50] sm:$0x1] %vm186_vm2, %v5476_v2  ;;  %v468_v23 = vrot.slane %v5662_v5, 4 }
  0x25   : > { %v872_v33 = vrot.slane %v870_v28, 5  ;;  %v876_v34 = vrot.slane %v874_v29, 4  ;;  %206 = vst.msk [vmem:[#allocation2 + $0x54] sm:$0xf] %vm183_vm1, %v5476_v2  ;;  %v5682_v24 = vrot.slane %v470_v60, 7  ;;  %v777_v25 = vsel %vm5593_vm11, %v772_v15, %v776_v0 }
  0x26   : > { %v867_v35 = vor.u32 %v866_v31, %v863_v30  ;;  %207 = vst.msk [vmem:[#allocation2 + $0x58] sm:$0xf] %vm183_vm1, %v5476_v2  ;;  %v882_v38 = vrot.slane %v880_v32, 5  ;;  %v787_v26 = vsel %vm5593_vm11, %v782_v16, %v786_v17  ;;  %v5689_v27 = vld [vmem:[%s5525_s19 + $0x40] sm:$0xf]  ;;  %v473_v29 = vshll.u32 %v5638_v51, 16 }
  0x27   : > { %v877_v37 = vor.u32 %v876_v34, %v872_v33  ;;  %208 = vst.msk [vmem:[#allocation2 + $0x5c] sm:$0x1] %vm186_vm2, %v5476_v2  ;;  %v1150_v30 = vunpack.c.l.b16 %v777_v25  ;;  %v1151_v31 = vunpack.c.l.b16 %v787_v26  ;;  %v354_v32 = vshll.u32 %v5658_v4, 16  ;;  %v744_v51 = vld [vmem:[%s7030_s1] sm:$0x3] }
  0x28   : > { %v868_v39 = vrot.slane %v867_v35, 4  ;;  %209 = vst.msk [vmem:[#allocation2 + $0x60] sm:$0xf] %vm183_vm1, %v5476_v2  ;;  %v345_v34 = vrot.slane %v343_v14, 7  ;;  %v5698_v35 = vrot.slane %v351_v18, 7  ;;  %v475_v48 = vor.u32 %v473_v29, %v5682_v24 }
  0x29   : > { %v878_v40 = vrot.slane %v877_v37, 4  ;;  %210 = vst.msk [vmem:[#allocation2 + $0x64] sm:$0xf] %vm183_vm1, %v5476_v2  ;;  %v5701_v37 = vld [vmem:[%s5525_s19 + $0x44] sm:$0xf]  ;;  %v1469_v54 = vsel %vm1247_vm0, %v744_v51, 0 }
  0x2a   : > { %v873_v41 = vsel %vm5593_vm11, %v868_v39, %v872_v33  ;;  %211 = vst.msk [vmem:[#allocation2 + $0x68] sm:$0x1] %vm186_vm2, %v5476_v2  ;;  %v399_v33 = vor.u32 %v397_v11, %v5647_v59  ;;  %v477_v39 = vrot.slane %v5682_v24, 4  ;;  %v419_v52 = vshrl.u32 %v5701_v37, 16  ;;  %1478 = vmatpush.bf16.msrb.mxu1 %v1469_v54  ;;  %v628_v60 = vld [vmem:[#allocation2 + $0x3c] sm:$0xf] }
  0x2b   : > { %v883_v42 = vsel %vm5593_vm11, %v878_v40, %v882_v38  ;;  %v1158_v43 = vunpack.c.l.b16 %v873_v41  ;;  %212 = vst.msk [vmem:[#allocation2 + $0x6c] sm:$0xf] %vm183_vm1, %v5476_v2  ;;  %v5069_v40 = vld [vmem:[%s7030_s1 + $0x4] sm:$0x3]  ;;  %v1182_v41 = vpack.c.b16 %v1151_v31, %v1150_v30  ;;  %v349_v56 = vrot.slane %v345_v34, 4 }
  0x2c   : > { %v1159_v44 = vunpack.c.l.b16 %v883_v42  ;;  %213 = vst.msk [vmem:[#allocation2 + $0x70] sm:$0xf] %vm183_vm1, %v5476_v2  ;;  %v411_v42 = vshrl.u32 %v5689_v27, 16  ;;  %v356_v57 = vor.u32 %v354_v32, %v5698_v35  ;;  %v2762_v59 = vsel %vm1247_vm0, %v5167_v55, 0  ;;  %v263_v4 = vld [vmem:[%s5525_s19 + $0x60] sm:$0xf] }
  0x2d   : > { %214 = vst.msk [vmem:[#allocation2 + $0x74] sm:$0x1] %vm186_vm2, %v5476_v2  ;;  %4957 = vmatmul.msk.bf16.vlgmr.msra.gmra.mxu0 %vm1198_vm12, %v1182_v41  ;;  %v414_v62 = vshll.u32 %v5689_v27, 16  ;;  %v422_v63 = vshll.u32 %v5701_v37, 16  ;;  %v348_v3 = vor.u32 %v346_v46, %v345_v34  ;;  %v421_v7 = vrot.slane %v419_v52, 7 }
  0x2e   : > { %v1186_v45 = vpack.c.b16 %v1159_v44, %v1158_v43  ;;  %215 = vst.msk [vmem:[#allocation2 + $0x78] sm:$0xf] %vm183_vm1, %v5476_v2  ;;  %v407_v43 = vor.u32 %v405_v20, %v5667_v12  ;;  %v1822_v44 = vsel %vm1247_vm0, %v5069_v40, 0  ;;  %v413_v61 = vrot.slane %v411_v42, 7  ;;  %2771 = vmatpush.bf16.msrb.mxu0 %v2762_v59  ;;  %v632_v16 = vld [vmem:[#allocation2 + $0x44] sm:$0x1] }
  0x2f   : > { %216 = vst.msk [vmem:[#allocation2 + $0x7c] sm:$0xf] %vm183_vm1, %v5476_v2  ;;  %v649_v28 = vld [vmem:[#allocation2 + $0x60] sm:$0xf]  ;;  %1831 = vmatpush.bf16.msrb.mxu2 %v1822_v44  ;;  %v479_v8 = vshrl.u32 %v263_v4, 16  ;;  %v482_v11 = vshll.u32 %v263_v4, 16  ;;  %v357_v18 = vsel %vm5544_vm7, %v349_v56, %v356_v57  ;;  %v629_v25 = vsel %vm5552_vm8, %v348_v3, %v628_v60 }
  0x30   : > { %4961 = vmatmul.msk.bf16.vlgmr.msra.gmra.mxu1 %vm1198_vm12, %v1186_v45  ;;  %217 = vst.msk [vmem:[#allocation2 + $0x80] sm:$0x1] %vm186_vm2, %v5476_v2  ;;  %v5086_v45 = vld [vmem:[%s7030_s1 + $0x6] sm:$0x3]  ;;  %v650_v53 = vsel %vm5552_vm8, %v399_v33, %v649_v28  ;;  %v408_v0 = vsel %vm5544_vm7, %v400_v19, %v407_v43  ;;  %v487_v12 = vshrl.u32 %v264_v6, 16  ;;  %v358_v15 = vrot.slane %v5698_v35, 4 }
  0x31   : > { %218 = vst.msk [vmem:[#allocation2 + $0x84] sm:$0xf] %vm183_vm1, %v5476_v2  ;;  %v653_v38 = vld [vmem:[#allocation2 + $0x68] sm:$0x1]  ;;  %v2108_v50 = vsel %vm1247_vm0, %v5086_v45, 0  ;;  %v490_v17 = vshll.u32 %v264_v6, 16  ;;  %v416_v26 = vor.u32 %v414_v62, %v413_v61 }
  0x32   : > { %219 = vst.msk [vmem:[#allocation2 + $0x88] sm:$0xf] %vm183_vm1, %v5476_v2  ;;  %2117 = vmatpush.bf16.msrb.mxu3 %v2108_v50  ;;  %v654_v1 = vsel %vm5537_vm6, %v409_v21, %v653_v38  ;;  %v656_v19 = vld [vmem:[#allocation2 + $0x6c] sm:$0xf]  ;;  %v481_v20 = vrot.slane %v479_v8, 7  ;;  %v489_v21 = vrot.slane %v487_v12, 7  ;;  %v633_v37 = vsel %vm5537_vm6, %v358_v15, %v632_v16 }
  0x33   : > { %220 = vst.msk [vmem:[#allocation2 + $0x8c] sm:$0x1] %vm186_vm2, %v5476_v2  ;;  %v240_v27 = vld [vmem:[%s5525_s19 + $0x4] sm:$0xf]  ;;  %v275_v5 = vshrl.u32 %v239_v22, 16  ;;  %v417_v28 = vrot.slane %v413_v61, 4  ;;  %v657_v41 = vsel %vm5552_vm8, %v416_v26, %v656_v19 }
  0x34   : > { %221 = vst.msk [vmem:[#allocation2 + $0x90] sm:$0xf] %vm183_vm1, %v5476_v2  ;;  %v426_v29 = vrot.slane %v421_v7, 4  ;;  %v660_v30 = vld [vmem:[#allocation2 + $0x74] sm:$0x1]  ;;  %v5768_v31 = vor.u32 %v482_v11, %v481_v20  ;;  %v485_v32 = vrot.slane %v481_v20, 4  ;;  %v492_v33 = vor.u32 %v490_v17, %v489_v21 }
  0x35   : > { %222 = vst.msk [vmem:[#allocation2 + $0x94] sm:$0xf] %vm183_vm1, %v5476_v2  ;;  %v5771_v34 = vrot.slane %v275_v5, 7  ;;  %v283_v35 = vshrl.u32 %v240_v27, 16  ;;  %v494_v38 = vrot.slane %v489_v21, 4  ;;  %v278_v40 = vshll.u32 %v239_v22, 16 }
  0x36   : > { %223 = vst.msk [vmem:[#allocation2 + $0x98] sm:$0x1] %vm186_vm2, %v5476_v2  ;;  %v286_v44 = vshll.u32 %v240_v27, 16  ;;  %v493_v52 = vsel %vm5544_vm7, %v485_v32, %v492_v33  ;;  %v598_v59 = vld [vmem:[#allocation2 + $0xc] sm:$0xf] }
  0x37   : > { %224 = vst.msk [vmem:[#allocation2 + $0x9c] sm:$0xf] %vm183_vm1, %v5476_v2  ;;  %v5779_v43 = vrot.slane %v283_v35, 7 }
  0x38   : > { %225 = vst.msk [vmem:[#allocation2 + $0xa0] sm:$0xf] %vm183_vm1, %v5476_v2 }
  0x39   : > { %226 = vst.msk [vmem:[#allocation2 + $0xa4] sm:$0x1] %vm186_vm2, %v5476_v2 }
  0x3a   : > { %227 = vst.msk [vmem:[#allocation2 + $0xa8] sm:$0xf] %vm183_vm1, %v5476_v2 }
  0x3b   : > { %228 = vst.msk [vmem:[#allocation2 + $0xac] sm:$0xf] %vm183_vm1, %v5476_v2  ;;  %v677_v49 = vld [vmem:[#allocation2 + $0x90] sm:$0xf] }
  0x3c   : > { %229 = vst.msk [vmem:[#allocation2 + $0xb0] sm:$0x1] %vm186_vm2, %v5476_v2  ;;  %v678_v14 = vsel %vm5552_vm8, %v467_v47, %v677_v49  ;;  %v661_v47 = vsel %vm5537_vm6, %v426_v29, %v660_v30 }
  0x3d   : > { %230 = vst.msk [vmem:[#allocation2 + $0xb4] sm:$0xf] %vm183_vm1, %v5476_v2  ;;  %v681_v58 = vld [vmem:[#allocation2 + $0x98] sm:$0x1] }
  0x3e   : > { %231 = vst.msk [vmem:[#allocation2 + $0xb8] sm:$0xf] %vm183_vm1, %v5476_v2  ;;  %v682_v24 = vsel %vm5537_vm6, %v477_v39, %v681_v58  ;;  %v5775_v39 = vld [vmem:[#allocation2 + $0x9c] sm:$0xf]  ;;  %v280_v58 = vor.u32 %v278_v40, %v5771_v34  ;;  %v5807_v40 = vld [vmem:[%s5525_s19 + $0x28] sm:$0xf] }
  0x3f   : > { %232 = vst.msk [vmem:[#allocation2 + $0xbc] sm:$0x1] %vm186_vm2, %v5476_v2 }
  0x40   : > { %233 = vst.msk [vmem:[#allocation2 + $0xc0] sm:$0xf] %vm183_vm1, %v5476_v2  ;;  %v688_v42 = vld [vmem:[#allocation2 + $0xa4] sm:$0x1] }
  0x41   : > { %234 = vst.msk [vmem:[#allocation2 + $0xc4] sm:$0xf] %vm183_vm1, %v5476_v2  ;;  %v689_v57 = vsel %vm5537_vm6, %v494_v38, %v688_v42 }
  0x42   : > { %235 = vst.msk [vmem:[#allocation2 + $0xc8] sm:$0x1] %vm186_vm2, %v5476_v2 }
  0x43   : > { %236 = vst.msk [vmem:[#allocation2 + $0xcc] sm:$0xf] %vm183_vm1, %v5476_v2 }
  0x44   : > { %237 = vst.msk [vmem:[#allocation2 + $0xd0] sm:$0xf] %vm183_vm1, %v5476_v2 }
  0x45   : > { %238 = vst.msk [vmem:[#allocation2 + $0xd4] sm:$0x1] %vm186_vm2, %v5476_v2  ;;  %v476_v2 = vsel %vm5544_vm7, %v468_v23, %v475_v48  ;;  %v424_v23 = vor.u32 %v422_v63, %v421_v7  ;;  %v281_v48 = vrot.slane %v5771_v34, 4 }
  0x46   : > { %651 = vst [vmem:[#allocation2 + $0x60] sm:$0xf] %v650_v53  ;;  %v685_v53 = vsel %vm5552_vm8, %v5768_v31, %v5775_v39 }
  0x47   : > { %652 = vst.msk [vmem:[#allocation2 + $0x64] sm:$0xf] %vm183_vm1, %v408_v0  ;;  %v425_v46 = vsel %vm5544_vm7, %v417_v28, %v424_v23  ;;  %v5797_v0 = vor.u32 %v286_v44, %v5779_v43 }
  0x48   : > { %655 = vst [vmem:[#allocation2 + $0x68] sm:$0x1] %v654_v1 }
  0x49   : > { %679 = vst [vmem:[#allocation2 + $0x90] sm:$0xf] %v678_v14 }
  0x4a   : > { %680 = vst.msk [vmem:[#allocation2 + $0x94] sm:$0xf] %vm183_vm1, %v476_v2 }
  0x4b   : > { %683 = vst [vmem:[#allocation2 + $0x98] sm:$0x1] %v682_v24 }
  0x4c   : > { %630 = vst [vmem:[#allocation2 + $0x3c] sm:$0xf] %v629_v25  ;;  %v599_v25 = vsel %vm5552_vm8, %v280_v58, %v598_v59 }
  0x4d   : > { %v728_v45 = vld [vmem:[#allocation2 + $0x60] sm:$0xf]  ;;  %631 = vst.msk [vmem:[#allocation2 + $0x40] sm:$0xf] %vm183_vm1, %v357_v18 }
  0x4e   : > { %v729_v49 = vld [vmem:[#allocation2 + $0x64] sm:$0xf]  ;;  %v957_v50 = vshrl.u32 %v728_v45, 16  ;;  %v960_v51 = vshll.u32 %v728_v45, 16  ;;  %634 = vst [vmem:[#allocation2 + $0x44] sm:$0x1] %v633_v37 }
  0x4f   : > { %v753_v54 = vld [vmem:[#allocation2 + $0x68] sm:$0x1]  ;;  %v966_v55 = vshll.u32 %v729_v49, 16  ;;  %v970_v56 = vshrl.u32 %v729_v49, 16  ;;  %658 = vst [vmem:[#allocation2 + $0x6c] sm:$0xf] %v657_v41 }
  0x50   : > { %v959_v60 = vrot.slane %v957_v50, 4  ;;  %v962_v61 = vrot.slane %v960_v51, 5  ;;  %v976_v62 = vshll.u32 %v753_v54, 16  ;;  %v736_v63 = vld [vmem:[#allocation2 + $0x90] sm:$0xf] }
  0x51   : > { %v968_v1 = vrot.slane %v966_v55, 5  ;;  %v972_v3 = vrot.slane %v970_v56, 4  ;;  %v737_v4 = vld [vmem:[#allocation2 + $0x94] sm:$0xf]  ;;  %v1053_v6 = vshrl.u32 %v736_v63, 16  ;;  %v1056_v7 = vshll.u32 %v736_v63, 16 }
  0x52   : > { %v963_v8 = vor.u32 %v962_v61, %v959_v60  ;;  %v978_v11 = vrot.slane %v976_v62, 5  ;;  %v757_v12 = vld [vmem:[#allocation2 + $0x98] sm:$0x1]  ;;  %v1062_v14 = vshll.u32 %v737_v4, 16  ;;  %v1066_v15 = vshrl.u32 %v737_v4, 16 }
  0x53   : > { %v973_v16 = vor.u32 %v972_v3, %v968_v1  ;;  %v1055_v17 = vrot.slane %v1053_v6, 4  ;;  %v1058_v2 = vrot.slane %v1056_v7, 5  ;;  %v1072_v18 = vshll.u32 %v757_v12, 16  ;;  %v722_v19 = vld [vmem:[#allocation2 + $0x3c] sm:$0xf] }
  0x54   : > { %v964_v20 = vrot.slane %v963_v8, 4  ;;  %v1064_v21 = vrot.slane %v1062_v14, 5  ;;  %v1068_v22 = vrot.slane %v1066_v15, 4  ;;  %v723_v24 = vld [vmem:[#allocation2 + $0x40] sm:$0xf]  ;;  %v885_v23 = vshrl.u32 %v722_v19, 16 }
  0x55   : > { %v974_v26 = vrot.slane %v973_v16, 4  ;;  %v1059_v27 = vor.u32 %v1058_v2, %v1055_v17  ;;  %v1074_v5 = vrot.slane %v1072_v18, 5  ;;  %v750_v28 = vld [vmem:[#allocation2 + $0x44] sm:$0x1]  ;;  %v888_v31 = vshll.u32 %v722_v19, 16 }
  0x56   : > { %v969_v29 = vsel %vm5593_vm11, %v964_v20, %v968_v1  ;;  %v1069_v30 = vor.u32 %v1068_v22, %v1064_v21  ;;  %v894_v32 = vshll.u32 %v723_v24, 16  ;;  %659 = vst.msk [vmem:[#allocation2 + $0x70] sm:$0xf] %vm183_vm1, %v425_v46  ;;  %v730_v33 = vld [vmem:[#allocation2 + $0x6c] sm:$0xf]  ;;  %v887_v39 = vrot.slane %v885_v23, 4 }
  0x57   : > { %v979_v35 = vsel %vm5593_vm11, %v974_v26, %v978_v11  ;;  %v1166_v37 = vunpack.c.l.b16 %v969_v29  ;;  %v1060_v38 = vrot.slane %v1059_v27, 4  ;;  %662 = vst [vmem:[#allocation2 + $0x74] sm:$0x1] %v661_v47  ;;  %v890_v44 = vrot.slane %v888_v31, 5  ;;  %v5828_v16 = vld [vmem:[%s5525_s19 + $0x2c] sm:$0xf] }
  0x58   : > { %v1167_v41 = vunpack.c.l.b16 %v979_v35  ;;  %v1070_v42 = vrot.slane %v1069_v30, 4  ;;  %v896_v45 = vrot.slane %v894_v32, 5  ;;  %686 = vst [vmem:[#allocation2 + $0x9c] sm:$0xf] %v685_v53  ;;  %v898_v50 = vshrl.u32 %v723_v24, 16 }
  0x59   : > { %v1065_v49 = vsel %vm5593_vm11, %v1060_v38, %v1064_v21  ;;  %v904_v46 = vshll.u32 %v750_v28, 16  ;;  %v981_v51 = vshrl.u32 %v730_v33, 16  ;;  %687 = vst.msk [vmem:[#allocation2 + $0xa0] sm:$0xf] %vm183_vm1, %v493_v52  ;;  %v891_v56 = vor.u32 %v890_v44, %v887_v39  ;;  %v604_v29 = vld [vmem:[#allocation2 + $0x14] sm:$0x1] }
  0x5a   : > { %v1190_v54 = vpack.c.b16 %v1167_v41, %v1166_v37  ;;  %v1075_v55 = vsel %vm5593_vm11, %v1070_v42, %v1074_v5  ;;  %v1174_v47 = vunpack.c.l.b16 %v1065_v49  ;;  %690 = vst [vmem:[#allocation2 + $0xa4] sm:$0x1] %v689_v57  ;;  %v900_v59 = vrot.slane %v898_v50, 4 }
  0x5b   : > { %v1175_v58 = vunpack.c.l.b16 %v1075_v55  ;;  %600 = vst [vmem:[#allocation2 + $0xc] sm:$0xf] %v599_v25  ;;  %v360_v53 = vshrl.u32 %v5807_v40, 16  ;;  %v363_v60 = vshll.u32 %v5807_v40, 16  ;;  %v892_v61 = vrot.slane %v891_v56, 4 }
  0x5c   : > { %4965 = vmatmul.msk.bf16.vlgmr.msra.gmra.mxu2 %vm1198_vm12, %v1190_v54  ;;  %v983_v62 = vrot.slane %v981_v51, 4  ;;  %v984_v63 = vshll.u32 %v730_v33, 16  ;;  %v289_v52 = vsel %vm5544_vm7, %v281_v48, %v5797_v0  ;;  %v901_v57 = vor.u32 %v900_v59, %v896_v45 }
  0x5d   : > { %v1194_v1 = vpack.c.b16 %v1175_v58, %v1174_v47  ;;  %v906_v3 = vrot.slane %v904_v46, 5  ;;  %v731_v4 = vld [vmem:[#allocation2 + $0x70] sm:$0xf]  ;;  %v290_v6 = vrot.slane %v5779_v43, 4  ;;  %601 = vst.msk [vmem:[#allocation2 + $0x10] sm:$0xf] %vm183_vm1, %v289_v52  ;;  %v897_v7 = vsel %vm5593_vm11, %v892_v61, %v896_v45 }
  0x5e   : > { %v754_v8 = vld [vmem:[#allocation2 + $0x74] sm:$0x1]  ;;  %v986_v11 = vrot.slane %v984_v63, 5  ;;  %v990_v12 = vshll.u32 %v731_v4, 16  ;;  %v994_v14 = vshrl.u32 %v731_v4, 16  ;;  %v902_v34 = vrot.slane %v901_v57, 4 }
  0x5f   : > { %4969 = vmatmul.msk.bf16.vlgmr.msra.gmra.mxu3 %vm1198_vm12, %v1194_v1  ;;  %v1160_v48 = vunpack.c.l.b16 %v897_v7  ;;  %v1000_v0 = vshll.u32 %v754_v8, 16  ;;  %v738_v15 = vld [vmem:[#allocation2 + $0x9c] sm:$0xf]  ;;  %v5830_v17 = vrot.slane %v360_v53, 7  ;;  %v368_v42 = vshrl.u32 %v5828_v16, 16 }
  0x60   : > { %v987_v43 = vor.u32 %v986_v11, %v983_v62  ;;  %v992_v2 = vrot.slane %v990_v12, 5  ;;  %v996_v18 = vrot.slane %v994_v14, 4  ;;  %v739_v19 = vld [vmem:[#allocation2 + $0xa0] sm:$0xf]  ;;  %v1077_v20 = vshrl.u32 %v738_v15, 16 }
  0x61   : > { %v907_v21 = vsel %vm5593_vm11, %v902_v34, %v906_v3  ;;  %v1002_v22 = vrot.slane %v1000_v0, 5  ;;  %v758_v24 = vld [vmem:[#allocation2 + $0xa4] sm:$0x1]  ;;  %v1080_v25 = vshll.u32 %v738_v15, 16  ;;  %v1086_v26 = vshll.u32 %v739_v19, 16 }
  0x62   : > { %v1161_v27 = vunpack.c.l.b16 %v907_v21  ;;  %v988_v5 = vrot.slane %v987_v43, 4  ;;  %v997_v28 = vor.u32 %v996_v18, %v992_v2  ;;  %v1079_v23 = vrot.slane %v1077_v20, 4  ;;  %v714_v35 = vld [vmem:[#allocation2 + $0xc] sm:$0xf]  ;;  %v635_v52 = vld [vmem:[#allocation2 + $0x48] sm:$0xf] }
  0x63   : > { %v1082_v30 = vrot.slane %v1080_v25, 5  ;;  %v1088_v31 = vrot.slane %v1086_v26, 5  ;;  %v1090_v32 = vshrl.u32 %v739_v19, 16  ;;  %v1096_v33 = vshll.u32 %v758_v24, 16  ;;  %v258_v14 = vld [vmem:[%s5525_s19 + $0x4c] sm:$0xf] }
  0x64   : > { %v1187_v37 = vpack.c.b16 %v1161_v27, %v1160_v48  ;;  %v993_v38 = vsel %vm5593_vm11, %v988_v5, %v992_v2  ;;  %v998_v39 = vrot.slane %v997_v28, 4  ;;  %v5836_v41 = vld [vmem:[#allocation2 + $0x10] sm:$0xf]  ;;  %v605_v51 = vsel %vm5537_vm6, %v290_v6, %v604_v29  ;;  %v257_v6 = vld [vmem:[%s5525_s19 + $0x48] sm:$0xf] }
  0x65   : > { %v1168_v44 = vunpack.c.l.b16 %v993_v38  ;;  %v1083_v45 = vor.u32 %v1082_v30, %v1079_v23  ;;  %v1092_v49 = vrot.slane %v1090_v32, 4  ;;  %v1098_v50 = vrot.slane %v1096_v33, 5  ;;  %606 = vst [vmem:[#allocation2 + $0x14] sm:$0x1] %v605_v51  ;;  %v639_v2 = vld [vmem:[#allocation2 + $0x50] sm:$0x1] }
  0x66   : > { %4962 = vmatmul.msk.bf16.gmra.mxu1 %vm1198_vm12, %v1187_v37  ;;  %v1003_v46 = vsel %vm5593_vm11, %v998_v39, %v1002_v22  ;;  %v789_v54 = vshrl.u32 %v714_v35, 16  ;;  %v792_v55 = vshll.u32 %v714_v35, 16  ;;  %v798_v59 = vshll.u32 %v5836_v41, 16  ;;  %v265_v22 = vld [vmem:[%s5525_s19 + $0x68] sm:$0xf] }
  0x67   : > { %v1169_v47 = vunpack.c.l.b16 %v1003_v46  ;;  %v1084_v56 = vrot.slane %v1083_v45, 4  ;;  %v1093_v58 = vor.u32 %v1092_v49, %v1088_v31  ;;  %v802_v62 = vshrl.u32 %v5836_v41, 16  ;;  %v266_v5 = vld [vmem:[%s5525_s19 + $0x6c] sm:$0xf]  ;;  %v667_v46 = vld [vmem:[#allocation2 + $0x80] sm:$0x1] }
  0x68   : > { %v791_v53 = vrot.slane %v789_v54, 4  ;;  %v794_v61 = vrot.slane %v792_v55, 5  ;;  %v365_v63 = vor.u32 %v363_v60, %v5830_v17  ;;  %v800_v4 = vrot.slane %v798_v59, 5  ;;  %v691_v54 = vld [vmem:[#allocation2 + $0xa8] sm:$0xf] }
  0x69   : > { %v1191_v1 = vpack.c.b16 %v1169_v47, %v1168_v44  ;;  %v1089_v57 = vsel %vm5593_vm11, %v1084_v56, %v1088_v31  ;;  %v1094_v3 = vrot.slane %v1093_v58, 4  ;;  %v804_v11 = vrot.slane %v802_v62, 4  ;;  %v663_v31 = vld [vmem:[#allocation2 + $0x78] sm:$0xf] }
  0x6a   : > { %v1176_v7 = vunpack.c.l.b16 %v1089_v57  ;;  %v795_v8 = vor.u32 %v794_v61, %v791_v53  ;;  %v366_v12 = vrot.slane %v5830_v17, 4  ;;  %v370_v40 = vrot.slane %v368_v42, 7 }
  0x6b   : > { %v1099_v34 = vsel %vm5593_vm11, %v1094_v3, %v1098_v50  ;;  %v371_v60 = vshll.u32 %v5828_v16, 16  ;;  %v636_v48 = vsel %vm5552_vm8, %v365_v63, %v635_v52  ;;  %v805_v43 = vor.u32 %v804_v11, %v800_v4  ;;  %v695_v63 = vld [vmem:[#allocation2 + $0xb0] sm:$0x1]  ;;  %v241_v52 = vld [vmem:[%s5525_s19 + $0x8] sm:$0xf] }
  0x6c   : > { %4966 = vmatmul.msk.bf16.gmra.mxu2 %vm1198_vm12, %v1191_v1  ;;  %v1177_v0 = vunpack.c.l.b16 %v1099_v34  ;;  %v796_v15 = vrot.slane %v795_v8, 4  ;;  %637 = vst [vmem:[#allocation2 + $0x48] sm:$0xf] %v636_v48  ;;  %v428_v17 = vshrl.u32 %v257_v6, 16  ;;  %v375_v19 = vrot.slane %v370_v40, 4 }
  0x6d   : > { %v373_v18 = vor.u32 %v371_v60, %v370_v40  ;;  %v431_v20 = vshll.u32 %v257_v6, 16  ;;  %v436_v21 = vshrl.u32 %v258_v14, 16  ;;  %v5861_v25 = vld [vmem:[#allocation2 + $0x14] sm:$0x1]  ;;  %v806_v26 = vrot.slane %v805_v43, 4 }
  0x6e   : > { %v1195_v24 = vpack.c.b16 %v1177_v0, %v1176_v7  ;;  %v801_v16 = vsel %vm5593_vm11, %v796_v15, %v800_v4  ;;  %v430_v27 = vrot.slane %v428_v17, 7  ;;  %v808_v28 = vshll.u32 %v5861_v25, 16  ;;  %v242_v6 = vld [vmem:[%s5525_s19 + $0xc] sm:$0xf]  ;;  %v5889_v0 = vld [vmem:[%s5525_s19 + $0x30] sm:$0xf] }
  0x6f   : > { %v1152_v23 = vunpack.c.l.b16 %v801_v16  ;;  %v374_v29 = vsel %vm5544_vm7, %v366_v12, %v373_v18  ;;  %v640_v30 = vsel %vm5537_vm6, %v375_v19, %v639_v2  ;;  %v438_v35 = vrot.slane %v436_v21, 7 }
  0x70   : > { %4970 = vmatmul.msk.bf16.gmra.mxu3 %vm1198_vm12, %v1195_v24  ;;  %638 = vst.msk [vmem:[#allocation2 + $0x4c] sm:$0xf] %vm183_vm1, %v374_v29  ;;  %v433_v32 = vor.u32 %v431_v20, %v430_v27  ;;  %v434_v33 = vrot.slane %v430_v27, 4  ;;  %v439_v37 = vshll.u32 %v258_v14, 16  ;;  %v810_v38 = vrot.slane %v808_v28, 5 }
  0x71   : > { %641 = vst [vmem:[#allocation2 + $0x50] sm:$0x1] %v640_v30  ;;  %v496_v39 = vshrl.u32 %v265_v22, 16  ;;  %v499_v42 = vshll.u32 %v265_v22, 16  ;;  %v504_v44 = vshrl.u32 %v266_v5, 16  ;;  %v443_v49 = vrot.slane %v438_v35, 4 }
  0x72   : > { %v441_v45 = vor.u32 %v439_v37, %v438_v35  ;;  %v664_v50 = vsel %vm5552_vm8, %v433_v32, %v663_v31  ;;  %v507_v51 = vshll.u32 %v266_v5, 16  ;;  %v811_v55 = vsel %vm5593_vm11, %v806_v26, %v810_v38 }
  0x73   : > { %v724_v47 = vld [vmem:[#allocation2 + $0x48] sm:$0xf]  ;;  %665 = vst [vmem:[#allocation2 + $0x78] sm:$0xf] %v664_v50  ;;  %v498_v56 = vrot.slane %v496_v39, 7  ;;  %v506_v58 = vrot.slane %v504_v44, 7  ;;  %v1153_v59 = vunpack.c.l.b16 %v811_v55  ;;  %v668_v1 = vsel %vm5537_vm6, %v443_v49, %v667_v46 }
  0x74   : > { %v909_v53 = vshrl.u32 %v724_v47, 16  ;;  %v912_v61 = vshll.u32 %v724_v47, 16  ;;  %v442_v62 = vsel %vm5544_vm7, %v434_v33, %v441_v45  ;;  %669 = vst [vmem:[#allocation2 + $0x80] sm:$0x1] %v668_v1  ;;  %v292_v60 = vshrl.u32 %v241_v52, 16 }
  0x75   : > { %666 = vst.msk [vmem:[#allocation2 + $0x7c] sm:$0xf] %vm183_vm1, %v442_v62  ;;  %v501_v57 = vor.u32 %v499_v42, %v498_v56  ;;  %v502_v3 = vrot.slane %v498_v56, 4  ;;  %v509_v4 = vor.u32 %v507_v51, %v506_v58  ;;  %v1183_v7 = vpack.c.b16 %v1153_v59, %v1152_v23 }
  0x76   : > { %v911_v8 = vrot.slane %v909_v53, 4  ;;  %v914_v11 = vrot.slane %v912_v61, 5  ;;  %v511_v12 = vrot.slane %v506_v58, 4  ;;  %v295_v48 = vshll.u32 %v241_v52, 16 }
  0x77   : > { %v725_v14 = vld [vmem:[#allocation2 + $0x4c] sm:$0xf]  ;;  %v510_v34 = vsel %vm5544_vm7, %v502_v3, %v509_v4  ;;  %v692_v40 = vsel %vm5552_vm8, %v501_v57, %v691_v54  ;;  %4958 = vmatmul.msk.bf16.gmra.mxu0 %vm1198_vm12, %v1183_v7  ;;  %v294_v20 = vrot.slane %v292_v60, 7  ;;  %v300_v21 = vshrl.u32 %v242_v6, 16  ;;  %v607_v3 = vld [vmem:[#allocation2 + $0x18] sm:$0xf] }
  0x78   : > { %v751_v15 = vld [vmem:[#allocation2 + $0x50] sm:$0x1]  ;;  %v915_v43 = vor.u32 %v914_v11, %v911_v8  ;;  %v918_v2 = vshll.u32 %v725_v14, 16  ;;  %v922_v17 = vshrl.u32 %v725_v14, 16  ;;  %693 = vst [vmem:[#allocation2 + $0xa8] sm:$0xf] %v692_v40  ;;  %v696_v18 = vsel %vm5537_vm6, %v511_v12, %v695_v63 }
  0x79   : > { %v928_v19 = vshll.u32 %v751_v15, 16  ;;  %694 = vst.msk [vmem:[#allocation2 + $0xac] sm:$0xf] %vm183_vm1, %v510_v34  ;;  %v303_v27 = vshll.u32 %v242_v6, 16  ;;  %v377_v29 = vshrl.u32 %v5889_v0, 16  ;;  %v297_v33 = vor.u32 %v295_v48, %v294_v20 }
  0x7a   : > { %v916_v22 = vrot.slane %v915_v43, 4  ;;  %v920_v24 = vrot.slane %v918_v2, 5  ;;  %v924_v16 = vrot.slane %v922_v17, 4  ;;  %v732_v26 = vld [vmem:[#allocation2 + $0x78] sm:$0xf]  ;;  %v302_v35 = vrot.slane %v300_v21, 7 }
  0x7b   : > { %v930_v5 = vrot.slane %v928_v19, 5  ;;  %v1005_v28 = vshrl.u32 %v732_v26, 16  ;;  %v1008_v23 = vshll.u32 %v732_v26, 16  ;;  %697 = vst [vmem:[#allocation2 + $0xb0] sm:$0x1] %v696_v18  ;;  %v298_v44 = vrot.slane %v294_v20, 4 }
  0x7c   : > { %v921_v30 = vsel %vm5593_vm11, %v916_v22, %v920_v24  ;;  %v925_v31 = vor.u32 %v924_v16, %v920_v24  ;;  %v733_v32 = vld [vmem:[#allocation2 + $0x7c] sm:$0xf]  ;;  %v755_v37 = vld [vmem:[#allocation2 + $0x80] sm:$0x1]  ;;  %v305_v47 = vor.u32 %v303_v27, %v302_v35  ;;  %v307_v56 = vrot.slane %v302_v35, 4 }
  0x7d   : > { %v1007_v38 = vrot.slane %v1005_v28, 4  ;;  %v1010_v39 = vrot.slane %v1008_v23, 5  ;;  %v1014_v42 = vshll.u32 %v733_v32, 16  ;;  %v1162_v49 = vunpack.c.l.b16 %v921_v30  ;;  %v611_v12 = vld [vmem:[#allocation2 + $0x20] sm:$0x1] }
  0x7e   : > { %v926_v45 = vrot.slane %v925_v31, 4  ;;  %v1018_v50 = vshrl.u32 %v733_v32, 16  ;;  %v1024_v46 = vshll.u32 %v755_v37, 16  ;;  %v306_v11 = vsel %vm5544_vm7, %v298_v44, %v305_v47  ;;  %v252_v2 = vld [vmem:[%s5525_s19 + $0x34] sm:$0xf] }
  0x7f   : > { %v1011_v51 = vor.u32 %v1010_v39, %v1007_v38  ;;  %v1016_v54 = vrot.slane %v1014_v42, 5  ;;  %v740_v55 = vld [vmem:[#allocation2 + $0xa8] sm:$0xf]  ;;  %610 = vst.msk [vmem:[#allocation2 + $0x1c] sm:$0xf] %vm183_vm1, %v306_v11  ;;  %v608_v19 = vsel %vm5552_vm8, %v297_v33, %v607_v3  ;;  %v612_v20 = vsel %vm5537_vm6, %v307_v56, %v611_v12 }
  0x80   : > { %v931_v58 = vsel %vm5593_vm11, %v926_v45, %v930_v5  ;;  %v1020_v59 = vrot.slane %v1018_v50, 4  ;;  %v1026_v53 = vrot.slane %v1024_v46, 5  ;;  %v741_v61 = vld [vmem:[#allocation2 + $0xac] sm:$0xf]  ;;  %v1101_v62 = vshrl.u32 %v740_v55, 16 }
  0x81   : > { %v1163_v63 = vunpack.c.l.b16 %v931_v58  ;;  %v1012_v52 = vrot.slane %v1011_v51, 4  ;;  %v1104_v1 = vshll.u32 %v740_v55, 16  ;;  %v1110_v57 = vshll.u32 %v741_v61, 16  ;;  %v259_v21 = vld [vmem:[%s5525_s19 + $0x50] sm:$0xf] }
  0x82   : > { %v1021_v4 = vor.u32 %v1020_v59, %v1016_v54  ;;  %v759_v6 = vld [vmem:[#allocation2 + $0xb0] sm:$0x1]  ;;  %v1103_v7 = vrot.slane %v1101_v62, 4  ;;  %v1114_v8 = vshrl.u32 %v741_v61, 16  ;;  %609 = vst [vmem:[#allocation2 + $0x18] sm:$0xf] %v608_v19 }
  0x83   : > { %v1188_v14 = vpack.c.b16 %v1163_v63, %v1162_v49  ;;  %v1017_v34 = vsel %vm5593_vm11, %v1012_v52, %v1016_v54  ;;  %v1106_v40 = vrot.slane %v1104_v1, 5  ;;  %v1112_v60 = vrot.slane %v1110_v57, 5  ;;  %613 = vst [vmem:[#allocation2 + $0x20] sm:$0x1] %v612_v20  ;;  %v642_v42 = vld [vmem:[#allocation2 + $0x54] sm:$0xf] }
  0x84   : > { %v1022_v48 = vrot.slane %v1021_v4, 4  ;;  %v1116_v15 = vrot.slane %v1114_v8, 4  ;;  %v1120_v43 = vshll.u32 %v759_v6, 16  ;;  %v1170_v17 = vunpack.c.l.b16 %v1017_v34  ;;  %v646_v47 = vld [vmem:[#allocation2 + $0x5c] sm:$0x1] }
  0x85   : > { %4963 = vmatmul.msk.bf16.gmra.mxu1 %vm1198_vm12, %v1188_v14  ;;  %v1107_v18 = vor.u32 %v1106_v40, %v1103_v7  ;;  %v379_v26 = vrot.slane %v377_v29, 7  ;;  %v380_v28 = vshll.u32 %v5889_v0, 16  ;;  %v385_v23 = vshrl.u32 %v252_v2, 16  ;;  %v260_v0 = vld [vmem:[%s5525_s19 + $0x54] sm:$0xf] }
  0x86   : > { %v1027_v22 = vsel %vm5593_vm11, %v1022_v48, %v1026_v53  ;;  %v1117_v24 = vor.u32 %v1116_v15, %v1112_v60  ;;  %v1122_v16 = vrot.slane %v1120_v43, 5  ;;  %v388_v32 = vshll.u32 %v252_v2, 16  ;;  %v5919_v45 = vld [vmem:[#allocation2 + $0x1c] sm:$0xf]  ;;  %v670_v56 = vld [vmem:[#allocation2 + $0x84] sm:$0xf] }
  0x87   : > { %v1171_v27 = vunpack.c.l.b16 %v1027_v22  ;;  %v1108_v5 = vrot.slane %v1107_v18, 4  ;;  %v383_v31 = vrot.slane %v379_v26, 4  ;;  %v445_v33 = vshrl.u32 %v259_v21, 16  ;;  %v267_v62 = vld [vmem:[%s5525_s19 + $0x70] sm:$0xf] }
  0x88   : > { %v1118_v30 = vrot.slane %v1117_v24, 4  ;;  %v382_v38 = vor.u32 %v380_v28, %v379_v26  ;;  %v387_v39 = vrot.slane %v385_v23, 7  ;;  %v448_v50 = vshll.u32 %v259_v21, 16  ;;  %v268_v63 = vld [vmem:[%s5525_s19 + $0x74] sm:$0xf] }
  0x89   : > { %v1192_v35 = vpack.c.b16 %v1171_v27, %v1170_v17  ;;  %v1113_v37 = vsel %vm5593_vm11, %v1108_v5, %v1112_v60  ;;  %v447_v49 = vrot.slane %v445_v33, 7  ;;  %v822_v51 = vshll.u32 %v5919_v45, 16  ;;  %v716_v1 = vld [vmem:[#allocation2 + $0x18] sm:$0xf]  ;;  %v5932_v6 = vld [vmem:[%s5525_s19 + $0x10] sm:$0xf] }
  0x8a   : > { %v1123_v29 = vsel %vm5593_vm11, %v1118_v30, %v1122_v16  ;;  %v1178_v44 = vunpack.c.l.b16 %v1113_v37  ;;  %v826_v54 = vshrl.u32 %v5919_v45, 16  ;;  %v390_v55 = vor.u32 %v388_v32, %v387_v39  ;;  %v5934_v7 = vld [vmem:[#allocation2 + $0x20] sm:$0x1]  ;;  %v674_v24 = vld [vmem:[#allocation2 + $0x8c] sm:$0x1] }
  0x8b   : > { %4967 = vmatmul.msk.bf16.gmra.mxu2 %vm1198_vm12, %v1192_v35  ;;  %v1179_v46 = vunpack.c.l.b16 %v1123_v29  ;;  %v392_v58 = vrot.slane %v387_v39, 4  ;;  %v643_v59 = vsel %vm5552_vm8, %v382_v38, %v642_v42  ;;  %v450_v53 = vor.u32 %v448_v50, %v447_v49  ;;  %v5433_v9 = vld [vmem:[#allocation2 + $0xb0] sm:$0x1] }
  0x8c   : > { %v451_v61 = vrot.slane %v447_v49, 4  ;;  %v824_v57 = vrot.slane %v822_v51, 5  ;;  %v828_v3 = vrot.slane %v826_v54, 4  ;;  %v391_v4 = vsel %vm5544_vm7, %v383_v31, %v390_v55  ;;  %644 = vst [vmem:[#allocation2 + $0x54] sm:$0xf] %v643_v59 }
  0x8d   : > { %v1196_v52 = vpack.c.b16 %v1179_v46, %v1178_v44  ;;  %v813_v8 = vshrl.u32 %v716_v1, 16  ;;  %v816_v11 = vshll.u32 %v716_v1, 16  ;;  %645 = vst.msk [vmem:[#allocation2 + $0x58] sm:$0xf] %vm183_vm1, %v391_v4  ;;  %v647_v12 = vsel %vm5537_vm6, %v392_v58, %v646_v47  ;;  %v702_v49 = vld [vmem:[#allocation2 + $0xbc] sm:$0x1] }
  0x8e   : > { %v671_v14 = vsel %vm5552_vm8, %v450_v53, %v670_v56  ;;  %v829_v34 = vor.u32 %v828_v3, %v824_v57  ;;  %v832_v40 = vshll.u32 %v5934_v7, 16  ;;  %648 = vst [vmem:[#allocation2 + $0x5c] sm:$0x1] %v647_v12  ;;  %v453_v60 = vshrl.u32 %v260_v0, 16 }
  0x8f   : > { %4971 = vmatmul.msk.bf16.gmra.mxu3 %vm1198_vm12, %v1196_v52  ;;  %v456_v48 = vshll.u32 %v260_v0, 16  ;;  %v815_v15 = vrot.slane %v813_v8, 4  ;;  %v818_v43 = vrot.slane %v816_v11, 5  ;;  %672 = vst [vmem:[#allocation2 + $0x84] sm:$0xf] %v671_v14  ;;  %v513_v2 = vshrl.u32 %v267_v62, 16 }
  0x90   : > { %v516_v17 = vshll.u32 %v267_v62, 16  ;;  %v830_v18 = vrot.slane %v829_v34, 4  ;;  %v834_v19 = vrot.slane %v832_v40, 5  ;;  %v455_v20 = vrot.slane %v453_v60, 7  ;;  %v698_v0 = vld [vmem:[#allocation2 + $0xb4] sm:$0xf] }
  0x91   : > { %v521_v21 = vshrl.u32 %v268_v63, 16  ;;  %v819_v22 = vor.u32 %v818_v43, %v815_v15  ;;  %v515_v16 = vrot.slane %v513_v2, 7  ;;  %v524_v26 = vshll.u32 %v268_v63, 16  ;;  %v244_v8 = vld [vmem:[%s5525_s19 + $0x14] sm:$0xf] }
  0x92   : > { %v309_v27 = vshrl.u32 %v5932_v6, 16  ;;  %v835_v5 = vsel %vm5593_vm11, %v830_v18, %v834_v19  ;;  %v458_v28 = vor.u32 %v456_v48, %v455_v20  ;;  %v460_v23 = vrot.slane %v455_v20, 4 }
  0x93   : > { %v523_v30 = vrot.slane %v521_v21, 7  ;;  %v820_v31 = vrot.slane %v819_v22, 4  ;;  %v1155_v32 = vunpack.c.l.b16 %v835_v5  ;;  %v726_v33 = vld [vmem:[#allocation2 + $0x54] sm:$0xf]  ;;  %v518_v35 = vor.u32 %v516_v17, %v515_v16  ;;  %v614_v22 = vld [vmem:[#allocation2 + $0x24] sm:$0xf] }
  0x94   : > { %v519_v37 = vrot.slane %v515_v16, 4  ;;  %v5946_v38 = vld [vmem:[#allocation2 + $0x58] sm:$0xf]  ;;  %v933_v39 = vshrl.u32 %v726_v33, 16  ;;  %v936_v42 = vshll.u32 %v726_v33, 16  ;;  %v459_v29 = vsel %vm5544_vm7, %v451_v61, %v458_v28 }
  0x95   : > { %v675_v44 = vsel %vm5537_vm6, %v460_v23, %v674_v24  ;;  %v825_v50 = vsel %vm5593_vm11, %v820_v31, %v824_v57  ;;  %v5954_v46 = vld [vmem:[#allocation2 + $0x5c] sm:$0x1]  ;;  %v942_v51 = vshll.u32 %v5946_v38, 16  ;;  %v946_v54 = vshrl.u32 %v5946_v38, 16  ;;  %673 = vst.msk [vmem:[#allocation2 + $0x88] sm:$0xf] %vm183_vm1, %v459_v29 }
  0x96   : > { %v526_v55 = vor.u32 %v524_v26, %v523_v30  ;;  %v1154_v47 = vunpack.c.l.b16 %v825_v50  ;;  %v935_v56 = vrot.slane %v933_v39, 4  ;;  %v938_v58 = vrot.slane %v936_v42, 5  ;;  %676 = vst [vmem:[#allocation2 + $0x8c] sm:$0x1] %v675_v44  ;;  %v734_v62 = vld [vmem:[#allocation2 + $0x84] sm:$0xf] }
  0x97   : > { %v952_v59 = vshll.u32 %v5954_v46, 16  ;;  %v944_v53 = vrot.slane %v942_v51, 5  ;;  %v948_v61 = vrot.slane %v946_v54, 4  ;;  %v528_v52 = vrot.slane %v523_v30, 4 }
  0x98   : > { %v527_v63 = vsel %vm5544_vm7, %v519_v37, %v526_v55  ;;  %v1184_v1 = vpack.c.b16 %v1155_v32, %v1154_v47  ;;  %v939_v57 = vor.u32 %v938_v58, %v935_v56  ;;  %v1029_v4 = vshrl.u32 %v734_v62, 16 }
  0x99   : > { %v954_v3 = vrot.slane %v952_v59, 5  ;;  %701 = vst.msk [vmem:[#allocation2 + $0xb8] sm:$0xf] %vm183_vm1, %v527_v63  ;;  %v949_v11 = vor.u32 %v948_v61, %v944_v53  ;;  %v1032_v12 = vshll.u32 %v734_v62, 16  ;;  %v699_v14 = vsel %vm5552_vm8, %v518_v35, %v698_v0  ;;  %v618_v59 = vld [vmem:[#allocation2 + $0x2c] sm:$0x1] }
  0x9a   : > { %v703_v34 = vsel %vm5537_vm6, %v528_v52, %v702_v49  ;;  %4959 = vmatmul.msk.bf16.gmra.mxu0 %vm1198_vm12, %v1184_v1  ;;  %v940_v40 = vrot.slane %v939_v57, 4  ;;  %v1031_v60 = vrot.slane %v1029_v4, 4  ;;  %700 = vst [vmem:[#allocation2 + $0xb4] sm:$0xf] %v699_v14  ;;  %v311_v48 = vrot.slane %v309_v27, 7 }
  0x9b   : > { %v312_v15 = vshll.u32 %v5932_v6, 16  ;;  %v950_v43 = vrot.slane %v949_v11, 4  ;;  %v1034_v2 = vrot.slane %v1032_v12, 5  ;;  %704 = vst [vmem:[#allocation2 + $0xbc] sm:$0x1] %v703_v34  ;;  %v317_v17 = vshrl.u32 %v244_v8, 16 }
  0x9c   : > { %v945_v18 = vsel %vm5593_vm11, %v940_v40, %v944_v53  ;;  %v735_v19 = vld [vmem:[#allocation2 + $0x88] sm:$0xf]  ;;  %v320_v21 = vshll.u32 %v244_v8, 16  ;;  %v315_v29 = vrot.slane %v311_v48, 4  ;;  %v1560_v40 = vld [vmem:[#allocation2] sm:$0xe] }
  0x9d   : > { %v314_v20 = vor.u32 %v312_v15, %v311_v48  ;;  %v955_v24 = vsel %vm5593_vm11, %v950_v43, %v954_v3  ;;  %v1164_v16 = vunpack.c.l.b16 %v945_v18  ;;  %v756_v26 = vld [vmem:[#allocation2 + $0x8c] sm:$0x1]  ;;  %v1035_v5 = vor.u32 %v1034_v2, %v1031_v60  ;;  %v5412_v43 = vld [vmem:[#allocation2 + $0x4] sm:$0xf] }
  0x9e   : > { %v1038_v27 = vshll.u32 %v735_v19, 16  ;;  %v1165_v28 = vunpack.c.l.b16 %v955_v24  ;;  %v1042_v6 = vshrl.u32 %v735_v19, 16  ;;  %v1048_v23 = vshll.u32 %v756_v26, 16  ;;  %v5217_v3 = vld [vmem:[%s7030_s1 + $0xc] sm:$0x3] }
  0x9f   : > { %v1036_v30 = vrot.slane %v1035_v5, 4  ;;  %v319_v33 = vrot.slane %v317_v17, 7  ;;  %v615_v35 = vsel %vm5552_vm8, %v314_v20, %v614_v22  ;;  %v1613_v2 = vrot.slane %v5412_v43, 5 }
  0xa0   : > { %v1040_v31 = vrot.slane %v1038_v27, 5  ;;  %v743_v32 = vld [vmem:[#allocation2 + $0xb8] sm:$0xf]  ;;  %v1189_v37 = vpack.c.b16 %v1165_v28, %v1164_v16  ;;  %v1044_v39 = vrot.slane %v1042_v6, 4  ;;  %616 = vst [vmem:[#allocation2 + $0x24] sm:$0xf] %v615_v35 }
  0xa1   : > { %v1134_v42 = vshll.u32 %v743_v32, 16  ;;  %v1050_v44 = vrot.slane %v1048_v23, 5  ;;  %v742_v0 = vld [vmem:[#allocation2 + $0xb4] sm:$0xf]  ;;  %v1138_v49 = vshrl.u32 %v743_v32, 16  ;;  %v322_v50 = vor.u32 %v320_v21, %v319_v33 }
  0xa2   : > { %v324_v51 = vrot.slane %v319_v33, 4  ;;  %4964 = vmatmul.msk.bf16.gmra.mxu1 %vm1198_vm12, %v1189_v37  ;;  %v1041_v54 = vsel %vm5593_vm11, %v1036_v30, %v1040_v31  ;;  %v1045_v55 = vor.u32 %v1044_v39, %v1040_v31  ;;  %v760_v47 = vld [vmem:[#allocation2 + $0xbc] sm:$0x1]  ;;  %v1125_v56 = vshrl.u32 %v742_v0, 16  ;;  %v2231_v16 = vld [vmem:[#allocation2 + $0xc] sm:$0xf] }
  0xa3   : > { %v1128_v58 = vshll.u32 %v742_v0, 16  ;;  %v1136_v53 = vrot.slane %v1134_v42, 5  ;;  %v1140_v61 = vrot.slane %v1138_v49, 4  ;;  %v1144_v62 = vshll.u32 %v760_v47, 16  ;;  %v5413_v23 = vld [vmem:[#allocation2 + $0x8] sm:$0x1] }
  0xa4   : > { %v1046_v63 = vrot.slane %v1045_v55, 4  ;;  %v1127_v52 = vrot.slane %v1125_v56, 4  ;;  %v323_v57 = vsel %vm5544_vm7, %v315_v29, %v322_v50  ;;  %v1172_v4 = vunpack.c.l.b16 %v1041_v54  ;;  %v2232_v33 = vld [vmem:[#allocation2 + $0x10] sm:$0xf]  ;;  %v5352_v54 = vld [vmem:[#allocation2] sm:$0xff] }
  0xa5   : > { %v1130_v1 = vrot.slane %v1128_v58, 5  ;;  %v1141_v8 = vor.u32 %v1140_v61, %v1136_v53  ;;  %v1146_v11 = vrot.slane %v1144_v62, 5  ;;  %617 = vst.msk [vmem:[#allocation2 + $0x28] sm:$0xf] %vm183_vm1, %v323_v57  ;;  %v619_v12 = vsel %vm5537_vm6, %v324_v51, %v618_v59  ;;  %v5298_v61 = vld [vmem:[%s7030_s1 + $0xe] sm:$0x3] }
  0xa6   : > { %v1051_v14 = vsel %vm5593_vm11, %v1046_v63, %v1050_v44  ;;  %620 = vst [vmem:[#allocation2 + $0x2c] sm:$0x1] %v619_v12  ;;  %v3447_v17 = vsel %vm1247_vm0, %v5217_v3, 0  ;;  %v5053_v24 = vrot.slane %v1560_v40, 9  ;;  %v1616_v30 = vrot.slane %v5413_v23, 5 }
  0xa7   : > { %v1131_v34 = vor.u32 %v1130_v1, %v1127_v52  ;;  %v1173_v60 = vunpack.c.l.b16 %v1051_v14  ;;  %v1142_v48 = vrot.slane %v1141_v8, 4  ;;  %v718_v15 = vld [vmem:[#allocation2 + $0x24] sm:$0xf]  ;;  %3456 = vmatpush.bf16.msra.mxu2 %v3447_v17  ;;  %v1615_v32 = vrot.slane %v1613_v2, 4  ;;  %v5200_v62 = vld [vmem:[%s7030_s1 + $0xa] sm:$0x3] }
  0xa8   : > { %v837_v19 = vshrl.u32 %v718_v15, 16  ;;  %v840_v20 = vshll.u32 %v718_v15, 16  ;;  %v2280_v39 = vshrl.u32 %v2231_v16, 16  ;;  %v1614_v49 = vsel %vm5996_vm15, %v5053_v24, %v1613_v2  ;;  %v5331_v3 = vld [vmem:[%s7030_s1 + $0x10] sm:$0x3] }
  0xa9   : > { %v1132_v18 = vrot.slane %v1131_v34, 4  ;;  %v1193_v21 = vpack.c.b16 %v1173_v60, %v1172_v4  ;;  %v1147_v22 = vsel %vm5593_vm11, %v1142_v48, %v1146_v11  ;;  %v2283_v55 = vshll.u32 %v2231_v16, 16  ;;  %v2233_v15 = vld [vmem:[#allocation2 + $0x14] sm:$0x1]  ;;  %v1561_v16 = vld [vmem:[#allocation2 + $0xc] sm:$0xe] }
  0xaa   : > { %v1181_v5 = vunpack.c.l.b16 %v1147_v22  ;;  %v839_v27 = vrot.slane %v837_v19, 4  ;;  %v842_v28 = vrot.slane %v840_v20, 5  ;;  %v2289_v47 = vshll.u32 %v2232_v33, 16 }
  0xab   : > { %v1137_v26 = vsel %vm5593_vm11, %v1132_v18, %v1136_v53  ;;  %4968 = vmatmul.msk.bf16.gmra.mxu2 %vm1198_vm12, %v1193_v21  ;;  %v1617_v59 = vsel %vm5996_vm15, %v1615_v32, %v1616_v30  ;;  %v2293_v53 = vshrl.u32 %v2232_v33, 16  ;;  %v1725_v57 = vunpack.c.l.b16 %v1614_v49  ;;  %v2234_v30 = vld [vmem:[#allocation2 + $0x18] sm:$0xf] }
  0xac   : > { %v1180_v31 = vunpack.c.l.b16 %v1137_v26  ;;  %v6001_v35 = vld [vmem:[#allocation2 + $0x28] sm:$0xf]  ;;  %v843_v37 = vor.u32 %v842_v28, %v839_v27  ;;  %v1726_v4 = vunpack.c.l.b16 %v1617_v59  ;;  %v2282_v8 = vrot.slane %v2280_v39, 4  ;;  %v5368_v26 = vld [vmem:[#allocation2 + $0xc] sm:$0xff]  ;;  %v1562_v27 = vld [vmem:[#allocation2 + $0x18] sm:$0xe] }
  0xad   : > { %v6003_v29 = vld [vmem:[#allocation2 + $0x2c] sm:$0x1]  ;;  %v846_v44 = vshll.u32 %v6001_v35, 16  ;;  %v850_v0 = vshrl.u32 %v6001_v35, 16  ;;  %v2285_v11 = vrot.slane %v2283_v55, 5  ;;  %v2291_v12 = vrot.slane %v2289_v47, 5 }
  0xae   : > { %v1197_v42 = vpack.c.b16 %v1181_v5, %v1180_v31  ;;  %v844_v50 = vrot.slane %v843_v37, 4  ;;  %v856_v51 = vshll.u32 %v6003_v29, 16  ;;  %v2295_v34 = vrot.slane %v2293_v53, 4 }
  0xaf   : > { %v848_v56 = vrot.slane %v846_v44, 5  ;;  %v852_v58 = vrot.slane %v850_v0, 4  ;;  %v4101_v40 = vsel %vm1247_vm0, %v5298_v61, 0  ;;  %v3160_v60 = vsel %vm1247_vm0, %v5200_v62, 0 }
  0xb0   : > { %4972 = vmatmul.msk.bf16.gmra.mxu3 %vm1198_vm12, %v1197_v42  ;;  %v858_v1 = vrot.slane %v856_v51, 5  ;;  %3169 = vmatpush.bf16.msra.mxu1 %v3160_v60  ;;  %v4499_v43 = vsel %vm1247_vm0, %v5331_v3, 0  ;;  %v2286_v18 = vor.u32 %v2285_v11, %v2282_v8  ;;  %v1757_v19 = vpack.c.b16 %v1726_v4, %v1725_v57  ;;  %v2235_v42 = vld [vmem:[#allocation2 + $0x1c] sm:$0xf]  ;;  %v2236_v8 = vld [vmem:[#allocation2 + $0x20] sm:$0x1] }
  0xb1   : > { %v849_v63 = vsel %vm5593_vm11, %v844_v50, %v848_v56  ;;  %v853_v52 = vor.u32 %v852_v58, %v848_v56  ;;  %4110 = vmatpush.bf16.msra.mxu3 %v4101_v40  ;;  %4508 = vmatpush.bf16.msra.mxu0 %v4499_v43  ;;  %v2296_v20 = vor.u32 %v2295_v34, %v2291_v12  ;;  %v2299_v21 = vshll.u32 %v2233_v15, 16  ;;  %v5353_v50 = vld [vmem:[#allocation2 + $0xc] sm:$0xff]  ;;  %v5369_v15 = vld [vmem:[#allocation2 + $0x18] sm:$0xff] }
  0xb2   : > { %5037 = vmatmul.msk.bf16.vlgmr.msrb.gmra.mxu1 %vm1198_vm12, %v5352_v54  ;;  %v1156_v48 = vunpack.c.l.b16 %v849_v63  ;;  %v1620_v24 = vrot.slane %v5836_v41, 5  ;;  %v2287_v5 = vrot.slane %v2286_v18, 4  ;;  %v5055_v31 = vrot.slane %v1562_v27, 9 }
  0xb3   : > { %v854_v14 = vrot.slane %v853_v52, 4  ;;  %v2297_v28 = vrot.slane %v2296_v20, 4  ;;  %v2301_v23 = vrot.slane %v2299_v21, 5  ;;  %v1627_v32 = vrot.slane %v5919_v45, 5  ;;  %v5354_v20 = vld [vmem:[#allocation2 + $0x18] sm:$0xff] }
  0xb4   : > { %v5054_v33 = vrot.slane %v1561_v16, 9  ;;  %v1622_v37 = vrot.slane %v1620_v24, 4  ;;  %v1623_v39 = vrot.slane %v5861_v25, 5  ;;  %v1630_v41 = vrot.slane %v5934_v7, 5 }
  0xb5   : > { %v859_v2 = vsel %vm5593_vm11, %v854_v14, %v858_v1  ;;  %v1628_v44 = vsel %vm5996_vm15, %v5055_v31, %v1627_v32  ;;  %v1629_v0 = vrot.slane %v1627_v32, 4  ;;  %v2292_v49 = vsel %vm5593_vm11, %v2287_v5, %v2291_v12  ;;  %v2239_v31 = vld [vmem:[#allocation2 + $0x2c] sm:$0x1] }
  0xb6   : > { %v1157_v17 = vunpack.c.l.b16 %v859_v2  ;;  %v2304_v51 = vshrl.u32 %v2234_v30, 16  ;;  %v2307_v54 = vshll.u32 %v2234_v30, 16  ;;  %v1729_v55 = vunpack.c.l.b16 %v1628_v44 }
  0xb7   : > { %v2302_v45 = vsel %vm5593_vm11, %v2297_v28, %v2301_v23  ;;  %v2313_v25 = vshll.u32 %v2235_v42, 16  ;;  %v2317_v47 = vshrl.u32 %v2235_v42, 16  ;;  %v1631_v7 = vsel %vm5996_vm15, %v1629_v0, %v1630_v41  ;;  %v1563_v42 = vld [vmem:[#allocation2 + $0x24] sm:$0xe] }
  0xb8   : > { %v1185_v22 = vpack.c.b16 %v1157_v17, %v1156_v48  ;;  %v1621_v56 = vsel %vm5996_vm15, %v5054_v33, %v1620_v24  ;;  %v1624_v58 = vsel %vm5996_vm15, %v1622_v37, %v1623_v39  ;;  %v1730_v59 = vunpack.c.l.b16 %v1631_v7  ;;  %v2237_v48 = vld [vmem:[#allocation2 + $0x24] sm:$0xf]  ;;  %v2238_v17 = vld [vmem:[#allocation2 + $0x28] sm:$0xf] }
  0xb9   : > { %v2665_v53 = vunpack.c.l.b16 %v2292_v49  ;;  %v2666_v61 = vunpack.c.l.b16 %v2302_v45  ;;  %v2306_v62 = vrot.slane %v2304_v51, 4  ;;  %v2309_v63 = vrot.slane %v2307_v54, 5  ;;  %v5370_v51 = vld [vmem:[#allocation2 + $0x24] sm:$0xff]  ;;  %v2240_v45 = vld [vmem:[#allocation2 + $0x30] sm:$0xf] }
  0xba   : > { %4960 = vmatmul.msk.bf16.gmra.mxu0 %vm1198_vm12, %v1185_v22  ;;  %v1759_v52 = vpack.c.b16 %v1730_v59, %v1729_v55  ;;  %v1727_v1 = vunpack.c.l.b16 %v1621_v56  ;;  %v1728_v57 = vunpack.c.l.b16 %v1624_v58  ;;  %v2315_v3 = vrot.slane %v2313_v25, 5  ;;  %v2241_v25 = vld [vmem:[#allocation2 + $0x34] sm:$0xf]  ;;  %v5355_v7 = vld [vmem:[#allocation2 + $0x24] sm:$0xff] }
  0xbb   : > { %5070 = vmatmul.msk.bf16.vlgmr.msrb.gmra.mxu2 %vm1198_vm12, %v1757_v19  ;;  %v2319_v4 = vrot.slane %v2317_v47, 4  ;;  %v2697_v11 = vpack.c.b16 %v2666_v61, %v2665_v53  ;;  %v2310_v12 = vor.u32 %v2309_v63, %v2306_v62  ;;  %v2323_v40 = vshll.u32 %v2236_v8, 16 }
  0xbc   : > { %v1758_v14 = vpack.c.b16 %v1728_v57, %v1727_v1  ;;  %v2328_v18 = vshrl.u32 %v2237_v48, 16  ;;  %v2331_v21 = vshll.u32 %v2237_v48, 16  ;;  %v2337_v22 = vshll.u32 %v2238_v17, 16 }
  0xbd   : > { %v2320_v34 = vor.u32 %v2319_v4, %v2315_v3  ;;  %v2311_v60 = vrot.slane %v2310_v12, 4  ;;  %v2325_v2 = vrot.slane %v2323_v40, 5  ;;  %v2341_v24 = vshrl.u32 %v2238_v17, 16  ;;  %v2242_v12 = vld [vmem:[#allocation2 + $0x38] sm:$0x1] }
  0xbe   : > { %v2330_v5 = vrot.slane %v2328_v18, 4  ;;  %v2333_v28 = vrot.slane %v2331_v21, 5  ;;  %v2339_v23 = vrot.slane %v2337_v22, 5  ;;  %v2347_v39 = vshll.u32 %v2239_v31, 16  ;;  %v2243_v17 = vld [vmem:[#allocation2 + $0x3c] sm:$0xf] }
  0xbf   : > { %v2321_v43 = vrot.slane %v2320_v34, 4  ;;  %v2316_v19 = vsel %vm5593_vm11, %v2311_v60, %v2315_v3  ;;  %v2343_v30 = vrot.slane %v2341_v24, 4  ;;  %v1634_v41 = vrot.slane %v6001_v35, 5  ;;  %v2244_v18 = vld [vmem:[#allocation2 + $0x40] sm:$0xf] }
  0xc0   : > { %5151 = vmatmul.msk.bf16.vlgmr.msrb.gmra.mxu3 %vm1198_vm12, %v5368_v26  ;;  %v2667_v26 = vunpack.c.l.b16 %v2316_v19  ;;  %v2334_v33 = vor.u32 %v2333_v28, %v2330_v5  ;;  %v2349_v49 = vrot.slane %v2347_v39, 5  ;;  %v1637_v55 = vrot.slane %v6003_v29, 5  ;;  %v5371_v19 = vld [vmem:[#allocation2 + $0x30] sm:$0xff] }
  0xc1   : > { %v2326_v16 = vsel %vm5593_vm11, %v2321_v43, %v2325_v2  ;;  %v2344_v37 = vor.u32 %v2343_v30, %v2339_v23  ;;  %v1636_v54 = vrot.slane %v1634_v41, 4  ;;  %v2352_v58 = vshrl.u32 %v2240_v45, 16  ;;  %v1564_v2 = vld [vmem:[#allocation2 + $0x30] sm:$0xe] }
  0xc2   : > { %5038 = vmatmul.msk.bf16.gmra.mxu1 %vm1198_vm12, %v5353_v50  ;;  %v2668_v27 = vunpack.c.l.b16 %v2326_v16  ;;  %v2335_v44 = vrot.slane %v2334_v33, 4  ;;  %v5056_v50 = vrot.slane %v1563_v42, 9  ;;  %v2355_v53 = vshll.u32 %v2240_v45, 16 }
  0xc3   : > { %v2345_v0 = vrot.slane %v2344_v37, 4  ;;  %v1638_v59 = vsel %vm5996_vm15, %v1636_v54, %v1637_v55  ;;  %v2361_v29 = vshll.u32 %v2241_v25, 16  ;;  %v2365_v61 = vshrl.u32 %v2241_v25, 16  ;;  %v2245_v54 = vld [vmem:[#allocation2 + $0x44] sm:$0x1] }
  0xc4   : > { %v2698_v32 = vpack.c.b16 %v2668_v27, %v2667_v26  ;;  %v2340_v47 = vsel %vm5593_vm11, %v2335_v44, %v2339_v23  ;;  %v1635_v56 = vsel %vm5996_vm15, %v5056_v50, %v1634_v41  ;;  %v1732_v1 = vunpack.c.l.b16 %v1638_v59  ;;  %v5415_v26 = vld [vmem:[#allocation2 + $0x38] sm:$0x1] }
  0xc5   : > { %v2350_v35 = vsel %vm5593_vm11, %v2345_v0, %v2349_v49  ;;  %v2669_v62 = vunpack.c.l.b16 %v2340_v47  ;;  %v2354_v57 = vrot.slane %v2352_v58, 4  ;;  %v2357_v3 = vrot.slane %v2355_v53, 5 }
  0xc6   : > { %v2670_v63 = vunpack.c.l.b16 %v2350_v35  ;;  %v2363_v4 = vrot.slane %v2361_v29, 5  ;;  %v2367_v8 = vrot.slane %v2365_v61, 4  ;;  %v2371_v48 = vshll.u32 %v2242_v12, 16  ;;  %v5416_v29 = vld [vmem:[#allocation2 + $0x40] sm:$0xf] }
  0xc7   : > { %v2358_v40 = vor.u32 %v2357_v3, %v2354_v57  ;;  %v5057_v24 = vrot.slane %v1564_v2, 9  ;;  %v1644_v5 = vrot.slane %v5415_v26, 5  ;;  %v2376_v27 = vshrl.u32 %v2243_v17, 16  ;;  %v6095_v57 = vpop.f32.mrf.mxu0  ;;  %v5372_v3 = vld [vmem:[#allocation2 + $0x3c] sm:$0xff] }
  0xc8   : > { %v2368_v60 = vor.u32 %v2367_v8, %v2363_v4  ;;  %v2373_v22 = vrot.slane %v2371_v48, 5  ;;  %v2379_v28 = vshll.u32 %v2243_v17, 16  ;;  %v2385_v23 = vshll.u32 %v2244_v18, 16  ;;  %v2247_v8 = vld [vmem:[#allocation2 + $0x4c] sm:$0xf] }
  0xc9   : > { %v2389_v30 = vshrl.u32 %v2244_v18, 16  ;;  %v2378_v41 = vrot.slane %v2376_v27, 4  ;;  %v1648_v61 = vrot.slane %v5416_v29, 5  ;;  %v2409_v18 = vshll.u32 %v2247_v8, 16 }
  0xca   : > { %5168 = vmatmul.msk.bf16.vlgmr.msrb.gmra.mxu0 %vm1198_vm12, %v2697_v11  ;;  %v6072_v11 = vpop.f32.mrf.mxu1  ;;  %v2369_v21 = vrot.slane %v2368_v60, 4  ;;  %v2381_v44 = vrot.slane %v2379_v28, 5  ;;  %v2387_v0 = vrot.slane %v2385_v23, 5  ;;  %vm4856_vm0 = vcmask 1040384  }
  0xcb   : > { %5071 = vmatmul.msk.bf16.gmra.mxu2 %vm1198_vm12, %v1758_v14  ;;  %v2699_v14 = vpack.c.b16 %v2670_v63, %v2669_v62  ;;  %v2391_v49 = vrot.slane %v2389_v30, 4  ;;  %v2411_v28 = vrot.slane %v2409_v18, 5 }
  0xcc   : > { %v2374_v37 = vsel %vm5593_vm11, %v2369_v21, %v2373_v22  ;;  %v2382_v47 = vor.u32 %v2381_v44, %v2378_v41 }
  0xcd   : > { %v2392_v35 = vor.u32 %v2391_v49, %v2387_v0 }
  0xce   : > { %v2383_v62 = vrot.slane %v2382_v47, 4 }
  0xcf   : > { %v2393_v63 = vrot.slane %v2392_v35, 4 }
  0xd0   : > { %5152 = vmatmul.msk.bf16.gmra.mxu3 %vm1198_vm12, %v5369_v15  ;;  %v5414_v15 = vld [vmem:[#allocation2 + $0x34] sm:$0xf]  ;;  %v2388_v48 = vsel %vm5593_vm11, %v2383_v62, %v2387_v0 }
  0xd1   : > { %v1641_v43 = vrot.slane %v5414_v15, 5 }
  0xd2   : > { %5039 = vmatmul.msk.bf16.gmra.mxu1 %vm1198_vm12, %v5354_v20  ;;  %v2359_v20 = vrot.slane %v2358_v40, 4  ;;  %v6076_v31 = vpop.f32.mrf.mxu1  ;;  %v5417_v40 = vld [vmem:[#allocation2 + $0x44] sm:$0x1] }
  0xd3   : > { %v1643_v16 = vrot.slane %v1641_v43, 4  ;;  %v1642_v39 = vsel %vm5996_vm15, %v5057_v24, %v1641_v43  ;;  %v1651_v60 = vrot.slane %v5417_v40, 5  ;;  %v5357_v43 = vld [vmem:[#allocation2 + $0x3c] sm:$0xff]  ;;  %v2673_v24 = vunpack.c.l.b16 %v2388_v48 }
  0xd4   : > { %v2364_v33 = vsel %vm5593_vm11, %v2359_v20, %v2363_v4  ;;  %v1733_v45 = vunpack.c.l.b16 %v1642_v39  ;;  %v2246_v4 = vld [vmem:[#allocation2 + $0x48] sm:$0xf] }
  0xd5   : > { %v1645_v42 = vsel %vm5996_vm15, %v1643_v16, %v1644_v5  ;;  %v2671_v50 = vunpack.c.l.b16 %v2364_v33  ;;  %v2400_v2 = vshrl.u32 %v2246_v4, 16  ;;  %v2403_v17 = vshll.u32 %v2246_v4, 16  ;;  %v2248_v33 = vld [vmem:[#allocation2 + $0x50] sm:$0x1]  ;;  %v5358_v4 = vld [vmem:[#allocation2 + $0x48] sm:$0xff] }
  0xd6   : > { %v1734_v25 = vunpack.c.l.b16 %v1645_v42  ;;  %v2419_v44 = vshll.u32 %v2248_v33, 16 }
  0xd7   : > { %v2402_v5 = vrot.slane %v2400_v2, 4  ;;  %v2405_v27 = vrot.slane %v2403_v17, 5 }
  0xd8   : > { %v1761_v59 = vpack.c.b16 %v1734_v25, %v1733_v45  ;;  %v2421_v47 = vrot.slane %v2419_v44, 5  ;;  %v1567_v44 = vld [vmem:[#allocation2 + $0x54] sm:$0xe] }
  0xd9   : > { %v2406_v42 = vor.u32 %v2405_v27, %v2402_v5  ;;  %v2251_v27 = vld [vmem:[#allocation2 + $0x5c] sm:$0x1] }
  0xda   : > { %5169 = vmatmul.msk.bf16.gmra.mxu0 %vm1198_vm12, %v2698_v32  ;;  %v5356_v32 = vld [vmem:[#allocation2 + $0x30] sm:$0xff] }
  0xdb   : > { %5072 = vmatmul.msk.bf16.gmra.mxu2 %vm1198_vm12, %v1759_v52  ;;  %v1731_v52 = vunpack.c.l.b16 %v1635_v56  ;;  %v2407_v45 = vrot.slane %v2406_v42, 4  ;;  %v1662_v42 = vrot.slane %v5946_v38, 5 }
  0xdd   : > { %v1760_v34 = vpack.c.b16 %v1732_v1, %v1731_v52  ;;  %v1565_v1 = vld [vmem:[#allocation2 + $0x3c] sm:$0xe] }
  0xdf   : > { %v6088_v55 = vpop.f32.mrf.mxu2 }
  0xe0   : > { %5153 = vmatmul.msk.bf16.gmra.mxu3 %vm1198_vm12, %v5370_v51  ;;  %v2672_v51 = vunpack.c.l.b16 %v2374_v37  ;;  %v6114_v37 = vpop.f32.mrf.mxu0 }
  0xe2   : > { %5040 = vmatmul.msk.bf16.gmra.mxu1 %vm1198_vm12, %v5355_v7  ;;  %v2395_v7 = vshll.u32 %v2245_v54, 16  ;;  %v2700_v56 = vpack.c.b16 %v2672_v51, %v2671_v50  ;;  %v6090_v58 = vpop.f32.mrf.mxu3  ;;  %v1566_v50 = vld [vmem:[#allocation2 + $0x48] sm:$0xe]  ;;  %v5418_v51 = vld [vmem:[#allocation2 + $0x4c] sm:$0xf] }
  0xe3   : > { %v6092_v53 = vpop.f32.mrf.mxu1  ;;  %v1655_v54 = vrot.slane %v5418_v51, 5 }
  0xe4   : > { %v2397_v52 = vrot.slane %v2395_v7, 5  ;;  %v5059_v7 = vrot.slane %v1566_v50, 9  ;;  %v5374_v50 = vld [vmem:[#allocation2 + $0x54] sm:$0xff] }
  0xe5   : > { %v1657_v29 = vrot.slane %v1655_v54, 4 }
  0xe6   : > { %v2398_v15 = vsel %vm5593_vm11, %v2393_v63, %v2397_v52  ;;  %v2249_v63 = vld [vmem:[#allocation2 + $0x54] sm:$0xf]  ;;  %v2250_v52 = vld [vmem:[#allocation2 + $0x58] sm:$0xf] }
  0xe7   : > { %v6098_v12 = vpop.f32.mrf.mxu2  ;;  %v2674_v16 = vunpack.c.l.b16 %v2398_v15  ;;  %v2433_v48 = vshll.u32 %v2250_v52, 16  ;;  %v2437_v15 = vshrl.u32 %v2250_v52, 16 }
  0xe9   : > { %v2701_v39 = vpack.c.b16 %v2674_v16, %v2673_v24  ;;  %v2435_v24 = vrot.slane %v2433_v48, 5  ;;  %v2439_v16 = vrot.slane %v2437_v15, 4 }
  0xea   : > { %5170 = vmatmul.msk.bf16.gmra.mxu0 %vm1198_vm12, %v2699_v14  ;;  %v5058_v14 = vrot.slane %v1565_v1, 9  ;;  %v6105_v20 = vpop.f32.mrf.mxu3  ;;  %v2412_v1 = vsel %vm5593_vm11, %v2407_v45, %v2411_v28 }
  0xeb   : > { %5073 = vmatmul.msk.bf16.gmra.mxu2 %vm1198_vm12, %v1760_v34  ;;  %v1650_v34 = vrot.slane %v1648_v61, 4  ;;  %v6111_v26 = vpop.f32.mrf.mxu1  ;;  %v2675_v2 = vunpack.c.l.b16 %v2412_v1  ;;  %v2440_v33 = vor.u32 %v2439_v16, %v2435_v24 }
  0xec   : > { %v1649_v21 = vsel %vm5996_vm15, %v5058_v14, %v1648_v61  ;;  %v5419_v61 = vld [vmem:[#allocation2 + $0x50] sm:$0x1]  ;;  %v2424_v14 = vshrl.u32 %v2249_v63, 16 }
  0xed   : > { %v1652_v22 = vsel %vm5996_vm15, %v1650_v34, %v1651_v60  ;;  %v1735_v30 = vunpack.c.l.b16 %v1649_v21  ;;  %v1658_v62 = vrot.slane %v5419_v61, 5  ;;  %v2427_v60 = vshll.u32 %v2249_v63, 16  ;;  %v5359_v61 = vld [vmem:[#allocation2 + $0x54] sm:$0xff] }
  0xee   : > { %v2426_v21 = vrot.slane %v2424_v14, 4 }
  0xef   : > { %v6116_v0 = vpop.f32.mrf.mxu2  ;;  %v1659_v40 = vsel %vm5996_vm15, %v1657_v29, %v1658_v62  ;;  %v2253_v29 = vld [vmem:[#allocation2 + $0x64] sm:$0xf] }
  0xf0   : > { %5154 = vmatmul.msk.bf16.gmra.mxu3 %vm1198_vm12, %v5371_v19  ;;  %v2413_v19 = vshrl.u32 %v2247_v8, 16  ;;  %v1656_v8 = vsel %vm5996_vm15, %v5059_v7, %v1655_v54  ;;  %v2441_v54 = vrot.slane %v2440_v33, 4  ;;  %v1664_v7 = vrot.slane %v1662_v42, 4 }
  0xf1   : > { %v1737_v18 = vunpack.c.l.b16 %v1656_v8  ;;  %v2461_v8 = vshrl.u32 %v2253_v29, 16 }
  0xf2   : > { %5041 = vmatmul.msk.bf16.gmra.mxu1 %vm1198_vm12, %v5356_v32  ;;  %v2415_v23 = vrot.slane %v2413_v19, 4  ;;  %v1736_v32 = vunpack.c.l.b16 %v1652_v22  ;;  %v1738_v19 = vunpack.c.l.b16 %v1659_v40  ;;  %v2429_v22 = vrot.slane %v2427_v60, 5 }
  0xf3   : > { %v6119_v35 = vpop.f32.mrf.mxu3 }
  0xf4   : > { %v2416_v41 = vor.u32 %v2415_v23, %v2411_v28  ;;  %v1762_v49 = vpack.c.b16 %v1736_v32, %v1735_v30  ;;  %v6130_v34 = vpop.f32.mrf.mxu0  ;;  %v1763_v30 = vpack.c.b16 %v1738_v19, %v1737_v18  ;;  %v2430_v32 = vor.u32 %v2429_v22, %v2426_v21 }
  0xf5   : > { %v2463_v21 = vrot.slane %v2461_v8, 4 }
  0xf6   : > { %v2417_v25 = vrot.slane %v2416_v41, 4  ;;  %v2431_v51 = vrot.slane %v2430_v32, 4 }
  0xf8   : > { %v2436_v52 = vsel %vm5593_vm11, %v2431_v51, %v2435_v24  ;;  %v2254_v24 = vld [vmem:[#allocation2 + $0x68] sm:$0x1]  ;;  %v5375_v51 = vld [vmem:[#allocation2 + $0x60] sm:$0xff] }
  0xf9   : > { %v2677_v40 = vunpack.c.l.b16 %v2436_v52  ;;  %v2467_v32 = vshll.u32 %v2254_v24, 16 }
  0xfa   : > { %5171 = vmatmul.msk.bf16.gmra.mxu0 %vm1198_vm12, %v2700_v56  ;;  %v5373_v56 = vld [vmem:[#allocation2 + $0x48] sm:$0xff] }
  0xfb   : > { %5074 = vmatmul.msk.bf16.gmra.mxu2 %vm1198_vm12, %v1761_v59  ;;  %v6138_v5 = vpop.f32.mrf.mxu3 }
  0xfc   : > { %v6143_v41 = vpop.f32.mrf.mxu0 }
 0x100   : > { %5155 = vmatmul.msk.bf16.gmra.mxu3 %vm1198_vm12, %v5372_v3  ;;  %v2422_v3 = vsel %vm5593_vm11, %v2417_v25, %v2421_v47  ;;  %v2252_v25 = vld [vmem:[#allocation2 + $0x60] sm:$0xf]  ;;  %v5060_v47 = vrot.slane %v1567_v44, 9 }
 0x101   : > { %v2676_v17 = vunpack.c.l.b16 %v2422_v3  ;;  %v2448_v62 = vshrl.u32 %v2252_v25, 16  ;;  %v2451_v63 = vshll.u32 %v2252_v25, 16  ;;  %v2469_v25 = vrot.slane %v2467_v32, 5 }
 0x102   : > { %5042 = vmatmul.msk.bf16.gmra.mxu1 %vm1198_vm12, %v5357_v43  ;;  %v6122_v59 = vpop.f32.mrf.mxu1  ;;  %v6135_v43 = vpop.f32.mrf.mxu2 }
 0x103   : > { %v2702_v23 = vpack.c.b16 %v2676_v17, %v2675_v2  ;;  %v2450_v48 = vrot.slane %v2448_v62, 4  ;;  %v2453_v15 = vrot.slane %v2451_v63, 5  ;;  %v2256_v62 = vld [vmem:[#allocation2 + $0x70] sm:$0xf] }
 0x10a   : > { %5172 = vmatmul.msk.bf16.gmra.mxu0 %vm1198_vm12, %v2701_v39  ;;  %v6140_v28 = vpop.f32.mrf.mxu1  ;;  %v2443_v39 = vshll.u32 %v2251_v27, 16 }
 0x10b   : > { %5075 = vmatmul.msk.bf16.gmra.mxu2 %vm1198_vm12, %v1762_v49 }
 0x10c   : > { %v2445_v45 = vrot.slane %v2443_v39, 5 }
 0x10e   : > { %v6146_v49 = vpop.f32.mrf.mxu2  ;;  %v2446_v1 = vsel %vm5593_vm11, %v2441_v54, %v2445_v45 }
 0x10f   : > { %v2678_v60 = vunpack.c.l.b16 %v2446_v1  ;;  %v5360_v1 = vld [vmem:[#allocation2 + $0x60] sm:$0xff] }
 0x110   : > { %5156 = vmatmul.msk.bf16.gmra.mxu3 %vm1198_vm12, %v5373_v56  ;;  %v1665_v56 = vrot.slane %v5954_v46, 5  ;;  %v1663_v46 = vsel %vm5996_vm15, %v5060_v47, %v1662_v42  ;;  %v5420_v42 = vld [vmem:[#allocation2 + $0x64] sm:$0xf]  ;;  %v2255_v47 = vld [vmem:[#allocation2 + $0x6c] sm:$0xf] }
 0x111   : > { %v1739_v17 = vunpack.c.l.b16 %v1663_v46  ;;  %v2703_v16 = vpack.c.b16 %v2678_v60, %v2677_v40  ;;  %v1669_v44 = vrot.slane %v5420_v42, 5  ;;  %v2475_v8 = vshll.u32 %v2255_v47, 16 }
 0x112   : > { %5043 = vmatmul.msk.bf16.gmra.mxu1 %vm1198_vm12, %v5358_v4  ;;  %v6150_v38 = vpop.f32.mrf.mxu3  ;;  %v2457_v4 = vshll.u32 %v2253_v29, 16  ;;  %v1666_v14 = vsel %vm5996_vm15, %v1664_v7, %v1665_v56  ;;  %v5421_v7 = vld [vmem:[#allocation2 + $0x68] sm:$0x1]  ;;  %v2481_v60 = vshll.u32 %v2256_v62, 16 }
 0x113   : > { %v1740_v18 = vunpack.c.l.b16 %v1666_v14  ;;  %v1672_v56 = vrot.slane %v5421_v7, 5 }
 0x114   : > { %v2459_v19 = vrot.slane %v2457_v4, 5  ;;  %v2472_v4 = vshrl.u32 %v2255_v47, 16  ;;  %v2483_v32 = vrot.slane %v2481_v60, 5  ;;  %v2259_v60 = vld [vmem:[#allocation2 + $0x7c] sm:$0xf] }
 0x115   : > { %v1764_v27 = vpack.c.b16 %v1740_v18, %v1739_v17 }
 0x116   : > { %v6166_v22 = vpop.f32.mrf.mxu2 }
 0x117   : > { %v6164_v2 = vpop.f32.mrf.mxu0 }
 0x11a   : > { %5173 = vmatmul.msk.bf16.gmra.mxu0 %vm1198_vm12, %v2702_v23  ;;  %v2454_v23 = vor.u32 %v2453_v15, %v2450_v48  ;;  %v6170_v39 = vpop.f32.mrf.mxu3  ;;  %v2485_v48 = vshrl.u32 %v2256_v62, 16 }
 0x11b   : > { %5076 = vmatmul.msk.bf16.gmra.mxu2 %vm1198_vm12, %v1763_v30  ;;  %v2464_v30 = vor.u32 %v2463_v21, %v2459_v19  ;;  %7043 = vst [vmem:[#allocation3_spill] sm:$0xff] %v6170_v39 }
 0x11c   : > { %v2455_v54 = vrot.slane %v2454_v23, 4  ;;  %v2487_v42 = vrot.slane %v2485_v48, 4  ;;  %v5423_v48 = vld [vmem:[#allocation2 + $0x74] sm:$0x1] }
 0x11d   : > { %v2465_v45 = vrot.slane %v2464_v30, 4  ;;  %v2257_v30 = vld [vmem:[#allocation2 + $0x74] sm:$0x1] }
 0x11e   : > { %v2460_v46 = vsel %vm5593_vm11, %v2455_v54, %v2459_v19  ;;  %v2477_v19 = vrot.slane %v2475_v8, 5  ;;  %v2491_v54 = vshll.u32 %v2257_v30, 16  ;;  %v2488_v47 = vor.u32 %v2487_v42, %v2483_v32  ;;  %v5376_v8 = vld [vmem:[#allocation2 + $0x6c] sm:$0xff] }
 0x11f   : > { %v6157_v3 = vpop.f32.mrf.mxu1  ;;  %v6174_v63 = vpop.f32.mrf.mxu0  ;;  %v2470_v14 = vsel %vm5593_vm11, %v2465_v45, %v2469_v25  ;;  %v2679_v18 = vunpack.c.l.b16 %v2460_v46  ;;  %v2505_v42 = vshll.u32 %v2259_v60, 16 }
 0x120   : > { %5157 = vmatmul.msk.bf16.gmra.mxu3 %vm1198_vm12, %v5374_v50  ;;  %v1568_v50 = vld [vmem:[#allocation2 + $0x60] sm:$0xe]  ;;  %v2680_v21 = vunpack.c.l.b16 %v2470_v14  ;;  %v2489_v46 = vrot.slane %v2488_v47, 4  ;;  %v2258_v14 = vld [vmem:[#allocation2 + $0x78] sm:$0xf]  ;;  %v2509_v47 = vshrl.u32 %v2259_v60, 16 }
 0x121   : > { %v5061_v29 = vrot.slane %v1568_v50, 9  ;;  %v2499_v30 = vshll.u32 %v2258_v14, 16 }
 0x122   : > { %5044 = vmatmul.msk.bf16.gmra.mxu1 %vm1198_vm12, %v5359_v61  ;;  %v1671_v61 = vrot.slane %v1669_v44, 4  ;;  %v2704_v50 = vpack.c.b16 %v2680_v21, %v2679_v18 }
 0x123   : > { %v1670_v15 = vsel %vm5996_vm15, %v5061_v29, %v1669_v44 }
 0x124   : > { %v1673_v17 = vsel %vm5996_vm15, %v1671_v61, %v1672_v56  ;;  %v5422_v56 = vld [vmem:[#allocation2 + $0x70] sm:$0xf]  ;;  %v1569_v61 = vld [vmem:[#allocation2 + $0x6c] sm:$0xe] }
 0x125   : > { %v1742_v23 = vunpack.c.l.b16 %v1673_v17  ;;  %v1676_v29 = vrot.slane %v5422_v56, 5  ;;  %v5062_v17 = vrot.slane %v1569_v61, 9 }
 0x127   : > { %v6168_v33 = vpop.f32.mrf.mxu1  ;;  %v1678_v18 = vrot.slane %v1676_v29, 4 }
 0x12a   : > { %5174 = vmatmul.msk.bf16.gmra.mxu0 %vm1198_vm12, %v2703_v16  ;;  %v2474_v16 = vrot.slane %v2472_v4, 4  ;;  %v2493_v4 = vrot.slane %v2491_v54, 5 }
 0x12b   : > { %5077 = vmatmul.msk.bf16.gmra.mxu2 %vm1198_vm12, %v1764_v27  ;;  %v1741_v27 = vunpack.c.l.b16 %v1670_v15  ;;  %v1679_v15 = vrot.slane %v5423_v48, 5 }
 0x12c   : > { %v2478_v44 = vor.u32 %v2477_v19, %v2474_v16 }
 0x12d   : > { %v1765_v25 = vpack.c.b16 %v1742_v23, %v1741_v27  ;;  %v5361_v27 = vld [vmem:[#allocation2 + $0x6c] sm:$0xff]  ;;  %v2496_v23 = vshrl.u32 %v2258_v14, 16  ;;  %v2501_v14 = vrot.slane %v2499_v30, 5 }
 0x12e   : > { %v6176_v52 = vpop.f32.mrf.mxu2 }
 0x12f   : > { %v1480_v40 = vpop.f32.mrf.mxu1 }
 0x130   : > { %5158 = vmatmul.msk.bf16.gmra.mxu3 %vm1198_vm12, %v5375_v51  ;;  %v1481_v21 = vadd.f32 %v1480_v40, %v6095_v57  ;;  %v1677_v57 = vsel %vm5996_vm15, %v5062_v17, %v1676_v29  ;;  %v1680_v40 = vsel %vm5996_vm15, %v1678_v18, %v1679_v15 }
 0x132   : > { %5045 = vmatmul.msk.bf16.gmra.mxu1 %vm1198_vm12, %v5360_v1  ;;  %v2479_v1 = vrot.slane %v2478_v44, 4  ;;  %v2494_v44 = vsel %vm5593_vm11, %v2489_v46, %v2493_v4  ;;  %v1744_v4 = vunpack.c.l.b16 %v1680_v40  ;;  %v2511_v46 = vrot.slane %v2509_v47, 4 }
 0x133   : > { %v6187_v24 = vpop.f32.mrf.mxu3  ;;  %v2682_v56 = vunpack.c.l.b16 %v2494_v44 }
 0x134   : > { %7044 = vst [vmem:[#allocation4_spill] sm:$0xff] %v6187_v24  ;;  %v2484_v16 = vsel %vm5593_vm11, %v2479_v1, %v2483_v32  ;;  %v2498_v1 = vrot.slane %v2496_v23, 4 }
 0x135   : > { %v2681_v32 = vunpack.c.l.b16 %v2484_v16 }
 0x136   : > { %v6190_v51 = vpop.f32.mrf.mxu2  ;;  %v2502_v17 = vor.u32 %v2501_v14, %v2498_v1 }
 0x137   : > { %v6192_v45 = vpop.f32.mrf.mxu0  ;;  %v1482_v7 = vpop.f32.mrf.mxu1 }
 0x138   : > { %v1483_v60 = vadd.f32 %v1482_v7, %v6114_v37  ;;  %v5377_v7 = vld [vmem:[#allocation2 + $0x78] sm:$0xff]  ;;  %v2503_v40 = vrot.slane %v2502_v17, 4 }
 0x13a   : > { %5175 = vmatmul.msk.bf16.gmra.mxu0 %vm1198_vm12, %v2704_v50 }
 0x13b   : > { %v6195_v62 = vpop.f32.mrf.mxu3  ;;  %5078 = vmatmul.msk.bf16.gmra.mxu2 %vm1198_vm12, %v1765_v25 }
 0x13c   : > { %7045 = vst [vmem:[#allocation5_spill] sm:$0xff] %v6195_v62  ;;  %v1743_v62 = vunpack.c.l.b16 %v1677_v57  ;;  %v2262_v57 = vld [vmem:[#allocation2 + $0x88] sm:$0xf] }
 0x13e   : > { %v1833_v19 = vpop.f32.mrf.mxu2  ;;  %v1766_v18 = vpack.c.b16 %v1744_v4, %v1743_v62 }
 0x13f   : > { %v6201_v50 = vpop.f32.mrf.mxu0  ;;  %v1913_v54 = vadd.f32 %v1833_v19, %v1481_v21  ;;  %v1485_v25 = vpop.f32.mrf.mxu1  ;;  %v2260_v21 = vld [vmem:[#allocation2 + $0x80] sm:$0x1]  ;;  %v2705_v19 = vpack.c.b16 %v2682_v56, %v2681_v32 }
 0x140   : > { %5159 = vmatmul.msk.bf16.gmra.mxu3 %vm1198_vm12, %v5376_v8  ;;  %v2507_v8 = vrot.slane %v2505_v42, 5  ;;  %v2515_v44 = vshll.u32 %v2260_v21, 16  ;;  %v1570_v42 = vld [vmem:[#allocation2 + $0x78] sm:$0xe]  ;;  %v5425_v56 = vld [vmem:[#allocation2 + $0x80] sm:$0x1] }
 0x141   : > { %v5063_v1 = vrot.slane %v1570_v42, 9  ;;  %v2533_v21 = vshrl.u32 %v2262_v57, 16 }
 0x142   : > { %5046 = vmatmul.msk.bf16.gmra.mxu1 %vm1198_vm12, %v5361_v27  ;;  %v2512_v16 = vor.u32 %v2511_v46, %v2507_v8  ;;  %v5424_v27 = vld [vmem:[#allocation2 + $0x7c] sm:$0xf]  ;;  %v2517_v62 = vrot.slane %v2515_v44, 5  ;;  %v2529_v46 = vshll.u32 %v2262_v57, 16  ;;  %v2508_v17 = vsel %vm5593_vm11, %v2503_v40, %v2507_v8 }
 0x143   : > { %v2119_v61 = vpop.f32.mrf.mxu3  ;;  %v1683_v23 = vrot.slane %v5424_v27, 5  ;;  %v2535_v57 = vrot.slane %v2533_v21, 4  ;;  %v2683_v8 = vunpack.c.l.b16 %v2508_v17 }
 0x144   : > { %v2199_v48 = vadd.f32 %v2119_v61, %v1913_v54  ;;  %v2261_v54 = vld [vmem:[#allocation2 + $0x84] sm:$0xf]  ;;  %v2513_v32 = vrot.slane %v2512_v16, 4  ;;  %v1686_v61 = vrot.slane %v5425_v56, 5 }
 0x145   : > { %v1685_v14 = vrot.slane %v1683_v23, 4  ;;  %v2520_v4 = vshrl.u32 %v2261_v54, 16 }
 0x146   : > { %v1835_v29 = vpop.f32.mrf.mxu2 }
 0x147   : > { %v2773_v24 = vpop.f32.mrf.mxu0  ;;  %v1914_v15 = vadd.f32 %v1835_v29, %v1483_v60  ;;  %v1487_v39 = vpop.f32.mrf.mxu1  ;;  %v2522_v42 = vrot.slane %v2520_v4, 4 }
 0x148   : > { %v6212_v30 = vadd.f32 %v2773_v24, %v2199_v48  ;;  %v1486_v24 = vadd.f32 %v1485_v25, %v6130_v34  ;;  %v2523_v48 = vshll.u32 %v2261_v54, 16  ;;  %v1684_v34 = vsel %vm5996_vm15, %v5063_v1, %v1683_v23 }
 0x149   : > { %v1687_v25 = vsel %vm5996_vm15, %v1685_v14, %v1686_v61  ;;  %v1488_v23 = vadd.f32 %v1487_v39, %v6143_v41 }
 0x14a   : > { %5176 = vmatmul.msk.bf16.gmra.mxu0 %vm1198_vm12, %v2705_v19  ;;  %v5362_v19 = vld [vmem:[#allocation2 + $0x78] sm:$0xff]  ;;  %v2525_v54 = vrot.slane %v2523_v48, 5  ;;  %v1746_v56 = vunpack.c.l.b16 %v1687_v25  ;;  %v5378_v25 = vld [vmem:[#allocation2 + $0x84] sm:$0xff] }
 0x14b   : > { %v2121_v47 = vpop.f32.mrf.mxu3  ;;  %5079 = vmatmul.msk.bf16.gmra.mxu2 %vm1198_vm12, %v1766_v18 }
 0x14c   : > { %v2200_v37 = vadd.f32 %v2121_v47, %v1914_v15  ;;  %v2518_v15 = vsel %vm5593_vm11, %v2513_v32, %v2517_v62  ;;  %v2531_v47 = vrot.slane %v2529_v46, 5  ;;  %v2263_v32 = vld [vmem:[#allocation2 + $0x8c] sm:$0x1]  ;;  %v2526_v1 = vor.u32 %v2525_v54, %v2522_v42  ;;  %v2264_v42 = vld [vmem:[#allocation2 + $0x90] sm:$0xf] }
 0x14d   : > { %v2539_v61 = vshll.u32 %v2263_v32, 16  ;;  %v2265_v54 = vld [vmem:[#allocation2 + $0x94] sm:$0xf] }
 0x14e   : > { %v1838_v60 = vpop.f32.mrf.mxu2 }
 0x14f   : > { %v2775_v29 = vpop.f32.mrf.mxu0  ;;  %v1915_v18 = vadd.f32 %v1838_v60, %v1486_v24  ;;  %v1490_v16 = vpop.f32.mrf.mxu1  ;;  %v2536_v24 = vor.u32 %v2535_v57, %v2531_v47  ;;  %v5427_v57 = vld [vmem:[#allocation2 + $0x8c] sm:$0x1] }
 0x150   : > { %5160 = vmatmul.msk.bf16.gmra.mxu3 %vm1198_vm12, %v5377_v7  ;;  %v1491_v44 = vadd.f32 %v1490_v16, %v6164_v2  ;;  %v6227_v27 = vadd.f32 %v2775_v29, %v2200_v37  ;;  %v2684_v7 = vunpack.c.l.b16 %v2518_v15  ;;  %v1745_v2 = vunpack.c.l.b16 %v1684_v34  ;;  %v5426_v29 = vld [vmem:[#allocation2 + $0x88] sm:$0xf]  ;;  %v1571_v34 = vld [vmem:[#allocation2 + $0x84] sm:$0xe] }
 0x151   : > { %v1690_v17 = vrot.slane %v5426_v29, 5  ;;  %v2527_v15 = vrot.slane %v2526_v1, 4  ;;  %v2541_v16 = vrot.slane %v2539_v61, 5  ;;  %v2553_v1 = vshll.u32 %v2265_v54, 16 }
 0x152   : > { %5047 = vmatmul.msk.bf16.gmra.mxu1 %vm1198_vm12, %v5362_v19  ;;  %v2706_v37 = vpack.c.b16 %v2684_v7, %v2683_v8  ;;  %v1767_v46 = vpack.c.b16 %v1746_v56, %v1745_v2  ;;  %v1693_v8 = vrot.slane %v5427_v57, 5  ;;  %v5363_v2 = vld [vmem:[#allocation2 + $0x84] sm:$0xff]  ;;  %v2544_v56 = vshrl.u32 %v2264_v42, 16 }
 0x153   : > { %v2124_v40 = vpop.f32.mrf.mxu3  ;;  %v1692_v7 = vrot.slane %v1690_v17, 4 }
 0x154   : > { %v2201_v62 = vadd.f32 %v2124_v40, %v1915_v18  ;;  %v2537_v18 = vrot.slane %v2536_v24, 4  ;;  %v2532_v40 = vsel %vm5593_vm11, %v2527_v15, %v2531_v47  ;;  %v2557_v24 = vshrl.u32 %v2265_v54, 16 }
 0x155   : > { %v1694_v47 = vsel %vm5996_vm15, %v1692_v7, %v1693_v8 }
 0x156   : > { %v1840_v14 = vpop.f32.mrf.mxu2  ;;  %v2542_v32 = vsel %vm5593_vm11, %v2537_v18, %v2541_v16  ;;  %v2546_v18 = vrot.slane %v2544_v56, 4 }
 0x157   : > { %v2778_v4 = vpop.f32.mrf.mxu0  ;;  %v1916_v48 = vadd.f32 %v1840_v14, %v1488_v23  ;;  %v1492_v21 = vpop.f32.mrf.mxu1  ;;  %v2547_v23 = vshll.u32 %v2264_v42, 16  ;;  %v2686_v29 = vunpack.c.l.b16 %v2542_v32  ;;  %v2266_v42 = vld [vmem:[#allocation2 + $0x98] sm:$0x1] }
 0x158   : > { %v1493_v60 = vadd.f32 %v1492_v21, %v6174_v63  ;;  %v6232_v19 = vadd.f32 %v2778_v4, %v2201_v62  ;;  %v5064_v63 = vrot.slane %v1571_v34, 9  ;;  %v2685_v21 = vunpack.c.l.b16 %v2532_v40 }
 0x159   : > { %v2549_v16 = vrot.slane %v2547_v23, 5  ;;  %v2555_v34 = vrot.slane %v2553_v1, 5  ;;  %v2563_v8 = vshll.u32 %v2266_v42, 16  ;;  %v2267_v23 = vld [vmem:[#allocation2 + $0x9c] sm:$0xf] }
 0x15a   : > { %5177 = vmatmul.msk.bf16.gmra.mxu0 %vm1198_vm12, %v2706_v37  ;;  %v2707_v54 = vpack.c.b16 %v2686_v29, %v2685_v21  ;;  %v2268_v1 = vld [vmem:[#allocation2 + $0xa0] sm:$0xf]  ;;  %v2568_v29 = vshrl.u32 %v2267_v23, 16 }
 0x15b   : > { %v2126_v41 = vpop.f32.mrf.mxu3  ;;  %5080 = vmatmul.msk.bf16.gmra.mxu2 %vm1198_vm12, %v1767_v46  ;;  %v2550_v57 = vor.u32 %v2549_v16, %v2546_v18  ;;  %v5429_v18 = vld [vmem:[#allocation2 + $0x98] sm:$0x1] }
 0x15c   : > { %v2202_v39 = vadd.f32 %v2126_v41, %v1916_v48  ;;  %v1691_v48 = vsel %vm5996_vm15, %v5064_v63, %v1690_v17  ;;  %v1700_v16 = vrot.slane %v5429_v18, 5 }
 0x15e   : > { %v1843_v62 = vpop.f32.mrf.mxu2 }
 0x15f   : > { %v2780_v61 = vpop.f32.mrf.mxu0  ;;  %v1917_v37 = vadd.f32 %v1843_v62, %v1491_v44  ;;  %v1495_v14 = vpop.f32.mrf.mxu1  ;;  %v2559_v44 = vrot.slane %v2557_v24, 4 }
 0x160   : > { %5161 = vmatmul.msk.bf16.gmra.mxu3 %vm1198_vm12, %v5378_v25  ;;  %v1496_v4 = vadd.f32 %v1495_v14, %v6192_v45  ;;  %v6246_v46 = vadd.f32 %v2780_v61, %v2202_v39  ;;  %v1747_v25 = vunpack.c.l.b16 %v1691_v48  ;;  %v1748_v45 = vunpack.c.l.b16 %v1694_v47  ;;  %v1572_v61 = vld [vmem:[#allocation2 + $0x90] sm:$0xe] }
 0x161   : > { %v2560_v63 = vor.u32 %v2559_v44, %v2555_v34  ;;  %v2551_v14 = vrot.slane %v2550_v57, 4  ;;  %v2565_v47 = vrot.slane %v2563_v8, 5  ;;  %v5065_v44 = vrot.slane %v1572_v61, 9 }
 0x162   : > { %5048 = vmatmul.msk.bf16.gmra.mxu1 %vm1198_vm12, %v5363_v2  ;;  %v1768_v40 = vpack.c.b16 %v1748_v45, %v1747_v25  ;;  %v5428_v2 = vld [vmem:[#allocation2 + $0x94] sm:$0xf] }
 0x163   : > { %v2129_v15 = vpop.f32.mrf.mxu3  ;;  %v1697_v56 = vrot.slane %v5428_v2, 5  ;;  %v2561_v48 = vrot.slane %v2560_v63, 4  ;;  %v2556_v45 = vsel %vm5593_vm11, %v2551_v14, %v2555_v34 }
 0x164   : > { %v2203_v41 = vadd.f32 %v2129_v15, %v1917_v37  ;;  %v2571_v15 = vshll.u32 %v2267_v23, 16  ;;  %v2687_v61 = vunpack.c.l.b16 %v2556_v45  ;;  %v5430_v45 = vld [vmem:[#allocation2 + $0xa0] sm:$0xf] }
 0x165   : > { %v1699_v25 = vrot.slane %v1697_v56, 4  ;;  %v2566_v42 = vsel %vm5593_vm11, %v2561_v48, %v2565_v47 }
 0x166   : > { %v1845_v17 = vpop.f32.mrf.mxu2 }
 0x167   : > { %v2783_v39 = vpop.f32.mrf.mxu0  ;;  %v1918_v7 = vadd.f32 %v1845_v17, %v1493_v60  ;;  %v1497_v32 = vpop.f32.mrf.mxu1  ;;  %v5379_v60 = vld [vmem:[#allocation2 + $0x90] sm:$0xff]  ;;  %v1701_v2 = vsel %vm5996_vm15, %v1699_v25, %v1700_v16 }
 0x168   : > { %v1498_v62 = vadd.f32 %v1497_v32, %v6201_v50  ;;  %v6250_v24 = vadd.f32 %v2783_v39, %v2203_v41  ;;  %v2577_v50 = vshll.u32 %v2268_v1, 16  ;;  %v2581_v41 = vshrl.u32 %v2268_v1, 16  ;;  %v5364_v17 = vld [vmem:[#allocation2 + $0x90] sm:$0xff]  ;;  %v2269_v1 = vld [vmem:[#allocation2 + $0xa4] sm:$0x1] }
 0x169   : > { %v2570_v39 = vrot.slane %v2568_v29, 4  ;;  %v1698_v32 = vsel %vm5996_vm15, %v5065_v44, %v1697_v56  ;;  %v1750_v47 = vunpack.c.l.b16 %v1701_v2 }
 0x16a   : > { %5178 = vmatmul.msk.bf16.gmra.mxu0 %vm1198_vm12, %v2707_v54  ;;  %v2583_v34 = vrot.slane %v2581_v41, 4  ;;  %v1749_v48 = vunpack.c.l.b16 %v1698_v32  ;;  %v5431_v32 = vld [vmem:[#allocation2 + $0xa4] sm:$0x1] }
 0x16b   : > { %v2131_v37 = vpop.f32.mrf.mxu3  ;;  %5081 = vmatmul.msk.bf16.gmra.mxu2 %vm1198_vm12, %v1768_v40  ;;  %v2579_v40 = vrot.slane %v2577_v50, 5  ;;  %v1707_v2 = vrot.slane %v5431_v32, 5 }
 0x16c   : > { %v2204_v21 = vadd.f32 %v2131_v37, %v1918_v7  ;;  %v2573_v7 = vrot.slane %v2571_v15, 5  ;;  %v2688_v37 = vunpack.c.l.b16 %v2566_v42  ;;  %v2587_v15 = vshll.u32 %v2269_v1, 16 }
 0x16d   : > { %v2584_v29 = vor.u32 %v2583_v34, %v2579_v40  ;;  %v1769_v16 = vpack.c.b16 %v1750_v47, %v1749_v48  ;;  %v1704_v42 = vrot.slane %v5430_v45, 5 }
 0x16e   : > { %v1848_v54 = vpop.f32.mrf.mxu2  ;;  %v2708_v50 = vpack.c.b16 %v2688_v37, %v2687_v61 }
 0x16f   : > { %v2785_v57 = vpop.f32.mrf.mxu0  ;;  %v1919_v63 = vadd.f32 %v1848_v54, %v1496_v4  ;;  %v1500_v8 = vpop.f32.mrf.mxu1  ;;  %v2585_v41 = vrot.slane %v2584_v29, 4  ;;  %v2589_v54 = vrot.slane %v2587_v15, 5  ;;  %v269_v29 = vld [vmem:[%s5525_s19 + $0x78] sm:$0xf] }
 0x170   : > { %5162 = vmatmul.msk.bf16.gmra.mxu3 %vm1198_vm12, %v5379_v60  ;;  %v6263_v23 = vadd.f32 %v2785_v57, %v2204_v21  ;;  %v2574_v60 = vor.u32 %v2573_v7, %v2570_v39  ;;  %v2270_v39 = vld [vmem:[#allocation2 + $0xa8] sm:$0xf]  ;;  %v2271_v7 = vld [vmem:[#allocation2 + $0xac] sm:$0xf] }
 0x171   : > { %v2590_v61 = vsel %vm5593_vm11, %v2585_v41, %v2589_v54  ;;  %v2592_v48 = vshrl.u32 %v2270_v39, 16  ;;  %v2595_v47 = vshll.u32 %v2270_v39, 16  ;;  %v270_v41 = vld [vmem:[%s5525_s19 + $0x7c] sm:$0xf] }
 0x172   : > { %7046 = vst [vmem:[#allocation6_spill] sm:$0xff] %v6263_v23  ;;  %5049 = vmatmul.msk.bf16.gmra.mxu1 %vm1198_vm12, %v5364_v17  ;;  %v2575_v25 = vrot.slane %v2574_v60, 4  ;;  %v1573_v17 = vld [vmem:[#allocation2 + $0x9c] sm:$0xe]  ;;  %v2601_v60 = vshll.u32 %v2271_v7, 16  ;;  %v2690_v54 = vunpack.c.l.b16 %v2590_v61 }
 0x173   : > { %v2134_v14 = vpop.f32.mrf.mxu3  ;;  %v5066_v37 = vrot.slane %v1573_v17, 9  ;;  %v2594_v17 = vrot.slane %v2592_v48, 4  ;;  %v705_v23 = vld [vmem:[#allocation2 + $0xc0] sm:$0xf] }
 0x174   : > { %v2205_v4 = vadd.f32 %v2134_v14, %v1919_v63  ;;  %v2580_v1 = vsel %vm5593_vm11, %v2575_v25, %v2579_v40  ;;  %v1706_v14 = vrot.slane %v1704_v42, 4  ;;  %v6286_v39 = vrot.slane %v2601_v60, 5 }
 0x175   : > { %v2689_v40 = vunpack.c.l.b16 %v2580_v1  ;;  %v533_v1 = vshll.u32 %v269_v29, 16 }
 0x176   : > { %v1850_v56 = vpop.f32.mrf.mxu2 }
 0x177   : > { %v2788_v18 = vpop.f32.mrf.mxu0  ;;  %v1920_v44 = vadd.f32 %v1850_v56, %v1498_v62  ;;  %v1502_v21 = vpop.f32.mrf.mxu1  ;;  %v5380_v62 = vld [vmem:[#allocation2 + $0x9c] sm:$0xff]  ;;  %v2605_v56 = vshrl.u32 %v2271_v7, 16 }
 0x178   : > { %v6266_v57 = vadd.f32 %v2788_v18, %v2205_v4  ;;  %v1501_v4 = vadd.f32 %v1500_v8, %v6072_v11  ;;  %v530_v18 = vshrl.u32 %v269_v29, 16  ;;  %v1705_v11 = vsel %vm5996_vm15, %v5066_v37, %v1704_v42  ;;  %v2272_v42 = vld [vmem:[#allocation2 + $0xb0] sm:$0x1] }
 0x179   : > { %v1708_v8 = vsel %vm5996_vm15, %v1706_v14, %v1707_v2  ;;  %v2607_v32 = vrot.slane %v2605_v56, 4  ;;  %v2709_v37 = vpack.c.b16 %v2690_v54, %v2689_v40  ;;  %v1503_v2 = vadd.f32 %v1502_v21, %v6076_v31  ;;  %v709_v54 = vld [vmem:[#allocation2 + $0xc8] sm:$0x1]  ;;  %v2273_v21 = vld [vmem:[#allocation2 + $0xb4] sm:$0xf] }
 0x17a   : > { %7047 = vst [vmem:[#allocation7_spill] sm:$0xff] %v6266_v57  ;;  %5179 = vmatmul.msk.bf16.gmra.mxu0 %vm1198_vm12, %v2708_v50  ;;  %v5365_v50 = vld [vmem:[#allocation2 + $0x9c] sm:$0xff]  ;;  %v1752_v57 = vunpack.c.l.b16 %v1708_v8  ;;  %v541_v56 = vshll.u32 %v270_v41, 16  ;;  %v5432_v8 = vld [vmem:[#allocation2 + $0xac] sm:$0xf] }
 0x17b   : > { %v2136_v63 = vpop.f32.mrf.mxu3  ;;  %5082 = vmatmul.msk.bf16.gmra.mxu2 %vm1198_vm12, %v1769_v16  ;;  %v2608_v60 = vor.u32 %v2607_v32, %v6286_v39  ;;  %v1711_v31 = vrot.slane %v5432_v8, 5 }
 0x17c   : > { %v2206_v34 = vadd.f32 %v2136_v63, %v1920_v44  ;;  %v2597_v63 = vrot.slane %v2595_v47, 5 }
 0x17e   : > { %v1853_v15 = vpop.f32.mrf.mxu2 }
 0x17f   : > { %v2790_v44 = vpop.f32.mrf.mxu0  ;;  %v1921_v16 = vadd.f32 %v1853_v15, %v1501_v4  ;;  %v6277_v25 = vpop.f32.mrf.mxu1  ;;  %v538_v4 = vshrl.u32 %v270_v41, 16  ;;  %v1751_v15 = vunpack.c.l.b16 %v1705_v11 }
 0x180   : > { %5163 = vmatmul.msk.bf16.gmra.mxu3 %vm1198_vm12, %v5380_v62  ;;  %v6284_v45 = vadd.f32 %v2790_v44, %v2206_v34  ;;  %v532_v62 = vrot.slane %v530_v18, 7  ;;  %v2598_v34 = vor.u32 %v2597_v63, %v2594_v17  ;;  %v2611_v44 = vshll.u32 %v2272_v42, 16 }
 0x181   : > { %v540_v48 = vrot.slane %v538_v4, 7  ;;  %v2609_v4 = vrot.slane %v2608_v60, 4  ;;  %v1714_v42 = vrot.slane %v5433_v9, 5 }
 0x182   : > { %7048 = vst [vmem:[#allocation8_spill] sm:$0xff] %v6284_v45  ;;  %5050 = vmatmul.msk.bf16.gmra.mxu1 %vm1198_vm12, %v5365_v50  ;;  %v535_v14 = vor.u32 %v533_v1, %v532_v62  ;;  %v536_v50 = vrot.slane %v532_v62, 4  ;;  %v1770_v45 = vpack.c.b16 %v1752_v57, %v1751_v15  ;;  %v2599_v32 = vrot.slane %v2598_v34, 4  ;;  %v2274_v62 = vld [vmem:[#allocation2 + $0xb8] sm:$0xf]  ;;  %v5381_v1 = vld [vmem:[#allocation2 + $0xa8] sm:$0xff] }
 0x183   : > { %v2139_v7 = vpop.f32.mrf.mxu3  ;;  %v545_v11 = vrot.slane %v540_v48, 4  ;;  %v543_v17 = vor.u32 %v541_v56, %v540_v48  ;;  %v2616_v15 = vshrl.u32 %v2273_v21, 16  ;;  %v1506_v34 = vadd.f32 %v6277_v25, %v6092_v53 }
 0x184   : > { %v2207_v61 = vadd.f32 %v2139_v7, %v1921_v16  ;;  %v706_v40 = vsel %vm5552_vm8, %v535_v14, %v705_v23  ;;  %v1574_v7 = vld [vmem:[#allocation2 + $0xa8] sm:$0xe]  ;;  %v2619_v14 = vshll.u32 %v2273_v21, 16  ;;  %v2625_v10 = vshll.u32 %v2274_v62, 16 }
 0x185   : > { %707 = vst [vmem:[#allocation2 + $0xc0] sm:$0xf] %v706_v40  ;;  %v710_v41 = vsel %vm5537_vm6, %v545_v11, %v709_v54  ;;  %v544_v13 = vsel %vm5544_vm7, %v536_v50, %v543_v17  ;;  %v2629_v48 = vshrl.u32 %v2274_v62, 16  ;;  %v5366_v50 = vld [vmem:[#allocation2 + $0xa8] sm:$0xff] }
 0x186   : > { %v1855_v47 = vpop.f32.mrf.mxu2  ;;  %711 = vst [vmem:[#allocation2 + $0xc8] sm:$0x1] %v710_v41  ;;  %v2621_v11 = vrot.slane %v2619_v14, 5  ;;  %v2627_v54 = vrot.slane %v2625_v10, 5 }
 0x187   : > { %v2793_v18 = vpop.f32.mrf.mxu0  ;;  %v1922_v29 = vadd.f32 %v1855_v47, %v1503_v2  ;;  %v1507_v16 = vpop.f32.mrf.mxu1  ;;  %708 = vst.msk [vmem:[#allocation2 + $0xc4] sm:$0xf] %vm183_vm1, %v544_v13  ;;  %v5067_v2 = vrot.slane %v1574_v7, 9  ;;  %v2631_v8 = vrot.slane %v2629_v48, 4  ;;  %v2275_v7 = vld [vmem:[#allocation2 + $0xbc] sm:$0x1] }
 0x188   : > { %v6293_v63 = vadd.f32 %v2793_v18, %v2207_v61  ;;  %v2613_v61 = vrot.slane %v2611_v44, 5 }
 0x189   : > { %v1712_v53 = vsel %vm5996_vm15, %v5067_v2, %v1711_v31  ;;  %v2632_v13 = vor.u32 %v2631_v8, %v2627_v54  ;;  %v1575_v2 = vld [vmem:[#allocation2 + $0xb4] sm:$0xe] }
 0x18a   : > { %5180 = vmatmul.msk.bf16.gmra.mxu0 %vm1198_vm12, %v2709_v37  ;;  %v1713_v37 = vrot.slane %v1711_v31, 4  ;;  %v2614_v60 = vsel %vm5593_vm11, %v2609_v4, %v2613_v61  ;;  %v1508_v31 = vadd.f32 %v1507_v16, %v6111_v26  ;;  %v5068_v16 = vrot.slane %v1575_v2, 9  ;;  %v2885_v2 = vld [vmem:[#allocation2 + $0xc] sm:$0xe] }
 0x18b   : > { %v2141_v57 = vpop.f32.mrf.mxu3  ;;  %5083 = vmatmul.msk.bf16.gmra.mxu2 %vm1198_vm12, %v1770_v45  ;;  %v2604_v45 = vsel %vm5593_vm11, %v2599_v32, %v6286_v39  ;;  %v2692_v17 = vunpack.c.l.b16 %v2614_v60  ;;  %v2633_v48 = vrot.slane %v2632_v13, 4  ;;  %v5436_v60 = vld [vmem:[#allocation2 + $0x10] sm:$0xf] }
 0x18c   : > { %v2208_v23 = vadd.f32 %v2141_v57, %v1922_v29  ;;  %v2618_v29 = vrot.slane %v2616_v15, 4  ;;  %v1715_v25 = vsel %vm5996_vm15, %v1713_v37, %v1714_v42  ;;  %v2691_v21 = vunpack.c.l.b16 %v2604_v45  ;;  %v5434_v37 = vld [vmem:[#allocation2 + $0xb8] sm:$0xf] }
 0x18d   : > { %v1753_v57 = vunpack.c.l.b16 %v1712_v53  ;;  %v1754_v32 = vunpack.c.l.b16 %v1715_v25  ;;  %v1718_v14 = vrot.slane %v5434_v37, 5  ;;  %v5382_v53 = vld [vmem:[#allocation2 + $0xb4] sm:$0xff] }
 0x18e   : > { %v1858_v47 = vpop.f32.mrf.mxu2  ;;  %v2622_v62 = vor.u32 %v2621_v11, %v2618_v29  ;;  %v2710_v4 = vpack.c.b16 %v2692_v17, %v2691_v21  ;;  %v2277_v11 = vld [vmem:[#allocation2 + $0xc4] sm:$0xf] }
 0x18f   : > { %v2795_v56 = vpop.f32.mrf.mxu0  ;;  %v1923_v44 = vadd.f32 %v1858_v47, %v1506_v34  ;;  %v1510_v18 = vpop.f32.mrf.mxu1  ;;  %v1771_v9 = vpack.c.b16 %v1754_v32, %v1753_v57  ;;  %v1720_v25 = vrot.slane %v1718_v14, 4  ;;  %v5367_v57 = vld [vmem:[#allocation2 + $0xb4] sm:$0xff]  ;;  %v1719_v32 = vsel %vm5996_vm15, %v5068_v16, %v1718_v14 }
 0x190   : > { %5164 = vmatmul.msk.bf16.gmra.mxu3 %vm1198_vm12, %v5381_v1  ;;  %v6314_v40 = vadd.f32 %v2795_v56, %v2208_v23  ;;  %v2635_v1 = vshll.u32 %v2275_v7, 16  ;;  %v2623_v34 = vrot.slane %v2622_v62, 4  ;;  %v5435_v56 = vld [vmem:[#allocation2 + $0xbc] sm:$0x1]  ;;  %v1511_v21 = vadd.f32 %v1510_v18, %v6122_v59 }
 0x191   : > { %v1721_v45 = vrot.slane %v5435_v56, 5  ;;  %v2649_v62 = vshll.u32 %v2277_v11, 16  ;;  %v1755_v14 = vunpack.c.l.b16 %v1719_v32 }
 0x192   : > { %5051 = vmatmul.msk.bf16.gmra.mxu1 %vm1198_vm12, %v5366_v50  ;;  %v2637_v47 = vrot.slane %v2635_v1, 5  ;;  %v2276_v50 = vld [vmem:[#allocation2 + $0xc0] sm:$0xf]  ;;  %v2628_v8 = vsel %vm5593_vm11, %v2623_v34, %v2627_v54  ;;  %v5437_v1 = vld [vmem:[#allocation2 + $0x14] sm:$0x1] }
 0x193   : > { %v2144_v39 = vpop.f32.mrf.mxu3  ;;  %v2643_v7 = vshll.u32 %v2276_v50, 16  ;;  %v1722_v18 = vsel %vm5996_vm15, %v1720_v25, %v1721_v45  ;;  %v2651_v56 = vrot.slane %v2649_v62, 5  ;;  %v2278_v25 = vld [vmem:[#allocation2 + $0xc8] sm:$0x1] }
 0x194   : > { %v2209_v41 = vadd.f32 %v2144_v39, %v1923_v44  ;;  %v2951_v44 = vrot.slane %v5436_v60, 5  ;;  %v2638_v17 = vsel %vm5593_vm11, %v2633_v48, %v2637_v47  ;;  %v2640_v39 = vshrl.u32 %v2276_v50, 16 }
 0x195   : > { %v2645_v48 = vrot.slane %v2643_v7, 5  ;;  %v5184_v47 = vrot.slane %v2885_v2, 9  ;;  %v1756_v50 = vunpack.c.l.b16 %v1722_v18 }
 0x196   : > { %v1860_v61 = vpop.f32.mrf.mxu2  ;;  %v2953_v13 = vrot.slane %v2951_v44, 4  ;;  %v2642_v34 = vrot.slane %v2640_v39, 4 }
 0x197   : > { %v2798_v23 = vpop.f32.mrf.mxu0  ;;  %v1924_v15 = vadd.f32 %v1860_v61, %v1508_v31  ;;  %v6318_v42 = vpop.f32.mrf.mxu1  ;;  %v2653_v31 = vshrl.u32 %v2277_v11, 16  ;;  %v2952_v11 = vsel %vm5996_vm15, %v5184_v47, %v2951_v44  ;;  %v1772_v62 = vpack.c.b16 %v1756_v50, %v1755_v14 }
 0x198   : > { %v6320_v10 = vadd.f32 %v2798_v23, %v2209_v41  ;;  %v3570_v23 = vld [vmem:[#allocation2 + $0x18] sm:$0xf] }
 0x199   : > { %v2655_v60 = vrot.slane %v2653_v31, 4  ;;  %v2646_v31 = vor.u32 %v2645_v48, %v2642_v34 }
 0x19a   : > { %5181 = vmatmul.msk.bf16.gmra.mxu0 %vm1198_vm12, %v2710_v4  ;;  %v2954_v4 = vrot.slane %v5437_v1, 5  ;;  %v2659_v1 = vshll.u32 %v2278_v25, 16 }
 0x19b   : > { %v2146_v26 = vpop.f32.mrf.mxu3  ;;  %5084 = vmatmul.msk.bf16.gmra.mxu2 %vm1198_vm12, %v1771_v9  ;;  %v2694_v9 = vunpack.c.l.b16 %v2638_v17  ;;  %v2656_v18 = vor.u32 %v2655_v60, %v2651_v56 }
 0x19c   : > { %v2210_v29 = vadd.f32 %v2146_v26, %v1924_v15  ;;  %v2693_v15 = vunpack.c.l.b16 %v2628_v8  ;;  %v6336_v26 = vld [vmem:[#allocation2 + $0x1c] sm:$0xf]  ;;  %v3622_v8 = vshll.u32 %v3570_v23, 16  ;;  %v2661_v34 = vrot.slane %v2659_v1, 5 }
 0x19d   : > { %v3628_v39 = vshll.u32 %v6336_v26, 16  ;;  %v3632_v7 = vshrl.u32 %v6336_v26, 16  ;;  %v2657_v14 = vrot.slane %v2656_v18, 4 }
 0x19e   : > { %v1863_v41 = vpop.f32.mrf.mxu2 }
 0x19f   : > { %v2800_v61 = vpop.f32.mrf.mxu0  ;;  %v1925_v54 = vadd.f32 %v1863_v41, %v1511_v21  ;;  %v1515_v59 = vpop.f32.mrf.mxu1  ;;  %v3063_v21 = vunpack.c.l.b16 %v2952_v11  ;;  %v2711_v41 = vpack.c.b16 %v2694_v9, %v2693_v15  ;;  %v3630_v2 = vrot.slane %v3628_v39, 5  ;;  %v6349_v11 = vld [vmem:[#allocation2 + $0x20] sm:$0x1] }
 0x1a0   : > { %5165 = vmatmul.msk.bf16.gmra.mxu3 %vm1198_vm12, %v5382_v53  ;;  %v6334_v37 = vadd.f32 %v2800_v61, %v2210_v29  ;;  %v3619_v53 = vshrl.u32 %v3570_v23, 16  ;;  %v2955_v29 = vsel %vm5996_vm15, %v2953_v13, %v2954_v4  ;;  %v3624_v23 = vrot.slane %v3622_v8, 5  ;;  %v5383_v9 = vld [vmem:[#allocation2 + $0xc0] sm:$0xff] }
 0x1a1   : > { %v3064_v17 = vunpack.c.l.b16 %v2955_v29  ;;  %v3634_v47 = vrot.slane %v3632_v7, 4  ;;  %v3638_v60 = vshll.u32 %v6349_v11, 16  ;;  %v3573_v29 = vld [vmem:[#allocation2 + $0x24] sm:$0xf] }
 0x1a2   : > { %5052 = vmatmul.msk.bf16.gmra.mxu1 %vm1198_vm12, %v5367_v57  ;;  %v1513_v57 = vadd.f32 %v6318_v42, %v6140_v28  ;;  %v3621_v4 = vrot.slane %v3619_v53, 4  ;;  %v2647_v42 = vrot.slane %v2646_v31, 4  ;;  %v1516_v53 = vadd.f32 %v1515_v59, %v6157_v3  ;;  %v2886_v59 = vld [vmem:[#allocation2 + $0x18] sm:$0xe] }
 0x1a3   : > { %v2149_v16 = vpop.f32.mrf.mxu3  ;;  %v3095_v61 = vpack.c.b16 %v3064_v17, %v3063_v21  ;;  %v3635_v50 = vor.u32 %v3634_v47, %v3630_v2  ;;  %v2662_v21 = vsel %vm5593_vm11, %v2657_v14, %v2661_v34  ;;  %v3640_v3 = vrot.slane %v3638_v60, 5 }
 0x1a4   : > { %v2211_v45 = vadd.f32 %v2149_v16, %v1925_v54  ;;  %v3625_v48 = vor.u32 %v3624_v23, %v3621_v4  ;;  %v2696_v4 = vunpack.c.l.b16 %v2662_v21  ;;  %v5185_v14 = vrot.slane %v2886_v59, 9 }
 0x1a6   : > { %v1865_v32 = vpop.f32.mrf.mxu2  ;;  %v3626_v7 = vrot.slane %v3625_v48, 4 }
 0x1a7   : > { %v2803_v44 = vpop.f32.mrf.mxu0  ;;  %v1926_v54 = vadd.f32 %v1865_v32, %v1513_v57  ;;  %v1517_v13 = vpop.f32.mrf.mxu1  ;;  %v6360_v32 = vld [vmem:[#allocation2 + $0x28] sm:$0xf] }
 0x1a8   : > { %v6347_v16 = vadd.f32 %v2803_v44, %v2211_v45  ;;  %v2652_v45 = vsel %vm5593_vm11, %v2647_v42, %v2651_v56  ;;  %v5439_v56 = vld [vmem:[#allocation2 + $0x20] sm:$0x1]  ;;  %v3643_v44 = vshrl.u32 %v3573_v29, 16  ;;  %v3652_v47 = vshll.u32 %v6360_v32, 16 }
 0x1a9   : > { %v2961_v1 = vrot.slane %v5439_v56, 5  ;;  %v2695_v18 = vunpack.c.l.b16 %v2652_v45  ;;  %v1518_v48 = vadd.f32 %v1517_v13, %v6168_v33 }
 0x1aa   : > { %5182 = vmatmul.msk.bf16.gmra.mxu0 %vm1198_vm12, %v2711_v41  ;;  %v5438_v41 = vld [vmem:[#allocation2 + $0x1c] sm:$0xf]  ;;  %v3645_v60 = vrot.slane %v3643_v44, 4  ;;  %v4293_v44 = vrot.slane %v6349_v11, 5 }
 0x1ab   : > { %v2151_v28 = vpop.f32.mrf.mxu3  ;;  %5085 = vmatmul.msk.bf16.gmra.mxu2 %vm1198_vm12, %v1772_v62  ;;  %v2958_v57 = vrot.slane %v5438_v41, 5  ;;  %v3636_v62 = vrot.slane %v3635_v50, 4  ;;  %v4290_v50 = vrot.slane %v6336_v26, 5  ;;  %v6377_v26 = vld [vmem:[#allocation2 + $0x2c] sm:$0x1] }
 0x1ac   : > { %v2212_v15 = vadd.f32 %v2151_v28, %v1926_v54  ;;  %v3646_v54 = vshll.u32 %v3573_v29, 16  ;;  %v3656_v28 = vshrl.u32 %v6360_v32, 16  ;;  %v4224_v29 = vld [vmem:[#allocation2 + $0x18] sm:$0xe] }
 0x1ad   : > { %v3641_v34 = vsel %vm5593_vm11, %v3636_v62, %v3640_v3  ;;  %v2959_v62 = vsel %vm5996_vm15, %v5185_v14, %v2958_v57  ;;  %v5315_v3 = vrot.slane %v4224_v29, 9  ;;  %v4292_v56 = vrot.slane %v4290_v50, 4  ;;  %v5440_v29 = vld [vmem:[#allocation2 + $0x28] sm:$0xf] }
 0x1ae   : > { %v1868_v25 = vpop.f32.mrf.mxu2  ;;  %v3658_v21 = vrot.slane %v3656_v28, 4 }
 0x1af   : > { %v2805_v8 = vpop.f32.mrf.mxu0  ;;  %v1927_v17 = vadd.f32 %v1868_v25, %v1516_v53  ;;  %v1520_v39 = vpop.f32.mrf.mxu1  ;;  %v3648_v53 = vrot.slane %v3646_v54, 5  ;;  %v4294_v11 = vsel %vm5996_vm15, %v4292_v56, %v4293_v44 }
 0x1b0   : > { %5166 = vmatmul.msk.bf16.gmra.mxu3 %vm1198_vm12, %v5383_v9  ;;  %v6362_v31 = vadd.f32 %v2805_v8, %v2212_v15  ;;  %v3631_v9 = vsel %vm5593_vm11, %v3626_v7, %v3630_v2  ;;  %v2960_v15 = vrot.slane %v2958_v57, 4  ;;  %v3654_v8 = vrot.slane %v3652_v47, 5  ;;  %v5384_v2 = vld [vmem:[#allocation2 + $0x18] sm:$0xff] }
 0x1b1   : > { %v4004_v25 = vunpack.c.l.b16 %v3631_v9  ;;  %v4005_v7 = vunpack.c.l.b16 %v3641_v34  ;;  %v3649_v54 = vor.u32 %v3648_v53, %v3645_v60  ;;  %v3662_v57 = vshll.u32 %v6377_v26, 16 }
 0x1b2   : > { %5201 = vmatmul.msk.bf16.vlgmr.msra.gmra.mxu1 %vm1198_vm12, %v3095_v61  ;;  %v2712_v61 = vpack.c.b16 %v2696_v4, %v2695_v18  ;;  %v2962_v33 = vsel %vm5996_vm15, %v2960_v15, %v2961_v1  ;;  %v3065_v4 = vunpack.c.l.b16 %v2959_v62  ;;  %v3659_v47 = vor.u32 %v3658_v21, %v3654_v8  ;;  %v3576_v21 = vld [vmem:[#allocation2 + $0x30] sm:$0xf] }
 0x1b3   : > { %v2154_v23 = vpop.f32.mrf.mxu3  ;;  %v4036_v1 = vpack.c.b16 %v4005_v7, %v4004_v25  ;;  %v4291_v9 = vsel %vm5996_vm15, %v5315_v3, %v4290_v50  ;;  %v3650_v34 = vrot.slane %v3649_v54, 4  ;;  %v3664_v60 = vrot.slane %v3662_v57, 5 }
 0x1b4   : > { %v2213_v42 = vadd.f32 %v2154_v23, %v1927_v17  ;;  %v3066_v23 = vunpack.c.l.b16 %v2962_v33  ;;  %v2965_v25 = vrot.slane %v5440_v29, 5  ;;  %v4402_v50 = vunpack.c.l.b16 %v4291_v9 }
 0x1b5   : > { %v3655_v33 = vsel %vm5593_vm11, %v3650_v34, %v3654_v8  ;;  %v3667_v56 = vshrl.u32 %v3576_v21, 16  ;;  %v4297_v8 = vrot.slane %v6360_v32, 5  ;;  %v5385_v34 = vld [vmem:[#allocation2 + $0x24] sm:$0xff] }
 0x1b6   : > { %v1870_v45 = vpop.f32.mrf.mxu2  ;;  %v3096_v15 = vpack.c.b16 %v3066_v23, %v3065_v4  ;;  %v3670_v4 = vshll.u32 %v3576_v21, 16 }
 0x1b7   : > { %v2808_v17 = vpop.f32.mrf.mxu0  ;;  %v1928_v41 = vadd.f32 %v1870_v45, %v1518_v48  ;;  %v1522_v59 = vpop.f32.mrf.mxu1  ;;  %v3660_v48 = vrot.slane %v3659_v47, 4 }
 0x1b8   : > { %v6379_v13 = vadd.f32 %v2808_v17, %v2213_v42  ;;  %v1521_v42 = vadd.f32 %v1520_v39, %v6088_v55  ;;  %v2887_v55 = vld [vmem:[#allocation2 + $0x24] sm:$0xe]  ;;  %v4403_v17 = vunpack.c.l.b16 %v4294_v11  ;;  %v3669_v11 = vrot.slane %v3667_v56, 4 }
 0x1b9   : > { %v3665_v3 = vsel %vm5593_vm11, %v3660_v48, %v3664_v60  ;;  %v5186_v54 = vrot.slane %v2887_v55, 9  ;;  %v4225_v48 = vld [vmem:[#allocation2 + $0x24] sm:$0xe]  ;;  %v3672_v29 = vrot.slane %v3670_v4, 5  ;;  %v6410_v55 = vld [vmem:[#allocation2 + $0x38] sm:$0x1] }
 0x1ba   : > { %5183 = vmatmul.msk.bf16.gmra.mxu0 %vm1198_vm12, %v2712_v61  ;;  %v4434_v57 = vpack.c.b16 %v4403_v17, %v4402_v50  ;;  %v4007_v9 = vunpack.c.l.b16 %v3665_v3  ;;  %v5316_v50 = vrot.slane %v4225_v48, 9  ;;  %v4299_v17 = vrot.slane %v4297_v8, 4 }
 0x1bb   : > { %v2156_v18 = vpop.f32.mrf.mxu3  ;;  %5282 = vmatmul.msk.bf16.vlgmr.msra.gmra.mxu2 %vm1198_vm12, %v5384_v2  ;;  %v5441_v2 = vld [vmem:[#allocation2 + $0x2c] sm:$0x1]  ;;  %v3673_v3 = vor.u32 %v3672_v29, %v3669_v11 }
 0x1bc   : > { %v2214_v28 = vadd.f32 %v2156_v18, %v1928_v41  ;;  %v6393_v41 = vld [vmem:[#allocation2 + $0x34] sm:$0xf]  ;;  %v2968_v7 = vrot.slane %v5441_v2, 5  ;;  %v2967_v18 = vrot.slane %v2965_v25, 4 }
 0x1bd   : > { %v3676_v23 = vshll.u32 %v6393_v41, 16  ;;  %v3680_v47 = vshrl.u32 %v6393_v41, 16 }
 0x1be   : > { %v1873_v14 = vpop.f32.mrf.mxu2 }
 0x1bf   : > { %v2810_v53 = vpop.f32.mrf.mxu0  ;;  %v1929_v61 = vadd.f32 %v1873_v14, %v1521_v42  ;;  %v1525_v45 = vpop.f32.mrf.mxu1  ;;  %v4006_v42 = vunpack.c.l.b16 %v3655_v33  ;;  %v3678_v21 = vrot.slane %v3676_v23, 5 }
 0x1c0   : > { %5299 = vmatmul.msk.bf16.vlgmr.msra.gmra.mxu3 %vm1198_vm12, %v4036_v1  ;;  %v6391_v39 = vadd.f32 %v2810_v53, %v2214_v28  ;;  %v1523_v28 = vadd.f32 %v1522_v59, %v6098_v12  ;;  %v2966_v53 = vsel %vm5996_vm15, %v5186_v54, %v2965_v25  ;;  %v3682_v12 = vrot.slane %v3680_v47, 4  ;;  %v3579_v47 = vld [vmem:[#allocation2 + $0x3c] sm:$0xf] }
 0x1c1   : > { %v3067_v2 = vunpack.c.l.b16 %v2966_v53  ;;  %v4037_v25 = vpack.c.b16 %v4007_v9, %v4006_v42  ;;  %v1526_v54 = vadd.f32 %v1525_v45, %v6116_v0  ;;  %v3674_v42 = vrot.slane %v3673_v3, 4  ;;  %v5442_v9 = vld [vmem:[#allocation2 + $0x34] sm:$0xf] }
 0x1c2   : > { %5202 = vmatmul.msk.bf16.gmra.mxu1 %vm1198_vm12, %v3096_v15  ;;  %v3683_v56 = vor.u32 %v3682_v12, %v3678_v21  ;;  %v2972_v11 = vrot.slane %v5442_v9, 5  ;;  %v3691_v53 = vshrl.u32 %v3579_v47, 16 }
 0x1c3   : > { %v2159_v62 = vpop.f32.mrf.mxu3 }
 0x1c4   : > { %v2215_v44 = vadd.f32 %v2159_v62, %v1929_v61  ;;  %v2969_v61 = vsel %vm5996_vm15, %v2967_v18, %v2968_v7  ;;  %v4300_v7 = vrot.slane %v6377_v26, 5  ;;  %v4298_v18 = vsel %vm5996_vm15, %v5316_v50, %v4297_v8 }
 0x1c5   : > { %v3068_v62 = vunpack.c.l.b16 %v2969_v61  ;;  %v3684_v0 = vrot.slane %v3683_v56, 4  ;;  %v3694_v61 = vshll.u32 %v3579_v47, 16  ;;  %v4404_v29 = vunpack.c.l.b16 %v4298_v18  ;;  %v4226_v47 = vld [vmem:[#allocation2 + $0x30] sm:$0xe] }
 0x1c6   : > { %v1875_v1 = vpop.f32.mrf.mxu2  ;;  %v4304_v56 = vrot.slane %v6393_v41, 5  ;;  %v6439_v41 = vld [vmem:[#allocation2 + $0x44] sm:$0x1] }
 0x1c7   : > { %v2813_v14 = vpop.f32.mrf.mxu0  ;;  %v1930_v15 = vadd.f32 %v1875_v1, %v1523_v28  ;;  %v1527_v60 = vpop.f32.mrf.mxu1  ;;  %v3097_v23 = vpack.c.b16 %v3068_v62, %v3067_v2  ;;  %v4301_v28 = vsel %vm5996_vm15, %v4299_v17, %v4300_v7  ;;  %v3679_v62 = vsel %vm5593_vm11, %v3674_v42, %v3678_v21  ;;  %v5386_v21 = vld [vmem:[#allocation2 + $0x30] sm:$0xff] }
 0x1c8   : > { %v6408_v59 = vadd.f32 %v2813_v14, %v2215_v44  ;;  %v3686_v44 = vshll.u32 %v6410_v55, 16  ;;  %v6422_v14 = vld [vmem:[#allocation2 + $0x40] sm:$0xf]  ;;  %v4405_v12 = vunpack.c.l.b16 %v4301_v28  ;;  %v1528_v3 = vadd.f32 %v1527_v60, %v6135_v43 }
 0x1c9   : > { %v3700_v50 = vshll.u32 %v6422_v14, 16  ;;  %v3704_v17 = vshrl.u32 %v6422_v14, 16 }
 0x1ca   : > { %5332 = vmatmul.msk.bf16.vlgmr.msra.gmra.mxu0 %vm1198_vm12, %v4434_v57  ;;  %v3688_v45 = vrot.slane %v3686_v44, 5  ;;  %v3693_v44 = vrot.slane %v3691_v53, 4  ;;  %v4435_v18 = vpack.c.b16 %v4405_v12, %v4404_v29  ;;  %v4307_v53 = vrot.slane %v6410_v55, 5 }
 0x1cb   : > { %v2161_v32 = vpop.f32.mrf.mxu3  ;;  %5283 = vmatmul.msk.bf16.gmra.mxu2 %vm1198_vm12, %v5385_v34  ;;  %v5443_v34 = vld [vmem:[#allocation2 + $0x38] sm:$0x1]  ;;  %v3706_v28 = vrot.slane %v3704_v17, 4 }
 0x1cc   : > { %v2216_v33 = vadd.f32 %v2161_v32, %v1930_v15  ;;  %v2888_v15 = vld [vmem:[#allocation2 + $0x30] sm:$0xe]  ;;  %v2975_v48 = vrot.slane %v5443_v34, 5  ;;  %v3689_v7 = vsel %vm5593_vm11, %v3684_v0, %v3688_v45  ;;  %v5317_v45 = vrot.slane %v4226_v47, 9  ;;  %v5444_v47 = vld [vmem:[#allocation2 + $0x40] sm:$0xf] }
 0x1cd   : > { %v4009_v42 = vunpack.c.l.b16 %v3689_v7  ;;  %v4306_v34 = vrot.slane %v4304_v56, 4 }
 0x1ce   : > { %v1878_v4 = vpop.f32.mrf.mxu2 }
 0x1cf   : > { %v2815_v57 = vpop.f32.mrf.mxu0  ;;  %v1931_v1 = vadd.f32 %v1878_v4, %v1526_v54  ;;  %v1530_v26 = vpop.f32.mrf.mxu1  ;;  %v3696_v54 = vrot.slane %v3694_v61, 5  ;;  %v4308_v55 = vsel %vm5996_vm15, %v4306_v34, %v4307_v53 }
 0x1d0   : > { %5300 = vmatmul.msk.bf16.gmra.mxu3 %vm1198_vm12, %v4037_v25  ;;  %v6424_v8 = vadd.f32 %v2815_v57, %v2216_v33  ;;  %v5187_v25 = vrot.slane %v2888_v15, 9  ;;  %v2974_v33 = vrot.slane %v2972_v11, 4  ;;  %v3702_v57 = vrot.slane %v3700_v50, 5 }
 0x1d1   : > { %v3697_v61 = vor.u32 %v3696_v54, %v3693_v44 }
 0x1d2   : > { %5203 = vmatmul.msk.bf16.gmra.mxu1 %vm1198_vm12, %v3097_v23  ;;  %v4008_v23 = vunpack.c.l.b16 %v3679_v62  ;;  %v2973_v0 = vsel %vm5996_vm15, %v5187_v25, %v2972_v11  ;;  %v2976_v43 = vsel %vm5996_vm15, %v2974_v33, %v2975_v48  ;;  %v3707_v50 = vor.u32 %v3706_v28, %v3702_v57  ;;  %v3582_v28 = vld [vmem:[#allocation2 + $0x48] sm:$0xf] }
 0x1d3   : > { %v2164_v32 = vpop.f32.mrf.mxu3  ;;  %v3069_v12 = vunpack.c.l.b16 %v2973_v0  ;;  %v3710_v11 = vshll.u32 %v6439_v41, 16  ;;  %v4305_v62 = vsel %vm5996_vm15, %v5317_v45, %v4304_v56  ;;  %v3698_v7 = vrot.slane %v3697_v61, 4 }
 0x1d4   : > { %v2217_v2 = vadd.f32 %v2164_v32, %v1931_v1  ;;  %v3070_v32 = vunpack.c.l.b16 %v2976_v43  ;;  %v4038_v48 = vpack.c.b16 %v4009_v42, %v4008_v23  ;;  %v2979_v23 = vrot.slane %v5444_v47, 5 }
 0x1d5   : > { %v3712_v44 = vrot.slane %v3710_v11, 5  ;;  %v4406_v56 = vunpack.c.l.b16 %v4305_v62  ;;  %v3703_v43 = vsel %vm5593_vm11, %v3698_v7, %v3702_v57  ;;  %v3715_v34 = vshrl.u32 %v3582_v28, 16  ;;  %v5387_v7 = vld [vmem:[#allocation2 + $0x3c] sm:$0xff] }
 0x1d6   : > { %v1880_v4 = vpop.f32.mrf.mxu2  ;;  %v3098_v33 = vpack.c.b16 %v3070_v32, %v3069_v12  ;;  %v3718_v12 = vshll.u32 %v3582_v28, 16  ;;  %v4311_v57 = vrot.slane %v6422_v14, 5 }
 0x1d7   : > { %v2818_v1 = vpop.f32.mrf.mxu0  ;;  %v1932_v9 = vadd.f32 %v1880_v4, %v1528_v3  ;;  %v1532_v15 = vpop.f32.mrf.mxu1  ;;  %v3708_v3 = vrot.slane %v3707_v50, 4 }
 0x1d8   : > { %v6441_v60 = vadd.f32 %v2818_v1, %v2217_v2  ;;  %v1531_v2 = vadd.f32 %v1530_v26, %v6146_v49  ;;  %v2889_v49 = vld [vmem:[#allocation2 + $0x3c] sm:$0xe]  ;;  %v4407_v1 = vunpack.c.l.b16 %v4308_v55  ;;  %v3717_v55 = vrot.slane %v3715_v34, 4 }
 0x1d9   : > { %v3713_v45 = vsel %vm5593_vm11, %v3708_v3, %v3712_v44  ;;  %v5188_v61 = vrot.slane %v2889_v49, 9  ;;  %v4227_v3 = vld [vmem:[#allocation2 + $0x3c] sm:$0xe]  ;;  %v3720_v47 = vrot.slane %v3718_v12, 5  ;;  %v6472_v49 = vld [vmem:[#allocation2 + $0x50] sm:$0x1] }
 0x1da   : > { %5333 = vmatmul.msk.bf16.gmra.mxu0 %vm1198_vm12, %v4435_v18  ;;  %v4436_v11 = vpack.c.b16 %v4407_v1, %v4406_v56  ;;  %v4011_v62 = vunpack.c.l.b16 %v3713_v45  ;;  %v5318_v56 = vrot.slane %v4227_v3, 9  ;;  %v4313_v1 = vrot.slane %v4311_v57, 4 }
 0x1db   : > { %v2166_v29 = vpop.f32.mrf.mxu3  ;;  %5284 = vmatmul.msk.bf16.gmra.mxu2 %vm1198_vm12, %v5386_v21  ;;  %v5445_v21 = vld [vmem:[#allocation2 + $0x44] sm:$0x1]  ;;  %v3721_v45 = vor.u32 %v3720_v47, %v3717_v55 }
 0x1dc   : > { %v2218_v17 = vadd.f32 %v2166_v29, %v1932_v9  ;;  %v6455_v9 = vld [vmem:[#allocation2 + $0x4c] sm:$0xf]  ;;  %v2982_v42 = vrot.slane %v5445_v21, 5  ;;  %v2981_v29 = vrot.slane %v2979_v23, 4 }
 0x1dd   : > { %v3724_v32 = vshll.u32 %v6455_v9, 16  ;;  %v3728_v50 = vshrl.u32 %v6455_v9, 16 }
 0x1de   : > { %v1883_v25 = vpop.f32.mrf.mxu2 }
 0x1df   : > { %v2820_v54 = vpop.f32.mrf.mxu0  ;;  %v1933_v18 = vadd.f32 %v1883_v25, %v1531_v2  ;;  %v1535_v4 = vpop.f32.mrf.mxu1  ;;  %v4010_v2 = vunpack.c.l.b16 %v3703_v43  ;;  %v3726_v28 = vrot.slane %v3724_v32, 5 }
 0x1e0   : > { %5301 = vmatmul.msk.bf16.gmra.mxu3 %vm1198_vm12, %v4038_v48  ;;  %v6453_v26 = vadd.f32 %v2820_v54, %v2218_v17  ;;  %v1533_v17 = vadd.f32 %v1532_v15, %v6166_v22  ;;  %v2980_v54 = vsel %vm5996_vm15, %v5188_v61, %v2979_v23  ;;  %v3730_v22 = vrot.slane %v3728_v50, 4  ;;  %v3585_v50 = vld [vmem:[#allocation2 + $0x54] sm:$0xf] }
 0x1e1   : > { %v3071_v21 = vunpack.c.l.b16 %v2980_v54  ;;  %v4039_v23 = vpack.c.b16 %v4011_v62, %v4010_v2  ;;  %v1536_v61 = vadd.f32 %v1535_v4, %v6176_v52  ;;  %v3722_v2 = vrot.slane %v3721_v45, 4  ;;  %v5446_v62 = vld [vmem:[#allocation2 + $0x4c] sm:$0xf] }
 0x1e2   : > { %5204 = vmatmul.msk.bf16.gmra.mxu1 %vm1198_vm12, %v3098_v33  ;;  %v3731_v34 = vor.u32 %v3730_v22, %v3726_v28  ;;  %v2986_v55 = vrot.slane %v5446_v62, 5  ;;  %v3739_v54 = vshrl.u32 %v3585_v50, 16 }
 0x1e3   : > { %v2169_v0 = vpop.f32.mrf.mxu3 }
 0x1e4   : > { %v2219_v53 = vadd.f32 %v2169_v0, %v1933_v18  ;;  %v2983_v18 = vsel %vm5996_vm15, %v2981_v29, %v2982_v42  ;;  %v4314_v42 = vrot.slane %v6439_v41, 5  ;;  %v4312_v29 = vsel %vm5996_vm15, %v5318_v56, %v4311_v57 }
 0x1e5   : > { %v3072_v0 = vunpack.c.l.b16 %v2983_v18  ;;  %v3732_v52 = vrot.slane %v3731_v34, 4  ;;  %v3742_v18 = vshll.u32 %v3585_v50, 16  ;;  %v4408_v47 = vunpack.c.l.b16 %v4312_v29  ;;  %v4228_v50 = vld [vmem:[#allocation2 + $0x48] sm:$0xe] }
 0x1e6   : > { %v1885_v48 = vpop.f32.mrf.mxu2  ;;  %v4318_v34 = vrot.slane %v6455_v9, 5  ;;  %v6501_v9 = vld [vmem:[#allocation2 + $0x5c] sm:$0x1] }
 0x1e7   : > { %v2823_v25 = vpop.f32.mrf.mxu0  ;;  %v1934_v33 = vadd.f32 %v1885_v48, %v1533_v17  ;;  %v1537_v44 = vpop.f32.mrf.mxu1  ;;  %v3099_v32 = vpack.c.b16 %v3072_v0, %v3071_v21  ;;  %v4315_v17 = vsel %vm5996_vm15, %v4313_v1, %v4314_v42  ;;  %v3727_v0 = vsel %vm5593_vm11, %v3722_v2, %v3726_v28  ;;  %v5388_v28 = vld [vmem:[#allocation2 + $0x48] sm:$0xff] }
 0x1e8   : > { %v6470_v15 = vadd.f32 %v2823_v25, %v2219_v53  ;;  %v3734_v53 = vshll.u32 %v6472_v49, 16  ;;  %v6484_v25 = vld [vmem:[#allocation2 + $0x58] sm:$0xf]  ;;  %v4409_v22 = vunpack.c.l.b16 %v4315_v17  ;;  %v1538_v45 = vadd.f32 %v1537_v44, %v6190_v51 }
 0x1e9   : > { %v3748_v56 = vshll.u32 %v6484_v25, 16  ;;  %v3752_v1 = vshrl.u32 %v6484_v25, 16 }
 0x1ea   : > { %5334 = vmatmul.msk.bf16.gmra.mxu0 %vm1198_vm12, %v4436_v11  ;;  %v3736_v4 = vrot.slane %v3734_v53, 5  ;;  %v3741_v53 = vrot.slane %v3739_v54, 4  ;;  %v4437_v29 = vpack.c.b16 %v4409_v22, %v4408_v47  ;;  %v4321_v54 = vrot.slane %v6472_v49, 5 }
 0x1eb   : > { %v2171_v14 = vpop.f32.mrf.mxu3  ;;  %5285 = vmatmul.msk.bf16.gmra.mxu2 %vm1198_vm12, %v5387_v7  ;;  %v5447_v7 = vld [vmem:[#allocation2 + $0x50] sm:$0x1]  ;;  %v3754_v17 = vrot.slane %v3752_v1, 4 }
 0x1ec   : > { %v2220_v43 = vadd.f32 %v2171_v14, %v1934_v33  ;;  %v2890_v33 = vld [vmem:[#allocation2 + $0x48] sm:$0xe]  ;;  %v2989_v3 = vrot.slane %v5447_v7, 5  ;;  %v3737_v42 = vsel %vm5593_vm11, %v3732_v52, %v3736_v4  ;;  %v5319_v4 = vrot.slane %v4228_v50, 9  ;;  %v5448_v50 = vld [vmem:[#allocation2 + $0x58] sm:$0xf] }
 0x1ed   : > { %v4013_v2 = vunpack.c.l.b16 %v3737_v42  ;;  %v4320_v7 = vrot.slane %v4318_v34, 4 }
 0x1ee   : > { %v1888_v12 = vpop.f32.mrf.mxu2 }
 0x1ef   : > { %v2825_v11 = vpop.f32.mrf.mxu0  ;;  %v1935_v48 = vadd.f32 %v1888_v12, %v1536_v61  ;;  %v1540_v41 = vpop.f32.mrf.mxu1  ;;  %v3744_v61 = vrot.slane %v3742_v18, 5  ;;  %v4322_v49 = vsel %vm5996_vm15, %v4320_v7, %v4321_v54 }
 0x1f0   : > { %5302 = vmatmul.msk.bf16.gmra.mxu3 %vm1198_vm12, %v4039_v23  ;;  %v6486_v57 = vadd.f32 %v2825_v11, %v2220_v43  ;;  %v5189_v23 = vrot.slane %v2890_v33, 9  ;;  %v2988_v43 = vrot.slane %v2986_v55, 4  ;;  %v3750_v11 = vrot.slane %v3748_v56, 5 }
 0x1f1   : > { %v3745_v18 = vor.u32 %v3744_v61, %v3741_v53 }
 0x1f2   : > { %5205 = vmatmul.msk.bf16.gmra.mxu1 %vm1198_vm12, %v3099_v32  ;;  %v4012_v32 = vunpack.c.l.b16 %v3727_v0  ;;  %v2987_v52 = vsel %vm5996_vm15, %v5189_v23, %v2986_v55  ;;  %v2990_v51 = vsel %vm5996_vm15, %v2988_v43, %v2989_v3  ;;  %v3755_v56 = vor.u32 %v3754_v17, %v3750_v11  ;;  %v3588_v17 = vld [vmem:[#allocation2 + $0x60] sm:$0xf] }
 0x1f3   : > { %v2174_v14 = vpop.f32.mrf.mxu3  ;;  %v3073_v22 = vunpack.c.l.b16 %v2987_v52  ;;  %v3758_v55 = vshll.u32 %v6501_v9, 16  ;;  %v4319_v0 = vsel %vm5996_vm15, %v5319_v4, %v4318_v34  ;;  %v3746_v42 = vrot.slane %v3745_v18, 4 }
 0x1f4   : > { %v2221_v21 = vadd.f32 %v2174_v14, %v1935_v48  ;;  %v3074_v14 = vunpack.c.l.b16 %v2990_v51  ;;  %v4040_v3 = vpack.c.b16 %v4013_v2, %v4012_v32  ;;  %v2993_v32 = vrot.slane %v5448_v50, 5 }
 0x1f5   : > { %v3760_v53 = vrot.slane %v3758_v55, 5  ;;  %v4410_v34 = vunpack.c.l.b16 %v4319_v0  ;;  %v3751_v51 = vsel %vm5593_vm11, %v3746_v42, %v3750_v11  ;;  %v3763_v7 = vshrl.u32 %v3588_v17, 16  ;;  %v5389_v42 = vld [vmem:[#allocation2 + $0x54] sm:$0xff] }
 0x1f6   : > { %v1890_v12 = vpop.f32.mrf.mxu2  ;;  %v3100_v43 = vpack.c.b16 %v3074_v14, %v3073_v22  ;;  %v3766_v22 = vshll.u32 %v3588_v17, 16  ;;  %v4325_v11 = vrot.slane %v6484_v25, 5 }
 0x1f7   : > { %v2828_v48 = vpop.f32.mrf.mxu0  ;;  %v1936_v62 = vadd.f32 %v1890_v12, %v1538_v45  ;;  %v1542_v33 = vpop.f32.mrf.mxu1  ;;  %v3756_v45 = vrot.slane %v3755_v56, 4 }
 0x1f8   : > { %v6503_v44 = vadd.f32 %v2828_v48, %v2221_v21  ;;  %v1541_v21 = vadd.f32 %v1540_v41, %v6090_v58  ;;  %v2891_v58 = vld [vmem:[#allocation2 + $0x54] sm:$0xe]  ;;  %v4411_v48 = vunpack.c.l.b16 %v4322_v49  ;;  %v3765_v49 = vrot.slane %v3763_v7, 4 }
 0x1f9   : > { %v3761_v4 = vsel %vm5593_vm11, %v3756_v45, %v3760_v53  ;;  %v5190_v18 = vrot.slane %v2891_v58, 9  ;;  %v4229_v45 = vld [vmem:[#allocation2 + $0x54] sm:$0xe]  ;;  %v3768_v50 = vrot.slane %v3766_v22, 5  ;;  %v6534_v58 = vld [vmem:[#allocation2 + $0x68] sm:$0x1] }
 0x1fa   : > { %5335 = vmatmul.msk.bf16.gmra.mxu0 %vm1198_vm12, %v4437_v29  ;;  %v4438_v55 = vpack.c.b16 %v4411_v48, %v4410_v34  ;;  %v4015_v0 = vunpack.c.l.b16 %v3761_v4  ;;  %v5320_v34 = vrot.slane %v4229_v45, 9  ;;  %v4327_v48 = vrot.slane %v4325_v11, 4  ;;  %v6548_v45 = vld [vmem:[#allocation2 + $0x70] sm:$0xf] }
 0x1fb   : > { %v2176_v47 = vpop.f32.mrf.mxu3  ;;  %5286 = vmatmul.msk.bf16.gmra.mxu2 %vm1198_vm12, %v5388_v28  ;;  %v5449_v28 = vld [vmem:[#allocation2 + $0x5c] sm:$0x1]  ;;  %v3769_v4 = vor.u32 %v3768_v50, %v3765_v49  ;;  %v3591_v49 = vld [vmem:[#allocation2 + $0x6c] sm:$0xf] }
 0x1fc   : > { %v2222_v1 = vadd.f32 %v2176_v47, %v1936_v62  ;;  %v6517_v62 = vld [vmem:[#allocation2 + $0x64] sm:$0xf]  ;;  %v2996_v2 = vrot.slane %v5449_v28, 5  ;;  %v2995_v47 = vrot.slane %v2993_v32, 4 }
 0x1fd   : > { %v3772_v14 = vshll.u32 %v6517_v62, 16  ;;  %v3776_v56 = vshrl.u32 %v6517_v62, 16 }
 0x1fe   : > { %v1893_v23 = vpop.f32.mrf.mxu2 }
 0x1ff   : > { %v2830_v61 = vpop.f32.mrf.mxu0  ;;  %v1937_v29 = vadd.f32 %v1893_v23, %v1541_v21  ;;  %v1545_v12 = vpop.f32.mrf.mxu1  ;;  %v4014_v21 = vunpack.c.l.b16 %v3751_v51  ;;  %v3774_v17 = vrot.slane %v3772_v14, 5 }
 0x200   : > { %5303 = vmatmul.msk.bf16.gmra.mxu3 %vm1198_vm12, %v4040_v3  ;;  %v6515_v41 = vadd.f32 %v2830_v61, %v2222_v1  ;;  %v1543_v1 = vadd.f32 %v1542_v33, %v6105_v20  ;;  %v2994_v61 = vsel %vm5996_vm15, %v5190_v18, %v2993_v32  ;;  %v3778_v20 = vrot.slane %v3776_v56, 4 }
 0x201   : > { %v3075_v28 = vunpack.c.l.b16 %v2994_v61  ;;  %v4041_v32 = vpack.c.b16 %v4015_v0, %v4014_v21  ;;  %v1546_v18 = vadd.f32 %v1545_v12, %v6119_v35  ;;  %v5450_v21 = vld [vmem:[#allocation2 + $0x64] sm:$0xf]  ;;  %v2892_v35 = vld [vmem:[#allocation2 + $0x60] sm:$0xe] }
 0x202   : > { %5206 = vmatmul.msk.bf16.gmra.mxu1 %vm1198_vm12, %v3100_v43  ;;  %v3779_v7 = vor.u32 %v3778_v20, %v3774_v17  ;;  %v3000_v0 = vrot.slane %v5450_v21, 5  ;;  %v3787_v20 = vshrl.u32 %v3591_v49, 16 }
 0x203   : > { %v2179_v52 = vpop.f32.mrf.mxu3 }
 0x204   : > { %v2223_v54 = vadd.f32 %v2179_v52, %v1937_v29  ;;  %v2997_v29 = vsel %vm5996_vm15, %v2995_v47, %v2996_v2  ;;  %v4328_v2 = vrot.slane %v6501_v9, 5  ;;  %v4326_v47 = vsel %vm5996_vm15, %v5320_v34, %v4325_v11  ;;  %v5451_v11 = vld [vmem:[#allocation2 + $0x68] sm:$0x1] }
 0x205   : > { %v3076_v52 = vunpack.c.l.b16 %v2997_v29  ;;  %v3770_v9 = vrot.slane %v3769_v4, 4  ;;  %v4412_v61 = vunpack.c.l.b16 %v4326_v47 }
 0x206   : > { %v1895_v3 = vpop.f32.mrf.mxu2 }
 0x207   : > { %v2833_v23 = vpop.f32.mrf.mxu0  ;;  %v1938_v43 = vadd.f32 %v1895_v3, %v1543_v1  ;;  %v1547_v53 = vpop.f32.mrf.mxu1  ;;  %v3101_v14 = vpack.c.b16 %v3076_v52, %v3075_v28  ;;  %v5191_v28 = vrot.slane %v2892_v35, 9  ;;  %v3002_v52 = vrot.slane %v3000_v0, 4 }
 0x208   : > { %v6532_v33 = vadd.f32 %v2833_v23, %v2223_v54  ;;  %v3782_v54 = vshll.u32 %v6534_v58, 16  ;;  %v3780_v23 = vrot.slane %v3779_v7, 4  ;;  %v1548_v4 = vadd.f32 %v1547_v53, %v6138_v5 }
 0x209   : > { %v4332_v7 = vrot.slane %v6517_v62, 5 }
 0x20a   : > { %5336 = vmatmul.msk.bf16.gmra.mxu0 %vm1198_vm12, %v4438_v55  ;;  %v4329_v55 = vsel %vm5996_vm15, %v4327_v48, %v4328_v2  ;;  %v3775_v48 = vsel %vm5593_vm11, %v3770_v9, %v3774_v17  ;;  %v3800_v2 = vshrl.u32 %v6548_v45, 16 }
 0x20b   : > { %v2181_v25 = vpop.f32.mrf.mxu3  ;;  %5287 = vmatmul.msk.bf16.gmra.mxu2 %vm1198_vm12, %v5389_v42  ;;  %v3003_v42 = vrot.slane %v5451_v11, 5  ;;  %v4413_v29 = vunpack.c.l.b16 %v4329_v55  ;;  %v4016_v47 = vunpack.c.l.b16 %v3775_v48  ;;  %v4334_v35 = vrot.slane %v4332_v7, 4  ;;  %v6565_v11 = vld [vmem:[#allocation2 + $0x74] sm:$0x1] }
 0x20c   : > { %v2224_v51 = vadd.f32 %v2181_v25, %v1938_v43  ;;  %v3784_v43 = vrot.slane %v3782_v54, 5  ;;  %v3790_v25 = vshll.u32 %v3591_v49, 16  ;;  %v3001_v49 = vsel %vm5996_vm15, %v5191_v28, %v3000_v0 }
 0x20d   : > { %v4439_v54 = vpack.c.b16 %v4413_v29, %v4412_v61  ;;  %v3802_v53 = vrot.slane %v3800_v2, 4  ;;  %v4335_v29 = vrot.slane %v6534_v58, 5 }
 0x20e   : > { %v1898_v22 = vpop.f32.mrf.mxu2 }
 0x20f   : > { %v2835_v56 = vpop.f32.mrf.mxu0  ;;  %v1939_v1 = vadd.f32 %v1898_v22, %v1546_v18  ;;  %v1550_v3 = vpop.f32.mrf.mxu1  ;;  %v4230_v22 = vld [vmem:[#allocation2 + $0x60] sm:$0xe] }
 0x210   : > { %5304 = vmatmul.msk.bf16.gmra.mxu3 %vm1198_vm12, %v4041_v32  ;;  %v6546_v12 = vadd.f32 %v2835_v56, %v2224_v51  ;;  %v3785_v51 = vsel %vm5593_vm11, %v3780_v23, %v3784_v43  ;;  %v3796_v32 = vshll.u32 %v6548_v45, 16  ;;  %v3792_v56 = vrot.slane %v3790_v25, 5 }
 0x211   : > { %v4017_v9 = vunpack.c.l.b16 %v3785_v51  ;;  %v3004_v23 = vsel %vm5996_vm15, %v3002_v52, %v3003_v42  ;;  %v5321_v43 = vrot.slane %v4230_v22, 9  ;;  %v1551_v28 = vadd.f32 %v1550_v3, %v6150_v38  ;;  %v2893_v38 = vld [vmem:[#allocation2 + $0x6c] sm:$0xe] }
 0x212   : > { %5207 = vmatmul.msk.bf16.gmra.mxu1 %vm1198_vm12, %v3101_v14  ;;  %v3789_v14 = vrot.slane %v3787_v20, 4  ;;  %v3798_v5 = vrot.slane %v3796_v32, 5  ;;  %v3078_v20 = vunpack.c.l.b16 %v3004_v23  ;;  %v4336_v51 = vsel %vm5996_vm15, %v4334_v35, %v4335_v29  ;;  %v5453_v29 = vld [vmem:[#allocation2 + $0x74] sm:$0x1] }
 0x213   : > { %v2184_v50 = vpop.f32.mrf.mxu3  ;;  %v4042_v42 = vpack.c.b16 %v4017_v9, %v4016_v47  ;;  %v4333_v52 = vsel %vm5996_vm15, %v5321_v43, %v4332_v7  ;;  %v5452_v47 = vld [vmem:[#allocation2 + $0x70] sm:$0xf]  ;;  %v5192_v35 = vrot.slane %v2893_v38, 9 }
 0x214   : > { %v2225_v34 = vadd.f32 %v2184_v50, %v1939_v1  ;;  %v5390_v1 = vld [vmem:[#allocation2 + $0x60] sm:$0xff]  ;;  %v3077_v50 = vunpack.c.l.b16 %v3001_v49  ;;  %v3793_v25 = vor.u32 %v3792_v56, %v3789_v14  ;;  %v3803_v48 = vor.u32 %v3802_v53, %v3798_v5  ;;  %v3594_v14 = vld [vmem:[#allocation2 + $0x78] sm:$0xf] }
 0x215   : > { %v3007_v22 = vrot.slane %v5452_v47, 5  ;;  %v4414_v7 = vunpack.c.l.b16 %v4333_v52  ;;  %v3811_v23 = vshrl.u32 %v3594_v14, 16  ;;  %v3814_v53 = vshll.u32 %v3594_v14, 16  ;;  %v4231_v47 = vld [vmem:[#allocation2 + $0x6c] sm:$0xe] }
 0x216   : > { %v1900_v18 = vpop.f32.mrf.mxu2  ;;  %v3102_v58 = vpack.c.b16 %v3078_v20, %v3077_v50  ;;  %v3794_v2 = vrot.slane %v3793_v25, 4  ;;  %v3804_v56 = vrot.slane %v3803_v48, 4  ;;  %v3010_v50 = vrot.slane %v5453_v29, 5  ;;  %v7049_v48 = vld [vmem:[#allocation3_spill] sm:$0xff] }
 0x217   : > { %v2838_v17 = vpop.f32.mrf.mxu0  ;;  %v1940_v55 = vadd.f32 %v1900_v18, %v1548_v4  ;;  %v1552_v21 = vpop.f32.mrf.mxu1 }
 0x218   : > { %v6563_v62 = vadd.f32 %v2838_v17, %v2225_v34  ;;  %v3806_v34 = vshll.u32 %v6565_v11, 16  ;;  %v3799_v49 = vsel %vm5593_vm11, %v3794_v2, %v3798_v5  ;;  %v4339_v5 = vrot.slane %v6548_v45, 5 }
 0x219   : > { %v4018_v52 = vunpack.c.l.b16 %v3799_v49 }
 0x21a   : > { %5337 = vmatmul.msk.bf16.gmra.mxu0 %vm1198_vm12, %v4439_v54  ;;  %v3808_v17 = vrot.slane %v3806_v34, 5  ;;  %v1553_v34 = vadd.f32 %v1552_v21, %v7049_v48 }
 0x21b   : > { %v2186_v61 = vpop.f32.mrf.mxu3  ;;  %5288 = vmatmul.msk.bf16.gmra.mxu2 %vm1198_vm12, %v5390_v1  ;;  %v6579_v1 = vld [vmem:[#allocation2 + $0x7c] sm:$0xf] }
 0x21c   : > { %v2226_v0 = vadd.f32 %v2186_v61, %v1940_v55  ;;  %v4415_v55 = vunpack.c.l.b16 %v4336_v51  ;;  %v3009_v61 = vrot.slane %v3007_v22, 4  ;;  %v3809_v20 = vsel %vm5593_vm11, %v3804_v56, %v3808_v17 }
 0x21d   : > { %v3820_v25 = vshll.u32 %v6579_v1, 16  ;;  %v3813_v51 = vrot.slane %v3811_v23, 4  ;;  %v3008_v56 = vsel %vm5996_vm15, %v5192_v35, %v3007_v22  ;;  %v4341_v35 = vrot.slane %v4339_v5, 4 }
 0x21e   : > { %v1903_v32 = vpop.f32.mrf.mxu2  ;;  %v3011_v17 = vsel %vm5996_vm15, %v3009_v61, %v3010_v50  ;;  %v3079_v49 = vunpack.c.l.b16 %v3008_v56  ;;  %v4342_v61 = vrot.slane %v6565_v11, 5 }
 0x21f   : > { %v2840_v4 = vpop.f32.mrf.mxu0  ;;  %v1941_v54 = vadd.f32 %v1903_v32, %v1551_v28  ;;  %v1555_v18 = vpop.f32.mrf.mxu1  ;;  %v3816_v32 = vrot.slane %v3814_v53, 5  ;;  %v3822_v38 = vrot.slane %v3820_v25, 5  ;;  %v3080_v23 = vunpack.c.l.b16 %v3011_v17 }
 0x220   : > { %5305 = vmatmul.msk.bf16.gmra.mxu3 %vm1198_vm12, %v4042_v42  ;;  %v6577_v3 = vadd.f32 %v2840_v4, %v2226_v0  ;;  %v3824_v0 = vshrl.u32 %v6579_v1, 16  ;;  %v4440_v42 = vpack.c.b16 %v4415_v55, %v4414_v7  ;;  %v5391_v4 = vld [vmem:[#allocation2 + $0x6c] sm:$0xff]  ;;  %v6596_v55 = vld [vmem:[#allocation2 + $0x80] sm:$0x1] }
 0x221   : > { %v3817_v53 = vor.u32 %v3816_v32, %v3813_v51  ;;  %v3103_v48 = vpack.c.b16 %v3080_v23, %v3079_v49 }
 0x222   : > { %5208 = vmatmul.msk.bf16.gmra.mxu1 %vm1198_vm12, %v3102_v58  ;;  %v3826_v21 = vrot.slane %v3824_v0, 4 }
 0x223   : > { %v2189_v9 = vpop.f32.mrf.mxu3 }
 0x224   : > { %v2227_v43 = vadd.f32 %v2189_v9, %v1941_v54  ;;  %v4019_v54 = vunpack.c.l.b16 %v3809_v20  ;;  %v5322_v9 = vrot.slane %v4231_v47, 9  ;;  %v3827_v50 = vor.u32 %v3826_v21, %v3822_v38  ;;  %v7050_v20 = vld [vmem:[#allocation4_spill] sm:$0xff]  ;;  %v2894_v47 = vld [vmem:[#allocation2 + $0x78] sm:$0xe] }
 0x225   : > { %v1556_v25 = vadd.f32 %v1555_v18, %v7050_v20  ;;  %v7052_v20 = vld [vmem:[#allocation5_spill] sm:$0xff] }
 0x226   : > { %v1905_v28 = vpop.f32.mrf.mxu2  ;;  %v4043_v22 = vpack.c.b16 %v4019_v54, %v4018_v52  ;;  %v4340_v0 = vsel %vm5996_vm15, %v5322_v9, %v4339_v5  ;;  %v4343_v52 = vsel %vm5996_vm15, %v4341_v35, %v4342_v61  ;;  %v3828_v18 = vrot.slane %v3827_v50, 4  ;;  %v5455_v50 = vld [vmem:[#allocation2 + $0x80] sm:$0x1] }
 0x227   : > { %v2843_v58 = vpop.f32.mrf.mxu0  ;;  %v1942_v2 = vadd.f32 %v1905_v28, %v1553_v34  ;;  %v1557_v14 = vpop.f32.mrf.mxu1  ;;  %v3818_v34 = vrot.slane %v3817_v53, 4  ;;  %v3597_v28 = vld [vmem:[#allocation2 + $0x84] sm:$0xf]  ;;  %v4416_v56 = vunpack.c.l.b16 %v4340_v0  ;;  %v5193_v35 = vrot.slane %v2894_v47, 9 }
 0x228   : > { %v6594_v7 = vadd.f32 %v2843_v58, %v2227_v43  ;;  %v3830_v43 = vshll.u32 %v6596_v55, 16  ;;  %v5454_v58 = vld [vmem:[#allocation2 + $0x7c] sm:$0xf]  ;;  %v3835_v17 = vshrl.u32 %v3597_v28, 16  ;;  %v3838_v21 = vshll.u32 %v3597_v28, 16 }
 0x229   : > { %v3823_v49 = vsel %vm5593_vm11, %v3818_v34, %v3822_v38  ;;  %v4346_v0 = vrot.slane %v6579_v1, 5  ;;  %v6625_v1 = vld [vmem:[#allocation2 + $0x8c] sm:$0x1] }
 0x22a   : > { %5338 = vmatmul.msk.bf16.gmra.mxu0 %vm1198_vm12, %v4440_v42  ;;  %v3832_v54 = vrot.slane %v3830_v43, 5  ;;  %v4020_v34 = vunpack.c.l.b16 %v3823_v49 }
 0x22b   : > { %v2191_v45 = vpop.f32.mrf.mxu3  ;;  %5289 = vmatmul.msk.bf16.gmra.mxu2 %vm1198_vm12, %v5391_v4  ;;  %v6608_v4 = vld [vmem:[#allocation2 + $0x88] sm:$0xf] }
 0x22c   : > { %v2228_v29 = vadd.f32 %v2191_v45, %v1942_v2  ;;  %v3014_v2 = vrot.slane %v5454_v58, 5  ;;  %v4417_v45 = vunpack.c.l.b16 %v4343_v52  ;;  %v3844_v23 = vshll.u32 %v6608_v4, 16 }
 0x22d   : > { %v3848_v53 = vshrl.u32 %v6608_v4, 16  ;;  %v3833_v43 = vsel %vm5593_vm11, %v3828_v18, %v3832_v54 }
 0x22e   : > { %v1908_v42 = vpop.f32.mrf.mxu2  ;;  %v3016_v61 = vrot.slane %v3014_v2, 4  ;;  %v4441_v28 = vpack.c.b16 %v4417_v45, %v4416_v56  ;;  %v3846_v52 = vrot.slane %v3844_v23, 5  ;;  %v3015_v18 = vsel %vm5996_vm15, %v5193_v35, %v3014_v2 }
 0x22f   : > { %v2845_v51 = vpop.f32.mrf.mxu0  ;;  %v1943_v32 = vadd.f32 %v1908_v42, %v1556_v25  ;;  %v3171_v11 = vpop.f32.mrf.mxu1  ;;  %v1558_v25 = vadd.f32 %v1557_v14, %v7052_v20  ;;  %v3837_v42 = vrot.slane %v3835_v17, 4  ;;  %v3850_v58 = vrot.slane %v3848_v53, 4  ;;  %v3600_v20 = vld [vmem:[#allocation2 + $0x90] sm:$0xf] }
 0x230   : > { %5306 = vmatmul.msk.bf16.gmra.mxu3 %vm1198_vm12, %v4043_v22  ;;  %v6610_v5 = vadd.f32 %v2845_v51, %v2228_v29  ;;  %v3017_v29 = vrot.slane %v5455_v50, 5  ;;  %v4232_v51 = vld [vmem:[#allocation2 + $0x78] sm:$0xe]  ;;  %v4348_v17 = vrot.slane %v4346_v0, 4  ;;  %v3081_v23 = vunpack.c.l.b16 %v3015_v18 }
 0x231   : > { %v5323_v56 = vrot.slane %v4232_v51, 9  ;;  %v3854_v2 = vshll.u32 %v6625_v1, 16 }
 0x232   : > { %7051 = vst [vmem:[#allocation3_spill] sm:$0xff] %v6610_v5  ;;  %5209 = vmatmul.msk.bf16.gmra.mxu1 %vm1198_vm12, %v3103_v48  ;;  %v3840_v48 = vrot.slane %v3838_v21, 5  ;;  %v4021_v5 = vunpack.c.l.b16 %v3833_v43  ;;  %v3018_v14 = vsel %vm5996_vm15, %v3016_v61, %v3017_v29  ;;  %v4349_v21 = vrot.slane %v6596_v55, 5 }
 0x233   : > { %v2194_v9 = vpop.f32.mrf.mxu3  ;;  %v3082_v53 = vunpack.c.l.b16 %v3018_v14  ;;  %v3851_v43 = vor.u32 %v3850_v58, %v3846_v52  ;;  %v4347_v29 = vsel %vm5996_vm15, %v5323_v56, %v4346_v0  ;;  %v3859_v0 = vshrl.u32 %v3600_v20, 16 }
 0x234   : > { %v2229_v22 = vadd.f32 %v2194_v9, %v1943_v32  ;;  %v5392_v9 = vld [vmem:[#allocation2 + $0x78] sm:$0xff]  ;;  %v3841_v45 = vor.u32 %v3840_v48, %v3837_v42  ;;  %v4044_v61 = vpack.c.b16 %v4021_v5, %v4020_v34  ;;  %v4350_v55 = vsel %vm5996_vm15, %v4348_v17, %v4349_v21  ;;  %v6639_v34 = vld [vmem:[#allocation2 + $0x94] sm:$0xf] }
 0x235   : > { %v3104_v42 = vpack.c.b16 %v3082_v53, %v3081_v23  ;;  %v4418_v18 = vunpack.c.l.b16 %v4347_v29  ;;  %v4419_v14 = vunpack.c.l.b16 %v4350_v55  ;;  %v4233_v23 = vld [vmem:[#allocation2 + $0x84] sm:$0xe]  ;;  %v3861_v29 = vrot.slane %v3859_v0, 4 }
 0x236   : > { %v1910_v38 = vpop.f32.mrf.mxu2  ;;  %v3842_v48 = vrot.slane %v3841_v45, 4  ;;  %v4353_v45 = vrot.slane %v6608_v4, 5  ;;  %v5324_v4 = vrot.slane %v4233_v23, 9 }
 0x237   : > { %v2848_v32 = vpop.f32.mrf.mxu0  ;;  %v1944_v47 = vadd.f32 %v1910_v38, %v1558_v25  ;;  %v3173_v50 = vpop.f32.mrf.mxu1  ;;  %v3856_v38 = vrot.slane %v3854_v2, 5  ;;  %v5457_v2 = vld [vmem:[#allocation2 + $0x8c] sm:$0x1] }
 0x238   : > { %v6627_v54 = vadd.f32 %v2848_v32, %v2229_v22  ;;  %v3251_v22 = vadd.f32 %v3171_v11, %v6212_v30  ;;  %v5456_v32 = vld [vmem:[#allocation2 + $0x88] sm:$0xf]  ;;  %v2895_v11 = vld [vmem:[#allocation2 + $0x84] sm:$0xe]  ;;  %v3847_v17 = vsel %vm5593_vm11, %v3842_v48, %v3846_v52  ;;  %v3252_v52 = vadd.f32 %v3173_v50, %v6227_v27 }
 0x239   : > { %v3021_v5 = vrot.slane %v5456_v32, 5  ;;  %v5194_v53 = vrot.slane %v2895_v11, 9  ;;  %v4356_v50 = vrot.slane %v6625_v1, 5  ;;  %v4354_v1 = vsel %vm5996_vm15, %v5324_v4, %v4353_v45 }
 0x23a   : > { %5339 = vmatmul.msk.bf16.gmra.mxu0 %vm1198_vm12, %v4441_v28  ;;  %v3852_v28 = vrot.slane %v3851_v43, 4 }
 0x23b   : > { %v2196_v49 = vpop.f32.mrf.mxu3  ;;  %5290 = vmatmul.msk.bf16.gmra.mxu2 %vm1198_vm12, %v5392_v9  ;;  %v3023_v43 = vrot.slane %v3021_v5, 4  ;;  %v3022_v11 = vsel %vm5996_vm15, %v5194_v53, %v3021_v5 }
 0x23c   : > { %v2230_v35 = vadd.f32 %v2196_v49, %v1944_v47  ;;  %v3862_v47 = vshll.u32 %v3600_v20, 16  ;;  %v3857_v21 = vsel %vm5593_vm11, %v3852_v28, %v3856_v38  ;;  %v3868_v49 = vshll.u32 %v6639_v34, 16 }
 0x23d   : > { %v4442_v20 = vpack.c.b16 %v4419_v14, %v4418_v18  ;;  %v4023_v48 = vunpack.c.l.b16 %v3857_v21  ;;  %v4355_v28 = vrot.slane %v4353_v45, 4  ;;  %v6661_v14 = vld [vmem:[#allocation2 + $0x98] sm:$0x1]  ;;  %v3083_v21 = vunpack.c.l.b16 %v3022_v11 }
 0x23e   : > { %v3458_v25 = vpop.f32.mrf.mxu2  ;;  %v3864_v55 = vrot.slane %v3862_v47, 5  ;;  %v6658_v0 = vrot.slane %v3868_v49, 5 }
 0x23f   : > { %v2850_v51 = vpop.f32.mrf.mxu0  ;;  %v3176_v58 = vpop.f32.mrf.mxu1  ;;  %v3538_v30 = vadd.f32 %v3458_v25, %v3251_v22  ;;  %v4022_v25 = vunpack.c.l.b16 %v3847_v17 }
 0x240   : > { %5307 = vmatmul.msk.bf16.gmra.mxu3 %vm1198_vm12, %v4044_v61  ;;  %v6641_v9 = vadd.f32 %v2850_v51, %v2230_v35  ;;  %v3024_v35 = vrot.slane %v5457_v2, 5  ;;  %v3872_v61 = vshrl.u32 %v6639_v34, 16  ;;  %v5393_v51 = vld [vmem:[#allocation2 + $0x84] sm:$0xff] }
 0x241   : > { %v4045_v23 = vpack.c.b16 %v4023_v48, %v4022_v25  ;;  %v3603_v25 = vld [vmem:[#allocation2 + $0x9c] sm:$0xf] }
 0x242   : > { %5210 = vmatmul.msk.bf16.gmra.mxu1 %vm1198_vm12, %v3104_v42  ;;  %v3874_v47 = vrot.slane %v3872_v61, 4 }
 0x243   : > { %v4112_v56 = vpop.f32.mrf.mxu3 }
 0x244   : > { %v4192_v22 = vadd.f32 %v4112_v56, %v3538_v30  ;;  %v3025_v30 = vsel %vm5996_vm15, %v3023_v43, %v3024_v35  ;;  %v3865_v56 = vor.u32 %v3864_v55, %v3861_v29  ;;  %v3875_v53 = vor.u32 %v3874_v47, %v6658_v0 }
 0x245   : > { %v3084_v49 = vunpack.c.l.b16 %v3025_v30  ;;  %v3878_v43 = vshll.u32 %v6661_v14, 16  ;;  %v4357_v35 = vsel %vm5996_vm15, %v4355_v28, %v4356_v50  ;;  %v4420_v29 = vunpack.c.l.b16 %v4354_v1 }
 0x246   : > { %v3460_v42 = vpop.f32.mrf.mxu2  ;;  %v3866_v61 = vrot.slane %v3865_v56, 4  ;;  %v3876_v4 = vrot.slane %v3875_v53, 4  ;;  %v3883_v50 = vshrl.u32 %v3603_v25, 16  ;;  %v3886_v56 = vshll.u32 %v3603_v25, 16 }
 0x247   : > { %v4510_v38 = vpop.f32.mrf.mxu0  ;;  %v6652_v32 = vpop.f32.mrf.mxu1  ;;  %v3539_v27 = vadd.f32 %v3460_v42, %v3252_v52  ;;  %v6681_v52 = vld [vmem:[#allocation2 + $0xa0] sm:$0xf]  ;;  %v4421_v42 = vunpack.c.l.b16 %v4357_v35 }
 0x248   : > { %v4590_v18 = vadd.f32 %v4510_v38, %v4192_v22  ;;  %v3253_v22 = vadd.f32 %v3176_v58, %v6232_v19  ;;  %v3880_v38 = vrot.slane %v3878_v43, 5  ;;  %v3871_v19 = vsel %vm5593_vm11, %v3866_v61, %v6658_v0  ;;  %v2896_v58 = vld [vmem:[#allocation2 + $0x90] sm:$0xe] }
 0x249   : > { %v5195_v1 = vrot.slane %v2896_v58, 9  ;;  %v3896_v35 = vshrl.u32 %v6681_v52, 16  ;;  %v4443_v58 = vpack.c.b16 %v4421_v42, %v4420_v29 }
 0x24a   : > { %5340 = vmatmul.msk.bf16.gmra.mxu0 %vm1198_vm12, %v4442_v20  ;;  %v4622_v5 = vpack.c.bf16 %v4590_v18, %v4590_v18  ;;  %v3105_v20 = vpack.c.b16 %v3084_v49, %v3083_v21  ;;  %v4755_v28 = vmul.f32 %v4590_v18, %v4590_v18 }
 0x24b   : > { %v4114_v17 = vpop.f32.mrf.mxu3  ;;  %5291 = vmatmul.msk.bf16.gmra.mxu2 %vm1198_vm12, %v5393_v51  ;;  %v5458_v51 = vld [vmem:[#allocation2 + $0x94] sm:$0xf] }
 0x24c   : > { %4654 = vst.msk [vmem:[%s6668_s11] sm:$0xf] %vm183_vm1, %v4622_v5  ;;  %v4193_v2 = vadd.f32 %v4114_v17, %v3539_v27  ;;  %v3028_v11 = vrot.slane %v5458_v51, 5  ;;  %v4686_v27 = vsel %vm1198_vm12, %v4590_v18, 0.0  ;;  %v3892_v5 = vshll.u32 %v6681_v52, 16 }
 0x24d   : > { %v4787_v18 = vsel %vm1198_vm12, %v4755_v28, 0.0  ;;  %v3885_v51 = vrot.slane %v3883_v50, 4  ;;  %v4024_v28 = vunpack.c.l.b16 %v3871_v19 }
 0x24e   : > { %v3463_v55 = vpop.f32.mrf.mxu2  ;;  %v3030_v43 = vrot.slane %v3028_v11, 4 }
 0x24f   : > { %v4512_v45 = vpop.f32.mrf.mxu0  ;;  %v6684_v48 = vpop.f32.mrf.mxu1  ;;  %v3540_v47 = vadd.f32 %v3463_v55, %v3253_v22  ;;  %v3881_v55 = vsel %vm5593_vm11, %v3876_v4, %v3880_v38  ;;  %v3898_v38 = vrot.slane %v3896_v35, 4 }
 0x250   : > { %5308 = vmatmul.msk.bf16.gmra.mxu3 %vm1198_vm12, %v4045_v23  ;;  %v4591_v30 = vadd.f32 %v4512_v45, %v4193_v2  ;;  %v5459_v2 = vld [vmem:[#allocation2 + $0x98] sm:$0x1]  ;;  %v4234_v45 = vld [vmem:[#allocation2 + $0x90] sm:$0xe] }
 0x251   : > { %v3031_v0 = vrot.slane %v5459_v2, 5  ;;  %v5325_v50 = vrot.slane %v4234_v45, 9 }
 0x252   : > { %v4623_v17 = vpack.c.bf16 %v4591_v30, %v4591_v30  ;;  %v4687_v21 = vsel %vm1198_vm12, %v4591_v30, 0.0  ;;  %v4756_v49 = vmul.f32 %v4591_v30, %v4591_v30  ;;  %5211 = vmatmul.msk.bf16.gmra.mxu1 %vm1198_vm12, %v3105_v20  ;;  %v4360_v20 = vrot.slane %v6639_v34, 5 }
 0x253   : > { %v4117_v23 = vpop.f32.mrf.mxu3  ;;  %v4688_v53 = vadd.f32 %v4687_v21, %v4686_v27  ;;  %v3888_v30 = vrot.slane %v3886_v56, 5  ;;  %v3254_v27 = vadd.f32 %v6652_v32, %v6246_v46  ;;  %v3032_v4 = vsel %vm5996_vm15, %v3030_v43, %v3031_v0  ;;  %v6711_v46 = vld [vmem:[#allocation2 + $0xa4] sm:$0x1] }
 0x254   : > { %4655 = vst.msk [vmem:[%s6668_s11 + $0x4] sm:$0xf] %vm183_vm1, %v4623_v17  ;;  %v4788_v61 = vsel %vm1198_vm12, %v4756_v49, 0.0  ;;  %v4194_v22 = vadd.f32 %v4117_v23, %v3540_v47  ;;  %v3029_v17 = vsel %vm5996_vm15, %v5195_v1, %v3028_v11  ;;  %v5394_v47 = vld [vmem:[#allocation2 + $0x90] sm:$0xff]  ;;  %v4025_v23 = vunpack.c.l.b16 %v3881_v55 }
 0x255   : > { %v4789_v25 = vadd.f32 %v4788_v61, %v4787_v18  ;;  %v6709_v34 = vrot.slane %v3892_v5, 5  ;;  %v4362_v32 = vrot.slane %v4360_v20, 4  ;;  %v4363_v11 = vrot.slane %v6661_v14, 5 }
 0x256   : > { %v3465_v21 = vpop.f32.mrf.mxu2  ;;  %v3085_v19 = vunpack.c.l.b16 %v3029_v17  ;;  %v3889_v56 = vor.u32 %v3888_v30, %v3885_v51  ;;  %v3086_v0 = vunpack.c.l.b16 %v3032_v4  ;;  %v4046_v61 = vpack.c.b16 %v4025_v23, %v4024_v28  ;;  %v3606_v17 = vld [vmem:[#allocation2 + $0xa8] sm:$0xf]  ;;  %v5460_v4 = vld [vmem:[#allocation2 + $0xa0] sm:$0xf] }
 0x257   : > { %v4515_v49 = vpop.f32.mrf.mxu0  ;;  %v6705_v2 = vpop.f32.mrf.mxu1  ;;  %v3541_v42 = vadd.f32 %v3465_v21, %v3254_v27  ;;  %v3902_v55 = vshll.u32 %v6711_v46, 16  ;;  %v4361_v30 = vsel %vm5996_vm15, %v5325_v50, %v4360_v20  ;;  %v3255_v27 = vadd.f32 %v6684_v48, %v6250_v24 }
 0x258   : > { %v4592_v29 = vadd.f32 %v4515_v49, %v4194_v22  ;;  %v3899_v22 = vor.u32 %v3898_v38, %v6709_v34  ;;  %v3106_v28 = vpack.c.b16 %v3086_v0, %v3085_v19  ;;  %v3035_v38 = vrot.slane %v5460_v4, 5 }
 0x259   : > { %v4367_v48 = vrot.slane %v6681_v52, 5  ;;  %v3907_v19 = vshrl.u32 %v3606_v17, 16  ;;  %v5461_v52 = vld [vmem:[#allocation2 + $0xa4] sm:$0x1] }
 0x25a   : > { %5341 = vmatmul.msk.bf16.gmra.mxu0 %vm1198_vm12, %v4443_v58  ;;  %v4624_v1 = vpack.c.bf16 %v4592_v29, %v4592_v29  ;;  %v4689_v18 = vsel %vm1198_vm12, %v4592_v29, 0.0  ;;  %v4757_v43 = vmul.f32 %v4592_v29, %v4592_v29  ;;  %v4364_v58 = vsel %vm5996_vm15, %v4362_v32, %v4363_v11  ;;  %v2897_v32 = vld [vmem:[#allocation2 + $0x9c] sm:$0xe]  ;;  %v6735_v11 = vld [vmem:[#allocation2 + $0xac] sm:$0xf] }
 0x25b   : > { %v4119_v5 = vpop.f32.mrf.mxu3  ;;  %v4690_v35 = vadd.f32 %v4689_v18, %v4688_v53  ;;  %5292 = vmatmul.msk.bf16.gmra.mxu2 %vm1198_vm12, %v5394_v47  ;;  %v3890_v53 = vrot.slane %v3889_v56, 4  ;;  %v3900_v23 = vrot.slane %v3899_v22, 4  ;;  %v4422_v29 = vunpack.c.l.b16 %v4361_v30 }
 0x25c   : > { %4656 = vst.msk [vmem:[%s6668_s11 + $0x8] sm:$0xf] %vm183_vm1, %v4624_v1  ;;  %v4790_v14 = vsel %vm1198_vm12, %v4757_v43, 0.0  ;;  %v4195_v45 = vadd.f32 %v4119_v5, %v3541_v42  ;;  %v4423_v42 = vunpack.c.l.b16 %v4364_v58  ;;  %v3910_v56 = vshll.u32 %v3606_v17, 16  ;;  %v7053_v17 = vld [vmem:[#allocation6_spill] sm:$0xff] }
 0x25d   : > { %v4791_v51 = vadd.f32 %v4790_v14, %v4789_v25  ;;  %v3904_v25 = vrot.slane %v3902_v55, 5  ;;  %v3895_v24 = vsel %vm5593_vm11, %v3890_v53, %v6709_v34  ;;  %v5196_v0 = vrot.slane %v2897_v32, 9  ;;  %v4235_v34 = vld [vmem:[#allocation2 + $0x9c] sm:$0xe] }
 0x25e   : > { %v3468_v21 = vpop.f32.mrf.mxu2  ;;  %v3037_v55 = vrot.slane %v3035_v38, 4  ;;  %v3038_v14 = vrot.slane %v5461_v52, 5  ;;  %v3916_v58 = vshll.u32 %v6735_v11, 16  ;;  %v3920_v53 = vshrl.u32 %v6735_v11, 16 }
 0x25f   : > { %v4517_v49 = vpop.f32.mrf.mxu0  ;;  %v6729_v47 = vpop.f32.mrf.mxu1  ;;  %v3542_v50 = vadd.f32 %v3468_v21, %v3255_v27  ;;  %v3905_v22 = vsel %vm5593_vm11, %v3900_v23, %v3904_v25  ;;  %v4444_v21 = vpack.c.b16 %v4423_v42, %v4422_v29  ;;  %v4026_v25 = vunpack.c.l.b16 %v3895_v24 }
 0x260   : > { %5309 = vmatmul.msk.bf16.gmra.mxu3 %vm1198_vm12, %v4046_v61  ;;  %v4593_v20 = vadd.f32 %v4517_v49, %v4195_v45  ;;  %v3256_v49 = vadd.f32 %v6705_v2, %v7053_v17  ;;  %v5326_v4 = vrot.slane %v4235_v34, 9  ;;  %v6755_v2 = vrot.slane %v3916_v58, 5  ;;  %v7054_v17 = vld [vmem:[#allocation7_spill] sm:$0xff] }
 0x261   : > { %v3922_v24 = vrot.slane %v3920_v53, 4 }
 0x262   : > { %v4625_v1 = vpack.c.bf16 %v4593_v20, %v4593_v20  ;;  %v4691_v18 = vsel %vm1198_vm12, %v4593_v20, 0.0  ;;  %v4758_v43 = vmul.f32 %v4593_v20, %v4593_v20  ;;  %5212 = vmatmul.msk.bf16.gmra.mxu1 %vm1198_vm12, %v3106_v28  ;;  %v3909_v28 = vrot.slane %v3907_v19, 4 }
 0x263   : > { %v4122_v5 = vpop.f32.mrf.mxu3  ;;  %v4692_v61 = vadd.f32 %v4691_v18, %v4690_v35  ;;  %v3912_v35 = vrot.slane %v3910_v56, 5  ;;  %v3036_v20 = vsel %vm5996_vm15, %v5196_v0, %v3035_v38  ;;  %v4369_v18 = vrot.slane %v4367_v48, 4  ;;  %v6757_v56 = vld [vmem:[#allocation2 + $0xb0] sm:$0x1] }
 0x264   : > { %4657 = vst.msk [vmem:[%s6668_s11 + $0xc] sm:$0xf] %vm183_vm1, %v4625_v1  ;;  %v4792_v45 = vsel %vm1198_vm12, %v4758_v43, 0.0  ;;  %v4196_v30 = vadd.f32 %v4122_v5, %v3542_v50  ;;  %v5395_v1 = vld [vmem:[#allocation2 + $0x9c] sm:$0xff]  ;;  %v4027_v50 = vunpack.c.l.b16 %v3905_v22  ;;  %v4370_v43 = vrot.slane %v6711_v46, 5 }
 0x265   : > { %v4793_v27 = vadd.f32 %v4792_v45, %v4791_v51  ;;  %v3039_v51 = vsel %vm5996_vm15, %v3037_v55, %v3038_v14  ;;  %v3087_v19 = vunpack.c.l.b16 %v3036_v20  ;;  %v3913_v38 = vor.u32 %v3912_v35, %v3909_v28 }
 0x266   : > { %v3470_v23 = vpop.f32.mrf.mxu2  ;;  %v3088_v52 = vunpack.c.l.b16 %v3039_v51  ;;  %v4047_v55 = vpack.c.b16 %v4027_v50, %v4026_v25  ;;  %v4368_v14 = vsel %vm5996_vm15, %v5326_v4, %v4367_v48  ;;  %v3926_v28 = vshll.u32 %v6757_v56, 16  ;;  %v3609_v48 = vld [vmem:[#allocation2 + $0xb4] sm:$0xf]  ;;  %v6773_v4 = vld [vmem:[#allocation2 + $0xb8] sm:$0xf] }
 0x267   : > { %v4520_v32 = vpop.f32.mrf.mxu0  ;;  %v6751_v5 = vpop.f32.mrf.mxu1  ;;  %v3543_v42 = vadd.f32 %v3470_v23, %v3256_v49  ;;  %v3257_v49 = vadd.f32 %v6729_v47, %v7054_v17 }
 0x268   : > { %v4594_v29 = vadd.f32 %v4520_v32, %v4196_v30  ;;  %v4371_v30 = vsel %vm5996_vm15, %v4369_v18, %v4370_v43  ;;  %v3107_v25 = vpack.c.b16 %v3088_v52, %v3087_v19  ;;  %v4424_v32 = vunpack.c.l.b16 %v4368_v14  ;;  %v5462_v18 = vld [vmem:[#allocation2 + $0xac] sm:$0xf] }
 0x269   : > { %v3042_v43 = vrot.slane %v5462_v18, 5  ;;  %v3931_v19 = vshrl.u32 %v3609_v48, 16 }
 0x26a   : > { %5342 = vmatmul.msk.bf16.gmra.mxu0 %vm1198_vm12, %v4444_v21  ;;  %v4626_v0 = vpack.c.bf16 %v4594_v29, %v4594_v29  ;;  %v4693_v46 = vsel %vm1198_vm12, %v4594_v29, 0.0  ;;  %v4759_v22 = vmul.f32 %v4594_v29, %v4594_v29  ;;  %v3923_v21 = vor.u32 %v3922_v24, %v6755_v2  ;;  %v2898_v24 = vld [vmem:[#allocation2 + $0xa8] sm:$0xe] }
 0x26b   : > { %v4124_v34 = vpop.f32.mrf.mxu3  ;;  %v4694_v45 = vadd.f32 %v4693_v46, %v4692_v61  ;;  %5293 = vmatmul.msk.bf16.gmra.mxu2 %vm1198_vm12, %v5395_v1  ;;  %v3914_v61 = vrot.slane %v3913_v38, 4  ;;  %v4425_v1 = vunpack.c.l.b16 %v4371_v30  ;;  %v3934_v38 = vshll.u32 %v3609_v48, 16  ;;  %v4236_v30 = vld [vmem:[#allocation2 + $0xa8] sm:$0xe] }
 0x26c   : > { %4658 = vst.msk [vmem:[%s6668_s11 + $0x10] sm:$0xf] %vm183_vm1, %v4626_v0  ;;  %v4794_v58 = vsel %vm1198_vm12, %v4759_v22, 0.0  ;;  %v4197_v53 = vadd.f32 %v4124_v34, %v3543_v42  ;;  %v3924_v29 = vrot.slane %v3923_v21, 4  ;;  %v3928_v42 = vrot.slane %v3926_v28, 5 }
 0x26d   : > { %v4795_v35 = vadd.f32 %v4794_v58, %v4793_v27  ;;  %v3919_v47 = vsel %vm5593_vm11, %v3914_v61, %v6755_v2  ;;  %v3940_v0 = vshll.u32 %v6773_v4, 16  ;;  %v3044_v58 = vrot.slane %v3042_v43, 4 }
 0x26e   : > { %v3473_v23 = vpop.f32.mrf.mxu2  ;;  %v3944_v2 = vshrl.u32 %v6773_v4, 16  ;;  %v3929_v17 = vsel %vm5593_vm11, %v3924_v29, %v3928_v42  ;;  %v3933_v48 = vrot.slane %v3931_v19, 4  ;;  %v4377_v42 = vrot.slane %v6757_v56, 5  ;;  %v6802_v19 = vld [vmem:[#allocation2 + $0xbc] sm:$0x1] }
 0x26f   : > { %v4522_v20 = vpop.f32.mrf.mxu0  ;;  %v6776_v50 = vpop.f32.mrf.mxu1  ;;  %v3544_v27 = vadd.f32 %v3473_v23, %v3257_v49  ;;  %v4374_v49 = vrot.slane %v6735_v11, 5 }
 0x270   : > { %5310 = vmatmul.msk.bf16.gmra.mxu3 %vm1198_vm12, %v4047_v55  ;;  %v4595_v51 = vadd.f32 %v4522_v20, %v4197_v53  ;;  %v5197_v55 = vrot.slane %v2898_v24, 9  ;;  %v5463_v53 = vld [vmem:[#allocation2 + $0xb0] sm:$0x1]  ;;  %v7055_v20 = vld [vmem:[#allocation8_spill] sm:$0xff]  ;;  %v4028_v24 = vunpack.c.l.b16 %v3919_v47 }
 0x271   : > { %v3045_v21 = vrot.slane %v5463_v53, 5  ;;  %v3258_v18 = vadd.f32 %v6751_v5, %v7055_v20  ;;  %v4376_v5 = vrot.slane %v4374_v49, 4  ;;  %v3612_v20 = vld [vmem:[#allocation2 + $0xc0] sm:$0xf] }
 0x272   : > { %v4627_v46 = vpack.c.bf16 %v4595_v51, %v4595_v51  ;;  %v4695_v22 = vsel %vm1198_vm12, %v4595_v51, 0.0  ;;  %v4760_v34 = vmul.f32 %v4595_v51, %v4595_v51  ;;  %5213 = vmatmul.msk.bf16.gmra.mxu1 %vm1198_vm12, %v3107_v25  ;;  %v4445_v25 = vpack.c.b16 %v4425_v1, %v4424_v32 }
 0x273   : > { %v4127_v52 = vpop.f32.mrf.mxu3  ;;  %v4696_v14 = vadd.f32 %v4695_v22, %v4694_v45  ;;  %v3936_v45 = vrot.slane %v3934_v38, 5  ;;  %v5327_v22 = vrot.slane %v4236_v30, 9  ;;  %v3046_v11 = vsel %vm5996_vm15, %v3044_v58, %v3045_v21 }
 0x274   : > { %4659 = vst.msk [vmem:[%s6668_s11 + $0x14] sm:$0xf] %vm183_vm1, %v4627_v46  ;;  %v4796_v28 = vsel %vm1198_vm12, %v4760_v34, 0.0  ;;  %v4198_v61 = vadd.f32 %v4127_v52, %v3544_v27  ;;  %v3043_v46 = vsel %vm5996_vm15, %v5197_v55, %v3042_v43  ;;  %v5396_v27 = vld [vmem:[#allocation2 + $0xa8] sm:$0xff]  ;;  %v4029_v52 = vunpack.c.l.b16 %v3929_v17 }
 0x275   : > { %v4797_v23 = vadd.f32 %v4796_v28, %v4795_v35  ;;  %v6799_v35 = vrot.slane %v3940_v0, 5  ;;  %v3946_v32 = vrot.slane %v3944_v2, 4  ;;  %v3089_v47 = vunpack.c.l.b16 %v3043_v46 }
 0x276   : > { %v3475_v51 = vpop.f32.mrf.mxu2  ;;  %v3937_v43 = vor.u32 %v3936_v45, %v3933_v48  ;;  %v3090_v0 = vunpack.c.l.b16 %v3046_v11  ;;  %v4048_v2 = vpack.c.b16 %v4029_v52, %v4028_v24  ;;  %v4375_v28 = vsel %vm5996_vm15, %v5327_v22, %v4374_v49  ;;  %v6818_v24 = vld [vmem:[#allocation2 + $0xc4] sm:$0xf]  ;;  %v5464_v11 = vld [vmem:[#allocation2 + $0xb8] sm:$0xf] }
 0x277   : > { %v4525_v34 = vpop.f32.mrf.mxu0  ;;  %v6795_v53 = vpop.f32.mrf.mxu1  ;;  %v3545_v29 = vadd.f32 %v3475_v51, %v3258_v18  ;;  %v3947_v56 = vor.u32 %v3946_v32, %v6799_v35  ;;  %v3950_v48 = vshll.u32 %v6802_v19, 16  ;;  %v3259_v18 = vadd.f32 %v6776_v50, %v6293_v63 }
 0x278   : > { %v4596_v1 = vadd.f32 %v4525_v34, %v4198_v61  ;;  %v3108_v49 = vpack.c.b16 %v3090_v0, %v3089_v47  ;;  %v4426_v46 = vunpack.c.l.b16 %v4375_v28  ;;  %v3049_v32 = vrot.slane %v5464_v11, 5 }
 0x279   : > { %v3948_v52 = vrot.slane %v3947_v56, 4  ;;  %v3958_v50 = vshll.u32 %v3612_v20, 16  ;;  %v3964_v47 = vshll.u32 %v6818_v24, 16  ;;  %v4381_v28 = vrot.slane %v6773_v4, 5 }
 0x27a   : > { %5343 = vmatmul.msk.bf16.gmra.mxu0 %vm1198_vm12, %v4445_v25  ;;  %v4628_v38 = vpack.c.bf16 %v4596_v1, %v4596_v1  ;;  %v4697_v55 = vsel %vm1198_vm12, %v4596_v1, 0.0  ;;  %v4761_v30 = vmul.f32 %v4596_v1, %v4596_v1  ;;  %v4378_v25 = vsel %vm5996_vm15, %v4376_v5, %v4377_v42  ;;  %v2899_v5 = vld [vmem:[#allocation2 + $0xb4] sm:$0xe] }
 0x27b   : > { %v4129_v58 = vpop.f32.mrf.mxu3  ;;  %v4698_v21 = vadd.f32 %v4697_v55, %v4696_v14  ;;  %5294 = vmatmul.msk.bf16.gmra.mxu2 %vm1198_vm12, %v5396_v27  ;;  %v3938_v14 = vrot.slane %v3937_v43, 4  ;;  %v4427_v34 = vunpack.c.l.b16 %v4378_v25  ;;  %v3955_v42 = vshrl.u32 %v3612_v20, 16 }
 0x27c   : > { %4660 = vst.msk [vmem:[%s6668_s11 + $0x18] sm:$0xf] %vm183_vm1, %v4628_v38  ;;  %v4798_v61 = vsel %vm1198_vm12, %v4761_v30, 0.0  ;;  %v4199_v17 = vadd.f32 %v4129_v58, %v3545_v29  ;;  %v3952_v29 = vrot.slane %v3950_v48, 5  ;;  %v3968_v43 = vshrl.u32 %v6818_v24, 16 }
 0x27d   : > { %v4799_v45 = vadd.f32 %v4798_v61, %v4797_v23  ;;  %v3943_v63 = vsel %vm5593_vm11, %v3938_v14, %v6799_v35  ;;  %v5198_v0 = vrot.slane %v2899_v5, 9  ;;  %v3051_v56 = vrot.slane %v3049_v32, 4  ;;  %v5465_v61 = vld [vmem:[#allocation2 + $0xbc] sm:$0x1]  ;;  %v4237_v14 = vld [vmem:[#allocation2 + $0xb4] sm:$0xe] }
 0x27e   : > { %v3478_v51 = vpop.f32.mrf.mxu2  ;;  %v3953_v48 = vsel %vm5593_vm11, %v3948_v52, %v3952_v29  ;;  %v3957_v20 = vrot.slane %v3955_v42, 4  ;;  %v3260_v4 = vadd.f32 %v6795_v53, %v6314_v40  ;;  %v6842_v5 = vld [vmem:[#allocation2 + $0xc8] sm:$0x1]  ;;  %v4030_v52 = vunpack.c.l.b16 %v3943_v63 }
 0x27f   : > { %v4527_v22 = vpop.f32.mrf.mxu0  ;;  %v6821_v27 = vpop.f32.mrf.mxu1  ;;  %v3546_v1 = vadd.f32 %v3478_v51, %v3259_v18  ;;  %v3960_v51 = vrot.slane %v3958_v50, 5  ;;  %v4031_v29 = vunpack.c.l.b16 %v3953_v48  ;;  %v5328_v42 = vrot.slane %v4237_v14, 9 }
 0x280   : > { %5311 = vmatmul.msk.bf16.gmra.mxu3 %vm1198_vm12, %v4048_v2  ;;  %v4597_v23 = vadd.f32 %v4527_v22, %v4199_v17  ;;  %v3052_v17 = vrot.slane %v5465_v61, 5  ;;  %v4446_v22 = vpack.c.b16 %v4427_v34, %v4426_v46  ;;  %v4383_v40 = vrot.slane %v4381_v28, 4 }
 0x281   : > { %v4384_v53 = vrot.slane %v6802_v19, 5 }
 0x282   : > { %v4629_v38 = vpack.c.bf16 %v4597_v23, %v4597_v23  ;;  %v4699_v55 = vsel %vm1198_vm12, %v4597_v23, 0.0  ;;  %v4762_v30 = vmul.f32 %v4597_v23, %v4597_v23  ;;  %5214 = vmatmul.msk.bf16.gmra.mxu1 %vm1198_vm12, %v3108_v49  ;;  %v6836_v49 = vrot.slane %v3964_v47, 5 }
 0x283   : > { %v4132_v58 = vpop.f32.mrf.mxu3  ;;  %v4700_v2 = vadd.f32 %v4699_v55, %v4698_v21  ;;  %v3970_v21 = vrot.slane %v3968_v43, 4  ;;  %v3050_v23 = vsel %vm5996_vm15, %v5198_v0, %v3049_v32  ;;  %v3053_v50 = vsel %vm5996_vm15, %v3051_v56, %v3052_v17 }
 0x284   : > { %4661 = vst.msk [vmem:[%s6668_s11 + $0x1c] sm:$0xf] %vm183_vm1, %v4629_v38  ;;  %v4800_v35 = vsel %vm1198_vm12, %v4762_v30, 0.0  ;;  %v4200_v25 = vadd.f32 %v4132_v58, %v3546_v1  ;;  %v5397_v38 = vld [vmem:[#allocation2 + $0xb4] sm:$0xff]  ;;  %v3091_v47 = vunpack.c.l.b16 %v3050_v23  ;;  %v3961_v32 = vor.u32 %v3960_v51, %v3957_v20 }
 0x285   : > { %v4801_v18 = vadd.f32 %v4800_v35, %v4799_v45  ;;  %v3971_v43 = vor.u32 %v3970_v21, %v6836_v49  ;;  %v3974_v55 = vshll.u32 %v6842_v5, 16  ;;  %v3092_v56 = vunpack.c.l.b16 %v3053_v50 }
 0x286   : > { %v3480_v11 = vpop.f32.mrf.mxu2  ;;  %v4049_v17 = vpack.c.b16 %v4031_v29, %v4030_v52  ;;  %v3962_v14 = vrot.slane %v3961_v32, 4  ;;  %v3261_v21 = vadd.f32 %v6821_v27, %v6320_v10 }
 0x287   : > { %v4530_v1 = vpop.f32.mrf.mxu0  ;;  %v6844_v45 = vpop.f32.mrf.mxu1  ;;  %v3547_v34 = vadd.f32 %v3480_v11, %v3260_v4  ;;  %v3972_v20 = vrot.slane %v3971_v43, 4  ;;  %v3976_v51 = vrot.slane %v3974_v55, 5  ;;  %v3109_v4 = vpack.c.b16 %v3092_v56, %v3091_v47  ;;  %v3615_v11 = vld [vmem:[#allocation2 + $0xcc] sm:$0xf] }
 0x288   : > { %v4598_v46 = vadd.f32 %v4530_v1, %v4200_v25  ;;  %v4382_v25 = vsel %vm5996_vm15, %v5328_v42, %v4381_v28  ;;  %v2900_v42 = vld [vmem:[#allocation2 + $0xc0] sm:$0xe]  ;;  %v3967_v10 = vsel %vm5593_vm11, %v3962_v14, %v6836_v49  ;;  %v3262_v14 = vadd.f32 %v6844_v45, %v6334_v37 }
 0x289   : > { %v4428_v52 = vunpack.c.l.b16 %v4382_v25  ;;  %v3977_v27 = vsel %vm5593_vm11, %v3972_v20, %v3976_v51  ;;  %v5199_v43 = vrot.slane %v2900_v42, 9  ;;  %v4238_v51 = vld [vmem:[#allocation2 + $0xc0] sm:$0xe] }
 0x28a   : > { %5344 = vmatmul.msk.bf16.gmra.mxu0 %vm1198_vm12, %v4446_v22  ;;  %v4630_v63 = vpack.c.bf16 %v4598_v46, %v4598_v46  ;;  %v4701_v30 = vsel %vm1198_vm12, %v4598_v46, 0.0  ;;  %v4763_v58 = vmul.f32 %v4598_v46, %v4598_v46  ;;  %v6871_v46 = vld [vmem:[#allocation2 + $0xd0] sm:$0xf]  ;;  %v5329_v42 = vrot.slane %v4238_v51, 9 }
 0x28b   : > { %v4134_v0 = vpop.f32.mrf.mxu3  ;;  %v4702_v61 = vadd.f32 %v4701_v30, %v4700_v2  ;;  %5295 = vmatmul.msk.bf16.gmra.mxu2 %vm1198_vm12, %v5397_v38  ;;  %v4385_v2 = vsel %vm5996_vm15, %v4383_v40, %v4384_v53  ;;  %v5466_v38 = vld [vmem:[#allocation2 + $0xc4] sm:$0xf]  ;;  %v5467_v30 = vld [vmem:[#allocation2 + $0xc8] sm:$0x1] }
 0x28c   : > { %4662 = vst.msk [vmem:[%s6668_s11 + $0x20] sm:$0xf] %vm183_vm1, %v4630_v63  ;;  %v4802_v19 = vsel %vm1198_vm12, %v4763_v58, 0.0  ;;  %v4201_v35 = vadd.f32 %v4134_v0, %v3547_v34  ;;  %v3056_v28 = vrot.slane %v5466_v38, 5  ;;  %v4429_v50 = vunpack.c.l.b16 %v4385_v2 }
 0x28d   : > { %v4803_v48 = vadd.f32 %v4802_v19, %v4801_v18  ;;  %v3979_v34 = vshrl.u32 %v3615_v11, 16  ;;  %v3059_v58 = vrot.slane %v5467_v30, 5  ;;  %v3982_v0 = vshll.u32 %v3615_v11, 16 }
 0x28e   : > { %v3483_v22 = vpop.f32.mrf.mxu2  ;;  %v3058_v63 = vrot.slane %v3056_v28, 4  ;;  %v3992_v19 = vshrl.u32 %v6871_v46, 16  ;;  %v4447_v25 = vpack.c.b16 %v4429_v50, %v4428_v52  ;;  %v3057_v2 = vsel %vm5996_vm15, %v5199_v43, %v3056_v28 }
 0x28f   : > { %v4532_v23 = vpop.f32.mrf.mxu0  ;;  %v6864_v1 = vpop.f32.mrf.mxu1  ;;  %v3548_v29 = vadd.f32 %v3483_v22, %v3261_v21  ;;  %v4388_v21 = vrot.slane %v6818_v24, 5  ;;  %v4033_v11 = vunpack.c.l.b16 %v3977_v27  ;;  %v4391_v24 = vrot.slane %v6842_v5, 5 }
 0x290   : > { %5312 = vmatmul.msk.bf16.gmra.mxu3 %vm1198_vm12, %v4049_v17  ;;  %v4599_v18 = vadd.f32 %v4532_v23, %v4201_v35  ;;  %v3988_v17 = vshll.u32 %v6871_v46, 16  ;;  %v3060_v38 = vsel %vm5996_vm15, %v3058_v63, %v3059_v58  ;;  %v3994_v45 = vrot.slane %v3992_v19, 4 }
 0x291   : > { %v3093_v50 = vunpack.c.l.b16 %v3057_v2  ;;  %v4390_v43 = vrot.slane %v4388_v21, 4 }
 0x292   : > { %v4631_v40 = vpack.c.bf16 %v4599_v18, %v4599_v18  ;;  %v4703_v53 = vsel %vm1198_vm12, %v4599_v18, 0.0  ;;  %v4764_v47 = vmul.f32 %v4599_v18, %v4599_v18  ;;  %5215 = vmatmul.msk.bf16.gmra.mxu1 %vm1198_vm12, %v3109_v4  ;;  %v5398_v4 = vld [vmem:[#allocation2 + $0xc0] sm:$0xff]  ;;  %v3984_v18 = vrot.slane %v3982_v0, 5 }
 0x293   : > { %v4137_v32 = vpop.f32.mrf.mxu3  ;;  %v4704_v55 = vadd.f32 %v4703_v53, %v4702_v61  ;;  %v4032_v61 = vunpack.c.l.b16 %v3967_v10  ;;  %v3990_v37 = vrot.slane %v3988_v17, 5  ;;  %v6888_v10 = vld [vmem:[#allocation2 + $0xd4] sm:$0x1] }
 0x294   : > { %4663 = vst.msk [vmem:[%s6668_s11 + $0x24] sm:$0xf] %vm183_vm1, %v4631_v40  ;;  %v4804_v49 = vsel %vm1198_vm12, %v4764_v47, 0.0  ;;  %v4202_v56 = vadd.f32 %v4137_v32, %v3548_v29  ;;  %v3998_v0 = vshll.u32 %v6888_v10, 16 }
 0x295   : > { %v4805_v35 = vadd.f32 %v4804_v49, %v4803_v48  ;;  %v3981_v48 = vrot.slane %v3979_v34, 4  ;;  %v3094_v34 = vunpack.c.l.b16 %v3060_v38  ;;  %v4050_v32 = vpack.c.b16 %v4033_v11, %v4032_v61 }
 0x296   : > { %v3485_v20 = vpop.f32.mrf.mxu2  ;;  %v3995_v58 = vor.u32 %v3994_v45, %v3990_v37 }
 0x297   : > { %v4535_v22 = vpop.f32.mrf.mxu0  ;;  %v3203_v23 = vpop.f32.mrf.mxu1  ;;  %v3549_v29 = vadd.f32 %v3485_v20, %v3262_v14  ;;  %v3985_v63 = vor.u32 %v3984_v18, %v3981_v48  ;;  %v3110_v19 = vpack.c.b16 %v3094_v34, %v3093_v50  ;;  %v4392_v14 = vsel %vm5996_vm15, %v4390_v43, %v4391_v24 }
 0x298   : > { %v4600_v52 = vadd.f32 %v4535_v22, %v4202_v56  ;;  %v3263_v56 = vadd.f32 %v6864_v1, %v6347_v16  ;;  %v4000_v22 = vrot.slane %v3998_v0, 5  ;;  %v4431_v11 = vunpack.c.l.b16 %v4392_v14 }
 0x299   : > { %v3986_v61 = vrot.slane %v3985_v63, 4  ;;  %v3264_v50 = vadd.f32 %v3203_v23, %v6362_v31 }
 0x29a   : > { %5345 = vmatmul.msk.bf16.gmra.mxu0 %vm1198_vm12, %v4447_v25  ;;  %v4632_v28 = vpack.c.bf16 %v4600_v52, %v4600_v52  ;;  %v4705_v27 = vsel %vm1198_vm12, %v4600_v52, 0.0  ;;  %v4765_v40 = vmul.f32 %v4600_v52, %v4600_v52 }
 0x29b   : > { %v4139_v53 = vpop.f32.mrf.mxu3  ;;  %v4706_v47 = vadd.f32 %v4705_v27, %v4704_v55  ;;  %5296 = vmatmul.msk.bf16.gmra.mxu2 %vm1198_vm12, %v5398_v4  ;;  %v4389_v55 = vsel %vm5996_vm15, %v5329_v42, %v4388_v21 }
 0x29c   : > { %4664 = vst.msk [vmem:[%s6668_s11 + $0x28] sm:$0xf] %vm183_vm1, %v4632_v28  ;;  %v4806_v5 = vsel %vm1198_vm12, %v4765_v40, 0.0  ;;  %v4203_v30 = vadd.f32 %v4139_v53, %v3549_v29  ;;  %v4430_v4 = vunpack.c.l.b16 %v4389_v55  ;;  %v3991_v29 = vsel %vm5593_vm11, %v3986_v61, %v3990_v37  ;;  %v5399_v40 = vld [vmem:[#allocation2 + $0xcc] sm:$0xff] }
 0x29d   : > { %v4807_v49 = vadd.f32 %v4806_v5, %v4805_v35  ;;  %v3996_v35 = vrot.slane %v3995_v58, 4  ;;  %v4034_v53 = vunpack.c.l.b16 %v3991_v29 }
 0x29e   : > { %v3488_v17 = vpop.f32.mrf.mxu2  ;;  %v4448_v24 = vpack.c.b16 %v4431_v11, %v4430_v4 }
 0x29f   : > { %v4537_v25 = vpop.f32.mrf.mxu0  ;;  %v3206_v20 = vpop.f32.mrf.mxu1  ;;  %v3550_v2 = vadd.f32 %v3488_v17, %v3263_v56  ;;  %v4001_v45 = vsel %vm5593_vm11, %v3996_v35, %v4000_v22  ;;  %v4398_v56 = vrot.slane %v6888_v10, 5 }
 0x2a0   : > { %5313 = vmatmul.msk.bf16.gmra.mxu3 %vm1198_vm12, %v4050_v32  ;;  %v4601_v51 = vadd.f32 %v4537_v25, %v4203_v30  ;;  %v4035_v34 = vunpack.c.l.b16 %v4001_v45  ;;  %v4395_v32 = vrot.slane %v6871_v46, 5 }
 0x2a2   : > { %v4633_v16 = vpack.c.bf16 %v4601_v51, %v4601_v51  ;;  %v4707_v1 = vsel %vm1198_vm12, %v4601_v51, 0.0  ;;  %v4766_v21 = vmul.f32 %v4601_v51, %v4601_v51  ;;  %5216 = vmatmul.msk.bf16.gmra.mxu1 %vm1198_vm12, %v3110_v19  ;;  %v4051_v0 = vpack.c.b16 %v4035_v34, %v4034_v53 }
 0x2a3   : > { %v4142_v38 = vpop.f32.mrf.mxu3  ;;  %v4708_v48 = vadd.f32 %v4707_v1, %v4706_v47  ;;  %v4239_v47 = vld [vmem:[#allocation2 + $0xcc] sm:$0xe]  ;;  %v3265_v19 = vadd.f32 %v3206_v20, %v6379_v13 }
 0x2a4   : > { %4665 = vst.msk [vmem:[%s6668_s11 + $0x2c] sm:$0xf] %vm183_vm1, %v4633_v16  ;;  %v4808_v18 = vsel %vm1198_vm12, %v4766_v21, 0.0  ;;  %v4204_v52 = vadd.f32 %v4142_v38, %v3550_v2  ;;  %v5330_v31 = vrot.slane %v4239_v47, 9 }
 0x2a5   : > { %v4809_v42 = vadd.f32 %v4808_v18, %v4807_v49  ;;  %v4397_v49 = vrot.slane %v4395_v32, 4 }
 0x2a6   : > { %v3490_v28 = vpop.f32.mrf.mxu2  ;;  %v4396_v25 = vsel %vm5996_vm15, %v5330_v31, %v4395_v32 }
 0x2a7   : > { %v4540_v27 = vpop.f32.mrf.mxu0  ;;  %v3208_v43 = vpop.f32.mrf.mxu1  ;;  %v3551_v5 = vadd.f32 %v3490_v28, %v3264_v50  ;;  %v4399_v51 = vsel %vm5996_vm15, %v4397_v49, %v4398_v56  ;;  %v4432_v22 = vunpack.c.l.b16 %v4396_v25 }
 0x2a8   : > { %v4602_v63 = vadd.f32 %v4540_v27, %v4204_v52  ;;  %v4433_v13 = vunpack.c.l.b16 %v4399_v51  ;;  %v3266_v18 = vadd.f32 %v3208_v43, %v6391_v39 }
 0x2aa   : > { %5346 = vmatmul.msk.bf16.gmra.mxu0 %vm1198_vm12, %v4448_v24  ;;  %v4634_v36 = vpack.c.bf16 %v4602_v63, %v4602_v63  ;;  %v4709_v37 = vsel %vm1198_vm12, %v4602_v63, 0.0  ;;  %v4767_v30 = vmul.f32 %v4602_v63, %v4602_v63  ;;  %v4449_v6 = vpack.c.b16 %v4433_v13, %v4432_v22 }
 0x2ab   : > { %v4144_v58 = vpop.f32.mrf.mxu3  ;;  %v4710_v23 = vadd.f32 %v4709_v37, %v4708_v48  ;;  %5297 = vmatmul.msk.bf16.gmra.mxu2 %vm1198_vm12, %v5399_v40 }
 0x2ac   : > { %4666 = vst.msk [vmem:[%s6668_s11 + $0x30] sm:$0xf] %vm183_vm1, %v4634_v36  ;;  %v4810_v46 = vsel %vm1198_vm12, %v4767_v30, 0.0  ;;  %v4205_v55 = vadd.f32 %v4144_v58, %v3551_v5 }
 0x2ad   : > { %v4811_v17 = vadd.f32 %v4810_v46, %v4809_v42 }
 0x2ae   : > { %v3493_v14 = vpop.f32.mrf.mxu2 }
 0x2af   : > { %v4542_v61 = vpop.f32.mrf.mxu0  ;;  %v3211_v10 = vpop.f32.mrf.mxu1  ;;  %v3552_v35 = vadd.f32 %v3493_v14, %v3265_v19 }
 0x2b0   : > { %5314 = vmatmul.msk.bf16.gmra.mxu3 %vm1198_vm12, %v4051_v0  ;;  %v4603_v2 = vadd.f32 %v4542_v61, %v4205_v55  ;;  %v3267_v32 = vadd.f32 %v3211_v10, %v6408_v59 }
 0x2b2   : > { %v4635_v4 = vpack.c.bf16 %v4603_v2, %v4603_v2  ;;  %v4711_v16 = vsel %vm1198_vm12, %v4603_v2, 0.0  ;;  %v4768_v1 = vmul.f32 %v4603_v2, %v4603_v2 }
 0x2b3   : > { %v4147_v20 = vpop.f32.mrf.mxu3  ;;  %v4712_v21 = vadd.f32 %v4711_v16, %v4710_v23 }
 0x2b4   : > { %4667 = vst.msk [vmem:[%s6668_s11 + $0x34] sm:$0xf] %vm183_vm1, %v4635_v4  ;;  %v4812_v11 = vsel %vm1198_vm12, %v4768_v1, 0.0  ;;  %v4206_v38 = vadd.f32 %v4147_v20, %v3552_v35 }
 0x2b5   : > { %v4813_v48 = vadd.f32 %v4812_v11, %v4811_v17 }
 0x2b6   : > { %v3495_v52 = vpop.f32.mrf.mxu2 }
 0x2b7   : > { %v4545_v29 = vpop.f32.mrf.mxu0  ;;  %v3213_v45 = vpop.f32.mrf.mxu1  ;;  %v3553_v24 = vadd.f32 %v3495_v52, %v3266_v18 }
 0x2b8   : > { %v4604_v42 = vadd.f32 %v4545_v29, %v4206_v38  ;;  %v3268_v59 = vadd.f32 %v3213_v45, %v6424_v8 }
 0x2ba   : > { %5347 = vmatmul.msk.bf16.gmra.mxu0 %vm1198_vm12, %v4449_v6  ;;  %v4636_v50 = vpack.c.bf16 %v4604_v42, %v4604_v42  ;;  %v4713_v28 = vsel %vm1198_vm12, %v4604_v42, 0.0  ;;  %v4769_v27 = vmul.f32 %v4604_v42, %v4604_v42 }
 0x2bb   : > { %v4149_v40 = vpop.f32.mrf.mxu3  ;;  %v4714_v53 = vadd.f32 %v4713_v28, %v4712_v21 }
 0x2bc   : > { %4668 = vst.msk [vmem:[%s6668_s11 + $0x38] sm:$0xf] %vm183_vm1, %v4636_v50  ;;  %v4814_v34 = vsel %vm1198_vm12, %v4769_v27, 0.0  ;;  %v4207_v47 = vadd.f32 %v4149_v40, %v3553_v24 }
 0x2bd   : > { %v4815_v39 = vadd.f32 %v4814_v34, %v4813_v48 }
 0x2be   : > { %v3498_v43 = vpop.f32.mrf.mxu2 }
 0x2bf   : > { %v4547_v63 = vpop.f32.mrf.mxu0  ;;  %v3216_v5 = vpop.f32.mrf.mxu1  ;;  %v3554_v37 = vadd.f32 %v3498_v43, %v3267_v32 }
 0x2c0   : > { %v4605_v36 = vadd.f32 %v4547_v63, %v4207_v47  ;;  %v3269_v8 = vadd.f32 %v3216_v5, %v6441_v60 }
 0x2c2   : > { %v4637_v30 = vpack.c.bf16 %v4605_v36, %v4605_v36  ;;  %v4715_v58 = vsel %vm1198_vm12, %v4605_v36, 0.0  ;;  %v4770_v31 = vmul.f32 %v4605_v36, %v4605_v36 }
 0x2c3   : > { %v4152_v23 = vpop.f32.mrf.mxu3  ;;  %v4716_v0 = vadd.f32 %v4715_v58, %v4714_v53 }
 0x2c4   : > { %4669 = vst.msk [vmem:[%s6668_s11 + $0x3c] sm:$0xf] %vm183_vm1, %v4637_v30  ;;  %v4816_v49 = vsel %vm1198_vm12, %v4770_v31, 0.0  ;;  %v4208_v56 = vadd.f32 %v4152_v23, %v3554_v37 }
 0x2c5   : > { %v4817_v46 = vadd.f32 %v4816_v49, %v4815_v39 }
 0x2c6   : > { %v3500_v55 = vpop.f32.mrf.mxu2 }
 0x2c7   : > { %v4550_v17 = vpop.f32.mrf.mxu0  ;;  %v3218_v19 = vpop.f32.mrf.mxu1  ;;  %v3555_v14 = vadd.f32 %v3500_v55, %v3268_v59 }
 0x2c8   : > { %v4606_v25 = vadd.f32 %v4550_v17, %v4208_v56  ;;  %v3270_v60 = vadd.f32 %v3218_v19, %v6453_v26 }
 0x2ca   : > { %v4638_v61 = vpack.c.bf16 %v4606_v25, %v4606_v25  ;;  %v4717_v51 = vsel %vm1198_vm12, %v4606_v25, 0.0  ;;  %v4771_v10 = vmul.f32 %v4606_v25, %v4606_v25 }
 0x2cb   : > { %v4154_v2 = vpop.f32.mrf.mxu3  ;;  %v4718_v35 = vadd.f32 %v4717_v51, %v4716_v0 }
 0x2cc   : > { %4670 = vst.msk [vmem:[%s6668_s11 + $0x40] sm:$0xf] %vm183_vm1, %v4638_v61  ;;  %v4818_v22 = vsel %vm1198_vm12, %v4771_v10, 0.0  ;;  %v4209_v4 = vadd.f32 %v4154_v2, %v3555_v14 }
 0x2cd   : > { %v4819_v16 = vadd.f32 %v4818_v22, %v4817_v46 }
 0x2ce   : > { %v3503_v1 = vpop.f32.mrf.mxu2 }
 0x2cf   : > { %v4552_v13 = vpop.f32.mrf.mxu0  ;;  %v3221_v20 = vpop.f32.mrf.mxu1  ;;  %v3556_v11 = vadd.f32 %v3503_v1, %v3269_v8 }
 0x2d0   : > { %v4607_v21 = vadd.f32 %v4552_v13, %v4209_v4  ;;  %v3271_v26 = vadd.f32 %v3221_v20, %v6470_v15 }
 0x2d2   : > { %v4639_v38 = vpack.c.bf16 %v4607_v21, %v4607_v21  ;;  %v4719_v48 = vsel %vm1198_vm12, %v4607_v21, 0.0  ;;  %v4772_v6 = vmul.f32 %v4607_v21, %v4607_v21 }
 0x2d3   : > { %v4157_v18 = vpop.f32.mrf.mxu3  ;;  %v4720_v52 = vadd.f32 %v4719_v48, %v4718_v35 }
 0x2d4   : > { %4671 = vst.msk [vmem:[%s6668_s11 + $0x44] sm:$0xf] %vm183_vm1, %v4639_v38  ;;  %v4820_v29 = vsel %vm1198_vm12, %v4772_v6, 0.0  ;;  %v4210_v45 = vadd.f32 %v4157_v18, %v3556_v11 }
 0x2d5   : > { %v4821_v42 = vadd.f32 %v4820_v29, %v4819_v16 }
 0x2d6   : > { %v3505_v24 = vpop.f32.mrf.mxu2 }
 0x2d7   : > { %v4555_v50 = vpop.f32.mrf.mxu0  ;;  %v3223_v28 = vpop.f32.mrf.mxu1  ;;  %v3557_v40 = vadd.f32 %v3505_v24, %v3270_v60 }
 0x2d8   : > { %v4608_v27 = vadd.f32 %v4555_v50, %v4210_v45  ;;  %v3272_v15 = vadd.f32 %v3223_v28, %v6486_v57 }
 0x2da   : > { %v4640_v53 = vpack.c.bf16 %v4608_v27, %v4608_v27  ;;  %v4721_v34 = vsel %vm1198_vm12, %v4608_v27, 0.0  ;;  %v4773_v47 = vmul.f32 %v4608_v27, %v4608_v27 }
 0x2db   : > { %v4159_v39 = vpop.f32.mrf.mxu3  ;;  %v4722_v32 = vadd.f32 %v4721_v34, %v4720_v52 }
 0x2dc   : > { %4672 = vst.msk [vmem:[%s6668_s11 + $0x48] sm:$0xf] %vm183_vm1, %v4640_v53  ;;  %v4822_v43 = vsel %vm1198_vm12, %v4773_v47, 0.0  ;;  %v4211_v63 = vadd.f32 %v4159_v39, %v3557_v40 }
 0x2dd   : > { %v4823_v5 = vadd.f32 %v4822_v43, %v4821_v42 }
 0x2de   : > { %v3508_v36 = vpop.f32.mrf.mxu2 }
 0x2df   : > { %v4557_v37 = vpop.f32.mrf.mxu0  ;;  %v3226_v30 = vpop.f32.mrf.mxu1  ;;  %v3558_v31 = vadd.f32 %v3508_v36, %v3271_v26 }
 0x2e0   : > { %v4609_v58 = vadd.f32 %v4557_v37, %v4211_v63  ;;  %v3273_v57 = vadd.f32 %v3226_v30, %v6503_v44 }
 0x2e2   : > { %v4641_v23 = vpack.c.bf16 %v4609_v58, %v4609_v58  ;;  %v4723_v0 = vsel %vm1198_vm12, %v4609_v58, 0.0  ;;  %v4774_v49 = vmul.f32 %v4609_v58, %v4609_v58 }
 0x2e3   : > { %v4162_v56 = vpop.f32.mrf.mxu3  ;;  %v4724_v46 = vadd.f32 %v4723_v0, %v4722_v32 }
 0x2e4   : > { %4673 = vst.msk [vmem:[%s6668_s11 + $0x4c] sm:$0xf] %vm183_vm1, %v4641_v23  ;;  %v4824_v59 = vsel %vm1198_vm12, %v4774_v49, 0.0  ;;  %v4212_v55 = vadd.f32 %v4162_v56, %v3558_v31 }
 0x2e5   : > { %v4825_v17 = vadd.f32 %v4824_v59, %v4823_v5 }
 0x2e6   : > { %v3510_v19 = vpop.f32.mrf.mxu2 }
 0x2e7   : > { %v4560_v25 = vpop.f32.mrf.mxu0  ;;  %v3228_v14 = vpop.f32.mrf.mxu1  ;;  %v3559_v51 = vadd.f32 %v3510_v19, %v3272_v15 }
 0x2e8   : > { %v4610_v61 = vadd.f32 %v4560_v25, %v4212_v55  ;;  %v3274_v44 = vadd.f32 %v3228_v14, %v6515_v41 }
 0x2ea   : > { %v4642_v10 = vpack.c.bf16 %v4610_v61, %v4610_v61  ;;  %v4725_v2 = vsel %vm1198_vm12, %v4610_v61, 0.0  ;;  %v4775_v35 = vmul.f32 %v4610_v61, %v4610_v61 }
 0x2eb   : > { %v4164_v22 = vpop.f32.mrf.mxu3  ;;  %v4726_v4 = vadd.f32 %v4725_v2, %v4724_v46 }
 0x2ec   : > { %4674 = vst.msk [vmem:[%s6668_s11 + $0x50] sm:$0xf] %vm183_vm1, %v4642_v10  ;;  %v4826_v16 = vsel %vm1198_vm12, %v4775_v35, 0.0  ;;  %v4213_v8 = vadd.f32 %v4164_v22, %v3559_v51 }
 0x2ed   : > { %v4827_v1 = vadd.f32 %v4826_v16, %v4825_v17 }
 0x2ee   : > { %v3513_v13 = vpop.f32.mrf.mxu2 }
 0x2ef   : > { %v4562_v20 = vpop.f32.mrf.mxu0  ;;  %v3231_v21 = vpop.f32.mrf.mxu1  ;;  %v3560_v38 = vadd.f32 %v3513_v13, %v3273_v57 }
 0x2f0   : > { %v4611_v11 = vadd.f32 %v4562_v20, %v4213_v8  ;;  %v3275_v41 = vadd.f32 %v3231_v21, %v6532_v33 }
 0x2f2   : > { %v4643_v48 = vpack.c.bf16 %v4611_v11, %v4611_v11  ;;  %v4727_v6 = vsel %vm1198_vm12, %v4611_v11, 0.0  ;;  %v4776_v18 = vmul.f32 %v4611_v11, %v4611_v11 }
 0x2f3   : > { %v4167_v52 = vpop.f32.mrf.mxu3  ;;  %v4728_v29 = vadd.f32 %v4727_v6, %v4726_v4 }
 0x2f4   : > { %4675 = vst.msk [vmem:[%s6668_s11 + $0x54] sm:$0xf] %vm183_vm1, %v4643_v48  ;;  %v4828_v45 = vsel %vm1198_vm12, %v4776_v18, 0.0  ;;  %v4214_v42 = vadd.f32 %v4167_v52, %v3560_v38 }
 0x2f5   : > { %v4829_v60 = vadd.f32 %v4828_v45, %v4827_v1 }
 0x2f6   : > { %v3515_v24 = vpop.f32.mrf.mxu2 }
 0x2f7   : > { %v4565_v50 = vpop.f32.mrf.mxu0  ;;  %v3233_v28 = vpop.f32.mrf.mxu1  ;;  %v3561_v40 = vadd.f32 %v3515_v24, %v3274_v44 }
 0x2f8   : > { %v4612_v27 = vadd.f32 %v4565_v50, %v4214_v42  ;;  %v3276_v33 = vadd.f32 %v3233_v28, %v6546_v12 }
 0x2fa   : > { %v4644_v53 = vpack.c.bf16 %v4612_v27, %v4612_v27  ;;  %v4729_v34 = vsel %vm1198_vm12, %v4612_v27, 0.0  ;;  %v4777_v47 = vmul.f32 %v4612_v27, %v4612_v27 }
 0x2fb   : > { %v4169_v39 = vpop.f32.mrf.mxu3  ;;  %v4730_v32 = vadd.f32 %v4729_v34, %v4728_v29 }
 0x2fc   : > { %4676 = vst.msk [vmem:[%s6668_s11 + $0x58] sm:$0xf] %vm183_vm1, %v4644_v53  ;;  %v4830_v43 = vsel %vm1198_vm12, %v4777_v47, 0.0  ;;  %v4215_v63 = vadd.f32 %v4169_v39, %v3561_v40 }
 0x2fd   : > { %v4831_v5 = vadd.f32 %v4830_v43, %v4829_v60 }
 0x2fe   : > { %v3518_v26 = vpop.f32.mrf.mxu2 }
 0x2ff   : > { %v4567_v36 = vpop.f32.mrf.mxu0  ;;  %v3562_v30 = vadd.f32 %v3518_v26, %v3275_v41  ;;  %v3236_v58 = vpop.f32.mrf.mxu1 }
 0x300   : > { %v4613_v37 = vadd.f32 %v4567_v36, %v4215_v63  ;;  %v3277_v12 = vadd.f32 %v3236_v58, %v6563_v62 }
 0x302   : > { %v4645_v31 = vpack.c.bf16 %v4613_v37, %v4613_v37  ;;  %v4731_v23 = vsel %vm1198_vm12, %v4613_v37, 0.0  ;;  %v4778_v0 = vmul.f32 %v4613_v37, %v4613_v37 }
 0x303   : > { %v4172_v49 = vpop.f32.mrf.mxu3  ;;  %v4732_v56 = vadd.f32 %v4731_v23, %v4730_v32 }
 0x304   : > { %4677 = vst.msk [vmem:[%s6668_s11 + $0x5c] sm:$0xf] %vm183_vm1, %v4645_v31  ;;  %v4832_v46 = vsel %vm1198_vm12, %v4778_v0, 0.0  ;;  %v4216_v59 = vadd.f32 %v4172_v49, %v3562_v30  ;;  %v7056_v0 = vld [vmem:[#allocation3_spill] sm:$0xff] }
 0x305   : > { %v4833_v55 = vadd.f32 %v4832_v46, %v4831_v5 }
 0x306   : > { %v3520_v17 = vpop.f32.mrf.mxu2 }
 0x307   : > { %v4570_v15 = vpop.f32.mrf.mxu0  ;;  %v3563_v25 = vadd.f32 %v3520_v17, %v3276_v33  ;;  %v3238_v35 = vpop.f32.mrf.mxu1 }
 0x308   : > { %v4614_v19 = vadd.f32 %v4570_v15, %v4216_v59  ;;  %v3278_v62 = vadd.f32 %v3238_v35, %v6577_v3 }
 0x30a   : > { %v4646_v14 = vpack.c.bf16 %v4614_v19, %v4614_v19  ;;  %v4733_v61 = vsel %vm1198_vm12, %v4614_v19, 0.0  ;;  %v4779_v51 = vmul.f32 %v4614_v19, %v4614_v19 }
 0x30b   : > { %v4174_v10 = vpop.f32.mrf.mxu3  ;;  %v4734_v2 = vadd.f32 %v4733_v61, %v4732_v56 }
 0x30c   : > { %4678 = vst.msk [vmem:[%s6668_s11 + $0x60] sm:$0xf] %vm183_vm1, %v4646_v14  ;;  %v4834_v22 = vsel %vm1198_vm12, %v4779_v51, 0.0  ;;  %v4217_v4 = vadd.f32 %v4174_v10, %v3563_v25 }
 0x30d   : > { %v4835_v16 = vadd.f32 %v4834_v22, %v4833_v55 }
 0x30e   : > { %v3523_v8 = vpop.f32.mrf.mxu2 }
 0x30f   : > { %v4572_v1 = vpop.f32.mrf.mxu0  ;;  %v3564_v13 = vadd.f32 %v3523_v8, %v3277_v12  ;;  %v3241_v29 = vpop.f32.mrf.mxu1 }
 0x310   : > { %v4615_v57 = vadd.f32 %v4572_v1, %v4217_v4  ;;  %v3279_v39 = vadd.f32 %v3241_v29, %v6594_v7 }
 0x312   : > { %v4647_v20 = vpack.c.bf16 %v4615_v57, %v4615_v57  ;;  %v4735_v21 = vsel %vm1198_vm12, %v4615_v57, 0.0  ;;  %v4780_v11 = vmul.f32 %v4615_v57, %v4615_v57 }
 0x313   : > { %v4177_v38 = vpop.f32.mrf.mxu3  ;;  %v4736_v48 = vadd.f32 %v4735_v21, %v4734_v2 }
 0x314   : > { %4679 = vst.msk [vmem:[%s6668_s11 + $0x64] sm:$0xf] %vm183_vm1, %v4647_v20  ;;  %v4836_v6 = vsel %vm1198_vm12, %v4780_v11, 0.0  ;;  %v4218_v18 = vadd.f32 %v4177_v38, %v3564_v13 }
 0x315   : > { %v4837_v52 = vadd.f32 %v4836_v6, %v4835_v16 }
 0x316   : > { %v3525_v45 = vpop.f32.mrf.mxu2 }
 0x317   : > { %v4575_v42 = vpop.f32.mrf.mxu0  ;;  %v3565_v44 = vadd.f32 %v3525_v45, %v3278_v62  ;;  %v3243_v43 = vpop.f32.mrf.mxu1 }
 0x318   : > { %v4616_v60 = vadd.f32 %v4575_v42, %v4218_v18  ;;  %v3280_v7 = vadd.f32 %v3243_v43, %v7056_v0 }
 0x31a   : > { %v4648_v24 = vpack.c.bf16 %v4616_v60, %v4616_v60  ;;  %v4737_v50 = vsel %vm1198_vm12, %v4616_v60, 0.0  ;;  %v4781_v28 = vmul.f32 %v4616_v60, %v4616_v60 }
 0x31b   : > { %v4179_v27 = vpop.f32.mrf.mxu3  ;;  %v4738_v40 = vadd.f32 %v4737_v50, %v4736_v48 }
 0x31c   : > { %4680 = vst.msk [vmem:[%s6668_s11 + $0x68] sm:$0xf] %vm183_vm1, %v4648_v24  ;;  %v4838_v53 = vsel %vm1198_vm12, %v4781_v28, 0.0  ;;  %v4219_v34 = vadd.f32 %v4179_v27, %v3565_v44 }
 0x31d   : > { %v4839_v47 = vadd.f32 %v4838_v53, %v4837_v52 }
 0x31e   : > { %v3528_v3 = vpop.f32.mrf.mxu2 }
 0x31f   : > { %v4577_v32 = vpop.f32.mrf.mxu0  ;;  %v3566_v5 = vadd.f32 %v3528_v3, %v3279_v39  ;;  %v3246_v55 = vpop.f32.mrf.mxu1 }
 0x320   : > { %v4617_v63 = vadd.f32 %v4577_v32, %v4219_v34  ;;  %v3281_v10 = vadd.f32 %v3246_v55, %v6627_v54 }
 0x322   : > { %v4649_v41 = vpack.c.bf16 %v4617_v63, %v4617_v63  ;;  %v4739_v26 = vsel %vm1198_vm12, %v4617_v63, 0.0  ;;  %v4782_v36 = vmul.f32 %v4617_v63, %v4617_v63 }
 0x323   : > { %v4182_v37 = vpop.f32.mrf.mxu3  ;;  %v4740_v30 = vadd.f32 %v4739_v26, %v4738_v40 }
 0x324   : > { %4681 = vst.msk [vmem:[%s6668_s11 + $0x6c] sm:$0xf] %vm183_vm1, %v4649_v41  ;;  %v4840_v58 = vsel %vm1198_vm12, %v4782_v36, 0.0  ;;  %v4220_v31 = vadd.f32 %v4182_v37, %v3566_v5 }
 0x325   : > { %v4841_v23 = vadd.f32 %v4840_v58, %v4839_v47 }
 0x326   : > { %v3530_v49 = vpop.f32.mrf.mxu2 }
 0x327   : > { %v4580_v56 = vpop.f32.mrf.mxu0  ;;  %v3567_v59 = vadd.f32 %v3530_v49, %v3280_v7  ;;  %v3248_v13 = vpop.f32.mrf.mxu1 }
 0x328   : > { %v4618_v46 = vadd.f32 %v4580_v56, %v4220_v31  ;;  %v3282_v54 = vadd.f32 %v3248_v13, %v6641_v9 }
 0x32a   : > { %v4650_v33 = vpack.c.bf16 %v4618_v46, %v4618_v46  ;;  %v4741_v17 = vsel %vm1198_vm12, %v4618_v46, 0.0  ;;  %v4783_v15 = vmul.f32 %v4618_v46, %v4618_v46 }
 0x32b   : > { %v4184_v19 = vpop.f32.mrf.mxu3  ;;  %v4742_v25 = vadd.f32 %v4741_v17, %v4740_v30 }
 0x32c   : > { %4682 = vst.msk [vmem:[%s6668_s11 + $0x70] sm:$0xf] %vm183_vm1, %v4650_v33  ;;  %v4842_v14 = vsel %vm1198_vm12, %v4783_v15, 0.0  ;;  %v4221_v61 = vadd.f32 %v4184_v19, %v3567_v59 }
 0x32d   : > { %v4843_v51 = vadd.f32 %v4842_v14, %v4841_v23 }
 0x32e   : > { %v3533_v2 = vpop.f32.mrf.mxu2 }
 0x32f   : > { %v4582_v35 = vpop.f32.mrf.mxu0  ;;  %v3568_v4 = vadd.f32 %v3533_v2, %v3281_v10 }
 0x330   : > { %v4619_v22 = vadd.f32 %v4582_v35, %v4221_v61 }
 0x332   : > { %v4651_v16 = vpack.c.bf16 %v4619_v22, %v4619_v22  ;;  %v4743_v12 = vsel %vm1198_vm12, %v4619_v22, 0.0  ;;  %v4784_v8 = vmul.f32 %v4619_v22, %v4619_v22 }
 0x333   : > { %v4187_v1 = vpop.f32.mrf.mxu3  ;;  %v4744_v57 = vadd.f32 %v4743_v12, %v4742_v25 }
 0x334   : > { %4683 = vst.msk [vmem:[%s6668_s11 + $0x74] sm:$0xf] %vm183_vm1, %v4651_v16  ;;  %v4844_v20 = vsel %vm1198_vm12, %v4784_v8, 0.0  ;;  %v4222_v21 = vadd.f32 %v4187_v1, %v3568_v4 }
 0x335   : > { %v4845_v11 = vadd.f32 %v4844_v20, %v4843_v51 }
 0x336   : > { %v3535_v38 = vpop.f32.mrf.mxu2 }
 0x337   : > { %v4585_v48 = vpop.f32.mrf.mxu0  ;;  %v3569_v18 = vadd.f32 %v3535_v38, %v3282_v54 }
 0x338   : > { %v4620_v6 = vadd.f32 %v4585_v48, %v4222_v21 }
 0x33a   : > { %v4652_v52 = vpack.c.bf16 %v4620_v6, %v4620_v6  ;;  %v4745_v29 = vsel %vm1198_vm12, %v4620_v6, 0.0  ;;  %v4785_v62 = vmul.f32 %v4620_v6, %v4620_v6 }
 0x33b   : > { %v4746_v45 = vadd.f32 %v4745_v29, %v4744_v57  ;;  %v4189_v42 = vpop.f32.mrf.mxu3 }
 0x33c   : > { %4684 = vst.msk [vmem:[%s6668_s11 + $0x78] sm:$0xf] %vm183_vm1, %v4652_v52  ;;  %v4846_v60 = vsel %vm1198_vm12, %v4785_v62, 0.0  ;;  %v4223_v44 = vadd.f32 %v4189_v42, %v3569_v18 }
 0x33d   : > { %v4847_v24 = vadd.f32 %v4846_v60, %v4845_v11 }
 0x33f   : > { %v4587_v50 = vpop.f32.mrf.mxu0 }
 0x340   : > { %v4621_v28 = vadd.f32 %v4587_v50, %v4223_v44 }
 0x342   : > { %v4653_v9 = vpack.c.bf16 %v4621_v28, %v4621_v28  ;;  %v4747_v27 = vsel %vm1198_vm12, %v4621_v28, 0.0  ;;  %v4786_v40 = vmul.f32 %v4621_v28, %v4621_v28 }
 0x343   : > { %v4748_v53 = vadd.f32 %v4747_v27, %v4746_v45 }
 0x344   : > { %4685 = vst.msk [vmem:[%s6668_s11 + $0x7c] sm:$0xf] %vm183_vm1, %v4653_v9  ;;  %v4848_v34 = vsel %vm1198_vm12, %v4786_v40, 0.0  ;;  %vm4858_vm1 = vcmask 25600  }
 0x345   : > { %v4749_v47 = vrot.slane %v4748_v53, 4  ;;  %v4849_v39 = vadd.f32 %v4848_v34, %v4847_v24 }
 0x347   : > { %v4750_v3 = vadd.f32 %v4749_v47, %v4748_v53  ;;  %v4850_v32 = vrot.slane %v4849_v39, 4 }
 0x349   : > { %v4751_v43 = vrot.slane %v4750_v3, 2  ;;  %v4851_v63 = vadd.f32 %v4850_v32, %v4849_v39 }
 0x34b   : > { %v4752_v5 = vadd.f32 %v4751_v43, %v4750_v3  ;;  %v4852_v41 = vrot.slane %v4851_v63, 2 }
 0x34d   : > { %v4753_v26 = vrot.slane %v4752_v5, 1  ;;  %v4853_v36 = vadd.f32 %v4852_v41, %v4851_v63 }
 0x34f   : > { %v4854_v37 = vrot.slane %v4853_v36, 1  ;;  %v4754_v30 = vadd.f32 %v4753_v26, %v4752_v5 }
 0x351   : > { %v4855_v58 = vadd.f32 %v4854_v37, %v4853_v36 }
 0x353   : > { %v4857_v31 = vsel %vm4856_vm0, %v4754_v30, %v4855_v58 }
 0x354   : > { %4859 = vst.msk [vmem:[%s181_s17] sm:$0x3] %vm4858_vm1, %v4857_v31 }
 0x355 PF: > { %s14_s12 = sadd.s32 1, %s5474_s12  }
 0x356   : > { %p11_p4 = scmp.ge.s32.totalorder %s14_s12, 4  }
 0x358   :  { %13 = sbr.rel (!%p11_p4) target bundleno = 1 (0x1), region = 80 }

</bundles_post_ra>
